<compile_context>
chip_gen: v6e
topology: v6e:2x2x1
jax: 0.10.0
libtpu: 0.0.40
codegen_flags: <defaults>
</compile_context>

<pallas_src>
import numpy as np
import jax
import jax.numpy as jnp
from jax.experimental import pallas as pl
from jax.experimental.pallas import tpu as pltpu

CP = 128  # lane-dense padded channel width


# ----------------------------------------------------------------------------
# In-kernel helpers (operate on VMEM-resident values, channels padded to CP)
# ----------------------------------------------------------------------------
def _conv3x3_im2col(xp, w, b, act):
    """3x3 'same' conv on a pre-padded (H+2, W+2, CP) activation.

    Returns the flat (H*W, CP) result (rows in (h, w) row-major order).
    """
    Hp, Wp, C = xp.shape
    H, W = Hp - 2, Wp - 2
    # im2col: 9 shifted taps, concatenated on the 128-aligned lane axis.
    taps = [xp[dy:dy + H, dx:dx + W, :].reshape(H * W, C)
            for dy in range(3) for dx in range(3)]
    patches = jnp.concatenate(taps, axis=-1)                    # (H*W, 9*CP)
    y = jnp.dot(patches, w, preferred_element_type=jnp.float32) + b
    if act == "relu":
        return jnp.maximum(y, 0.0)
    return jax.nn.sigmoid(y)                                    # final layer


def _maxpool2x2_flat(y, H, W):
    """2x2 / stride-2 max pool of a flat (H*W, C) activation -> (H/2*W/2, C)."""
    C = y.shape[-1]
    Hh, Wh = H // 2, W // 2
    z = y.reshape(Hh, 2 * W, C)                 # rows 2i and 2i+1 side by side
    z = jnp.maximum(z[:, :W, :], z[:, W:, :])   # (Hh, W, C): max over row pairs
    z = z.reshape(Hh * W, C).reshape(Hh * Wh, 2, C)
    return jnp.max(z, axis=1)                   # max over column pairs


# ----------------------------------------------------------------------------
# Fused autoencoder kernel (one batch element per grid step)
# ----------------------------------------------------------------------------
def _autoencoder_kernel(x_ref,
                        w1, b1, w2, b2, w3, b3, w4, b4, w5, b5,
                        up_half, up_full,
                        o_ref,
                        pad_f, pad_h, pad_q):
    H, W = x_ref.shape[1], x_ref.shape[2]
    Hh, Wh = H // 2, W // 2
    Hq, Wq = H // 4, W // 4

    # Zero the halo'd scratch buffers (the 1-pixel border stays zero; the
    # interiors are fully overwritten before each use).
    pad_f[...] = jnp.zeros_like(pad_f)
    pad_h[...] = jnp.zeros_like(pad_h)
    pad_q[...] = jnp.zeros_like(pad_q)

    # ---- encoder: conv(3->32) + relu, maxpool -------------------------------
    pad_f[1:H + 1, 1:W + 1, :] = x_ref[0]
    y = _conv3x3_im2col(pad_f[...], w1[...], b1[...], "relu")    # (H*W, CP)
    y = _maxpool2x2_flat(y, H, W)                                # (Hh*Wh, CP)

    # ---- encoder: conv(32->64) + relu, maxpool ------------------------------
    pad_h[1:Hh + 1, 1:Wh + 1, :] = y.reshape(Hh, Wh, CP)
    y = _conv3x3_im2col(pad_h[...], w2[...], b2[...], "relu")    # (Hh*Wh, CP)
    y = _maxpool2x2_flat(y, Hh, Wh)                              # (Hq*Wq, CP)

    # ---- decoder: conv(64->64) + relu, 2x nearest upsample (gather matmul) --
    pad_q[1:Hq + 1, 1:Wq + 1, :] = y.reshape(Hq, Wq, CP)
    y = _conv3x3_im2col(pad_q[...], w3[...], b3[...], "relu")    # (Hq*Wq, CP)
    y = jnp.dot(up_half[...], y, preferred_element_type=jnp.float32)  # (Hh*Wh, CP)

    # ---- decoder: conv(64->32) + relu, 2x nearest upsample ------------------
    pad_h[1:Hh + 1, 1:Wh + 1, :] = y.reshape(Hh, Wh, CP)
    y = _conv3x3_im2col(pad_h[...], w4[...], b4[...], "relu")    # (Hh*Wh, CP)
    y = jnp.dot(up_full[...], y, preferred_element_type=jnp.float32)  # (H*W, CP)

    # ---- decoder: conv(32->3) + sigmoid --------------------------------------
    pad_f[1:H + 1, 1:W + 1, :] = y.reshape(H, W, CP)
    y = _conv3x3_im2col(pad_f[...], w5[...], b5[...], "sigmoid")  # (H*W, CP)

    o_ref[0] = y.astype(o_ref.dtype)


# ----------------------------------------------------------------------------
# Host-side parameter packing / upsample gather matrices
# ----------------------------------------------------------------------------
def _pack_conv(w_oihw, b):
    """(Cout, Cin, 3, 3) PyTorch weight -> (9*CP, CP) im2col weight, padded."""
    cout, cin = w_oihw.shape[0], w_oihw.shape[1]
    wt = jnp.transpose(w_oihw, (2, 3, 1, 0))                       # (3,3,Cin,Cout)
    wt = jnp.pad(wt, ((0, 0), (0, 0), (0, CP - cin), (0, CP - cout)))
    wt = wt.reshape(9 * CP, CP).astype(jnp.float32)
    bp = jnp.pad(b, (0, CP - cout)).reshape(1, CP).astype(jnp.float32)
    return wt, bp


def _upsample_matrix(h_small, w_small):
    """0/1 gather matrix implementing nearest 2x upsample as a matmul."""
    hb, wb = 2 * h_small, 2 * w_small
    q = np.arange(hb * wb)
    r, s = q // wb, q % wb
    p = (r // 2) * w_small + (s // 2)
    m = np.zeros((hb * wb, h_small * w_small), np.float32)
    m[q, p] = 1.0
    return jnp.asarray(m)


# ----------------------------------------------------------------------------
# Full autoencoder forward (NCHW in / NCHW out, matching the PyTorch module)
# ----------------------------------------------------------------------------
def autoencoder_forward(params, x_nchw):
    N, cin, H, W = x_nchw.shape
    assert H % 4 == 0 and W % 4 == 0, "two 2x2 pools require H, W % 4 == 0"

    # NCHW -> NHWC and zero-pad channels to the lane-dense width CP.
    x = jnp.transpose(x_nchw, (0, 2, 3, 1)).astype(jnp.float32)
    x = jnp.pad(x, ((0, 0), (0, 0), (0, 0), (0, CP - cin)))

    packed = []
    for name in ("enc1", "enc2", "dec1", "dec2", "dec3"):
        packed += list(_pack_conv(params[name + "_w"], params[name + "_b"]))

    up_half = _upsample_matrix(H // 4, W // 4)   # (Hh*Wh, Hq*Wq)
    up_full = _upsample_matrix(H // 2, W // 2)   # (H*W,  Hh*Wh)

    w_spec = pl.BlockSpec((9 * CP, CP), lambda n: (0, 0))
    b_spec = pl.BlockSpec((1, CP), lambda n: (0, 0))
    in_specs = [pl.BlockSpec((1, H, W, CP), lambda n: (n, 0, 0, 0))]
    in_specs += [w_spec, b_spec] * 5
    in_specs += [pl.BlockSpec(up_half.shape, lambda n: (0, 0)),
                 pl.BlockSpec(up_full.shape, lambda n: (0, 0))]

    out = pl.pallas_call(
        _autoencoder_kernel,
        out_shape=jax.ShapeDtypeStruct((N, H * W, CP), jnp.float32),
        grid=(N,),
        in_specs=in_specs,
        out_specs=pl.BlockSpec((1, H * W, CP), lambda n: (n, 0, 0)),
        scratch_shapes=[
            pltpu.VMEM((H + 2, W + 2, CP), jnp.float32),
            pltpu.VMEM((H // 2 + 2, W // 2 + 2, CP), jnp.float32),
            pltpu.VMEM((H // 4 + 2, W // 4 + 2, CP), jnp.float32),
        ],
        compiler_params=pltpu.CompilerParams(
            dimension_semantics=("parallel",),
            vmem_limit_bytes=32 * 1024 * 1024,
        ),
    )(x, *packed, up_half, up_full)

    cout_final = params["dec3_w"].shape[0]
    y = out[:, :, :cout_final].reshape(N, H, W, cout_final)
    return jnp.transpose(y, (0, 3, 1, 2))  # NHWC -> NCHW


# ----------------------------------------------------------------------------
# Parameter init (deterministic, PyTorch-Conv2d-like uniform init)
# ----------------------------------------------------------------------------
def init_params(key):
    shapes = {
        "enc1": (32, 3),
        "enc2": (64, 32),
        "dec1": (64, 64),
        "dec2": (32, 64),
        "dec3": (3, 32),
    }
    params = {}
    for name, (cout, cin) in shapes.items():
        key, kw, kb = jax.random.split(key, 3)
        bound = 1.0 / np.sqrt(cin * 9)
        params[name + "_w"] = jax.random.uniform(
            kw, (cout, cin, 3, 3), jnp.float32, -bound, bound)
        params[name + "_b"] = jax.random.uniform(
            kb, (cout,), jnp.float32, -bound, bound)
    return params


# ----------------------------------------------------------------------------
# Pure-JAX reference (for correctness check only)
# ----------------------------------------------------------------------------
def _ref_conv(x, w, b):
    y = jax.lax.conv_general_dilated(
        x, w, window_strides=(1, 1), padding="SAME",
        dimension_numbers=("NCHW", "OIHW", "NCHW"))
    return y + b[None, :, None, None]


def _ref_maxpool(x):
    return jax.lax.reduce_window(x, -jnp.inf, jax.lax.max,
                                 (1, 1, 2, 2), (1, 1, 2, 2), "VALID")


def _ref_upsample(x):
    return jnp.repeat(jnp.repeat(x, 2, axis=2), 2, axis=3)


def reference_forward(params, x):
    x = jax.nn.relu(_ref_conv(x, params["enc1_w"], params["enc1_b"]))
    x = _ref_maxpool(x)
    x = jax.nn.relu(_ref_conv(x, params["enc2_w"], params["enc2_b"]))
    x = _ref_maxpool(x)
    x = jax.nn.relu(_ref_conv(x, params["dec1_w"], params["dec1_b"]))
    x = _ref_upsample(x)
    x = jax.nn.relu(_ref_conv(x, params["dec2_w"], params["dec2_b"]))
    x = _ref_upsample(x)
    x = jax.nn.sigmoid(_ref_conv(x, params["dec3_w"], params["dec3_b"]))
    return x


if __name__ == "__main__":
    key = jax.random.PRNGKey(0)
    kp, kx = jax.random.split(key)
    params = init_params(kp)

    # small input consistent with the module: NCHW, 3 input channels
    x = jax.random.normal(kx, (2, 3, 16, 16), jnp.float32)

    out = jax.jit(autoencoder_forward)(params, x)
    out = jax.block_until_ready(out)

    ref = jax.block_until_ready(jax.jit(reference_forward)(params, x))

    assert out.shape == (2, 3, 16, 16), out.shape
    np.testing.assert_allclose(np.asarray(out), np.asarray(ref),
                               rtol=1e-4, atol=1e-4)
    print("KERNEL_OK")
</pallas_src>

<mosaic_0001>
module attributes {stable_mosaic.version = 11 : i64} {
  func.func @_autoencoder_kernel(%arg0: i32, %arg1: memref<1x16x16x128xf32, #tpu.memory_space<vmem>>, %arg2: memref<1152x128xf32, #tpu.memory_space<vmem>>, %arg3: memref<1x128xf32, #tpu.memory_space<vmem>>, %arg4: memref<1152x128xf32, #tpu.memory_space<vmem>>, %arg5: memref<1x128xf32, #tpu.memory_space<vmem>>, %arg6: memref<1152x128xf32, #tpu.memory_space<vmem>>, %arg7: memref<1x128xf32, #tpu.memory_space<vmem>>, %arg8: memref<1152x128xf32, #tpu.memory_space<vmem>>, %arg9: memref<1x128xf32, #tpu.memory_space<vmem>>, %arg10: memref<1152x128xf32, #tpu.memory_space<vmem>>, %arg11: memref<1x128xf32, #tpu.memory_space<vmem>>, %arg12: memref<64x16xf32, #tpu.memory_space<vmem>>, %arg13: memref<256x64xf32, #tpu.memory_space<vmem>>, %arg14: memref<1x256x128xf32, #tpu.memory_space<vmem>>, %arg15: memref<18x18x128xf32, #tpu.memory_space<vmem>>, %arg16: memref<10x10x128xf32, #tpu.memory_space<vmem>>, %arg17: memref<6x6x128xf32, #tpu.memory_space<vmem>>) attributes {dimension_semantics = [#tpu.dimension_semantics<parallel>], iteration_bounds = array<i64: 2>, scalar_prefetch = 0 : i64, scratch_operands = 3 : i64, tpu.core_type = #tpu.core_type<tc>, window_params = [{transform_indices = @transform_0, window_bounds = array<i64: 1, 16, 16, 128>}, {pipeline_mode = #tpu.pipeline_mode<synchronous>, transform_indices = @transform_1, window_bounds = array<i64: 1152, 128>}, {pipeline_mode = #tpu.pipeline_mode<synchronous>, transform_indices = @transform_2, window_bounds = array<i64: 1, 128>}, {pipeline_mode = #tpu.pipeline_mode<synchronous>, transform_indices = @transform_3, window_bounds = array<i64: 1152, 128>}, {pipeline_mode = #tpu.pipeline_mode<synchronous>, transform_indices = @transform_4, window_bounds = array<i64: 1, 128>}, {pipeline_mode = #tpu.pipeline_mode<synchronous>, transform_indices = @transform_5, window_bounds = array<i64: 1152, 128>}, {pipeline_mode = #tpu.pipeline_mode<synchronous>, transform_indices = @transform_6, window_bounds = array<i64: 1, 128>}, {pipeline_mode = #tpu.pipeline_mode<synchronous>, transform_indices = @transform_7, window_bounds = array<i64: 1152, 128>}, {pipeline_mode = #tpu.pipeline_mode<synchronous>, transform_indices = @transform_8, window_bounds = array<i64: 1, 128>}, {pipeline_mode = #tpu.pipeline_mode<synchronous>, transform_indices = @transform_9, window_bounds = array<i64: 1152, 128>}, {pipeline_mode = #tpu.pipeline_mode<synchronous>, transform_indices = @transform_10, window_bounds = array<i64: 1, 128>}, {pipeline_mode = #tpu.pipeline_mode<synchronous>, transform_indices = @transform_11, window_bounds = array<i64: 64, 16>}, {pipeline_mode = #tpu.pipeline_mode<synchronous>, transform_indices = @transform_12, window_bounds = array<i64: 256, 64>}, {transform_indices = @transform_13, window_bounds = array<i64: 1, 256, 128>}]} {
    %cst = arith.constant 0.000000e+00 : f32
    %0 = vector.broadcast %cst : f32 to vector<18x18x128xf32>
    %c0 = arith.constant 0 : index
    %c0_0 = arith.constant 0 : index
    %c0_1 = arith.constant 0 : index
    %1 = vector.load %arg15[%c0, %c0_0, %c0_1] : memref<18x18x128xf32, #tpu.memory_space<vmem>>, vector<18x18x128xf32>
    tpu.vector_store %arg15[%c0, %c0_0, %c0_1], %0 {strides = array<i32>} : memref<18x18x128xf32, #tpu.memory_space<vmem>>, vector<18x18x128xf32>,
    %cst_2 = arith.constant 0.000000e+00 : f32
    %2 = vector.broadcast %cst_2 : f32 to vector<10x10x128xf32>
    %c0_3 = arith.constant 0 : index
    %c0_4 = arith.constant 0 : index
    %c0_5 = arith.constant 0 : index
    %3 = vector.load %arg16[%c0_3, %c0_4, %c0_5] : memref<10x10x128xf32, #tpu.memory_space<vmem>>, vector<10x10x128xf32>
    tpu.vector_store %arg16[%c0_3, %c0_4, %c0_5], %2 {strides = array<i32>} : memref<10x10x128xf32, #tpu.memory_space<vmem>>, vector<10x10x128xf32>,
    %cst_6 = arith.constant 0.000000e+00 : f32
    %4 = vector.broadcast %cst_6 : f32 to vector<6x6x128xf32>
    %c0_7 = arith.constant 0 : index
    %c0_8 = arith.constant 0 : index
    %c0_9 = arith.constant 0 : index
    %5 = vector.load %arg17[%c0_7, %c0_8, %c0_9] : memref<6x6x128xf32, #tpu.memory_space<vmem>>, vector<6x6x128xf32>
    tpu.vector_store %arg17[%c0_7, %c0_8, %c0_9], %4 {strides = array<i32>} : memref<6x6x128xf32, #tpu.memory_space<vmem>>, vector<6x6x128xf32>,
    %c0_10 = arith.constant 0 : index
    %c0_11 = arith.constant 0 : index
    %c0_12 = arith.constant 0 : index
    %c0_13 = arith.constant 0 : index
    %6 = vector.load %arg1[%c0_10, %c0_11, %c0_12, %c0_13] : memref<1x16x16x128xf32, #tpu.memory_space<vmem>>, vector<1x16x16x128xf32>
    %7 = vector.shape_cast %6 : vector<1x16x16x128xf32> to vector<16x16x128xf32>
    %c1 = arith.constant 1 : index
    %c1_14 = arith.constant 1 : index
    %c0_15 = arith.constant 0 : index
    %8 = vector.load %arg15[%c1, %c1_14, %c0_15] : memref<18x18x128xf32, #tpu.memory_space<vmem>>, vector<16x16x128xf32>
    tpu.vector_store %arg15[%c1, %c1_14, %c0_15], %7 {strides = array<i32>} : memref<18x18x128xf32, #tpu.memory_space<vmem>>, vector<16x16x128xf32>,
    %c0_16 = arith.constant 0 : index
    %c0_17 = arith.constant 0 : index
    %c0_18 = arith.constant 0 : index
    %9 = vector.load %arg15[%c0_16, %c0_17, %c0_18] : memref<18x18x128xf32, #tpu.memory_space<vmem>>, vector<18x18x128xf32>
    %c0_19 = arith.constant 0 : index
    %c0_20 = arith.constant 0 : index
    %10 = vector.load %arg2[%c0_19, %c0_20] : memref<1152x128xf32, #tpu.memory_space<vmem>>, vector<1152x128xf32>
    %c0_21 = arith.constant 0 : index
    %c0_22 = arith.constant 0 : index
    %11 = vector.load %arg3[%c0_21, %c0_22] : memref<1x128xf32, #tpu.memory_space<vmem>>, vector<1x128xf32>
    %12 = vector.extract_strided_slice %9 {offsets = [0, 0, 0], sizes = [16, 16, 128], strides = [1, 1, 1]} : vector<18x18x128xf32> to vector<16x16x128xf32>
    %13 = vector.shape_cast %12 : vector<16x16x128xf32> to vector<256x128xf32>
    %14 = vector.extract_strided_slice %9 {offsets = [0, 1, 0], sizes = [16, 16, 128], strides = [1, 1, 1]} : vector<18x18x128xf32> to vector<16x16x128xf32>
    %15 = vector.shape_cast %14 : vector<16x16x128xf32> to vector<256x128xf32>
    %16 = vector.extract_strided_slice %9 {offsets = [0, 2, 0], sizes = [16, 16, 128], strides = [1, 1, 1]} : vector<18x18x128xf32> to vector<16x16x128xf32>
    %17 = vector.shape_cast %16 : vector<16x16x128xf32> to vector<256x128xf32>
    %18 = vector.extract_strided_slice %9 {offsets = [1, 0, 0], sizes = [16, 16, 128], strides = [1, 1, 1]} : vector<18x18x128xf32> to vector<16x16x128xf32>
    %19 = vector.shape_cast %18 : vector<16x16x128xf32> to vector<256x128xf32>
    %20 = vector.extract_strided_slice %9 {offsets = [1, 1, 0], sizes = [16, 16, 128], strides = [1, 1, 1]} : vector<18x18x128xf32> to vector<16x16x128xf32>
    %21 = vector.shape_cast %20 : vector<16x16x128xf32> to vector<256x128xf32>
    %22 = vector.extract_strided_slice %9 {offsets = [1, 2, 0], sizes = [16, 16, 128], strides = [1, 1, 1]} : vector<18x18x128xf32> to vector<16x16x128xf32>
    %23 = vector.shape_cast %22 : vector<16x16x128xf32> to vector<256x128xf32>
    %24 = vector.extract_strided_slice %9 {offsets = [2, 0, 0], sizes = [16, 16, 128], strides = [1, 1, 1]} : vector<18x18x128xf32> to vector<16x16x128xf32>
    %25 = vector.shape_cast %24 : vector<16x16x128xf32> to vector<256x128xf32>
    %26 = vector.extract_strided_slice %9 {offsets = [2, 1, 0], sizes = [16, 16, 128], strides = [1, 1, 1]} : vector<18x18x128xf32> to vector<16x16x128xf32>
    %27 = vector.shape_cast %26 : vector<16x16x128xf32> to vector<256x128xf32>
    %28 = vector.extract_strided_slice %9 {offsets = [2, 2, 0], sizes = [16, 16, 128], strides = [1, 1, 1]} : vector<18x18x128xf32> to vector<16x16x128xf32>
    %29 = vector.shape_cast %28 : vector<16x16x128xf32> to vector<256x128xf32>
    %30 = tpu.concatenate %13, %15, %17, %19, %21, %23, %25, %27, %29 in 1 : vector<256x128xf32>, vector<256x128xf32>, vector<256x128xf32>, vector<256x128xf32>, vector<256x128xf32>, vector<256x128xf32>, vector<256x128xf32>, vector<256x128xf32>, vector<256x128xf32> -> vector<256x1152xf32>
    %cst_23 = arith.constant dense<0.000000e+00> : vector<256x128xf32>
    %31 = tpu.matmul %30, %10, %cst_23 {dimension_numbers = #tpu.dot_dimension_numbers<[1], [0], [0], [1], [0, 0, 1, 1], [], []>} : vector<256x1152xf32>, vector<1152x128xf32>, vector<256x128xf32> -> vector<256x128xf32>
    %32 = vector.broadcast %11 : vector<1x128xf32> to vector<256x128xf32>
    %33 = arith.addf %31, %32 : vector<256x128xf32>
    %cst_24 = arith.constant 0.000000e+00 : f32
    %34 = vector.broadcast %cst_24 : f32 to vector<256x128xf32>
    %35 = arith.maximumf %33, %34 : vector<256x128xf32>
    %36 = vector.shape_cast %35 : vector<256x128xf32> to vector<8x32x128xf32>
    %37 = vector.extract_strided_slice %36 {offsets = [0, 0, 0], sizes = [8, 16, 128], strides = [1, 1, 1]} : vector<8x32x128xf32> to vector<8x16x128xf32>
    %38 = vector.extract_strided_slice %36 {offsets = [0, 16, 0], sizes = [8, 16, 128], strides = [1, 1, 1]} : vector<8x32x128xf32> to vector<8x16x128xf32>
    %39 = arith.maximumf %37, %38 : vector<8x16x128xf32>
    %40 = vector.shape_cast %39 : vector<8x16x128xf32> to vector<128x128xf32>
    %41 = vector.shape_cast %40 : vector<128x128xf32> to vector<64x2x128xf32>
    %cst_25 = arith.constant dense<0xFF800000> : vector<64x128xf32>
    %42 = vector.multi_reduction <maximumf>, %41, %cst_25 [1] : vector<64x2x128xf32> to vector<64x128xf32>
    %43 = vector.shape_cast %42 : vector<64x128xf32> to vector<8x8x128xf32>
    %c1_26 = arith.constant 1 : index
    %c1_27 = arith.constant 1 : index
    %c0_28 = arith.constant 0 : index
    %44 = vector.load %arg16[%c1_26, %c1_27, %c0_28] : memref<10x10x128xf32, #tpu.memory_space<vmem>>, vector<8x8x128xf32>
    tpu.vector_store %arg16[%c1_26, %c1_27, %c0_28], %43 {strides = array<i32>} : memref<10x10x128xf32, #tpu.memory_space<vmem>>, vector<8x8x128xf32>,
    %c0_29 = arith.constant 0 : index
    %c0_30 = arith.constant 0 : index
    %c0_31 = arith.constant 0 : index
    %45 = vector.load %arg16[%c0_29, %c0_30, %c0_31] : memref<10x10x128xf32, #tpu.memory_space<vmem>>, vector<10x10x128xf32>
    %c0_32 = arith.constant 0 : index
    %c0_33 = arith.constant 0 : index
    %46 = vector.load %arg4[%c0_32, %c0_33] : memref<1152x128xf32, #tpu.memory_space<vmem>>, vector<1152x128xf32>
    %c0_34 = arith.constant 0 : index
    %c0_35 = arith.constant 0 : index
    %47 = vector.load %arg5[%c0_34, %c0_35] : memref<1x128xf32, #tpu.memory_space<vmem>>, vector<1x128xf32>
    %48 = vector.extract_strided_slice %45 {offsets = [0, 0, 0], sizes = [8, 8, 128], strides = [1, 1, 1]} : vector<10x10x128xf32> to vector<8x8x128xf32>
    %49 = vector.shape_cast %48 : vector<8x8x128xf32> to vector<64x128xf32>
    %50 = vector.extract_strided_slice %45 {offsets = [0, 1, 0], sizes = [8, 8, 128], strides = [1, 1, 1]} : vector<10x10x128xf32> to vector<8x8x128xf32>
    %51 = vector.shape_cast %50 : vector<8x8x128xf32> to vector<64x128xf32>
    %52 = vector.extract_strided_slice %45 {offsets = [0, 2, 0], sizes = [8, 8, 128], strides = [1, 1, 1]} : vector<10x10x128xf32> to vector<8x8x128xf32>
    %53 = vector.shape_cast %52 : vector<8x8x128xf32> to vector<64x128xf32>
    %54 = vector.extract_strided_slice %45 {offsets = [1, 0, 0], sizes = [8, 8, 128], strides = [1, 1, 1]} : vector<10x10x128xf32> to vector<8x8x128xf32>
    %55 = vector.shape_cast %54 : vector<8x8x128xf32> to vector<64x128xf32>
    %56 = vector.extract_strided_slice %45 {offsets = [1, 1, 0], sizes = [8, 8, 128], strides = [1, 1, 1]} : vector<10x10x128xf32> to vector<8x8x128xf32>
    %57 = vector.shape_cast %56 : vector<8x8x128xf32> to vector<64x128xf32>
    %58 = vector.extract_strided_slice %45 {offsets = [1, 2, 0], sizes = [8, 8, 128], strides = [1, 1, 1]} : vector<10x10x128xf32> to vector<8x8x128xf32>
    %59 = vector.shape_cast %58 : vector<8x8x128xf32> to vector<64x128xf32>
    %60 = vector.extract_strided_slice %45 {offsets = [2, 0, 0], sizes = [8, 8, 128], strides = [1, 1, 1]} : vector<10x10x128xf32> to vector<8x8x128xf32>
    %61 = vector.shape_cast %60 : vector<8x8x128xf32> to vector<64x128xf32>
    %62 = vector.extract_strided_slice %45 {offsets = [2, 1, 0], sizes = [8, 8, 128], strides = [1, 1, 1]} : vector<10x10x128xf32> to vector<8x8x128xf32>
    %63 = vector.shape_cast %62 : vector<8x8x128xf32> to vector<64x128xf32>
    %64 = vector.extract_strided_slice %45 {offsets = [2, 2, 0], sizes = [8, 8, 128], strides = [1, 1, 1]} : vector<10x10x128xf32> to vector<8x8x128xf32>
    %65 = vector.shape_cast %64 : vector<8x8x128xf32> to vector<64x128xf32>
    %66 = tpu.concatenate %49, %51, %53, %55, %57, %59, %61, %63, %65 in 1 : vector<64x128xf32>, vector<64x128xf32>, vector<64x128xf32>, vector<64x128xf32>, vector<64x128xf32>, vector<64x128xf32>, vector<64x128xf32>, vector<64x128xf32>, vector<64x128xf32> -> vector<64x1152xf32>
    %cst_36 = arith.constant dense<0.000000e+00> : vector<64x128xf32>
    %67 = tpu.matmul %66, %46, %cst_36 {dimension_numbers = #tpu.dot_dimension_numbers<[1], [0], [0], [1], [0, 0, 1, 1], [], []>} : vector<64x1152xf32>, vector<1152x128xf32>, vector<64x128xf32> -> vector<64x128xf32>
    %68 = vector.broadcast %47 : vector<1x128xf32> to vector<64x128xf32>
    %69 = arith.addf %67, %68 : vector<64x128xf32>
    %cst_37 = arith.constant 0.000000e+00 : f32
    %70 = vector.broadcast %cst_37 : f32 to vector<64x128xf32>
    %71 = arith.maximumf %69, %70 : vector<64x128xf32>
    %72 = vector.shape_cast %71 : vector<64x128xf32> to vector<4x16x128xf32>
    %73 = vector.extract_strided_slice %72 {offsets = [0, 0, 0], sizes = [4, 8, 128], strides = [1, 1, 1]} : vector<4x16x128xf32> to vector<4x8x128xf32>
    %74 = vector.extract_strided_slice %72 {offsets = [0, 8, 0], sizes = [4, 8, 128], strides = [1, 1, 1]} : vector<4x16x128xf32> to vector<4x8x128xf32>
    %75 = arith.maximumf %73, %74 : vector<4x8x128xf32>
    %76 = vector.shape_cast %75 : vector<4x8x128xf32> to vector<32x128xf32>
    %77 = vector.shape_cast %76 : vector<32x128xf32> to vector<16x2x128xf32>
    %cst_38 = arith.constant dense<0xFF800000> : vector<16x128xf32>
    %78 = vector.multi_reduction <maximumf>, %77, %cst_38 [1] : vector<16x2x128xf32> to vector<16x128xf32>
    %79 = vector.shape_cast %78 : vector<16x128xf32> to vector<4x4x128xf32>
    %c1_39 = arith.constant 1 : index
    %c1_40 = arith.constant 1 : index
    %c0_41 = arith.constant 0 : index
    %80 = vector.load %arg17[%c1_39, %c1_40, %c0_41] : memref<6x6x128xf32, #tpu.memory_space<vmem>>, vector<4x4x128xf32>
    tpu.vector_store %arg17[%c1_39, %c1_40, %c0_41], %79 {strides = array<i32>} : memref<6x6x128xf32, #tpu.memory_space<vmem>>, vector<4x4x128xf32>,
    %c0_42 = arith.constant 0 : index
    %c0_43 = arith.constant 0 : index
    %c0_44 = arith.constant 0 : index
    %81 = vector.load %arg17[%c0_42, %c0_43, %c0_44] : memref<6x6x128xf32, #tpu.memory_space<vmem>>, vector<6x6x128xf32>
    %c0_45 = arith.constant 0 : index
    %c0_46 = arith.constant 0 : index
    %82 = vector.load %arg6[%c0_45, %c0_46] : memref<1152x128xf32, #tpu.memory_space<vmem>>, vector<1152x128xf32>
    %c0_47 = arith.constant 0 : index
    %c0_48 = arith.constant 0 : index
    %83 = vector.load %arg7[%c0_47, %c0_48] : memref<1x128xf32, #tpu.memory_space<vmem>>, vector<1x128xf32>
    %84 = vector.extract_strided_slice %81 {offsets = [0, 0, 0], sizes = [4, 4, 128], strides = [1, 1, 1]} : vector<6x6x128xf32> to vector<4x4x128xf32>
    %85 = vector.shape_cast %84 : vector<4x4x128xf32> to vector<16x128xf32>
    %86 = vector.extract_strided_slice %81 {offsets = [0, 1, 0], sizes = [4, 4, 128], strides = [1, 1, 1]} : vector<6x6x128xf32> to vector<4x4x128xf32>
    %87 = vector.shape_cast %86 : vector<4x4x128xf32> to vector<16x128xf32>
    %88 = vector.extract_strided_slice %81 {offsets = [0, 2, 0], sizes = [4, 4, 128], strides = [1, 1, 1]} : vector<6x6x128xf32> to vector<4x4x128xf32>
    %89 = vector.shape_cast %88 : vector<4x4x128xf32> to vector<16x128xf32>
    %90 = vector.extract_strided_slice %81 {offsets = [1, 0, 0], sizes = [4, 4, 128], strides = [1, 1, 1]} : vector<6x6x128xf32> to vector<4x4x128xf32>
    %91 = vector.shape_cast %90 : vector<4x4x128xf32> to vector<16x128xf32>
    %92 = vector.extract_strided_slice %81 {offsets = [1, 1, 0], sizes = [4, 4, 128], strides = [1, 1, 1]} : vector<6x6x128xf32> to vector<4x4x128xf32>
    %93 = vector.shape_cast %92 : vector<4x4x128xf32> to vector<16x128xf32>
    %94 = vector.extract_strided_slice %81 {offsets = [1, 2, 0], sizes = [4, 4, 128], strides = [1, 1, 1]} : vector<6x6x128xf32> to vector<4x4x128xf32>
    %95 = vector.shape_cast %94 : vector<4x4x128xf32> to vector<16x128xf32>
    %96 = vector.extract_strided_slice %81 {offsets = [2, 0, 0], sizes = [4, 4, 128], strides = [1, 1, 1]} : vector<6x6x128xf32> to vector<4x4x128xf32>
    %97 = vector.shape_cast %96 : vector<4x4x128xf32> to vector<16x128xf32>
    %98 = vector.extract_strided_slice %81 {offsets = [2, 1, 0], sizes = [4, 4, 128], strides = [1, 1, 1]} : vector<6x6x128xf32> to vector<4x4x128xf32>
    %99 = vector.shape_cast %98 : vector<4x4x128xf32> to vector<16x128xf32>
    %100 = vector.extract_strided_slice %81 {offsets = [2, 2, 0], sizes = [4, 4, 128], strides = [1, 1, 1]} : vector<6x6x128xf32> to vector<4x4x128xf32>
    %101 = vector.shape_cast %100 : vector<4x4x128xf32> to vector<16x128xf32>
    %102 = tpu.concatenate %85, %87, %89, %91, %93, %95, %97, %99, %101 in 1 : vector<16x128xf32>, vector<16x128xf32>, vector<16x128xf32>, vector<16x128xf32>, vector<16x128xf32>, vector<16x128xf32>, vector<16x128xf32>, vector<16x128xf32>, vector<16x128xf32> -> vector<16x1152xf32>
    %cst_49 = arith.constant dense<0.000000e+00> : vector<16x128xf32>
    %103 = tpu.matmul %102, %82, %cst_49 {dimension_numbers = #tpu.dot_dimension_numbers<[1], [0], [0], [1], [0, 0, 1, 1], [], []>} : vector<16x1152xf32>, vector<1152x128xf32>, vector<16x128xf32> -> vector<16x128xf32>
    %104 = vector.broadcast %83 : vector<1x128xf32> to vector<16x128xf32>
    %105 = arith.addf %103, %104 : vector<16x128xf32>
    %cst_50 = arith.constant 0.000000e+00 : f32
    %106 = vector.broadcast %cst_50 : f32 to vector<16x128xf32>
    %107 = arith.maximumf %105, %106 : vector<16x128xf32>
    %c0_51 = arith.constant 0 : index
    %c0_52 = arith.constant 0 : index
    %108 = vector.load %arg12[%c0_51, %c0_52] : memref<64x16xf32, #tpu.memory_space<vmem>>, vector<64x16xf32>
    %cst_53 = arith.constant dense<0.000000e+00> : vector<64x128xf32>
    %109 = tpu.matmul %108, %107, %cst_53 {dimension_numbers = #tpu.dot_dimension_numbers<[1], [0], [0], [1], [0, 0, 1, 1], [], []>} : vector<64x16xf32>, vector<16x128xf32>, vector<64x128xf32> -> vector<64x128xf32>
    %110 = vector.shape_cast %109 : vector<64x128xf32> to vector<8x8x128xf32>
    %c1_54 = arith.constant 1 : index
    %c1_55 = arith.constant 1 : index
    %c0_56 = arith.constant 0 : index
    %111 = vector.load %arg16[%c1_54, %c1_55, %c0_56] : memref<10x10x128xf32, #tpu.memory_space<vmem>>, vector<8x8x128xf32>
    tpu.vector_store %arg16[%c1_54, %c1_55, %c0_56], %110 {strides = array<i32>} : memref<10x10x128xf32, #tpu.memory_space<vmem>>, vector<8x8x128xf32>,
    %c0_57 = arith.constant 0 : index
    %c0_58 = arith.constant 0 : index
    %c0_59 = arith.constant 0 : index
    %112 = vector.load %arg16[%c0_57, %c0_58, %c0_59] : memref<10x10x128xf32, #tpu.memory_space<vmem>>, vector<10x10x128xf32>
    %c0_60 = arith.constant 0 : index
    %c0_61 = arith.constant 0 : index
    %113 = vector.load %arg8[%c0_60, %c0_61] : memref<1152x128xf32, #tpu.memory_space<vmem>>, vector<1152x128xf32>
    %c0_62 = arith.constant 0 : index
    %c0_63 = arith.constant 0 : index
    %114 = vector.load %arg9[%c0_62, %c0_63] : memref<1x128xf32, #tpu.memory_space<vmem>>, vector<1x128xf32>
    %115 = vector.extract_strided_slice %112 {offsets = [0, 0, 0], sizes = [8, 8, 128], strides = [1, 1, 1]} : vector<10x10x128xf32> to vector<8x8x128xf32>
    %116 = vector.shape_cast %115 : vector<8x8x128xf32> to vector<64x128xf32>
    %117 = vector.extract_strided_slice %112 {offsets = [0, 1, 0], sizes = [8, 8, 128], strides = [1, 1, 1]} : vector<10x10x128xf32> to vector<8x8x128xf32>
    %118 = vector.shape_cast %117 : vector<8x8x128xf32> to vector<64x128xf32>
    %119 = vector.extract_strided_slice %112 {offsets = [0, 2, 0], sizes = [8, 8, 128], strides = [1, 1, 1]} : vector<10x10x128xf32> to vector<8x8x128xf32>
    %120 = vector.shape_cast %119 : vector<8x8x128xf32> to vector<64x128xf32>
    %121 = vector.extract_strided_slice %112 {offsets = [1, 0, 0], sizes = [8, 8, 128], strides = [1, 1, 1]} : vector<10x10x128xf32> to vector<8x8x128xf32>
    %122 = vector.shape_cast %121 : vector<8x8x128xf32> to vector<64x128xf32>
    %123 = vector.extract_strided_slice %112 {offsets = [1, 1, 0], sizes = [8, 8, 128], strides = [1, 1, 1]} : vector<10x10x128xf32> to vector<8x8x128xf32>
    %124 = vector.shape_cast %123 : vector<8x8x128xf32> to vector<64x128xf32>
    %125 = vector.extract_strided_slice %112 {offsets = [1, 2, 0], sizes = [8, 8, 128], strides = [1, 1, 1]} : vector<10x10x128xf32> to vector<8x8x128xf32>
    %126 = vector.shape_cast %125 : vector<8x8x128xf32> to vector<64x128xf32>
    %127 = vector.extract_strided_slice %112 {offsets = [2, 0, 0], sizes = [8, 8, 128], strides = [1, 1, 1]} : vector<10x10x128xf32> to vector<8x8x128xf32>
    %128 = vector.shape_cast %127 : vector<8x8x128xf32> to vector<64x128xf32>
    %129 = vector.extract_strided_slice %112 {offsets = [2, 1, 0], sizes = [8, 8, 128], strides = [1, 1, 1]} : vector<10x10x128xf32> to vector<8x8x128xf32>
    %130 = vector.shape_cast %129 : vector<8x8x128xf32> to vector<64x128xf32>
    %131 = vector.extract_strided_slice %112 {offsets = [2, 2, 0], sizes = [8, 8, 128], strides = [1, 1, 1]} : vector<10x10x128xf32> to vector<8x8x128xf32>
    %132 = vector.shape_cast %131 : vector<8x8x128xf32> to vector<64x128xf32>
    %133 = tpu.concatenate %116, %118, %120, %122, %124, %126, %128, %130, %132 in 1 : vector<64x128xf32>, vector<64x128xf32>, vector<64x128xf32>, vector<64x128xf32>, vector<64x128xf32>, vector<64x128xf32>, vector<64x128xf32>, vector<64x128xf32>, vector<64x128xf32> -> vector<64x1152xf32>
    %cst_64 = arith.constant dense<0.000000e+00> : vector<64x128xf32>
    %134 = tpu.matmul %133, %113, %cst_64 {dimension_numbers = #tpu.dot_dimension_numbers<[1], [0], [0], [1], [0, 0, 1, 1], [], []>} : vector<64x1152xf32>, vector<1152x128xf32>, vector<64x128xf32> -> vector<64x128xf32>
    %135 = vector.broadcast %114 : vector<1x128xf32> to vector<64x128xf32>
    %136 = arith.addf %134, %135 : vector<64x128xf32>
    %cst_65 = arith.constant 0.000000e+00 : f32
    %137 = vector.broadcast %cst_65 : f32 to vector<64x128xf32>
    %138 = arith.maximumf %136, %137 : vector<64x128xf32>
    %c0_66 = arith.constant 0 : index
    %c0_67 = arith.constant 0 : index
    %139 = vector.load %arg13[%c0_66, %c0_67] : memref<256x64xf32, #tpu.memory_space<vmem>>, vector<256x64xf32>
    %cst_68 = arith.constant dense<0.000000e+00> : vector<256x128xf32>
    %140 = tpu.matmul %139, %138, %cst_68 {dimension_numbers = #tpu.dot_dimension_numbers<[1], [0], [0], [1], [0, 0, 1, 1], [], []>} : vector<256x64xf32>, vector<64x128xf32>, vector<256x128xf32> -> vector<256x128xf32>
    %141 = vector.shape_cast %140 : vector<256x128xf32> to vector<16x16x128xf32>
    %c1_69 = arith.constant 1 : index
    %c1_70 = arith.constant 1 : index
    %c0_71 = arith.constant 0 : index
    %142 = vector.load %arg15[%c1_69, %c1_70, %c0_71] : memref<18x18x128xf32, #tpu.memory_space<vmem>>, vector<16x16x128xf32>
    tpu.vector_store %arg15[%c1_69, %c1_70, %c0_71], %141 {strides = array<i32>} : memref<18x18x128xf32, #tpu.memory_space<vmem>>, vector<16x16x128xf32>,
    %c0_72 = arith.constant 0 : index
    %c0_73 = arith.constant 0 : index
    %c0_74 = arith.constant 0 : index
    %143 = vector.load %arg15[%c0_72, %c0_73, %c0_74] : memref<18x18x128xf32, #tpu.memory_space<vmem>>, vector<18x18x128xf32>
    %c0_75 = arith.constant 0 : index
    %c0_76 = arith.constant 0 : index
    %144 = vector.load %arg10[%c0_75, %c0_76] : memref<1152x128xf32, #tpu.memory_space<vmem>>, vector<1152x128xf32>
    %c0_77 = arith.constant 0 : index
    %c0_78 = arith.constant 0 : index
    %145 = vector.load %arg11[%c0_77, %c0_78] : memref<1x128xf32, #tpu.memory_space<vmem>>, vector<1x128xf32>
    %146 = vector.extract_strided_slice %143 {offsets = [0, 0, 0], sizes = [16, 16, 128], strides = [1, 1, 1]} : vector<18x18x128xf32> to vector<16x16x128xf32>
    %147 = vector.shape_cast %146 : vector<16x16x128xf32> to vector<256x128xf32>
    %148 = vector.extract_strided_slice %143 {offsets = [0, 1, 0], sizes = [16, 16, 128], strides = [1, 1, 1]} : vector<18x18x128xf32> to vector<16x16x128xf32>
    %149 = vector.shape_cast %148 : vector<16x16x128xf32> to vector<256x128xf32>
    %150 = vector.extract_strided_slice %143 {offsets = [0, 2, 0], sizes = [16, 16, 128], strides = [1, 1, 1]} : vector<18x18x128xf32> to vector<16x16x128xf32>
    %151 = vector.shape_cast %150 : vector<16x16x128xf32> to vector<256x128xf32>
    %152 = vector.extract_strided_slice %143 {offsets = [1, 0, 0], sizes = [16, 16, 128], strides = [1, 1, 1]} : vector<18x18x128xf32> to vector<16x16x128xf32>
    %153 = vector.shape_cast %152 : vector<16x16x128xf32> to vector<256x128xf32>
    %154 = vector.extract_strided_slice %143 {offsets = [1, 1, 0], sizes = [16, 16, 128], strides = [1, 1, 1]} : vector<18x18x128xf32> to vector<16x16x128xf32>
    %155 = vector.shape_cast %154 : vector<16x16x128xf32> to vector<256x128xf32>
    %156 = vector.extract_strided_slice %143 {offsets = [1, 2, 0], sizes = [16, 16, 128], strides = [1, 1, 1]} : vector<18x18x128xf32> to vector<16x16x128xf32>
    %157 = vector.shape_cast %156 : vector<16x16x128xf32> to vector<256x128xf32>
    %158 = vector.extract_strided_slice %143 {offsets = [2, 0, 0], sizes = [16, 16, 128], strides = [1, 1, 1]} : vector<18x18x128xf32> to vector<16x16x128xf32>
    %159 = vector.shape_cast %158 : vector<16x16x128xf32> to vector<256x128xf32>
    %160 = vector.extract_strided_slice %143 {offsets = [2, 1, 0], sizes = [16, 16, 128], strides = [1, 1, 1]} : vector<18x18x128xf32> to vector<16x16x128xf32>
    %161 = vector.shape_cast %160 : vector<16x16x128xf32> to vector<256x128xf32>
    %162 = vector.extract_strided_slice %143 {offsets = [2, 2, 0], sizes = [16, 16, 128], strides = [1, 1, 1]} : vector<18x18x128xf32> to vector<16x16x128xf32>
    %163 = vector.shape_cast %162 : vector<16x16x128xf32> to vector<256x128xf32>
    %164 = tpu.concatenate %147, %149, %151, %153, %155, %157, %159, %161, %163 in 1 : vector<256x128xf32>, vector<256x128xf32>, vector<256x128xf32>, vector<256x128xf32>, vector<256x128xf32>, vector<256x128xf32>, vector<256x128xf32>, vector<256x128xf32>, vector<256x128xf32> -> vector<256x1152xf32>
    %cst_79 = arith.constant dense<0.000000e+00> : vector<256x128xf32>
    %165 = tpu.matmul %164, %144, %cst_79 {dimension_numbers = #tpu.dot_dimension_numbers<[1], [0], [0], [1], [0, 0, 1, 1], [], []>} : vector<256x1152xf32>, vector<1152x128xf32>, vector<256x128xf32> -> vector<256x128xf32>
    %166 = vector.broadcast %145 : vector<1x128xf32> to vector<256x128xf32>
    %167 = arith.addf %165, %166 : vector<256x128xf32>
    %168 = arith.negf %167 : vector<256x128xf32>
    %169 = math.exp %168 : vector<256x128xf32>
    %cst_80 = arith.constant 1.000000e+00 : f32
    %170 = vector.broadcast %cst_80 : f32 to vector<256x128xf32>
    %171 = arith.addf %170, %169 : vector<256x128xf32>
    %172 = arith.divf %170, %171 : vector<256x128xf32>
    %c0_81 = arith.constant 0 : index
    %c0_82 = arith.constant 0 : index
    %c0_83 = arith.constant 0 : index
    %173 = vector.load %arg14[%c0_81, %c0_82, %c0_83] : memref<1x256x128xf32, #tpu.memory_space<vmem>>, vector<1x256x128xf32>
    %174 = vector.shape_cast %173 : vector<1x256x128xf32> to vector<256x128xf32>
    %175 = vector.shape_cast %172 : vector<256x128xf32> to vector<1x256x128xf32>
    tpu.vector_store %arg14[%c0_81, %c0_82, %c0_83], %175 {strides = array<i32>} : memref<1x256x128xf32, #tpu.memory_space<vmem>>, vector<1x256x128xf32>,
    return
  }
  func.func @transform_0(%arg0: i32) -> (i32, i32, i32, i32) {
    %c0_i32 = arith.constant 0 : i32
    %c0_i32_0 = arith.constant 0 : i32
    %c0_i32_1 = arith.constant 0 : i32
    %c0_i32_2 = arith.constant 0 : i32
    return %arg0, %c0_i32, %c0_i32_0, %c0_i32_1 : i32, i32, i32, i32
  }
  func.func @transform_1(%arg0: i32) -> (i32, i32) {
    %c0_i32 = arith.constant 0 : i32
    %c0_i32_0 = arith.constant 0 : i32
    %c0_i32_1 = arith.constant 0 : i32
    return %c0_i32, %c0_i32_0 : i32, i32
  }
  func.func @transform_2(%arg0: i32) -> (i32, i32) {
    %c0_i32 = arith.constant 0 : i32
    %c0_i32_0 = arith.constant 0 : i32
    %c0_i32_1 = arith.constant 0 : i32
    return %c0_i32, %c0_i32_0 : i32, i32
  }
  func.func @transform_3(%arg0: i32) -> (i32, i32) {
    %c0_i32 = arith.constant 0 : i32
    %c0_i32_0 = arith.constant 0 : i32
    %c0_i32_1 = arith.constant 0 : i32
    return %c0_i32, %c0_i32_0 : i32, i32
  }
  func.func @transform_4(%arg0: i32) -> (i32, i32) {
    %c0_i32 = arith.constant 0 : i32
    %c0_i32_0 = arith.constant 0 : i32
    %c0_i32_1 = arith.constant 0 : i32
    return %c0_i32, %c0_i32_0 : i32, i32
  }
  func.func @transform_5(%arg0: i32) -> (i32, i32) {
    %c0_i32 = arith.constant 0 : i32
    %c0_i32_0 = arith.constant 0 : i32
    %c0_i32_1 = arith.constant 0 : i32
    return %c0_i32, %c0_i32_0 : i32, i32
  }
  func.func @transform_6(%arg0: i32) -> (i32, i32) {
    %c0_i32 = arith.constant 0 : i32
    %c0_i32_0 = arith.constant 0 : i32
    %c0_i32_1 = arith.constant 0 : i32
    return %c0_i32, %c0_i32_0 : i32, i32
  }
  func.func @transform_7(%arg0: i32) -> (i32, i32) {
    %c0_i32 = arith.constant 0 : i32
    %c0_i32_0 = arith.constant 0 : i32
    %c0_i32_1 = arith.constant 0 : i32
    return %c0_i32, %c0_i32_0 : i32, i32
  }
  func.func @transform_8(%arg0: i32) -> (i32, i32) {
    %c0_i32 = arith.constant 0 : i32
    %c0_i32_0 = arith.constant 0 : i32
    %c0_i32_1 = arith.constant 0 : i32
    return %c0_i32, %c0_i32_0 : i32, i32
  }
  func.func @transform_9(%arg0: i32) -> (i32, i32) {
    %c0_i32 = arith.constant 0 : i32
    %c0_i32_0 = arith.constant 0 : i32
    %c0_i32_1 = arith.constant 0 : i32
    return %c0_i32, %c0_i32_0 : i32, i32
  }
  func.func @transform_10(%arg0: i32) -> (i32, i32) {
    %c0_i32 = arith.constant 0 : i32
    %c0_i32_0 = arith.constant 0 : i32
    %c0_i32_1 = arith.constant 0 : i32
    return %c0_i32, %c0_i32_0 : i32, i32
  }
  func.func @transform_11(%arg0: i32) -> (i32, i32) {
    %c0_i32 = arith.constant 0 : i32
    %c0_i32_0 = arith.constant 0 : i32
    %c0_i32_1 = arith.constant 0 : i32
    return %c0_i32, %c0_i32_0 : i32, i32
  }
  func.func @transform_12(%arg0: i32) -> (i32, i32) {
    %c0_i32 = arith.constant 0 : i32
    %c0_i32_0 = arith.constant 0 : i32
    %c0_i32_1 = arith.constant 0 : i32
    return %c0_i32, %c0_i32_0 : i32, i32
  }
  func.func @transform_13(%arg0: i32) -> (i32, i32, i32) {
    %c0_i32 = arith.constant 0 : i32
    %c0_i32_0 = arith.constant 0 : i32
    %c0_i32_1 = arith.constant 0 : i32
    return %arg0, %c0_i32, %c0_i32_0 : i32, i32, i32
  }
}

</mosaic_0001>

<bundles_post_ra>
// kernel: autoencoder_forward.1
= control target key start
LH: loop header
LB: loop body
LE: loop exit
PB: predicated region body
PF: predicated region fallthrough
CT: control target
= control target key end

     0   :  { %s9689_s25 = smov 0   ;;  %s15199_s0 = inlined_call_operand.vmem [shape: f32[2,16,16,128], index: 0, kind: input, shape index: {}]   ;;  %s15200_s1 = inlined_call_operand.vmem [shape: f32[1152,128], index: 1, kind: input, shape index: {}]   ;;  %s15201_s2 = inlined_call_operand.vmem [shape: f32[1,128], index: 2, kind: input, shape index: {}]   ;;  %s15202_s3 = inlined_call_operand.vmem [shape: f32[1152,128], index: 3, kind: input, shape index: {}]   ;;  %s15203_s4 = inlined_call_operand.vmem [shape: f32[1,128], index: 4, kind: input, shape index: {}]   ;;  %s15204_s5 = inlined_call_operand.vmem [shape: f32[1152,128], index: 5, kind: input, shape index: {}]   ;;  %s15205_s6 = inlined_call_operand.vmem [shape: f32[1,128], index: 6, kind: input, shape index: {}]   ;;  %s15206_s7 = inlined_call_operand.vmem [shape: f32[1152,128], index: 7, kind: input, shape index: {}]   ;;  %s15207_s8 = inlined_call_operand.vmem [shape: f32[1,128], index: 8, kind: input, shape index: {}]   ;;  %s15208_s9 = inlined_call_operand.vmem [shape: f32[1152,128], index: 9, kind: input, shape index: {}]   ;;  %s15209_s10 = inlined_call_operand.vmem [shape: f32[1,128], index: 10, kind: input, shape index: {}]   ;;  %s15210_s11 = inlined_call_operand.vmem [shape: f32[64,16], index: 11, kind: input, shape index: {}]   ;;  %s15211_s12 = inlined_call_operand.vmem [shape: f32[256,64], index: 12, kind: input, shape index: {}]   ;;  %s15212_s13 = inlined_call_operand.vmem [shape: f32[2,256,128], index: 13, kind: output, shape index: {}]  }
   0x1 LB: > { %s8142_s26 = sadd.s32 4294967295, %s9615_s25   ;;  %p8146_p0 = scmp.ge.s32.totalorder %s9615_s25, 1  ;;  %s9615_s25 = sphi %s9689_s25, %s23_s25  }
   0x2   : > { %p387_p1 = scmp.lt.s32.totalorder %s9615_s25, 3 }
   0x4   : > { %p388_p2 = pnand %p8146_p0, %p387_p1 }
   0x6   : > { %391 = sbr.rel (%p388_p2) target bundleno = 2512 (0x9d0), region = 72 }
   0xb   : > { %v9700_v0 = vld [vmem:[%s15200_s1 + $0x78] sm:$0xff]  ;;  %v9617_v2 = vmov 0.0   ;;  %v654_v3 = vld [vmem:[%s15200_s1 + $0x70] sm:$0xff]  ;;  %v653_v5 = vld [vmem:[%s15200_s1 + $0x68] sm:$0xff]  ;;  %p431_p3 = scmp.lt.s32.totalorder %s8142_s26, 1  ;;  %vm833_vm0 = vcmask 1046528  }
   0xc   : > { %v9705_v1 = vld [vmem:[%s15200_s1 + $0x178] sm:$0xff]  ;;  %1099 = vmatprep.subr.mxu0 %v9617_v2  ;;  %441 = vst [vmem:[#allocation2] sm:$0xff] %v9617_v2  ;;  %443 = vst [vmem:[#allocation2 + $0x10] sm:$0x3] %v9617_v2  ;;  %1324 = vmatprep.subr.mxu1 %v9617_v2  ;;  %v686_v4 = vld [vmem:[%s15200_s1 + $0x170] sm:$0xff]  ;;  %vm946_vm1 = vcmask 1045504  }
   0xd   : > { %444 = vst [vmem:[#allocation2 + $0x18] sm:$0xff] %v9617_v2  ;;  %445 = vst [vmem:[#allocation2 + $0x20] sm:$0xff] %v9617_v2  ;;  %1100 = vmatpush1.msra.mxu0 %v9700_v0  ;;  %1325 = vmatpush1.msra.mxu1 %v9705_v1  ;;  %v685_v6 = vld [vmem:[%s15200_s1 + $0x168] sm:$0xff]  ;;  %v652_v7 = vld [vmem:[%s15200_s1 + $0x60] sm:$0xff]  ;;  %s15467_s26 = smov (!%p431_p3, %s8142_s26), 1  ;;  %vm2624_vm2 = vcmask 1041408  }
   0xe   : > { %446 = vst [vmem:[#allocation2 + $0x28] sm:$0x3] %v9617_v2  ;;  %447 = vst [vmem:[#allocation2 + $0x30] sm:$0xff] %v9617_v2  ;;  %1101 = vmatprep.subr.mxu0 %v9617_v2  ;;  %1326 = vmatprep.subr.mxu1 %v9617_v2  ;;  %v684_v8 = vld [vmem:[%s15200_s1 + $0x160] sm:$0xff]  ;;  %v651_v9 = vld [vmem:[%s15200_s1 + $0x58] sm:$0xff]  ;;  %s8242_s16 = sshll.u32 %s15467_s26, 8 }
   0xf   : > { %448 = vst [vmem:[#allocation2 + $0x38] sm:$0xff] %v9617_v2  ;;  %449 = vst [vmem:[#allocation2 + $0x40] sm:$0x3] %v9617_v2  ;;  %1102 = vmatpush1.msra.mxu0 %v654_v3  ;;  %1327 = vmatpush1.msra.mxu1 %v686_v4  ;;  %v683_v10 = vld [vmem:[%s15200_s1 + $0x158] sm:$0xff]  ;;  %v650_v11 = vld [vmem:[%s15200_s1 + $0x50] sm:$0xff]  ;;  %s9868_s23 = scalar_lea.vmem %s15199_s0, %s8242_s16  ;;  %vm3137_vm3 = vcmask 1041409   ;;  %s15148_s27 = scalar_lea.vmem %s15212_s13, %s8242_s16 }
  0x10   : > { %450 = vst [vmem:[#allocation2 + $0x48] sm:$0xff] %v9617_v2  ;;  %451 = vst [vmem:[#allocation2 + $0x50] sm:$0xff] %v9617_v2  ;;  %1103 = vmatprep.subr.mxu0 %v9617_v2  ;;  %1328 = vmatprep.subr.mxu1 %v9617_v2  ;;  %v682_v12 = vld [vmem:[%s15200_s1 + $0x150] sm:$0xff]  ;;  %v649_v13 = vld [vmem:[%s15200_s1 + $0x48] sm:$0xff]  ;;  %vm3139_vm4 = vcmask 1042434   ;;  %vm3141_vm5 = vcmask 1043459  }
  0x11   : > { %452 = vst [vmem:[#allocation2 + $0x58] sm:$0x3] %v9617_v2  ;;  %453 = vst [vmem:[#allocation2 + $0x60] sm:$0xff] %v9617_v2  ;;  %1104 = vmatpush1.msra.mxu0 %v653_v5  ;;  %1329 = vmatpush1.msra.mxu1 %v685_v6  ;;  %v681_v14 = vld [vmem:[%s15200_s1 + $0x148] sm:$0xff]  ;;  %v648_v15 = vld [vmem:[%s15200_s1 + $0x40] sm:$0xff]  ;;  %vm3143_vm6 = vcmask 1044484  }
  0x12   : > { %454 = vst [vmem:[#allocation2 + $0x68] sm:$0xff] %v9617_v2  ;;  %455 = vst [vmem:[#allocation2 + $0x70] sm:$0x3] %v9617_v2  ;;  %1105 = vmatprep.subr.mxu0 %v9617_v2  ;;  %1330 = vmatprep.subr.mxu1 %v9617_v2  ;;  %v680_v16 = vld [vmem:[%s15200_s1 + $0x140] sm:$0xff]  ;;  %v647_v17 = vld [vmem:[%s15200_s1 + $0x38] sm:$0xff]  ;;  %vm3145_vm7 = vcmask 1045509  }
  0x13   : > { %456 = vst [vmem:[#allocation2 + $0x78] sm:$0xff] %v9617_v2  ;;  %457 = vst [vmem:[#allocation2 + $0x80] sm:$0xff] %v9617_v2  ;;  %1106 = vmatpush1.msra.mxu0 %v652_v7  ;;  %1331 = vmatpush1.msra.mxu1 %v684_v8  ;;  %v679_v18 = vld [vmem:[%s15200_s1 + $0x138] sm:$0xff]  ;;  %v646_v19 = vld [vmem:[%s15200_s1 + $0x30] sm:$0xff]  ;;  %vm3147_vm8 = vcmask 1046534   ;;  %vm3149_vm9 = vcmask 1047559  }
  0x14   : > { %458 = vst [vmem:[#allocation2 + $0x88] sm:$0x3] %v9617_v2  ;;  %459 = vst [vmem:[#allocation2 + $0x90] sm:$0xff] %v9617_v2  ;;  %1107 = vmatprep.subr.mxu0 %v9617_v2  ;;  %1332 = vmatprep.subr.mxu1 %v9617_v2  ;;  %v678_v20 = vld [vmem:[%s15200_s1 + $0x130] sm:$0xff]  ;;  %v645_v21 = vld [vmem:[%s15200_s1 + $0x28] sm:$0xff]  ;;  %vm4421_vm10 = vcmask 1042432  }
  0x15   : > { %460 = vst [vmem:[#allocation2 + $0x98] sm:$0xff] %v9617_v2  ;;  %461 = vst [vmem:[#allocation2 + $0xa0] sm:$0x3] %v9617_v2  ;;  %1108 = vmatpush1.msra.mxu0 %v651_v9  ;;  %1333 = vmatpush1.msra.mxu1 %v683_v10  ;;  %v677_v22 = vld [vmem:[%s15200_s1 + $0x128] sm:$0xff]  ;;  %v644_v23 = vld [vmem:[%s15200_s1 + $0x20] sm:$0xff]  ;;  %vm4422_vm11 = vcmask 1046532  }
  0x16   : > { %462 = vst [vmem:[#allocation2 + $0xa8] sm:$0xff] %v9617_v2  ;;  %463 = vst [vmem:[#allocation2 + $0xb0] sm:$0xff] %v9617_v2  ;;  %1109 = vmatprep.subr.mxu0 %v9617_v2  ;;  %1334 = vmatprep.subr.mxu1 %v9617_v2  ;;  %v676_v24 = vld [vmem:[%s15200_s1 + $0x120] sm:$0xff]  ;;  %v643_v26 = vld [vmem:[%s15200_s1 + $0x18] sm:$0xff]  ;;  %vm4440_vm12 = vcmask 1045508   ;;  %vm4899_vm15 = vcmask 130048  }
  0x17   : > { %464 = vst [vmem:[#allocation2 + $0xb8] sm:$0x3] %v9617_v2  ;;  %465 = vst [vmem:[#allocation2 + $0xc0] sm:$0xff] %v9617_v2  ;;  %1110 = vmatpush1.msra.mxu0 %v650_v11  ;;  %1335 = vmatpush1.msra.mxu1 %v682_v12  ;;  %v521_v25 = vld [vmem:[%s9868_s23] sm:$0xff]  ;;  %v522_v27 = vld [vmem:[%s9868_s23 + $0x8] sm:$0xff] }
  0x18   : > { %466 = vst [vmem:[#allocation2 + $0xc8] sm:$0xff] %v9617_v2  ;;  %467 = vst [vmem:[#allocation2 + $0xd0] sm:$0x3] %v9617_v2  ;;  %1111 = vmatprep.subr.mxu0 %v9617_v2  ;;  %1336 = vmatprep.subr.mxu1 %v9617_v2  ;;  %v675_v28 = vld [vmem:[%s15200_s1 + $0x118] sm:$0xff]  ;;  %v523_v29 = vld [vmem:[%s9868_s23 + $0x10] sm:$0xff] }
  0x19   : > { %468 = vst [vmem:[#allocation2 + $0xd8] sm:$0xff] %v9617_v2  ;;  %469 = vst [vmem:[#allocation2 + $0xe0] sm:$0xff] %v9617_v2  ;;  %1112 = vmatpush1.msra.mxu0 %v649_v13  ;;  %1337 = vmatpush1.msra.mxu1 %v681_v14  ;;  %v524_v30 = vld [vmem:[%s9868_s23 + $0x18] sm:$0xff]  ;;  %v642_v31 = vld [vmem:[%s15200_s1 + $0x10] sm:$0xff] }
  0x1a   : > { %470 = vst [vmem:[#allocation2 + $0xe8] sm:$0x3] %v9617_v2  ;;  %471 = vst [vmem:[#allocation2 + $0xf0] sm:$0xff] %v9617_v2  ;;  %1113 = vmatprep.subr.mxu0 %v9617_v2  ;;  %1338 = vmatprep.subr.mxu1 %v9617_v2  ;;  %v525_v32 = vld [vmem:[%s9868_s23 + $0x20] sm:$0xff]  ;;  %v674_v33 = vld [vmem:[%s15200_s1 + $0x110] sm:$0xff] }
  0x1b   : > { %472 = vst [vmem:[#allocation2 + $0xf8] sm:$0xff] %v9617_v2  ;;  %473 = vst [vmem:[#allocation2 + $0x100] sm:$0x3] %v9617_v2  ;;  %1114 = vmatpush1.msra.mxu0 %v648_v15  ;;  %1339 = vmatpush1.msra.mxu1 %v680_v16  ;;  %v526_v34 = vld [vmem:[%s9868_s23 + $0x28] sm:$0xff]  ;;  %v527_v35 = vld [vmem:[%s9868_s23 + $0x30] sm:$0xff] }
  0x1c   : > { %474 = vst [vmem:[#allocation2 + $0x108] sm:$0xff] %v9617_v2  ;;  %475 = vst [vmem:[#allocation2 + $0x110] sm:$0xff] %v9617_v2  ;;  %1115 = vmatprep.subr.mxu0 %v9617_v2  ;;  %1340 = vmatprep.subr.mxu1 %v9617_v2  ;;  %v641_v36 = vld [vmem:[%s15200_s1 + $0x8] sm:$0xff]  ;;  %v528_v37 = vld [vmem:[%s9868_s23 + $0x38] sm:$0xff] }
  0x1d   : > { %476 = vst [vmem:[#allocation2 + $0x118] sm:$0x3] %v9617_v2  ;;  %477 = vst [vmem:[#allocation2 + $0x120] sm:$0xff] %v9617_v2  ;;  %1116 = vmatpush1.msra.mxu0 %v647_v17  ;;  %1341 = vmatpush1.msra.mxu1 %v679_v18  ;;  %v673_v38 = vld [vmem:[%s15200_s1 + $0x108] sm:$0xff]  ;;  %v529_v39 = vld [vmem:[%s9868_s23 + $0x40] sm:$0xff] }
  0x1e   : > { %478 = vst [vmem:[#allocation2 + $0x128] sm:$0xff] %v9617_v2  ;;  %479 = vst [vmem:[#allocation2 + $0x130] sm:$0x3] %v9617_v2  ;;  %1117 = vmatprep.subr.mxu0 %v9617_v2  ;;  %1342 = vmatprep.subr.mxu1 %v9617_v2  ;;  %v530_v40 = vld [vmem:[%s9868_s23 + $0x48] sm:$0xff]  ;;  %v531_v41 = vld [vmem:[%s9868_s23 + $0x50] sm:$0xff] }
  0x1f   : > { %480 = vst [vmem:[#allocation2 + $0x138] sm:$0xff] %v9617_v2  ;;  %481 = vst [vmem:[#allocation2 + $0x140] sm:$0xff] %v9617_v2  ;;  %1118 = vmatpush1.msra.mxu0 %v646_v19  ;;  %1343 = vmatpush1.msra.mxu1 %v678_v20  ;;  %v640_v42 = vld [vmem:[%s15200_s1] sm:$0xff]  ;;  %v532_v44 = vld [vmem:[%s9868_s23 + $0x58] sm:$0xff] }
  0x20   : > { %482 = vst [vmem:[#allocation2 + $0x148] sm:$0x3] %v9617_v2  ;;  %483 = vst [vmem:[#allocation2 + $0x150] sm:$0xff] %v9617_v2  ;;  %1119 = vmatprep.subr.mxu0 %v9617_v2  ;;  %1344 = vmatprep.subr.mxu1 %v9617_v2  ;;  %v672_v43 = vld [vmem:[%s15200_s1 + $0x100] sm:$0xff]  ;;  %v671_v46 = vld [vmem:[%s15200_s1 + $0xf8] sm:$0xff] }
  0x21   : > { %484 = vst [vmem:[#allocation2 + $0x158] sm:$0xff] %v9617_v2  ;;  %485 = vst [vmem:[#allocation2 + $0x160] sm:$0x3] %v9617_v2  ;;  %1120 = vmatpush1.msra.mxu0 %v645_v21  ;;  %1345 = vmatpush1.msra.mxu1 %v677_v22  ;;  %v533_v45 = vld [vmem:[%s9868_s23 + $0x60] sm:$0xff]  ;;  %v703_v47 = vld [vmem:[%s15200_s1 + $0x1f8] sm:$0xff]  ;;  %v834_v21 = vrot.slane %v9617_v2, 1 }
  0x22   : > { %486 = vst [vmem:[#allocation2 + $0x168] sm:$0xff] %v9617_v2  ;;  %487 = vst [vmem:[#allocation2 + $0x170] sm:$0xff] %v9617_v2  ;;  %1121 = vmatprep.subr.mxu0 %v9617_v2  ;;  %1346 = vmatprep.subr.mxu1 %v9617_v2  ;;  %v670_v48 = vld [vmem:[%s15200_s1 + $0xf0] sm:$0xff]  ;;  %v669_v50 = vld [vmem:[%s15200_s1 + $0xe8] sm:$0xff] }
  0x23   : > { %488 = vst [vmem:[#allocation2 + $0x178] sm:$0x3] %v9617_v2  ;;  %489 = vst [vmem:[#allocation2 + $0x180] sm:$0xff] %v9617_v2  ;;  %1122 = vmatpush1.msra.mxu0 %v644_v23  ;;  %1347 = vmatpush1.msra.mxu1 %v676_v24  ;;  %v702_v49 = vld [vmem:[%s15200_s1 + $0x1f0] sm:$0xff]  ;;  %v701_v51 = vld [vmem:[%s15200_s1 + $0x1e8] sm:$0xff] }
  0x24   : > { %490 = vst [vmem:[#allocation2 + $0x188] sm:$0xff] %v9617_v2  ;;  %491 = vst [vmem:[#allocation2 + $0x190] sm:$0x3] %v9617_v2  ;;  %1123 = vmatprep.subr.mxu0 %v9617_v2  ;;  %1348 = vmatprep.subr.mxu1 %v9617_v2  ;;  %v668_v52 = vld [vmem:[%s15200_s1 + $0xe0] sm:$0xff]  ;;  %v534_v54 = vld [vmem:[%s9868_s23 + $0x68] sm:$0xff] }
  0x25   : > { %494 = vst [vmem:[#allocation2 + $0x1a8] sm:$0x3] %v9617_v2  ;;  %496 = vst [vmem:[#allocation3 + $0x8] sm:$0x3] %v9617_v2  ;;  %1124 = vmatpush1.msra.mxu0 %v643_v26  ;;  %1349 = vmatpush1.msra.mxu1 %v675_v28  ;;  %v700_v53 = vld [vmem:[%s15200_s1 + $0x1e0] sm:$0xff]  ;;  %v535_v55 = vld [vmem:[%s9868_s23 + $0x70] sm:$0xff] }
  0x26   : > { %497 = vst [vmem:[#allocation3 + $0x10] sm:$0xff] %v9617_v2  ;;  %498 = vst [vmem:[#allocation3 + $0x18] sm:$0x3] %v9617_v2  ;;  %1125 = vmatprep.subr.mxu0 %v9617_v2  ;;  %1350 = vmatprep.subr.mxu1 %v9617_v2  ;;  %v667_v56 = vld [vmem:[%s15200_s1 + $0xd8] sm:$0xff]  ;;  %v537_v59 = vld [vmem:[%s9868_s23 + $0x80] sm:$0xff] }
  0x27   : > { %499 = vst [vmem:[#allocation3 + $0x20] sm:$0xff] %v9617_v2  ;;  %500 = vst [vmem:[#allocation3 + $0x28] sm:$0x3] %v9617_v2  ;;  %1126 = vmatpush1.msra.mxu0 %v642_v31  ;;  %1351 = vmatpush1.msra.mxu1 %v674_v33  ;;  %v699_v57 = vld [vmem:[%s15200_s1 + $0x1d8] sm:$0xff]  ;;  %v666_v60 = vld [vmem:[%s15200_s1 + $0xd0] sm:$0xff] }
  0x28   : > { %501 = vst [vmem:[#allocation3 + $0x30] sm:$0xff] %v9617_v2  ;;  %502 = vst [vmem:[#allocation3 + $0x38] sm:$0x3] %v9617_v2  ;;  %1127 = vmatprep.subr.mxu0 %v9617_v2  ;;  %1352 = vmatprep.subr.mxu1 %v9617_v2  ;;  %v536_v58 = vld [vmem:[%s9868_s23 + $0x78] sm:$0xff]  ;;  %v698_v61 = vld [vmem:[%s15200_s1 + $0x1d0] sm:$0xff] }
  0x29   : > { %503 = vst [vmem:[#allocation3 + $0x40] sm:$0xff] %v9617_v2  ;;  %504 = vst [vmem:[#allocation3 + $0x48] sm:$0x3] %v9617_v2  ;;  %1128 = vmatpush1.msra.mxu0 %v641_v36  ;;  %1353 = vmatpush1.msra.mxu1 %v673_v38  ;;  %v538_v62 = vld [vmem:[%s9868_s23 + $0x88] sm:$0xff]  ;;  %v539_v63 = vld [vmem:[%s9868_s23 + $0x90] sm:$0xff] }
  0x2a   : > { %505 = vst [vmem:[#allocation3 + $0x50] sm:$0xff] %v9617_v2  ;;  %506 = vst [vmem:[#allocation3 + $0x58] sm:$0x3] %v9617_v2  ;;  %1129 = vmatprep.subr.mxu0 %v9617_v2  ;;  %1354 = vmatprep.subr.mxu1 %v9617_v2  ;;  %v665_v0 = vld [vmem:[%s15200_s1 + $0xc8] sm:$0xff]  ;;  %v540_v3 = vld [vmem:[%s9868_s23 + $0x98] sm:$0xff] }
  0x2b   : > { %507 = vst [vmem:[#allocation3 + $0x60] sm:$0xff] %v9617_v2  ;;  %508 = vst [vmem:[#allocation3 + $0x68] sm:$0x3] %v9617_v2  ;;  %1130 = vmatpush1.msra.mxu0 %v640_v42  ;;  %1355 = vmatpush1.msra.mxu1 %v672_v43  ;;  %v697_v1 = vld [vmem:[%s15200_s1 + $0x1c8] sm:$0xff]  ;;  %v664_v4 = vld [vmem:[%s15200_s1 + $0xc0] sm:$0xff] }
  0x2c   : > { %509 = vst [vmem:[#allocation3 + $0x70] sm:$0xff] %v9617_v2  ;;  %510 = vst [vmem:[#allocation3 + $0x78] sm:$0x3] %v9617_v2  ;;  %1131 = vmatprep.subr.mxu0 %v9617_v2  ;;  %1356 = vmatprep.subr.mxu1 %v9617_v2  ;;  %v696_v5 = vld [vmem:[%s15200_s1 + $0x1c0] sm:$0xff]  ;;  %v663_v7 = vld [vmem:[%s15200_s1 + $0xb8] sm:$0xff] }
  0x2d   : > { %511 = vst [vmem:[#allocation3 + $0x80] sm:$0xff] %v9617_v2  ;;  %512 = vst [vmem:[#allocation3 + $0x88] sm:$0x3] %v9617_v2  ;;  %1132 = vmatpush2.msra.mxu0 %v671_v46  ;;  %1357 = vmatpush2.msra.mxu1 %v703_v47  ;;  %v541_v6 = vld [vmem:[%s9868_s23 + $0xa0] sm:$0xff]  ;;  %v695_v8 = vld [vmem:[%s15200_s1 + $0x1b8] sm:$0xff] }
  0x2e   : > { %514 = vst [vmem:[#allocation3 + $0x98] sm:$0x3] %v9617_v2  ;;  %515 = vst [vmem:[#allocation4] sm:$0x3f] %v9617_v2  ;;  %1133 = vmatprep.subr.mxu0 %v9617_v2  ;;  %1358 = vmatprep.subr.mxu1 %v9617_v2  ;;  %v542_v9 = vld [vmem:[%s9868_s23 + $0xa8] sm:$0xff]  ;;  %v662_v10 = vld [vmem:[%s15200_s1 + $0xb0] sm:$0xff] }
  0x2f   : > { %516 = vst [vmem:[#allocation4 + $0x8] sm:$0x3f] %v9617_v2  ;;  %517 = vst [vmem:[#allocation4 + $0x10] sm:$0x3f] %v9617_v2  ;;  %1134 = vmatpush2.msra.mxu0 %v670_v48  ;;  %1359 = vmatpush2.msra.mxu1 %v702_v49  ;;  %v694_v11 = vld [vmem:[%s15200_s1 + $0x1b0] sm:$0xff]  ;;  %v661_v12 = vld [vmem:[%s15200_s1 + $0xa8] sm:$0xff] }
  0x30   : > { %518 = vst [vmem:[#allocation4 + $0x18] sm:$0x3f] %v9617_v2  ;;  %519 = vst [vmem:[#allocation4 + $0x20] sm:$0x3f] %v9617_v2  ;;  %1135 = vmatprep.subr.mxu0 %v9617_v2  ;;  %1360 = vmatprep.subr.mxu1 %v9617_v2  ;;  %v693_v13 = vld [vmem:[%s15200_s1 + $0x1a8] sm:$0xff]  ;;  %v543_v14 = vld [vmem:[%s9868_s23 + $0xb0] sm:$0xff] }
  0x31   : > { %520 = vst [vmem:[#allocation4 + $0x28] sm:$0x3f] %v9617_v2  ;;  %554 = vst [vmem:[#allocation2 + $0x19] sm:$0xff] %v521_v25  ;;  %1136 = vmatpush2.msra.mxu0 %v669_v50  ;;  %1361 = vmatpush2.msra.mxu1 %v701_v51  ;;  %v660_v15 = vld [vmem:[%s15200_s1 + $0xa0] sm:$0xff]  ;;  %v544_v17 = vld [vmem:[%s9868_s23 + $0xb8] sm:$0xff] }
  0x32   : > { %555 = vst [vmem:[#allocation2 + $0x21] sm:$0xff] %v522_v27  ;;  %556 = vst [vmem:[#allocation2 + $0x31] sm:$0xff] %v523_v29  ;;  %1137 = vmatprep.subr.mxu0 %v9617_v2  ;;  %1362 = vmatprep.subr.mxu1 %v9617_v2  ;;  %v692_v16 = vld [vmem:[%s15200_s1 + $0x1a0] sm:$0xff]  ;;  %v659_v19 = vld [vmem:[%s15200_s1 + $0x98] sm:$0xff]  ;;  %v947_v29 = vrot.slane %v9617_v2, 2 }
  0x33   : > { %557 = vst [vmem:[#allocation2 + $0x39] sm:$0xff] %v524_v30  ;;  %558 = vst [vmem:[#allocation2 + $0x49] sm:$0xff] %v525_v32  ;;  %1138 = vmatpush2.msra.mxu0 %v668_v52  ;;  %1363 = vmatpush2.msra.mxu1 %v700_v53  ;;  %v545_v18 = vld [vmem:[%s9868_s23 + $0xc0] sm:$0xff]  ;;  %v691_v20 = vld [vmem:[%s15200_s1 + $0x198] sm:$0xff] }
  0x34   : > { %559 = vst [vmem:[#allocation2 + $0x51] sm:$0xff] %v526_v34  ;;  %560 = vst [vmem:[#allocation2 + $0x61] sm:$0xff] %v527_v35  ;;  %1139 = vmatprep.subr.mxu0 %v9617_v2  ;;  %1364 = vmatprep.subr.mxu1 %v9617_v2  ;;  %v546_v22 = vld [vmem:[%s9868_s23 + $0xc8] sm:$0xff]  ;;  %v658_v23 = vld [vmem:[%s15200_s1 + $0x90] sm:$0xff] }
  0x35   : > { %561 = vst [vmem:[#allocation2 + $0x69] sm:$0xff] %v528_v37  ;;  %562 = vst [vmem:[#allocation2 + $0x79] sm:$0xff] %v529_v39  ;;  %1140 = vmatpush2.msra.mxu0 %v667_v56  ;;  %1365 = vmatpush2.msra.mxu1 %v699_v57  ;;  %v690_v24 = vld [vmem:[%s15200_s1 + $0x190] sm:$0xff]  ;;  %v657_v27 = vld [vmem:[%s15200_s1 + $0x88] sm:$0xff] }
  0x36   : > { %563 = vst [vmem:[#allocation2 + $0x81] sm:$0xff] %v530_v40  ;;  %564 = vst [vmem:[#allocation2 + $0x91] sm:$0xff] %v531_v41  ;;  %1141 = vmatprep.subr.mxu0 %v9617_v2  ;;  %1366 = vmatprep.subr.mxu1 %v9617_v2  ;;  %v588_v25 = vld [vmem:[#allocation2 + $0x10] sm:$0x3]  ;;  %v689_v28 = vld [vmem:[%s15200_s1 + $0x188] sm:$0xff] }
  0x37   : > { %565 = vst [vmem:[#allocation2 + $0x99] sm:$0xff] %v532_v44  ;;  %566 = vst [vmem:[#allocation2 + $0xa9] sm:$0xff] %v533_v45  ;;  %1142 = vmatpush2.msra.mxu0 %v666_v60  ;;  %1367 = vmatpush2.msra.mxu1 %v698_v61  ;;  %v547_v26 = vld [vmem:[%s9868_s23 + $0xd0] sm:$0xff]  ;;  %v548_v31 = vld [vmem:[%s9868_s23 + $0xd8] sm:$0xff]  ;;  %v837_v33 = vrot.slane %v588_v25, 1  ;;  %v950_v40 = vrot.slane %v588_v25, 2 }
  0x38   : > { %567 = vst [vmem:[#allocation2 + $0xb1] sm:$0xff] %v534_v54  ;;  %568 = vst [vmem:[#allocation2 + $0xc1] sm:$0xff] %v535_v55  ;;  %1143 = vmatprep.subr.mxu0 %v9617_v2  ;;  %1368 = vmatprep.subr.mxu1 %v9617_v2  ;;  %v656_v32 = vld [vmem:[%s15200_s1 + $0x80] sm:$0xff]  ;;  %v589_v34 = vld [vmem:[#allocation2 + $0x18] sm:$0xff] }
  0x39   : > { %569 = vst [vmem:[#allocation2 + $0xc9] sm:$0xff] %v536_v58  ;;  %570 = vst [vmem:[#allocation2 + $0xd9] sm:$0xff] %v537_v59  ;;  %1144 = vmatpush2.msra.mxu0 %v665_v0  ;;  %1369 = vmatpush2.msra.mxu1 %v697_v1  ;;  %v10067_v30 = vld [vmem:[#allocation2 + $0x20] sm:$0xff]  ;;  %v839_v37 = vrot.slane %v589_v34, 1  ;;  %v719_v39 = vld [vmem:[%s15200_s1 + $0x278] sm:$0xff]  ;;  %v838_v43 = vsel %vm833_vm0, %v834_v21, %v837_v33  ;;  %v951_v49 = vsel %vm946_vm1, %v947_v29, %v950_v40 }
  0x3a   : > { %571 = vst [vmem:[#allocation2 + $0xe1] sm:$0xff] %v538_v62  ;;  %572 = vst [vmem:[#allocation2 + $0xf1] sm:$0xff] %v539_v63  ;;  %1145 = vmatprep.subr.mxu0 %v9617_v2  ;;  %1370 = vmatprep.subr.mxu1 %v9617_v2  ;;  %v549_v35 = vld [vmem:[%s9868_s23 + $0xe0] sm:$0xff]  ;;  %v840_v38 = vrot.slane %v10067_v30, 1  ;;  %v591_v41 = vld [vmem:[#allocation2 + $0x28] sm:$0x3] }
  0x3b   : > { %573 = vst [vmem:[#allocation2 + $0xf9] sm:$0xff] %v540_v3  ;;  %574 = vst [vmem:[#allocation2 + $0x109] sm:$0xff] %v541_v6  ;;  %1146 = vmatpush2.msra.mxu0 %v664_v4  ;;  %1371 = vmatpush2.msra.mxu1 %v696_v5  ;;  %v688_v36 = vld [vmem:[%s15200_s1 + $0x180] sm:$0xff]  ;;  %v550_v42 = vld [vmem:[%s9868_s23 + $0xe8] sm:$0xff]  ;;  %v842_v47 = vrot.slane %v591_v41, 1  ;;  %v952_v50 = vrot.slane %v589_v34, 2 }
  0x3c   : > { %1147 = vmatprep.subr.mxu0 %v9617_v2  ;;  %1372 = vmatprep.subr.mxu1 %v9617_v2  ;;  %575 = vst [vmem:[#allocation2 + $0x111] sm:$0xff] %v542_v9  ;;  %576 = vst [vmem:[#allocation2 + $0x121] sm:$0xff] %v543_v14  ;;  %v551_v44 = vld [vmem:[%s9868_s23 + $0xf0] sm:$0xff]  ;;  %v10094_v46 = vsel %vm833_vm0, %v839_v37, %v840_v38  ;;  %v552_v48 = vld [vmem:[%s9868_s23 + $0xf8] sm:$0xff]  ;;  %v953_v51 = vrot.slane %v10067_v30, 2  ;;  %v955_v60 = vrot.slane %v591_v41, 2 }
  0x3d   : > { %1148 = vmatpush2.msra.mxu0 %v663_v7  ;;  %1373 = vmatpush2.msra.mxu1 %v695_v8  ;;  %577 = vst [vmem:[#allocation2 + $0x129] sm:$0xff] %v544_v17  ;;  %578 = vst [vmem:[#allocation2 + $0x139] sm:$0xff] %v545_v18  ;;  %v718_v45 = vld [vmem:[%s15200_s1 + $0x270] sm:$0xff]  ;;  %v10100_v52 = vld [vmem:[#allocation2 + $0x38] sm:$0xff]  ;;  %v10112_v55 = vsel %vm833_vm0, %v840_v38, %v842_v47 }
  0x3e   : > { %1149 = vmatprep.subr.mxu0 %v9617_v2  ;;  %1374 = vmatprep.subr.mxu1 %v9617_v2  ;;  %579 = vst [vmem:[#allocation2 + $0x141] sm:$0xff] %v546_v22  ;;  %580 = vst [vmem:[#allocation2 + $0x151] sm:$0xff] %v547_v26  ;;  %v10104_v53 = vld [vmem:[#allocation2 + $0x30] sm:$0xff]  ;;  %v717_v54 = vld [vmem:[%s15200_s1 + $0x268] sm:$0xff]  ;;  %v845_v58 = vrot.slane %v10100_v52, 1  ;;  %v10121_v59 = vsel %vm946_vm1, %v952_v50, %v953_v51  ;;  %v10138_v3 = vsel %vm946_vm1, %v953_v51, %v955_v60 }
  0x3f   : > { %1150 = vmatpush2.msra.mxu0 %v662_v10  ;;  %1375 = vmatpush2.msra.mxu1 %v694_v11  ;;  %581 = vst [vmem:[#allocation2 + $0x159] sm:$0xff] %v548_v31  ;;  %582 = vst [vmem:[#allocation2 + $0x169] sm:$0xff] %v549_v35  ;;  %v716_v56 = vld [vmem:[%s15200_s1 + $0x260] sm:$0xff]  ;;  %v844_v57 = vrot.slane %v10104_v53, 1  ;;  %v715_v62 = vld [vmem:[%s15200_s1 + $0x258] sm:$0xff]  ;;  %v957_v4 = vrot.slane %v10104_v53, 2 }
  0x40   : > { %1151 = vmatprep.subr.mxu0 %v9617_v2  ;;  %1376 = vmatprep.subr.mxu1 %v9617_v2  ;;  %583 = vst [vmem:[#allocation2 + $0x171] sm:$0xff] %v550_v42  ;;  %584 = vst [vmem:[#allocation2 + $0x181] sm:$0xff] %v551_v44  ;;  %v594_v61 = vld [vmem:[#allocation2 + $0x40] sm:$0x3]  ;;  %v714_v1 = vld [vmem:[%s15200_s1 + $0x250] sm:$0xff]  ;;  %v958_v5 = vrot.slane %v10100_v52, 2 }
  0x41   : > { %1152 = vmatpush2.msra.mxu0 %v661_v12  ;;  %1377 = vmatpush2.msra.mxu1 %v693_v13  ;;  %585 = vst [vmem:[#allocation2 + $0x189] sm:$0xff] %v552_v48  ;;  %v10130_v63 = vsel %vm833_vm0, %v844_v57, %v845_v58  ;;  %v847_v0 = vrot.slane %v594_v61, 1  ;;  %v10142_v6 = vld [vmem:[#allocation2 + $0x50] sm:$0xff]  ;;  %v10145_v7 = vld [vmem:[#allocation2 + $0x48] sm:$0xff]  ;;  %v712_v12 = vld [vmem:[%s15200_s1 + $0x240] sm:$0xff]  ;;  %v960_v14 = vrot.slane %v594_v61, 2 }
  0x42   : > { %1153 = vmatprep.subr.mxu0 %v9617_v2  ;;  %1378 = vmatprep.subr.mxu1 %v9617_v2  ;;  %v713_v8 = vld [vmem:[%s15200_s1 + $0x248] sm:$0xff]  ;;  %v849_v10 = vrot.slane %v10145_v7, 1  ;;  %v850_v11 = vrot.slane %v10142_v6, 1  ;;  %v10164_v13 = vsel %vm946_vm1, %v957_v4, %v958_v5  ;;  %v963_v22 = vrot.slane %v10142_v6, 2  ;;  %v707_v33 = vld [vmem:[%s15200_s1 + $0x218] sm:$0xff]  ;;  %v10230_v40 = vld [vmem:[#allocation2 + $0x80] sm:$0xff] }
  0x43   : > { %1154 = vmatpush2.msra.mxu0 %v660_v15  ;;  %1379 = vmatpush2.msra.mxu1 %v692_v16  ;;  %v10154_v9 = vsel %vm833_vm0, %v845_v58, %v847_v0  ;;  %v597_v15 = vld [vmem:[#allocation2 + $0x58] sm:$0x3]  ;;  %v709_v25 = vld [vmem:[%s15200_s1 + $0x228] sm:$0xff]  ;;  %v704_v47 = vld [vmem:[%s15200_s1 + $0x200] sm:$0xff]  ;;  %v973_v60 = vrot.slane %v10230_v40, 2 }
  0x44   : > { %1155 = vmatprep.subr.mxu0 %v9617_v2  ;;  %1380 = vmatprep.subr.mxu1 %v9617_v2  ;;  %v711_v16 = vld [vmem:[%s15200_s1 + $0x238] sm:$0xff]  ;;  %v10174_v17 = vsel %vm833_vm0, %v849_v10, %v850_v11  ;;  %v852_v18 = vrot.slane %v597_v15, 1  ;;  %v965_v31 = vrot.slane %v597_v15, 2  ;;  %v705_v42 = vld [vmem:[%s15200_s1 + $0x208] sm:$0xff]  ;;  %v750_v0 = vld [vmem:[%s15200_s1 + $0x370] sm:$0xff] }
  0x45   : > { %1156 = vmatpush2.msra.mxu0 %v659_v19  ;;  %1381 = vmatpush2.msra.mxu1 %v691_v20  ;;  %v710_v19 = vld [vmem:[%s15200_s1 + $0x230] sm:$0xff]  ;;  %v10182_v20 = vsel %vm946_vm1, %v958_v5, %v960_v14  ;;  %v10233_v41 = vld [vmem:[#allocation2 + $0x78] sm:$0xff]  ;;  %v603_v50 = vld [vmem:[#allocation2 + $0x88] sm:$0x3] }
  0x46   : > { %1157 = vmatprep.subr.mxu0 %v9617_v2  ;;  %1382 = vmatprep.subr.mxu1 %v9617_v2  ;;  %v10198_v26 = vsel %vm833_vm0, %v850_v11, %v852_v18  ;;  %v10226_v37 = vsel %vm946_vm1, %v963_v22, %v965_v31  ;;  %v859_v44 = vrot.slane %v10233_v41, 1  ;;  %v735_v51 = vld [vmem:[%s15200_s1 + $0x2f8] sm:$0xff]  ;;  %v972_v58 = vrot.slane %v10233_v41, 2  ;;  %v10298_v14 = vld [vmem:[#allocation2] sm:$0xff]  ;;  %vm12423_vm13 = vmor %vm4421_vm10, %vm4422_vm11 }
  0x47   : > { %1158 = vmatpush2.msra.mxu0 %v658_v23  ;;  %1383 = vmatpush2.msra.mxu1 %v690_v24  ;;  %v10186_v23 = vld [vmem:[#allocation2 + $0x68] sm:$0xff]  ;;  %v10189_v24 = vld [vmem:[#allocation2 + $0x60] sm:$0xff]  ;;  %v10274_v61 = vld [vmem:[#allocation2 + $0x98] sm:$0xff]  ;;  %v975_v11 = vrot.slane %v603_v50, 2 }
  0x48   : > { %1159 = vmatprep.subr.mxu0 %v9617_v2  ;;  %1384 = vmatprep.subr.mxu1 %v9617_v2  ;;  %v967_v38 = vrot.slane %v10189_v24, 2  ;;  %v865_v5 = vrot.slane %v10274_v61, 1  ;;  %v10296_v10 = vsel %vm946_vm1, %v972_v58, %v973_v60  ;;  %vm12431_vm14 = vmor %vm2624_vm2, %vm4440_vm12 }
  0x49   : > { %1160 = vmatpush2.msra.mxu0 %v657_v27  ;;  %1163 = vmatprep.mubr.f32.mxu0 %v834_v21  ;;  %v962_v21 = vrot.slane %v10145_v7, 2  ;;  %v854_v27 = vrot.slane %v10189_v24, 1  ;;  %v10313_v18 = vsel %vm946_vm1, %v973_v60, %v975_v11  ;;  %v731_v11 = vld [vmem:[%s15200_s1 + $0x2d8] sm:$0xff] }
  0x4a   : > { %1161 = vmatprep.subr.mxu0 %v9617_v2  ;;  %1385 = vmatpush2.msra.mxu1 %v689_v28  ;;  %v855_v28 = vrot.slane %v10186_v23, 1 }
  0x4b   : > { %1162 = vmatpush2.msra.mxu0 %v656_v32  ;;  %1386 = vmatprep.subr.mxu1 %v9617_v2  ;;  %v600_v32 = vld [vmem:[#allocation2 + $0x70] sm:$0x3] }
  0x4c   : > { %1164 = vmatmul.mubr.f32.vlgmr.msra.gmra.mxu0 %v9617_v2  ;;  %1549 = vmatprep.subr.mxu0 %v9617_v2  ;;  %v857_v35 = vrot.slane %v600_v32, 1 }
  0x4d   : > { %1387 = vmatpush2.msra.mxu1 %v688_v36  ;;  %1388 = vmatprep.mubr.f32.mxu1 %v589_v34  ;;  %v706_v36 = vld [vmem:[%s15200_s1 + $0x210] sm:$0xff] }
  0x4e   : > { %1550 = vmatpush1.msra.mxu0 %v719_v39  ;;  %1389 = vmatmul.mubr.f32.vlgmr.msra.gmra.mxu1 %v947_v29  ;;  %v708_v29 = vld [vmem:[%s15200_s1 + $0x220] sm:$0xff]  ;;  %v968_v39 = vrot.slane %v10186_v23, 2 }
  0x4f   : > { %1168 = vmatprep.mubr.f32.mxu0 %v838_v43  ;;  %1551 = vmatprep.subr.mxu0 %v9617_v2  ;;  %v10242_v43 = vsel %vm833_vm0, %v855_v28, %v857_v35 }
  0x50   : > { %1169 = vmatmul.mubr.f32.gmra.mxu0 %v9617_v2  ;;  %1393 = vmatprep.mubr.f32.mxu1 %v10067_v30  ;;  %v10252_v48 = vsel %vm946_vm1, %v967_v38, %v968_v39  ;;  %v609_v38 = vld [vmem:[#allocation2 + $0xb8] sm:$0x3] }
  0x51   : > { %1552 = vmatpush1.msra.mxu0 %v718_v45  ;;  %1173 = vmatprep.mubr.f32.mxu0 %v10094_v46  ;;  %v860_v45 = vrot.slane %v10230_v40, 1 }
  0x52   : > { %1394 = vmatmul.mubr.f32.gmra.mxu1 %v951_v49  ;;  %1553 = vmatprep.subr.mxu0 %v9617_v2  ;;  %v970_v49 = vrot.slane %v600_v32, 2 }
  0x53   : > { %1398 = vmatprep.mubr.f32.mxu1 %v10104_v53  ;;  %1554 = vmatpush1.msra.mxu0 %v717_v54  ;;  %v862_v54 = vrot.slane %v603_v50, 1 }
  0x54   : > { %1174 = vmatmul.mubr.f32.gmra.mxu0 %v589_v34  ;;  %1555 = vmatprep.subr.mxu0 %v9617_v2  ;;  %v10218_v34 = vsel %vm833_vm0, %v854_v27, %v855_v28  ;;  %v10270_v57 = vsel %vm946_vm1, %v968_v39, %v970_v49  ;;  %v10323_v27 = vld [vmem:[#allocation2 + $0xa8] sm:$0xff]  ;;  %v748_v28 = vld [vmem:[%s15200_s1 + $0x360] sm:$0xff]  ;;  %v746_v39 = vld [vmem:[%s15200_s1 + $0x350] sm:$0xff] }
  0x55   : > { %1178 = vmatprep.mubr.f32.mxu0 %v10112_v55  ;;  %1556 = vmatpush1.msra.mxu0 %v716_v56  ;;  %v751_v56 = vld [vmem:[%s15200_s1 + $0x378] sm:$0xff]  ;;  %v869_v31 = vrot.slane %v10323_v27, 1  ;;  %v982_v49 = vrot.slane %v10323_v27, 2 }
  0x56   : > { %1399 = vmatmul.mubr.f32.gmra.mxu1 %v10121_v59  ;;  %1557 = vmatprep.subr.mxu0 %v9617_v2 }
  0x57   : > { %1403 = vmatprep.mubr.f32.mxu1 %v10100_v52  ;;  %1558 = vmatpush1.msra.mxu0 %v715_v62  ;;  %v10277_v62 = vld [vmem:[#allocation2 + $0x90] sm:$0xff] }
  0x58   : > { %1179 = vmatmul.mubr.f32.gmra.mxu0 %v10067_v30  ;;  %1559 = vmatprep.subr.mxu0 %v9617_v2  ;;  %v10208_v30 = vsel %vm946_vm1, %v962_v21, %v963_v22  ;;  %v864_v4 = vrot.slane %v10277_v62, 1  ;;  %v978_v21 = vrot.slane %v10274_v61, 2  ;;  %v10317_v22 = vld [vmem:[#allocation2 + $0xb0] sm:$0xff] }
  0x59   : > { %1183 = vmatprep.mubr.f32.mxu0 %v10130_v63  ;;  %1560 = vmatpush1.msra.mxu0 %v714_v1  ;;  %v10286_v1 = vsel %vm833_vm0, %v860_v45, %v862_v54  ;;  %v870_v32 = vrot.slane %v10317_v22, 1  ;;  %v983_v50 = vrot.slane %v10317_v22, 2  ;;  %v10368_v54 = vld [vmem:[#allocation2 + $0xc0] sm:$0xff] }
  0x5a   : > { %1404 = vmatmul.mubr.f32.gmra.mxu1 %v10138_v3  ;;  %1561 = vmatprep.subr.mxu0 %v9617_v2  ;;  %v10308_v15 = vsel %vm833_vm0, %v864_v4, %v865_v5  ;;  %v874_v60 = vrot.slane %v10368_v54, 1 }
  0x5b   : > { %1408 = vmatprep.mubr.f32.mxu1 %v10145_v7  ;;  %1562 = vmatpush1.msra.mxu0 %v713_v8  ;;  %v734_v8 = vld [vmem:[%s15200_s1 + $0x2f0] sm:$0xff]  ;;  %v10383_v4 = vsel %vm946_vm1, %v982_v49, %v983_v50 }
  0x5c   : > { %1184 = vmatmul.mubr.f32.gmra.mxu0 %v10104_v53  ;;  %1563 = vmatprep.subr.mxu0 %v9617_v2 }
  0x5d   : > { %1188 = vmatprep.mubr.f32.mxu0 %v10154_v9  ;;  %1564 = vmatpush1.msra.mxu0 %v712_v12  ;;  %v606_v12 = vld [vmem:[#allocation2 + $0xa0] sm:$0x3] }
  0x5e   : > { %1409 = vmatmul.mubr.f32.gmra.mxu1 %v10164_v13  ;;  %1565 = vmatprep.subr.mxu0 %v9617_v2 }
  0x5f   : > { %1413 = vmatprep.mubr.f32.mxu1 %v10142_v6  ;;  %1566 = vmatpush1.msra.mxu0 %v711_v16  ;;  %v867_v16 = vrot.slane %v606_v12, 1 }
  0x60   : > { %1189 = vmatmul.mubr.f32.gmra.mxu0 %v10100_v52  ;;  %1567 = vmatprep.subr.mxu0 %v9617_v2  ;;  %v10262_v52 = vsel %vm833_vm0, %v859_v44, %v860_v45  ;;  %v872_v44 = vrot.slane %v609_v38, 1  ;;  %v732_v45 = vld [vmem:[%s15200_s1 + $0x2e0] sm:$0xff] }
  0x61   : > { %1193 = vmatprep.mubr.f32.mxu0 %v10174_v17  ;;  %1568 = vmatpush1.msra.mxu0 %v710_v19  ;;  %v977_v19 = vrot.slane %v10277_v62, 2 }
  0x62   : > { %1414 = vmatmul.mubr.f32.gmra.mxu1 %v10182_v20  ;;  %1569 = vmatprep.subr.mxu0 %v9617_v2  ;;  %v10376_v58 = vsel %vm833_vm0, %v870_v32, %v872_v44  ;;  %v730_v44 = vld [vmem:[%s15200_s1 + $0x2d0] sm:$0xff] }
  0x63   : > { %1418 = vmatprep.mubr.f32.mxu1 %v10189_v24  ;;  %1570 = vmatpush1.msra.mxu0 %v709_v25  ;;  %v733_v25 = vld [vmem:[%s15200_s1 + $0x2e8] sm:$0xff]  ;;  %v10342_v35 = vsel %vm946_vm1, %v977_v19, %v978_v21  ;;  %v743_v19 = vld [vmem:[%s15200_s1 + $0x338] sm:$0xff] }
  0x64   : > { %1194 = vmatmul.mubr.f32.gmra.mxu0 %v10145_v7  ;;  %1571 = vmatprep.subr.mxu0 %v9617_v2 }
  0x65   : > { %1198 = vmatprep.mubr.f32.mxu0 %v10198_v26  ;;  %1572 = vmatpush1.msra.mxu0 %v708_v29  ;;  %v10333_v29 = vsel %vm833_vm0, %v865_v5, %v867_v16  ;;  %v985_v5 = vrot.slane %v609_v38, 2 }
  0x66   : > { %1419 = vmatmul.mubr.f32.gmra.mxu1 %v10208_v30  ;;  %1573 = vmatprep.subr.mxu0 %v9617_v2 }
  0x67   : > { %1423 = vmatprep.mubr.f32.mxu1 %v10186_v23  ;;  %1574 = vmatpush1.msra.mxu0 %v707_v33  ;;  %v747_v33 = vld [vmem:[%s15200_s1 + $0x358] sm:$0xff] }
  0x68   : > { %1199 = vmatmul.mubr.f32.gmra.mxu0 %v10142_v6  ;;  %1575 = vmatprep.subr.mxu0 %v9617_v2 }
  0x69   : > { %1203 = vmatprep.mubr.f32.mxu0 %v10218_v34  ;;  %1576 = vmatpush1.msra.mxu0 %v706_v36  ;;  %v980_v36 = vrot.slane %v606_v12, 2  ;;  %v744_v12 = vld [vmem:[%s15200_s1 + $0x340] sm:$0xff] }
  0x6a   : > { %1424 = vmatmul.mubr.f32.gmra.mxu1 %v10226_v37  ;;  %1577 = vmatprep.subr.mxu0 %v9617_v2 }
  0x6b   : > { %1428 = vmatprep.mubr.f32.mxu1 %v10233_v41  ;;  %1578 = vmatpush1.msra.mxu0 %v705_v42  ;;  %v10352_v42 = vsel %vm833_vm0, %v869_v31, %v870_v32  ;;  %v10408_v31 = vld [vmem:[#allocation2 + $0xe0] sm:$0xff]  ;;  %v10411_v32 = vld [vmem:[#allocation2 + $0xd8] sm:$0xff] }
  0x6c   : > { %1204 = vmatmul.mubr.f32.gmra.mxu0 %v10189_v24  ;;  %1579 = vmatprep.subr.mxu0 %v9617_v2  ;;  %15322 = vst [vmem:[#allocation5_spill] sm:$0xff] %v10408_v31  ;;  %15323 = vst [vmem:[#allocation6_spill] sm:$0xff] %v10411_v32  ;;  %v879_v38 = vrot.slane %v10411_v32, 1 }
  0x6d   : > { %1208 = vmatprep.mubr.f32.mxu0 %v10242_v43  ;;  %1580 = vmatpush1.msra.mxu0 %v704_v47  ;;  %v10360_v47 = vsel %vm946_vm1, %v978_v21, %v980_v36  ;;  %v10404_v21 = vsel %vm946_vm1, %v983_v50, %v985_v5  ;;  %v615_v50 = vld [vmem:[#allocation2 + $0xe8] sm:$0x3] }
  0x6e   : > { %1429 = vmatmul.mubr.f32.gmra.mxu1 %v10252_v48  ;;  %1581 = vmatprep.subr.mxu0 %v9617_v2 }
  0x6f   : > { %1433 = vmatprep.mubr.f32.mxu1 %v10230_v40  ;;  %1582 = vmatpush2.msra.mxu0 %v735_v51  ;;  %v10364_v51 = vld [vmem:[#allocation2 + $0xc8] sm:$0xff] }
  0x70   : > { %1209 = vmatmul.mubr.f32.gmra.mxu0 %v10186_v23  ;;  %1774 = vmatprep.subr.mxu1 %v9617_v2 }
  0x71   : > { %1213 = vmatprep.mubr.f32.mxu0 %v10262_v52  ;;  %1775 = vmatpush1.msra.mxu1 %v751_v56  ;;  %v745_v56 = vld [vmem:[%s15200_s1 + $0x348] sm:$0xff] }
  0x72   : > { %1434 = vmatmul.mubr.f32.gmra.mxu1 %v10270_v57  ;;  %1583 = vmatprep.subr.mxu0 %v9617_v2  ;;  %v749_v2 = vld [vmem:[%s15200_s1 + $0x368] sm:$0xff] }
  0x73   : > { %1438 = vmatprep.mubr.f32.mxu1 %v10277_v62  ;;  %1776 = vmatprep.subr.mxu1 %v10298_v14 }
  0x74   : > { %1214 = vmatmul.mubr.f32.gmra.mxu0 %v10233_v41  ;;  %1777 = vmatpush1.msra.mxu1 %v750_v0  ;;  %v875_v0 = vrot.slane %v10364_v51, 1 }
  0x75   : > { %1218 = vmatprep.mubr.f32.mxu0 %v10286_v1  ;;  %1584 = vmatpush2.msra.mxu0 %v734_v8  ;;  %v612_v8 = vld [vmem:[#allocation2 + $0xd0] sm:$0x3] }
  0x76   : > { %1439 = vmatmul.mubr.f32.gmra.mxu1 %v10296_v10  ;;  %1778 = vmatprep.subr.mxu1 %v10298_v14  ;;  %v877_v16 = vrot.slane %v612_v8, 1  ;;  %v990_v49 = vrot.slane %v612_v8, 2  ;;  %v992_v8 = vrot.slane %v10411_v32, 2 }
  0x77   : > { %1443 = vmatprep.mubr.f32.mxu1 %v10274_v61  ;;  %1779 = vmatpush1.msra.mxu1 %v749_v2  ;;  %v10397_v2 = vsel %vm833_vm0, %v874_v60, %v875_v0 }
  0x78   : > { %1219 = vmatmul.mubr.f32.gmra.mxu0 %v10230_v40  ;;  %1585 = vmatprep.subr.mxu0 %v10298_v14  ;;  %v10420_v36 = vsel %vm833_vm0, %v875_v0, %v877_v16  ;;  %v882_v0 = vrot.slane %v615_v50, 1  ;;  %v729_v16 = vld [vmem:[%s15200_s1 + $0x2c8] sm:$0xff] }
  0x79   : > { %1223 = vmatprep.mubr.f32.mxu0 %v10308_v15  ;;  %1780 = vmatprep.subr.mxu1 %v10298_v14 }
  0x7a   : > { %1444 = vmatmul.mubr.f32.gmra.mxu1 %v10313_v18  ;;  %1586 = vmatpush2.msra.mxu0 %v733_v25  ;;  %v987_v25 = vrot.slane %v10368_v54, 2 }
  0x7b   : > { %1448 = vmatprep.mubr.f32.mxu1 %v10323_v27  ;;  %1781 = vmatpush1.msra.mxu1 %v748_v28  ;;  %v988_v28 = vrot.slane %v10364_v51, 2 }
  0x7c   : > { %1224 = vmatmul.mubr.f32.gmra.mxu0 %v10277_v62  ;;  %1782 = vmatprep.subr.mxu1 %v10298_v14 }
  0x7d   : > { %1228 = vmatprep.mubr.f32.mxu0 %v10333_v29  ;;  %1783 = vmatpush1.msra.mxu1 %v747_v33  ;;  %v742_v33 = vld [vmem:[%s15200_s1 + $0x330] sm:$0xff]  ;;  %v10445_v5 = vsel %vm946_vm1, %v988_v28, %v990_v49 }
  0x7e   : > { %1449 = vmatmul.mubr.f32.gmra.mxu1 %v10342_v35  ;;  %1587 = vmatprep.subr.mxu0 %v10298_v14  ;;  %15325 = vst [vmem:[#allocation8_spill] sm:$0xff] %v10445_v5 }
  0x7f   : > { %1453 = vmatprep.mubr.f32.mxu1 %v10317_v22  ;;  %1784 = vmatprep.subr.mxu1 %v10298_v14 }
  0x80   : > { %1229 = vmatmul.mubr.f32.gmra.mxu0 %v10274_v61  ;;  %1785 = vmatpush1.msra.mxu1 %v746_v39  ;;  %v880_v39 = vrot.slane %v10408_v31, 1 }
  0x81   : > { %1233 = vmatprep.mubr.f32.mxu0 %v10352_v42  ;;  %1588 = vmatpush2.msra.mxu0 %v732_v45  ;;  %v10430_v45 = vsel %vm946_vm1, %v987_v25, %v988_v28  ;;  %v740_v25 = vld [vmem:[%s15200_s1 + $0x320] sm:$0xff] }
  0x82   : > { %1454 = vmatmul.mubr.f32.gmra.mxu1 %v10360_v47  ;;  %1786 = vmatprep.subr.mxu1 %v10298_v14  ;;  %v10440_v60 = vsel %vm833_vm0, %v879_v38, %v880_v39  ;;  %v10465_v28 = vsel %vm833_vm0, %v880_v39, %v882_v0  ;;  %v738_v39 = vld [vmem:[%s15200_s1 + $0x310] sm:$0xff] }
  0x83   : > { %1458 = vmatprep.mubr.f32.mxu1 %v10368_v54  ;;  %1787 = vmatpush1.msra.mxu1 %v745_v56  ;;  %v741_v56 = vld [vmem:[%s15200_s1 + $0x328] sm:$0xff]  ;;  %15324 = vst [vmem:[#allocation7_spill] sm:$0xff] %v10440_v60  ;;  %15328 = vst [vmem:[#allocation11_spill] sm:$0xff] %v10465_v28 }
  0x84   : > { %1234 = vmatmul.mubr.f32.gmra.mxu0 %v10323_v27  ;;  %1589 = vmatprep.subr.mxu0 %v10298_v14 }
  0x85   : > { %1238 = vmatprep.mubr.f32.mxu0 %v10376_v58  ;;  %1788 = vmatprep.subr.mxu1 %v10298_v14 }
  0x86   : > { %1459 = vmatmul.mubr.f32.gmra.mxu1 %v10383_v4  ;;  %1590 = vmatpush2.msra.mxu0 %v731_v11  ;;  %v993_v11 = vrot.slane %v10408_v31, 2 }
  0x87   : > { %1463 = vmatprep.mubr.f32.mxu1 %v10364_v51  ;;  %1789 = vmatpush1.msra.mxu1 %v744_v12  ;;  %v10449_v12 = vld [vmem:[#allocation2 + $0xf8] sm:$0xff] }
  0x88   : > { %1239 = vmatmul.mubr.f32.gmra.mxu0 %v10317_v22  ;;  %1790 = vmatprep.subr.mxu1 %v10298_v14  ;;  %15326 = vst [vmem:[#allocation9_spill] sm:$0xff] %v10449_v12  ;;  %v885_v38 = vrot.slane %v10449_v12, 1  ;;  %v10474_v49 = vsel %vm946_vm1, %v992_v8, %v993_v11 }
  0x89   : > { %1243 = vmatprep.mubr.f32.mxu0 %v10397_v2  ;;  %1791 = vmatpush1.msra.mxu1 %v743_v19  ;;  %v10455_v19 = vld [vmem:[#allocation2 + $0xf0] sm:$0xff]  ;;  %15329 = vst [vmem:[#allocation12_spill] sm:$0xff] %v10474_v49 }
  0x8a   : > { %1464 = vmatmul.mubr.f32.gmra.mxu1 %v10404_v21  ;;  %1591 = vmatprep.subr.mxu0 %v10298_v14  ;;  %15327 = vst [vmem:[#allocation10_spill] sm:$0xff] %v10455_v19 }
  0x8b   : > { %1468 = vmatprep.mubr.f32.mxu1 %v10411_v32  ;;  %1792 = vmatprep.subr.mxu1 %v10298_v14 }
  0x8c   : > { %1244 = vmatmul.mubr.f32.gmra.mxu0 %v10368_v54  ;;  %1793 = vmatpush1.msra.mxu1 %v742_v33  ;;  %v884_v33 = vrot.slane %v10455_v19, 1 }
  0x8d   : > { %1248 = vmatprep.mubr.f32.mxu0 %v10420_v36  ;;  %1592 = vmatpush2.msra.mxu0 %v730_v44  ;;  %v739_v44 = vld [vmem:[%s15200_s1 + $0x318] sm:$0xff] }
  0x8e   : > { %1469 = vmatmul.mubr.f32.gmra.mxu1 %v10430_v45  ;;  %1794 = vmatprep.subr.mxu1 %v10298_v14  ;;  %v10484_v0 = vsel %vm833_vm0, %v884_v33, %v885_v38  ;;  %v10500_v33 = vld [vmem:[#allocation2 + $0x108] sm:$0xff] }
  0x8f   : > { %1473 = vmatprep.mubr.f32.mxu1 %v10408_v31  ;;  %1795 = vmatpush1.msra.mxu1 %v741_v56  ;;  %v995_v56 = vrot.slane %v615_v50, 2  ;;  %v728_v50 = vld [vmem:[%s15200_s1 + $0x2c0] sm:$0xff]  ;;  %15332 = vst [vmem:[#allocation15_spill] sm:$0xff] %v10500_v33 }
  0x90   : > { %1249 = vmatmul.mubr.f32.gmra.mxu0 %v10364_v51  ;;  %1593 = vmatprep.subr.mxu0 %v10298_v14 }
  0x91   : > { %1253 = vmatprep.mubr.f32.mxu0 %v10440_v60  ;;  %1796 = vmatprep.subr.mxu1 %v10298_v14  ;;  %v618_v60 = vld [vmem:[#allocation2 + $0x100] sm:$0x3] }
  0x92   : > { %1474 = vmatmul.mubr.f32.gmra.mxu1 %v10445_v5  ;;  %1594 = vmatpush2.msra.mxu0 %v729_v16  ;;  %v887_v8 = vrot.slane %v618_v60, 1  ;;  %v10492_v16 = vsel %vm946_vm1, %v993_v11, %v995_v56  ;;  %v889_v56 = vrot.slane %v10500_v33, 1  ;;  %v621_v5 = vld [vmem:[#allocation2 + $0x118] sm:$0x3] }
  0x93   : > { %1478 = vmatprep.mubr.f32.mxu1 %v10455_v19  ;;  %1797 = vmatpush1.msra.mxu1 %v740_v25  ;;  %15330 = vst [vmem:[#allocation13_spill] sm:$0xff] %v10492_v16  ;;  %v997_v25 = vrot.slane %v10455_v19, 2 }
  0x94   : > { %1254 = vmatmul.mubr.f32.gmra.mxu0 %v10411_v32  ;;  %1798 = vmatprep.subr.mxu1 %v10298_v14  ;;  %v10508_v11 = vsel %vm833_vm0, %v885_v38, %v887_v8  ;;  %v736_v38 = vld [vmem:[%s15200_s1 + $0x300] sm:$0xff]  ;;  %v767_v8 = vld [vmem:[%s15200_s1 + $0x3f8] sm:$0xff] }
  0x95   : > { %1258 = vmatprep.mubr.f32.mxu0 %v10465_v28  ;;  %1799 = vmatpush1.msra.mxu1 %v739_v44  ;;  %v998_v44 = vrot.slane %v10449_v12, 2  ;;  %v737_v28 = vld [vmem:[%s15200_s1 + $0x308] sm:$0xff]  ;;  %15333 = vst [vmem:[#allocation16_spill] sm:$0xff] %v10508_v11 }
  0x96   : > { %1479 = vmatmul.mubr.f32.gmra.mxu1 %v10474_v49  ;;  %1595 = vmatprep.subr.mxu0 %v10298_v14  ;;  %v10496_v49 = vld [vmem:[#allocation2 + $0x110] sm:$0xff] }
  0x97   : > { %1483 = vmatprep.mubr.f32.mxu1 %v10449_v12  ;;  %15331 = vst [vmem:[#allocation14_spill] sm:$0xff] %v10496_v49  ;;  %1800 = vmatprep.subr.mxu1 %v10298_v14  ;;  %v890_v32 = vrot.slane %v10496_v49, 1 }
  0x98   : > { %1259 = vmatmul.mubr.f32.gmra.mxu0 %v10408_v31  ;;  %1801 = vmatpush1.msra.mxu1 %v738_v39  ;;  %v10515_v39 = vsel %vm946_vm1, %v997_v25, %v998_v44  ;;  %v1000_v31 = vrot.slane %v618_v60, 2 }
  0x99   : > { %1263 = vmatprep.mubr.f32.mxu0 %v10484_v0  ;;  %1596 = vmatpush2.msra.mxu0 %v728_v50  ;;  %15334 = vst [vmem:[#allocation17_spill] sm:$0xff] %v10515_v39  ;;  %v727_v50 = vld [vmem:[%s15200_s1 + $0x2b8] sm:$0xff]  ;;  %v10529_v60 = vsel %vm833_vm0, %v889_v56, %v890_v32  ;;  %v10543_v56 = vld [vmem:[#allocation2 + $0x120] sm:$0xff] }
  0x9a   : > { %1484 = vmatmul.mubr.f32.gmra.mxu1 %v10492_v16  ;;  %1802 = vmatprep.subr.mxu1 %v10298_v14  ;;  %15335 = vst [vmem:[#allocation18_spill] sm:$0xff] %v10529_v60  ;;  %v10536_v25 = vsel %vm946_vm1, %v998_v44, %v1000_v31  ;;  %v10540_v16 = vld [vmem:[#allocation2 + $0x128] sm:$0xff]  ;;  %15338 = vst [vmem:[#allocation21_spill] sm:$0xff] %v10543_v56  ;;  %v766_v31 = vld [vmem:[%s15200_s1 + $0x3f0] sm:$0xff] }
  0x9b   : > { %1488 = vmatprep.mubr.f32.mxu1 %v10500_v33  ;;  %1803 = vmatpush1.msra.mxu1 %v737_v28  ;;  %v892_v28 = vrot.slane %v621_v5, 1  ;;  %15336 = vst [vmem:[#allocation19_spill] sm:$0xff] %v10536_v25  ;;  %15337 = vst [vmem:[#allocation20_spill] sm:$0xff] %v10540_v16 }
  0x9c   : > { %1264 = vmatmul.mubr.f32.gmra.mxu0 %v10455_v19  ;;  %1597 = vmatprep.subr.mxu0 %v10298_v14  ;;  %v1003_v19 = vrot.slane %v10496_v49, 2 }
  0x9d   : > { %1268 = vmatprep.mubr.f32.mxu0 %v10508_v11  ;;  %1804 = vmatprep.subr.mxu1 %v10298_v14  ;;  %v1002_v11 = vrot.slane %v10500_v33, 2  ;;  %v10552_v44 = vsel %vm833_vm0, %v890_v32, %v892_v28  ;;  %v765_v32 = vld [vmem:[%s15200_s1 + $0x3e8] sm:$0xff] }
  0x9e   : > { %1489 = vmatmul.mubr.f32.gmra.mxu1 %v10515_v39  ;;  %1598 = vmatpush2.msra.mxu0 %v727_v50  ;;  %15339 = vst [vmem:[#allocation22_spill] sm:$0xff] %v10552_v44  ;;  %v894_v50 = vrot.slane %v10543_v56, 1  ;;  %v10581_v39 = vld [vmem:[#allocation2 + $0x140] sm:$0xff] }
  0x9f   : > { %1493 = vmatprep.mubr.f32.mxu1 %v10496_v49  ;;  %1805 = vmatpush1.msra.mxu1 %v736_v38  ;;  %v895_v38 = vrot.slane %v10540_v16, 1  ;;  %15343 = vst [vmem:[#allocation26_spill] sm:$0xff] %v10581_v39 }
  0xa0   : > { %1269 = vmatmul.mubr.f32.gmra.mxu0 %v10449_v12  ;;  %1806 = vmatprep.subr.mxu1 %v10298_v14  ;;  %v1005_v12 = vrot.slane %v621_v5, 2 }
  0xa1   : > { %1273 = vmatprep.mubr.f32.mxu0 %v10529_v60  ;;  %1807 = vmatpush2.msra.mxu1 %v767_v8  ;;  %v726_v60 = vld [vmem:[%s15200_s1 + $0x2b0] sm:$0xff]  ;;  %v10562_v8 = vsel %vm946_vm1, %v1002_v11, %v1003_v19  ;;  %v10572_v28 = vsel %vm833_vm0, %v894_v50, %v895_v38  ;;  %v10587_v50 = vld [vmem:[#allocation2 + $0x138] sm:$0xff] }
  0xa2   : > { %1494 = vmatmul.mubr.f32.gmra.mxu1 %v10536_v25  ;;  %1599 = vmatprep.subr.mxu0 %v10298_v14  ;;  %15340 = vst [vmem:[#allocation23_spill] sm:$0xff] %v10562_v8  ;;  %v624_v25 = vld [vmem:[#allocation2 + $0x130] sm:$0x3]  ;;  %15341 = vst [vmem:[#allocation24_spill] sm:$0xff] %v10572_v28  ;;  %v10577_v5 = vsel %vm946_vm1, %v1003_v19, %v1005_v12  ;;  %v764_v12 = vld [vmem:[%s15200_s1 + $0x3e0] sm:$0xff] }
  0xa3   : > { %1498 = vmatprep.mubr.f32.mxu1 %v10543_v56  ;;  %1808 = vmatprep.subr.mxu1 %v10298_v14  ;;  %v897_v11 = vrot.slane %v624_v25, 1  ;;  %15342 = vst [vmem:[#allocation25_spill] sm:$0xff] %v10577_v5  ;;  %15344 = vst [vmem:[#allocation27_spill] sm:$0xff] %v10587_v50 }
  0xa4   : > { %1274 = vmatmul.mubr.f32.gmra.mxu0 %v10500_v33  ;;  %1809 = vmatpush2.msra.mxu1 %v766_v31  ;;  %v1007_v31 = vrot.slane %v10543_v56, 2  ;;  %v1008_v33 = vrot.slane %v10540_v16, 2 }
  0xa5   : > { %1278 = vmatprep.mubr.f32.mxu0 %v10552_v44  ;;  %1600 = vmatpush2.msra.mxu0 %v726_v60  ;;  %v725_v60 = vld [vmem:[%s15200_s1 + $0x2a8] sm:$0xff]  ;;  %v10597_v19 = vsel %vm833_vm0, %v895_v38, %v897_v11  ;;  %v1010_v44 = vrot.slane %v624_v25, 2  ;;  %v762_v38 = vld [vmem:[%s15200_s1 + $0x3d0] sm:$0xff]  ;;  %v724_v25 = vld [vmem:[%s15200_s1 + $0x2a0] sm:$0xff] }
  0xa6   : > { %1499 = vmatmul.mubr.f32.gmra.mxu1 %v10562_v8  ;;  %1810 = vmatprep.subr.mxu1 %v10298_v14  ;;  %15345 = vst [vmem:[#allocation28_spill] sm:$0xff] %v10597_v19  ;;  %v763_v8 = vld [vmem:[%s15200_s1 + $0x3d8] sm:$0xff] }
  0xa7   : > { %1503 = vmatprep.mubr.f32.mxu1 %v10540_v16  ;;  %1811 = vmatpush2.msra.mxu1 %v765_v32  ;;  %v899_v32 = vrot.slane %v10587_v50, 1 }
  0xa8   : > { %1279 = vmatmul.mubr.f32.gmra.mxu0 %v10496_v49  ;;  %1601 = vmatprep.subr.mxu0 %v10298_v14  ;;  %v900_v49 = vrot.slane %v10581_v39, 1 }
  0xa9   : > { %1283 = vmatprep.mubr.f32.mxu0 %v10572_v28  ;;  %1812 = vmatprep.subr.mxu1 %v10298_v14  ;;  %v10606_v28 = vsel %vm946_vm1, %v1007_v31, %v1008_v33 }
  0xaa   : > { %1504 = vmatmul.mubr.f32.gmra.mxu1 %v10577_v5  ;;  %1602 = vmatpush2.msra.mxu0 %v725_v60  ;;  %15346 = vst [vmem:[#allocation29_spill] sm:$0xff] %v10606_v28  ;;  %v627_v5 = vld [vmem:[#allocation2 + $0x148] sm:$0x3]  ;;  %v10616_v11 = vsel %vm833_vm0, %v899_v32, %v900_v49  ;;  %v1012_v60 = vrot.slane %v10587_v50, 2  ;;  %v10629_v32 = vld [vmem:[#allocation2 + $0x158] sm:$0xff] }
  0xab   : > { %1508 = vmatprep.mubr.f32.mxu1 %v10587_v50  ;;  %1813 = vmatpush2.msra.mxu1 %v764_v12  ;;  %v902_v31 = vrot.slane %v627_v5, 1  ;;  %v1013_v12 = vrot.slane %v10581_v39, 2  ;;  %15348 = vst [vmem:[#allocation31_spill] sm:$0xff] %v10629_v32 }
  0xac   : > { %1284 = vmatmul.mubr.f32.gmra.mxu0 %v10543_v56  ;;  %1814 = vmatprep.subr.mxu1 %v10298_v14  ;;  %v1015_v56 = vrot.slane %v627_v5, 2 }
  0xad   : > { %1288 = vmatprep.mubr.f32.mxu0 %v10597_v19  ;;  %1815 = vmatpush2.msra.mxu1 %v763_v8  ;;  %v10624_v8 = vsel %vm946_vm1, %v1008_v33, %v1010_v44  ;;  %v761_v19 = vld [vmem:[%s15200_s1 + $0x3c8] sm:$0xff]  ;;  %v10640_v33 = vsel %vm833_vm0, %v900_v49, %v902_v31  ;;  %v760_v49 = vld [vmem:[%s15200_s1 + $0x3c0] sm:$0xff]  ;;  %v759_v31 = vld [vmem:[%s15200_s1 + $0x3b8] sm:$0xff] }
  0xae   : > { %1509 = vmatmul.mubr.f32.gmra.mxu1 %v10606_v28  ;;  %1603 = vmatprep.subr.mxu0 %v10298_v14  ;;  %15347 = vst [vmem:[#allocation30_spill] sm:$0xff] %v10624_v8  ;;  %v10632_v28 = vld [vmem:[#allocation2 + $0x150] sm:$0xff]  ;;  %15349 = vst [vmem:[#allocation32_spill] sm:$0xff] %v10640_v33 }
  0xaf   : > { %1513 = vmatprep.mubr.f32.mxu1 %v10581_v39  ;;  %1816 = vmatprep.subr.mxu1 %v10298_v14  ;;  %v904_v44 = vrot.slane %v10632_v28, 1 }
  0xb0   : > { %1289 = vmatmul.mubr.f32.gmra.mxu0 %v10540_v16  ;;  %1817 = vmatpush2.msra.mxu1 %v762_v38  ;;  %v905_v16 = vrot.slane %v10629_v32, 1  ;;  %v10647_v38 = vsel %vm946_vm1, %v1012_v60, %v1013_v12  ;;  %v10668_v60 = vsel %vm946_vm1, %v1013_v12, %v1015_v56  ;;  %v758_v56 = vld [vmem:[%s15200_s1 + $0x3b0] sm:$0xff] }
  0xb1   : > { %1293 = vmatprep.mubr.f32.mxu0 %v10616_v11  ;;  %1604 = vmatpush2.msra.mxu0 %v724_v25  ;;  %15350 = vst [vmem:[#allocation33_spill] sm:$0xff] %v10647_v38  ;;  %v723_v25 = vld [vmem:[%s15200_s1 + $0x298] sm:$0xff]  ;;  %15352 = vst [vmem:[#allocation35_spill] sm:$0xff] %v10668_v60 }
  0xb2   : > { %1514 = vmatmul.mubr.f32.gmra.mxu1 %v10624_v8  ;;  %1818 = vmatprep.subr.mxu1 %v10298_v14  ;;  %v630_v8 = vld [vmem:[#allocation2 + $0x160] sm:$0x3]  ;;  %v10661_v5 = vsel %vm833_vm0, %v904_v44, %v905_v16  ;;  %v10675_v44 = vld [vmem:[#allocation2 + $0x168] sm:$0xff] }
  0xb3   : > { %1518 = vmatprep.mubr.f32.mxu1 %v10632_v28  ;;  %1819 = vmatpush2.msra.mxu1 %v761_v19  ;;  %15351 = vst [vmem:[#allocation34_spill] sm:$0xff] %v10661_v5  ;;  %v907_v19 = vrot.slane %v630_v8, 1 }
  0xb4   : > { %1294 = vmatmul.mubr.f32.gmra.mxu0 %v10587_v50  ;;  %1605 = vmatprep.subr.mxu0 %v10298_v14  ;;  %v1018_v50 = vrot.slane %v10629_v32, 2 }
  0xb5   : > { %1298 = vmatprep.mubr.f32.mxu0 %v10640_v33  ;;  %1820 = vmatprep.subr.mxu1 %v10298_v14  ;;  %v1017_v33 = vrot.slane %v10632_v28, 2  ;;  %v10684_v12 = vsel %vm833_vm0, %v905_v16, %v907_v19  ;;  %v633_v16 = vld [vmem:[#allocation2 + $0x178] sm:$0x3]  ;;  %v757_v19 = vld [vmem:[%s15200_s1 + $0x3a8] sm:$0xff] }
  0xb6   : > { %1519 = vmatmul.mubr.f32.gmra.mxu1 %v10647_v38  ;;  %1606 = vmatpush2.msra.mxu0 %v723_v25  ;;  %v10672_v38 = vld [vmem:[#allocation2 + $0x170] sm:$0xff]  ;;  %15353 = vst [vmem:[#allocation36_spill] sm:$0xff] %v10684_v12 }
  0xb7   : > { %1523 = vmatprep.mubr.f32.mxu1 %v10629_v32  ;;  %1821 = vmatpush2.msra.mxu1 %v760_v49  ;;  %v722_v25 = vld [vmem:[%s15200_s1 + $0x290] sm:$0xff]  ;;  %v909_v49 = vrot.slane %v10675_v44, 1 }
  0xb8   : > { %1299 = vmatmul.mubr.f32.gmra.mxu0 %v10581_v39  ;;  %1822 = vmatprep.subr.mxu1 %v10298_v14  ;;  %v912_v39 = vrot.slane %v633_v16, 1 }
  0xb9   : > { %1303 = vmatprep.mubr.f32.mxu0 %v10661_v5  ;;  %1823 = vmatpush2.msra.mxu1 %v759_v31  ;;  %v910_v5 = vrot.slane %v10672_v38, 1  ;;  %v10694_v31 = vsel %vm946_vm1, %v1017_v33, %v1018_v50 }
  0xba   : > { %1524 = vmatmul.mubr.f32.gmra.mxu1 %v10668_v60  ;;  %1607 = vmatprep.subr.mxu0 %v10298_v14  ;;  %15354 = vst [vmem:[#allocation37_spill] sm:$0xff] %v10694_v31  ;;  %v1020_v60 = vrot.slane %v630_v8, 2 }
  0xbb   : > { %1528 = vmatprep.mubr.f32.mxu1 %v10675_v44  ;;  %1824 = vmatprep.subr.mxu1 %v10298_v14  ;;  %v10705_v33 = vsel %vm833_vm0, %v909_v49, %v910_v5  ;;  %v10718_v49 = vld [vmem:[#allocation2 + $0x180] sm:$0xff] }
  0xbc   : > { %1304 = vmatmul.mubr.f32.gmra.mxu0 %v10632_v28  ;;  %1825 = vmatpush2.msra.mxu1 %v758_v56  ;;  %v10709_v8 = vsel %vm946_vm1, %v1018_v50, %v1020_v60  ;;  %v721_v56 = vld [vmem:[%s15200_s1 + $0x288] sm:$0xff]  ;;  %v756_v50 = vld [vmem:[%s15200_s1 + $0x3a0] sm:$0xff]  ;;  %v10727_v60 = vsel %vm833_vm0, %v910_v5, %v912_v39  ;;  %v754_v39 = vld [vmem:[%s15200_s1 + $0x390] sm:$0xff] }
  0xbd   : > { %1308 = vmatprep.mubr.f32.mxu0 %v10684_v12  ;;  %1608 = vmatpush2.msra.mxu0 %v722_v25  ;;  %15355 = vst [vmem:[#allocation38_spill] sm:$0xff] %v10709_v8  ;;  %v1022_v25 = vrot.slane %v10675_v44, 2  ;;  %v1025_v12 = vrot.slane %v633_v16, 2  ;;  %v720_v5 = vld [vmem:[%s15200_s1 + $0x280] sm:$0xff] }
  0xbe   : > { %1529 = vmatmul.mubr.f32.gmra.mxu1 %v10694_v31  ;;  %1826 = vmatprep.subr.mxu1 %v10298_v14  ;;  %v1023_v31 = vrot.slane %v10672_v38, 2 }
  0xbf   : > { %1533 = vmatprep.mubr.f32.mxu1 %v10672_v38  ;;  %1827 = vmatpush2.msra.mxu1 %v757_v19  ;;  %v755_v19 = vld [vmem:[%s15200_s1 + $0x398] sm:$0xff] }
  0xc0   : > { %1309 = vmatmul.mubr.f32.gmra.mxu0 %v10629_v32  ;;  %1609 = vmatprep.subr.mxu0 %v10298_v14  ;;  %v10734_v32 = vsel %vm946_vm1, %v1022_v25, %v1023_v31  ;;  %v10752_v16 = vsel %vm946_vm1, %v1023_v31, %v1025_v12  ;;  %v783_v25 = vld [vmem:[%s15200_s1 + $0x478] sm:$0xff]  ;;  %v752_v12 = vld [vmem:[%s15200_s1 + $0x380] sm:$0xff]  ;;  %v782_v31 = vld [vmem:[%s15200_s1 + $0x470] sm:$0xff] }
  0xc1   : > { %1313 = vmatprep.mubr.f32.mxu0 %v10705_v33  ;;  %1828 = vmatprep.subr.mxu1 %v10298_v14 }
  0xc2   : > { %1534 = vmatmul.mubr.f32.gmra.mxu1 %v10709_v8  ;;  %1610 = vmatpush2.msra.mxu0 %v721_v56  ;;  %v10738_v8 = vld [vmem:[#allocation2 + $0x188] sm:$0xff] }
  0xc3   : > { %1538 = vmatprep.mubr.f32.mxu1 %v10718_v49  ;;  %1829 = vmatpush2.msra.mxu1 %v756_v50  ;;  %v753_v56 = vld [vmem:[%s15200_s1 + $0x388] sm:$0xff] }
  0xc4   : > { %1314 = vmatmul.mubr.f32.gmra.mxu0 %v10675_v44  ;;  %1830 = vmatprep.subr.mxu1 %v10298_v14 }
  0xc5   : > { %1318 = vmatprep.mubr.f32.mxu0 %v10727_v60  ;;  %1831 = vmatpush2.msra.mxu1 %v755_v19  ;;  %v15365_v19 = vld [vmem:[#allocation17_spill] sm:$0xff] }
  0xc6   : > { %1539 = vmatmul.mubr.f32.gmra.mxu1 %v10734_v32  ;;  %1611 = vmatprep.subr.mxu0 %v10298_v14 }
  0xc7   : > { %1832 = vmatprep.subr.mxu1 %v10298_v14  ;;  %1543 = vmatprep.mubr.f32.mxu1 %v10738_v8 }
  0xc8   : > { %1319 = vmatmul.mubr.f32.gmra.mxu0 %v10672_v38  ;;  %1833 = vmatpush2.msra.mxu1 %v754_v39 }
  0xc9   : > { %1612 = vmatpush2.msra.mxu0 %v720_v5  ;;  %1834 = vmatprep.subr.mxu1 %v10298_v14 }
  0xca   : > { %1544 = vmatmul.mubr.f32.gmra.mxu1 %v10752_v16  ;;  %1613 = vmatprep.mubr.f32.mxu0 %v10121_v59  ;;  %v780_v59 = vld [vmem:[%s15200_s1 + $0x460] sm:$0xff] }
  0xcb   : > { %1835 = vmatpush2.msra.mxu1 %v753_v56  ;;  %9056 = vmatprep.subr.mxu0 %v783_v25  ;;  %v15366_v56 = vld [vmem:[#allocation9_spill] sm:$0xff] }
  0xcc   : > { %1614 = vmatmul.mubr.f32.vlgmr.msra.gmra.mxu0 %v10094_v46  ;;  %1836 = vmatprep.subr.mxu1 %v10298_v14  ;;  %v781_v46 = vld [vmem:[%s15200_s1 + $0x468] sm:$0xff]  ;;  %v9601_v14 = vld [vmem:[#allocation2 + $0x38] sm:$0xff] }
  0xcd   : > { %1837 = vmatpush2.msra.mxu1 %v752_v12  ;;  %1838 = vmatprep.mubr.f32.mxu1 %v10130_v63  ;;  %v15367_v12 = vld [vmem:[#allocation18_spill] sm:$0xff] }
  0xce   : > { %9057 = vmatpush3.msra.mxu0 %v783_v25  ;;  %1839 = vmatmul.mubr.f32.vlgmr.msra.gmra.mxu1 %v10104_v53  ;;  %v779_v53 = vld [vmem:[%s15200_s1 + $0x458] sm:$0xff] }
  0xcf   : > { %1618 = vmatprep.mubr.f32.mxu0 %v10138_v3  ;;  %1843 = vmatprep.mubr.f32.mxu1 %v10154_v9  ;;  %v777_v3 = vld [vmem:[%s15200_s1 + $0x448] sm:$0xff] }
  0xd0   : > { %1619 = vmatmul.mubr.f32.gmra.mxu0 %v10112_v55  ;;  %9058 = vmatprep.subr.mxu0 %v782_v31  ;;  %v778_v55 = vld [vmem:[%s15200_s1 + $0x450] sm:$0xff] }
  0xd1   : > { %1623 = vmatprep.mubr.f32.mxu0 %v10164_v13  ;;  %9059 = vmatpush3.msra.mxu0 %v782_v31 }
  0xd2   : > { %1844 = vmatmul.mubr.f32.gmra.mxu1 %v9601_v14  ;;  %9060 = vmatprep.subr.mxu0 %v781_v46  ;;  %v15368_v14 = vld [vmem:[#allocation19_spill] sm:$0xff] }
  0xd3   : > { %1848 = vmatprep.mubr.f32.mxu1 %v10174_v17  ;;  %9061 = vmatpush3.msra.mxu0 %v781_v46 }
  0xd4   : > { %1624 = vmatmul.mubr.f32.gmra.mxu0 %v10130_v63  ;;  %9062 = vmatprep.subr.mxu0 %v780_v59  ;;  %v776_v63 = vld [vmem:[%s15200_s1 + $0x440] sm:$0xff] }
  0xd5   : > { %1628 = vmatprep.mubr.f32.mxu0 %v10182_v20  ;;  %9063 = vmatpush3.msra.mxu0 %v780_v59 }
  0xd6   : > { %1849 = vmatmul.mubr.f32.gmra.mxu1 %v10145_v7  ;;  %9064 = vmatprep.subr.mxu0 %v779_v53  ;;  %v775_v7 = vld [vmem:[%s15200_s1 + $0x438] sm:$0xff] }
  0xd7   : > { %1853 = vmatprep.mubr.f32.mxu1 %v10198_v26  ;;  %9065 = vmatpush3.msra.mxu0 %v779_v53 }
  0xd8   : > { %1629 = vmatmul.mubr.f32.gmra.mxu0 %v10154_v9  ;;  %9066 = vmatprep.subr.mxu0 %v778_v55  ;;  %v774_v9 = vld [vmem:[%s15200_s1 + $0x430] sm:$0xff] }
  0xd9   : > { %1633 = vmatprep.mubr.f32.mxu0 %v10208_v30  ;;  %9067 = vmatpush3.msra.mxu0 %v778_v55 }
  0xda   : > { %1854 = vmatmul.mubr.f32.gmra.mxu1 %v10142_v6  ;;  %9068 = vmatprep.subr.mxu0 %v777_v3  ;;  %v773_v6 = vld [vmem:[%s15200_s1 + $0x428] sm:$0xff] }
  0xdb   : > { %1858 = vmatprep.mubr.f32.mxu1 %v10218_v34  ;;  %9069 = vmatpush3.msra.mxu0 %v777_v3  ;;  %v15369_v3 = vld [vmem:[#allocation15_spill] sm:$0xff] }
  0xdc   : > { %1634 = vmatmul.mubr.f32.gmra.mxu0 %v10174_v17  ;;  %9070 = vmatprep.subr.mxu0 %v776_v63  ;;  %v772_v17 = vld [vmem:[%s15200_s1 + $0x420] sm:$0xff] }
  0xdd   : > { %1638 = vmatprep.mubr.f32.mxu0 %v10226_v37  ;;  %9071 = vmatpush3.msra.mxu0 %v776_v63 }
  0xde   : > { %1859 = vmatmul.mubr.f32.gmra.mxu1 %v10189_v24  ;;  %9072 = vmatprep.subr.mxu0 %v775_v7  ;;  %v771_v24 = vld [vmem:[%s15200_s1 + $0x418] sm:$0xff] }
  0xdf   : > { %1863 = vmatprep.mubr.f32.mxu1 %v10242_v43  ;;  %9073 = vmatpush3.msra.mxu0 %v775_v7  ;;  %v15370_v7 = vld [vmem:[#allocation22_spill] sm:$0xff] }
  0xe0   : > { %1639 = vmatmul.mubr.f32.gmra.mxu0 %v10198_v26  ;;  %9074 = vmatprep.subr.mxu0 %v774_v9  ;;  %v770_v26 = vld [vmem:[%s15200_s1 + $0x410] sm:$0xff] }
  0xe1   : > { %1643 = vmatprep.mubr.f32.mxu0 %v10252_v48  ;;  %9075 = vmatpush3.msra.mxu0 %v774_v9 }
  0xe2   : > { %1864 = vmatmul.mubr.f32.gmra.mxu1 %v10186_v23  ;;  %9076 = vmatprep.subr.mxu0 %v773_v6  ;;  %v769_v23 = vld [vmem:[%s15200_s1 + $0x408] sm:$0xff] }
  0xe3   : > { %1868 = vmatprep.mubr.f32.mxu1 %v10262_v52  ;;  %9077 = vmatpush3.msra.mxu0 %v773_v6 }
  0xe4   : > { %1644 = vmatmul.mubr.f32.gmra.mxu0 %v10218_v34  ;;  %9078 = vmatprep.subr.mxu0 %v772_v17  ;;  %v768_v34 = vld [vmem:[%s15200_s1 + $0x400] sm:$0xff] }
  0xe5   : > { %1648 = vmatprep.mubr.f32.mxu0 %v10270_v57  ;;  %9079 = vmatpush3.msra.mxu0 %v772_v17 }
  0xe6   : > { %1869 = vmatmul.mubr.f32.gmra.mxu1 %v10233_v41  ;;  %9080 = vmatprep.subr.mxu0 %v771_v24  ;;  %v15357_v41 = vld [vmem:[#allocation8_spill] sm:$0xff] }
  0xe7   : > { %1873 = vmatprep.mubr.f32.mxu1 %v10286_v1  ;;  %9081 = vmatpush3.msra.mxu0 %v771_v24  ;;  %v15371_v24 = vld [vmem:[#allocation23_spill] sm:$0xff] }
  0xe8   : > { %1649 = vmatmul.mubr.f32.gmra.mxu0 %v10242_v43  ;;  %9082 = vmatprep.subr.mxu0 %v770_v26  ;;  %v15358_v43 = vld [vmem:[#allocation6_spill] sm:$0xff] }
  0xe9   : > { %1653 = vmatprep.mubr.f32.mxu0 %v10296_v10  ;;  %9083 = vmatpush3.msra.mxu0 %v770_v26 }
  0xea   : > { %1874 = vmatmul.mubr.f32.gmra.mxu1 %v10230_v40  ;;  %9084 = vmatprep.subr.mxu0 %v769_v23  ;;  %v15356_v40 = vld [vmem:[#allocation7_spill] sm:$0xff] }
  0xeb   : > { %1878 = vmatprep.mubr.f32.mxu1 %v10308_v15  ;;  %9085 = vmatpush3.msra.mxu0 %v769_v23  ;;  %v15372_v23 = vld [vmem:[#allocation14_spill] sm:$0xff] }
  0xec   : > { %1654 = vmatmul.mubr.f32.gmra.mxu0 %v10262_v52  ;;  %9086 = vmatprep.subr.mxu0 %v768_v34  ;;  %v15359_v52 = vld [vmem:[#allocation11_spill] sm:$0xff] }
  0xed   : > { %1658 = vmatprep.mubr.f32.mxu0 %v10313_v18  ;;  %9087 = vmatpush3.msra.mxu0 %v768_v34 }
  0xee   : > { %1879 = vmatmul.mubr.f32.gmra.mxu1 %v10277_v62  ;;  %v15361_v62 = vld [vmem:[#allocation5_spill] sm:$0xff] }
  0xef   : > { %1883 = vmatprep.mubr.f32.mxu1 %v10333_v29 }
  0xf0   : > { %1659 = vmatmul.mubr.f32.gmra.mxu0 %v10286_v1  ;;  %v10879_v1 = vld [vmem:[%s15201_s2] ss:$0 sm:$0xff] }
  0xf1   : > { %1663 = vmatprep.mubr.f32.mxu0 %v10342_v35 }
  0xf2   : > { %1884 = vmatmul.mubr.f32.gmra.mxu1 %v10274_v61  ;;  %v15360_v61 = vld [vmem:[#allocation12_spill] sm:$0xff] }
  0xf3   : > { %1888 = vmatprep.mubr.f32.mxu1 %v10352_v42 }
  0xf4   : > { %1664 = vmatmul.mubr.f32.gmra.mxu0 %v10308_v15 }
  0xf5   : > { %1668 = vmatprep.mubr.f32.mxu0 %v10360_v47 }
  0xf6   : > { %1889 = vmatmul.mubr.f32.gmra.mxu1 %v10323_v27  ;;  %v15362_v27 = vld [vmem:[#allocation13_spill] sm:$0xff] }
  0xf7   : > { %1893 = vmatprep.mubr.f32.mxu1 %v10376_v58 }
  0xf8   : > { %1669 = vmatmul.mubr.f32.gmra.mxu0 %v10333_v29 }
  0xf9   : > { %1673 = vmatprep.mubr.f32.mxu0 %v10383_v4 }
  0xfa   : > { %1894 = vmatmul.mubr.f32.gmra.mxu1 %v10317_v22 }
  0xfb   : > { %1898 = vmatprep.mubr.f32.mxu1 %v10397_v2 }
  0xfc   : > { %1674 = vmatmul.mubr.f32.gmra.mxu0 %v10352_v42 }
  0xfd   : > { %1678 = vmatprep.mubr.f32.mxu0 %v10404_v21 }
  0xfe   : > { %1899 = vmatmul.mubr.f32.gmra.mxu1 %v10368_v54 }
  0xff   : > { %1903 = vmatprep.mubr.f32.mxu1 %v10420_v36 }
 0x100   : > { %1679 = vmatmul.mubr.f32.gmra.mxu0 %v10376_v58  ;;  %v15364_v58 = vld [vmem:[#allocation16_spill] sm:$0xff] }
 0x101   : > { %1683 = vmatprep.mubr.f32.mxu0 %v10430_v45 }
 0x102   : > { %1904 = vmatmul.mubr.f32.gmra.mxu1 %v10364_v51  ;;  %v15363_v51 = vld [vmem:[#allocation10_spill] sm:$0xff] }
 0x103   : > { %1908 = vmatprep.mubr.f32.mxu1 %v15356_v40 }
 0x104   : > { %1684 = vmatmul.mubr.f32.gmra.mxu0 %v10397_v2 }
 0x105   : > { %1688 = vmatprep.mubr.f32.mxu0 %v15357_v41 }
 0x106   : > { %1909 = vmatmul.mubr.f32.gmra.mxu1 %v15358_v43 }
 0x107   : > { %1913 = vmatprep.mubr.f32.mxu1 %v15359_v52 }
 0x108   : > { %1689 = vmatmul.mubr.f32.gmra.mxu0 %v10420_v36 }
 0x109   : > { %1693 = vmatprep.mubr.f32.mxu0 %v15360_v61 }
 0x10a   : > { %1914 = vmatmul.mubr.f32.gmra.mxu1 %v15361_v62 }
 0x10b   : > { %1918 = vmatprep.mubr.f32.mxu1 %v10484_v0 }
 0x10c   : > { %v1165_v15 = vpop.f32.mrf.mxu0  ;;  %1694 = vmatmul.mubr.f32.gmra.mxu0 %v15356_v40  ;;  %v15373_v40 = vld [vmem:[#allocation24_spill] sm:$0xff] }
 0x10d   : > { %v1166_v22 = vadd.f32 %v10879_v1, %v1165_v15  ;;  %1698 = vmatprep.mubr.f32.mxu0 %v15362_v27  ;;  %v15374_v15 = vld [vmem:[#allocation25_spill] sm:$0xff] }
 0x10e   : > { %v1167_v29 = vpop.f32.mrf.mxu0  ;;  %v1390_v42 = vpop.f32.mrf.mxu1  ;;  %1919 = vmatmul.mubr.f32.gmra.mxu1 %v15363_v51 }
 0x10f   : > { %v10886_v54 = vadd.f32 %v1390_v42, %v1166_v22  ;;  %1923 = vmatprep.mubr.f32.mxu1 %v15364_v58  ;;  %v15375_v42 = vld [vmem:[#allocation21_spill] sm:$0xff] }
 0x110   : > { %v1170_v2 = vpop.f32.mrf.mxu0  ;;  %v1392_v36 = vpop.f32.mrf.mxu1  ;;  %1699 = vmatmul.mubr.f32.gmra.mxu0 %v15359_v52 }
 0x111   : > { %v1171_v50 = vadd.f32 %v10879_v1, %v1170_v2  ;;  %1703 = vmatprep.mubr.f32.mxu0 %v15365_v19 }
 0x112   : > { %v1172_v39 = vpop.f32.mrf.mxu0  ;;  %v1395_v5 = vpop.f32.mrf.mxu1  ;;  %1924 = vmatmul.mubr.f32.gmra.mxu1 %v15366_v56 }
 0x113   : > { %v10893_v25 = vadd.f32 %v1395_v5, %v1171_v50  ;;  %1928 = vmatprep.mubr.f32.mxu1 %v15367_v12  ;;  %v15377_v39 = vld [vmem:[#allocation29_spill] sm:$0xff] }
 0x114   : > { %v1175_v31 = vpop.f32.mrf.mxu0  ;;  %v1397_v46 = vpop.f32.mrf.mxu1  ;;  %1704 = vmatmul.mubr.f32.gmra.mxu0 %v10484_v0 }
 0x115   : > { %v1176_v59 = vadd.f32 %v10879_v1, %v1175_v31  ;;  %1708 = vmatprep.mubr.f32.mxu0 %v15368_v14 }
 0x116   : > { %v1177_v53 = vpop.f32.mrf.mxu0  ;;  %v1400_v55 = vpop.f32.mrf.mxu1  ;;  %1929 = vmatmul.mubr.f32.gmra.mxu1 %v15369_v3 }
 0x117   : > { %v10900_v63 = vadd.f32 %v1400_v55, %v1176_v59  ;;  %1933 = vmatprep.mubr.f32.mxu1 %v15370_v7  ;;  %v15379_v55 = vld [vmem:[#allocation30_spill] sm:$0xff] }
 0x118   : > { %v1180_v9 = vpop.f32.mrf.mxu0  ;;  %v1402_v6 = vpop.f32.mrf.mxu1  ;;  %1709 = vmatmul.mubr.f32.gmra.mxu0 %v15364_v58  ;;  %v15376_v58 = vld [vmem:[#allocation28_spill] sm:$0xff] }
 0x119   : > { %v1181_v17 = vadd.f32 %v10879_v1, %v1180_v9  ;;  %1713 = vmatprep.mubr.f32.mxu0 %v15371_v24  ;;  %v15380_v9 = vld [vmem:[#allocation27_spill] sm:$0xff] }
 0x11a   : > { %v1182_v0 = vpop.f32.mrf.mxu0  ;;  %v1405_v26 = vpop.f32.mrf.mxu1  ;;  %1934 = vmatmul.mubr.f32.gmra.mxu1 %v15372_v23 }
 0x11b   : > { %v10907_v34 = vadd.f32 %v1405_v26, %v1181_v17  ;;  %1938 = vmatprep.mubr.f32.mxu1 %v15373_v40  ;;  %v15381_v17 = vld [vmem:[#allocation32_spill] sm:$0xff] }
 0x11c   : > { %v1185_v43 = vpop.f32.mrf.mxu0  ;;  %v1407_v52 = vpop.f32.mrf.mxu1  ;;  %1714 = vmatmul.mubr.f32.gmra.mxu0 %v15367_v12  ;;  %v15378_v12 = vld [vmem:[#allocation20_spill] sm:$0xff] }
 0x11d   : > { %v1186_v62 = vadd.f32 %v10879_v1, %v1185_v43  ;;  %1718 = vmatprep.mubr.f32.mxu0 %v15374_v15  ;;  %v15382_v43 = vld [vmem:[#allocation33_spill] sm:$0xff] }
 0x11e   : > { %v1187_v22 = vpop.f32.mrf.mxu0  ;;  %v1410_v29 = vpop.f32.mrf.mxu1  ;;  %1939 = vmatmul.mubr.f32.gmra.mxu1 %v15375_v42 }
 0x11f   : > { %v10914_v51 = vadd.f32 %v1410_v29, %v1186_v62  ;;  %1943 = vmatprep.mubr.f32.mxu1 %v15376_v58  ;;  %v15383_v62 = vld [vmem:[#allocation26_spill] sm:$0xff] }
 0x120   : > { %v1190_v2 = vpop.f32.mrf.mxu0  ;;  %v1412_v36 = vpop.f32.mrf.mxu1  ;;  %1719 = vmatmul.mubr.f32.gmra.mxu0 %v15370_v7  ;;  %v15384_v29 = vld [vmem:[#allocation34_spill] sm:$0xff] }
 0x121   : > { %v1191_v50 = vadd.f32 %v10879_v1, %v1190_v2  ;;  %1723 = vmatprep.mubr.f32.mxu0 %v15377_v39 }
 0x122   : > { %v1192_v5 = vpop.f32.mrf.mxu0  ;;  %v1415_v56 = vpop.f32.mrf.mxu1  ;;  %1944 = vmatmul.mubr.f32.gmra.mxu1 %v15378_v12  ;;  %v15386_v12 = vld [vmem:[#allocation36_spill] sm:$0xff] }
 0x123   : > { %v10921_v31 = vadd.f32 %v1415_v56, %v1191_v50  ;;  %1948 = vmatprep.mubr.f32.mxu1 %v10616_v11  ;;  %v15385_v50 = vld [vmem:[#allocation35_spill] sm:$0xff] }
 0x124   : > { %v1195_v46 = vpop.f32.mrf.mxu0  ;;  %v1417_v59 = vpop.f32.mrf.mxu1  ;;  %1724 = vmatmul.mubr.f32.gmra.mxu0 %v15373_v40 }
 0x125   : > { %v1196_v53 = vadd.f32 %v10879_v1, %v1195_v46  ;;  %1728 = vmatprep.mubr.f32.mxu0 %v15379_v55 }
 0x126   : > { %v1197_v3 = vpop.f32.mrf.mxu0  ;;  %v1420_v7 = vpop.f32.mrf.mxu1  ;;  %1949 = vmatmul.mubr.f32.gmra.mxu1 %v15380_v9  ;;  %v15388_v9 = vld [vmem:[#allocation31_spill] sm:$0xff] }
 0x127   : > { %v10928_v6 = vadd.f32 %v1420_v7, %v1196_v53  ;;  %1953 = vmatprep.mubr.f32.mxu1 %v15381_v17  ;;  %v15387_v3 = vld [vmem:[#allocation37_spill] sm:$0xff] }
 0x128   : > { %v1200_v0 = vpop.f32.mrf.mxu0  ;;  %v1422_v26 = vpop.f32.mrf.mxu1  ;;  %1729 = vmatmul.mubr.f32.gmra.mxu0 %v15376_v58 }
 0x129   : > { %v1201_v23 = vadd.f32 %v10879_v1, %v1200_v0  ;;  %1733 = vmatprep.mubr.f32.mxu0 %v15382_v43 }
 0x12a   : > { %v1202_v40 = vpop.f32.mrf.mxu0  ;;  %v1425_v52 = vpop.f32.mrf.mxu1  ;;  %1954 = vmatmul.mubr.f32.gmra.mxu1 %v15383_v62  ;;  %v636_v62 = vld [vmem:[#allocation2 + $0x190] sm:$0x3] }
 0x12b   : > { %v10935_v22 = vadd.f32 %v1425_v52, %v1201_v23  ;;  %1958 = vmatprep.mubr.f32.mxu1 %v15384_v29  ;;  %v1062_v23 = vrot.slane %v10718_v49, 1  ;;  %v15389_v52 = vld [vmem:[#allocation38_spill] sm:$0xff] }
 0x12c   : > { %v1205_v42 = vpop.f32.mrf.mxu0  ;;  %v1427_v2 = vpop.f32.mrf.mxu1  ;;  %1734 = vmatmul.mubr.f32.gmra.mxu0 %v10616_v11 }
 0x12d   : > { %v1206_v36 = vadd.f32 %v10879_v1, %v1205_v42  ;;  %1738 = vmatprep.mubr.f32.mxu0 %v15385_v50 }
 0x12e   : > { %v1207_v58 = vpop.f32.mrf.mxu0  ;;  %v1430_v5 = vpop.f32.mrf.mxu1  ;;  %1959 = vmatmul.mubr.f32.gmra.mxu1 %v10632_v28 }
 0x12f   : > { %v10942_v56 = vadd.f32 %v1430_v5, %v1206_v36  ;;  %1963 = vmatprep.mubr.f32.mxu1 %v15386_v12 }
 0x130   : > { %v1210_v46 = vpop.f32.mrf.mxu0  ;;  %v1432_v59 = vpop.f32.mrf.mxu1  ;;  %1739 = vmatmul.mubr.f32.gmra.mxu0 %v15381_v17  ;;  %v1063_v17 = vrot.slane %v10738_v8, 1 }
 0x131   : > { %v1211_v53 = vadd.f32 %v10879_v1, %v1210_v46  ;;  %1743 = vmatprep.mubr.f32.mxu0 %v15387_v3  ;;  %v1065_v46 = vrot.slane %v636_v62, 1 }
 0x132   : > { %v1212_v11 = vpop.f32.mrf.mxu0  ;;  %v1435_v7 = vpop.f32.mrf.mxu1  ;;  %1964 = vmatmul.mubr.f32.gmra.mxu1 %v15388_v9 }
 0x133   : > { %v10949_v0 = vadd.f32 %v1435_v7, %v1211_v53  ;;  %1968 = vmatprep.mubr.f32.mxu1 %v10705_v33  ;;  %v1070_v7 = vrot.slane %v10738_v8, 2 }
 0x134   : > { %v1215_v28 = vpop.f32.mrf.mxu0  ;;  %v1437_v26 = vpop.f32.mrf.mxu1  ;;  %1744 = vmatmul.mubr.f32.gmra.mxu0 %v15384_v29  ;;  %v1064_v29 = vsel %vm833_vm0, %v1062_v23, %v1063_v17  ;;  %v10972_v23 = vld [vmem:[#allocation2] sm:$0xff] }
 0x135   : > { %v1216_v40 = vadd.f32 %v10879_v1, %v1215_v28  ;;  %1748 = vmatprep.mubr.f32.mxu0 %v15389_v52  ;;  %v1066_v26 = vsel %vm833_vm0, %v1063_v17, %v1065_v46 }
 0x136   : > { %v1217_v42 = vpop.f32.mrf.mxu0  ;;  %v1440_v2 = vpop.f32.mrf.mxu1  ;;  %1969 = vmatmul.mubr.f32.gmra.mxu1 %v10675_v44  ;;  %v1069_v44 = vrot.slane %v10718_v49, 2 }
 0x137   : > { %v10958_v36 = vadd.f32 %v1440_v2, %v1216_v40  ;;  %1973 = vmatprep.mubr.f32.mxu1 %v10727_v60  ;;  %v10975_v40 = vrot.slane %v10972_v23, 1  ;;  %v10979_v42 = vld [vmem:[#allocation2 + $0x1a8] sm:$0x3] }
 0x138   : > { %v1220_v58 = vpop.f32.mrf.mxu0  ;;  %v1442_v5 = vpop.f32.mrf.mxu1  ;;  %1749 = vmatmul.mubr.f32.gmra.mxu0 %v15386_v12 }
 0x139   : > { %v1221_v59 = vadd.f32 %v10879_v1, %v1220_v58  ;;  %1753 = vmatprep.mubr.f32.mxu0 %v10734_v32  ;;  %v10983_v5 = vsel %vm946_vm1, %v1069_v44, %v1070_v7 }
 0x13a   : > { %v1222_v53 = vpop.f32.mrf.mxu0  ;;  %v1445_v11 = vpop.f32.mrf.mxu1  ;;  %1974 = vmatmul.mubr.f32.gmra.mxu1 %v10672_v38 }
 0x13b   : > { %v10968_v9 = vadd.f32 %v1445_v11, %v1221_v59  ;;  %1978 = vmatprep.mubr.f32.mxu1 %v1064_v29  ;;  %v1082_v53 = vrot.slane %v10979_v42, 1 }
 0x13c   : > { %v1225_v28 = vpop.f32.mrf.mxu0  ;;  %v1447_v12 = vpop.f32.mrf.mxu1  ;;  %1754 = vmatmul.mubr.f32.gmra.mxu0 %v10705_v33  ;;  %v1072_v33 = vrot.slane %v636_v62, 2 }
 0x13d   : > { %v1226_v38 = vadd.f32 %v10879_v1, %v1225_v28  ;;  %1758 = vmatprep.mubr.f32.mxu0 %v10752_v16 }
 0x13e   : > { %v1227_v2 = vpop.f32.mrf.mxu0  ;;  %v1450_v58 = vpop.f32.mrf.mxu1  ;;  %1979 = vmatmul.mubr.f32.gmra.mxu1 %v10718_v49  ;;  %v10993_v49 = vsel %vm946_vm1, %v1070_v7, %v1072_v33 }
 0x13f   : > { %v10985_v17 = vadd.f32 %v1450_v58, %v1226_v38  ;;  %1983 = vmatprep.mubr.f32.mxu1 %v1066_v26 }
 0x140   : > { %v1230_v46 = vpop.f32.mrf.mxu0  ;;  %v1452_v59 = vpop.f32.mrf.mxu1  ;;  %1759 = vmatmul.mubr.f32.gmra.mxu0 %v10727_v60  ;;  %v1083_v60 = vsel %vm833_vm0, %v10975_v40, %v1082_v53 }
 0x141   : > { %v1231_v11 = vadd.f32 %v10879_v1, %v1230_v46  ;;  %1763 = vmatprep.mubr.f32.mxu0 %v10983_v5 }
 0x142   : > { %v1232_v28 = vpop.f32.mrf.mxu0  ;;  %v1455_v12 = vpop.f32.mrf.mxu1  ;;  %1984 = vmatmul.mubr.f32.gmra.mxu1 %v10738_v8 }
 0x143   : > { %v10995_v62 = vadd.f32 %v1455_v12, %v1231_v11  ;;  %1988 = vmatprep.mubr.f32.mxu1 %v10975_v40 }
 0x144   : > { %v1235_v44 = vpop.f32.mrf.mxu0  ;;  %v1457_v38 = vpop.f32.mrf.mxu1  ;;  %1764 = vmatmul.mubr.f32.gmra.mxu0 %v1064_v29 }
 0x145   : > { %v1236_v2 = vadd.f32 %v10879_v1, %v1235_v44  ;;  %1768 = vmatprep.mubr.f32.mxu0 %v10993_v49 }
 0x146   : > { %v1237_v58 = vpop.f32.mrf.mxu0  ;;  %v1460_v46 = vpop.f32.mrf.mxu1  ;;  %1989 = vmatmul.mubr.f32.gmra.mxu1 %v10972_v23 }
 0x147   : > { %v11003_v8 = vadd.f32 %v1460_v46, %v1236_v2  ;;  %1993 = vmatprep.mubr.f32.mxu1 %v1083_v60 }
 0x148   : > { %v1240_v7 = vpop.f32.mrf.mxu0  ;;  %v1462_v33 = vpop.f32.mrf.mxu1  ;;  %1769 = vmatmul.mubr.f32.gmra.mxu0 %v1066_v26 }
 0x149   : > { %v1241_v59 = vadd.f32 %v10879_v1, %v1240_v7  ;;  %9088 = vmatprep.mubr.f32.mxu0 %v10164_v13  ;;  %v3252_v33 = vld [vmem:[%s15202_s3 + $0x78] sm:$0xff] }
 0x14a   : > { %v1242_v29 = vpop.f32.mrf.mxu0  ;;  %v1465_v53 = vpop.f32.mrf.mxu1  ;;  %1994 = vmatmul.mubr.f32.gmra.mxu1 %v10972_v23 }
 0x14b   : > { %v11008_v11 = vadd.f32 %v1465_v53, %v1241_v59 }
 0x14c   : > { %v1245_v28 = vpop.f32.mrf.mxu0  ;;  %v1467_v12 = vpop.f32.mrf.mxu1  ;;  %9089 = vmatmul.mubr.f32.vlgmr.msra.gmra.mxu0 %v10182_v20  ;;  %v3268_v20 = vld [vmem:[%s15202_s3 + $0xf8] sm:$0xff] }
 0x14d   : > { %v1246_v44 = vadd.f32 %v10879_v1, %v1245_v28  ;;  %9091 = vmatprep.mubr.f32.mxu0 %v10208_v30  ;;  %8292 = vmatprep.subr.mxu1 %v3268_v20 }
 0x14e   : > { %v1247_v38 = vpop.f32.mrf.mxu0  ;;  %v1470_v26 = vpop.f32.mrf.mxu1  ;;  %8293 = vmatpush3.msra.mxu1 %v3252_v33 }
 0x14f   : > { %v11013_v60 = vadd.f32 %v1470_v26, %v1246_v44 }
 0x150   : > { %v1250_v2 = vpop.f32.mrf.mxu0  ;;  %v1472_v13 = vpop.f32.mrf.mxu1  ;;  %9092 = vmatmul.mubr.f32.gmra.mxu0 %v10226_v37 }
 0x151   : > { %v1251_v58 = vadd.f32 %v10879_v1, %v1250_v2  ;;  %9094 = vmatprep.mubr.f32.mxu0 %v10252_v48  ;;  %v3251_v13 = vld [vmem:[%s15202_s3 + $0x70] sm:$0xff] }
 0x152   : > { %v1252_v46 = vpop.f32.mrf.mxu0  ;;  %v1475_v7 = vpop.f32.mrf.mxu1 }
 0x153   : > { %v11021_v30 = vadd.f32 %v1475_v7, %v1251_v58 }
 0x154   : > { %v1255_v59 = vpop.f32.mrf.mxu0  ;;  %v1477_v29 = vpop.f32.mrf.mxu1  ;;  %9095 = vmatmul.mubr.f32.gmra.mxu0 %v10270_v57  ;;  %v3267_v57 = vld [vmem:[%s15202_s3 + $0xf0] sm:$0xff] }
 0x155   : > { %v1256_v37 = vadd.f32 %v10879_v1, %v1255_v59  ;;  %9097 = vmatprep.mubr.f32.mxu0 %v10296_v10  ;;  %8294 = vmatprep.subr.mxu1 %v3267_v57 }
 0x156   : > { %v1257_v48 = vpop.f32.mrf.mxu0  ;;  %v1480_v53 = vpop.f32.mrf.mxu1  ;;  %8295 = vmatpush3.msra.mxu1 %v3251_v13 }
 0x157   : > { %v11029_v28 = vadd.f32 %v1480_v53, %v1256_v37  ;;  %v3250_v53 = vld [vmem:[%s15202_s3 + $0x68] sm:$0xff] }
 0x158   : > { %v1260_v12 = vpop.f32.mrf.mxu0  ;;  %v1482_v44 = vpop.f32.mrf.mxu1  ;;  %9098 = vmatmul.mubr.f32.gmra.mxu0 %v10313_v18 }
 0x159   : > { %v1261_v38 = vadd.f32 %v10879_v1, %v1260_v12  ;;  %9100 = vmatprep.mubr.f32.mxu0 %v10342_v35 }
 0x15a   : > { %v1262_v26 = vpop.f32.mrf.mxu0  ;;  %v1485_v2 = vpop.f32.mrf.mxu1 }
 0x15b   : > { %v11037_v10 = vadd.f32 %v1485_v2, %v1261_v38 }
 0x15c   : > { %v1265_v58 = vpop.f32.mrf.mxu0  ;;  %v1487_v20 = vpop.f32.mrf.mxu1  ;;  %9101 = vmatmul.mubr.f32.gmra.mxu0 %v10360_v47  ;;  %v3266_v47 = vld [vmem:[%s15202_s3 + $0xe8] sm:$0xff] }
 0x15d   : > { %v1266_v18 = vadd.f32 %v10879_v1, %v1265_v58  ;;  %9103 = vmatprep.mubr.f32.mxu0 %v10383_v4  ;;  %8296 = vmatprep.subr.mxu1 %v3266_v47 }
 0x15e   : > { %v1267_v35 = vpop.f32.mrf.mxu0  ;;  %v1490_v46 = vpop.f32.mrf.mxu1  ;;  %8297 = vmatpush3.msra.mxu1 %v3250_v53 }
 0x15f   : > { %v11045_v7 = vadd.f32 %v1490_v46, %v1266_v18  ;;  %v3249_v18 = vld [vmem:[%s15202_s3 + $0x60] sm:$0xff] }
 0x160   : > { %v1270_v33 = vpop.f32.mrf.mxu0  ;;  %v1492_v59 = vpop.f32.mrf.mxu1  ;;  %9104 = vmatmul.mubr.f32.gmra.mxu0 %v10404_v21 }
 0x161   : > { %v1271_v29 = vadd.f32 %v10879_v1, %v1270_v33  ;;  %9106 = vmatprep.mubr.f32.mxu0 %v10430_v45 }
 0x162   : > { %v1272_v37 = vpop.f32.mrf.mxu0  ;;  %v1495_v48 = vpop.f32.mrf.mxu1 }
 0x163   : > { %v11053_v4 = vadd.f32 %v1495_v48, %v1271_v29 }
 0x164   : > { %v1275_v12 = vpop.f32.mrf.mxu0  ;;  %v1497_v44 = vpop.f32.mrf.mxu1  ;;  %9107 = vmatmul.mubr.f32.gmra.mxu0 %v15357_v41  ;;  %v3265_v41 = vld [vmem:[%s15202_s3 + $0xe0] sm:$0xff] }
 0x165   : > { %v1276_v21 = vadd.f32 %v10879_v1, %v1275_v12  ;;  %9109 = vmatprep.mubr.f32.mxu0 %v15360_v61  ;;  %8298 = vmatprep.subr.mxu1 %v3265_v41  ;;  %v3248_v12 = vld [vmem:[%s15202_s3 + $0x58] sm:$0xff] }
 0x166   : > { %v1277_v45 = vpop.f32.mrf.mxu0  ;;  %v1500_v38 = vpop.f32.mrf.mxu1  ;;  %8299 = vmatpush3.msra.mxu1 %v3249_v18 }
 0x167   : > { %v11061_v57 = vadd.f32 %v1500_v38, %v1276_v21 }
 0x168   : > { %v1280_v26 = vpop.f32.mrf.mxu0  ;;  %v1502_v2 = vpop.f32.mrf.mxu1  ;;  %9110 = vmatmul.mubr.f32.gmra.mxu0 %v15362_v27 }
 0x169   : > { %v1281_v13 = vadd.f32 %v10879_v1, %v1280_v26  ;;  %9112 = vmatprep.mubr.f32.mxu0 %v15365_v19 }
 0x16a   : > { %v1282_v58 = vpop.f32.mrf.mxu0  ;;  %v1505_v20 = vpop.f32.mrf.mxu1 }
 0x16b   : > { %v11069_v61 = vadd.f32 %v1505_v20, %v1281_v13  ;;  %v3247_v20 = vld [vmem:[%s15202_s3 + $0x50] sm:$0xff] }
 0x16c   : > { %v1285_v35 = vpop.f32.mrf.mxu0  ;;  %v1507_v46 = vpop.f32.mrf.mxu1  ;;  %9113 = vmatmul.mubr.f32.gmra.mxu0 %v15368_v14  ;;  %v3264_v14 = vld [vmem:[%s15202_s3 + $0xd8] sm:$0xff] }
 0x16d   : > { %v1286_v27 = vadd.f32 %v10879_v1, %v1285_v35  ;;  %9115 = vmatprep.mubr.f32.mxu0 %v15371_v24  ;;  %8300 = vmatprep.subr.mxu1 %v3264_v14 }
 0x16e   : > { %v1287_v19 = vpop.f32.mrf.mxu0  ;;  %v1510_v33 = vpop.f32.mrf.mxu1  ;;  %8301 = vmatpush3.msra.mxu1 %v3248_v12 }
 0x16f   : > { %v11077_v59 = vadd.f32 %v1510_v33, %v1286_v27  ;;  %v1086_v27 = vrot.slane %v10972_v23, 2 }
 0x170   : > { %v1290_v29 = vpop.f32.mrf.mxu0  ;;  %v1512_v47 = vpop.f32.mrf.mxu1  ;;  %9116 = vmatmul.mubr.f32.gmra.mxu0 %v15374_v15 }
 0x171   : > { %v1291_v37 = vadd.f32 %v10879_v1, %v1290_v29  ;;  %9118 = vmatprep.mubr.f32.mxu0 %v15377_v39 }
 0x172   : > { %v1292_v48 = vpop.f32.mrf.mxu0  ;;  %v1515_v53 = vpop.f32.mrf.mxu1 }
 0x173   : > { %v11085_v24 = vadd.f32 %v1515_v53, %v1291_v37  ;;  %v3246_v53 = vld [vmem:[%s15202_s3 + $0x48] sm:$0xff] }
 0x174   : > { %v1295_v44 = vpop.f32.mrf.mxu0  ;;  %v1517_v21 = vpop.f32.mrf.mxu1  ;;  %9119 = vmatmul.mubr.f32.gmra.mxu0 %v15379_v55  ;;  %v3263_v55 = vld [vmem:[%s15202_s3 + $0xd0] sm:$0xff] }
 0x175   : > { %v1296_v15 = vadd.f32 %v10879_v1, %v1295_v44  ;;  %9121 = vmatprep.mubr.f32.mxu0 %v15382_v43  ;;  %8302 = vmatprep.subr.mxu1 %v3263_v55 }
 0x176   : > { %v1297_v39 = vpop.f32.mrf.mxu0  ;;  %v1520_v45 = vpop.f32.mrf.mxu1  ;;  %8303 = vmatpush3.msra.mxu1 %v3247_v20 }
 0x177   : > { %v11093_v38 = vadd.f32 %v1520_v45, %v1296_v15 }
 0x178   : > { %v1300_v26 = vpop.f32.mrf.mxu0  ;;  %v1522_v2 = vpop.f32.mrf.mxu1  ;;  %9122 = vmatmul.mubr.f32.gmra.mxu0 %v15385_v50 }
 0x179   : > { %v1301_v13 = vadd.f32 %v10879_v1, %v1300_v26  ;;  %9124 = vmatprep.mubr.f32.mxu0 %v15387_v3  ;;  %v3261_v2 = vld [vmem:[%s15202_s3 + $0xc0] sm:$0xff] }
 0x17a   : > { %v1302_v41 = vpop.f32.mrf.mxu0  ;;  %v1525_v58 = vpop.f32.mrf.mxu1 }
 0x17b   : > { %v11101_v43 = vadd.f32 %v1525_v58, %v1301_v13  ;;  %v3245_v41 = vld [vmem:[%s15202_s3 + $0x40] sm:$0xff] }
 0x17c   : > { %v1305_v18 = vpop.f32.mrf.mxu0  ;;  %v1527_v35 = vpop.f32.mrf.mxu1  ;;  %9125 = vmatmul.mubr.f32.gmra.mxu0 %v15389_v52  ;;  %v1089_v52 = vrot.slane %v10979_v42, 2 }
 0x17d   : > { %v1306_v50 = vadd.f32 %v10879_v1, %v1305_v18  ;;  %9127 = vmatprep.mubr.f32.mxu0 %v10734_v32  ;;  %v3262_v32 = vld [vmem:[%s15202_s3 + $0xc8] sm:$0xff] }
 0x17e   : > { %v1307_v3 = vpop.f32.mrf.mxu0  ;;  %v1530_v46 = vpop.f32.mrf.mxu1  ;;  %8304 = vmatprep.subr.mxu1 %v3262_v32 }
 0x17f   : > { %v11110_v19 = vadd.f32 %v1530_v46, %v1306_v50  ;;  %8305 = vmatpush3.msra.mxu1 %v3246_v53 }
 0x180   : > { %v1310_v33 = vpop.f32.mrf.mxu0  ;;  %v1532_v29 = vpop.f32.mrf.mxu1  ;;  %9128 = vmatmul.mubr.f32.gmra.mxu0 %v10752_v16  ;;  %8306 = vmatprep.subr.mxu1 %v3261_v2 }
 0x181   : > { %v1311_v47 = vadd.f32 %v10879_v1, %v1310_v33  ;;  %9130 = vmatprep.mubr.f32.mxu0 %v10983_v5  ;;  %v1090_v5 = vsel %vm946_vm1, %v1086_v27, %v1089_v52  ;;  %8307 = vmatpush3.msra.mxu1 %v3245_v41 }
 0x182   : > { %v1312_v37 = vpop.f32.mrf.mxu0  ;;  %v1535_v14 = vpop.f32.mrf.mxu1 }
 0x183   : > { %v11119_v48 = vadd.f32 %v1535_v14, %v1311_v47 }
 0x184   : > { %v1315_v16 = vpop.f32.mrf.mxu0  ;;  %v1537_v12 = vpop.f32.mrf.mxu1  ;;  %9131 = vmatmul.mubr.f32.gmra.mxu0 %v10993_v49 }
 0x185   : > { %v1316_v42 = vadd.f32 %v10879_v1, %v1315_v16  ;;  %9133 = vmatprep.mubr.f32.mxu0 %v1086_v27 }
 0x186   : > { %v1317_v44 = vpop.f32.mrf.mxu0  ;;  %v1540_v21 = vpop.f32.mrf.mxu1 }
 0x187   : > { %v11127_v15 = vadd.f32 %v1540_v21, %v1316_v42 }
 0x188   : > { %v1320_v39 = vpop.f32.mrf.mxu0  ;;  %v1542_v45 = vpop.f32.mrf.mxu1  ;;  %9134 = vmatmul.mubr.f32.gmra.mxu0 %v1090_v5 }
 0x189   : > { %v1321_v26 = vadd.f32 %v10879_v1, %v1320_v39 }
 0x18a   : > { %v1322_v49 = vpop.f32.mrf.mxu0  ;;  %v1545_v13 = vpop.f32.mrf.mxu1 }
 0x18b   : > { %v11133_v55 = vadd.f32 %v1545_v13, %v1321_v26 }
 0x18c   : > { %v1547_v58 = vpop.f32.mrf.mxu1  ;;  %v1615_v20 = vpop.f32.mrf.mxu0 }
 0x18d   : > { %v1616_v18 = vadd.f32 %v1615_v20, %v10886_v54 }
 0x18e   : > { %v1617_v35 = vpop.f32.mrf.mxu0  ;;  %v1840_v1 = vpop.f32.mrf.mxu1 }
 0x18f   : > { %v11139_v50 = vadd.f32 %v1840_v1, %v1616_v18 }
 0x190   : > { %v1620_v3 = vpop.f32.mrf.mxu0  ;;  %v1842_v46 = vpop.f32.mrf.mxu1 }
 0x191   : > { %v1621_v27 = vadd.f32 %v1620_v3, %v10893_v25 }
 0x192   : > { %v1622_v33 = vpop.f32.mrf.mxu0  ;;  %v1845_v29 = vpop.f32.mrf.mxu1 }
 0x193   : > { %v11142_v47 = vadd.f32 %v1845_v29, %v1621_v27  ;;  %v3260_v29 = vld [vmem:[%s15202_s3 + $0xb8] sm:$0xff] }
 0x194   : > { %v1625_v52 = vpop.f32.mrf.mxu0  ;;  %v1847_v32 = vpop.f32.mrf.mxu1  ;;  %8308 = vmatprep.subr.mxu1 %v3260_v29 }
 0x195   : > { %v1626_v37 = vadd.f32 %v1625_v52, %v10900_v63 }
 0x196   : > { %v1627_v14 = vpop.f32.mrf.mxu0  ;;  %v1850_v53 = vpop.f32.mrf.mxu1 }
 0x197   : > { %v11145_v16 = vadd.f32 %v1850_v53, %v1626_v37 }
 0x198   : > { %v1630_v54 = vpop.f32.mrf.mxu0  ;;  %v1852_v12 = vpop.f32.mrf.mxu1 }
 0x199   : > { %v1631_v42 = vadd.f32 %v1630_v54, %v10907_v34 }
 0x19a   : > { %v1632_v5 = vpop.f32.mrf.mxu0  ;;  %v1855_v44 = vpop.f32.mrf.mxu1 }
 0x19b   : > { %v11148_v21 = vadd.f32 %v1855_v44, %v1631_v42  ;;  %v3316_v44 = vld [vmem:[%s15202_s3 + $0x278] sm:$0xff] }
 0x19c   : > { %v1635_v25 = vpop.f32.mrf.mxu0  ;;  %v1857_v39 = vpop.f32.mrf.mxu1 }
 0x19d   : > { %v1636_v45 = vadd.f32 %v1635_v25, %v10914_v51 }
 0x19e   : > { %v1637_v26 = vpop.f32.mrf.mxu0  ;;  %v1860_v2 = vpop.f32.mrf.mxu1 }
 0x19f   : > { %v11151_v49 = vadd.f32 %v1860_v2, %v1636_v45 }
 0x1a0   : > { %v1640_v63 = vpop.f32.mrf.mxu0  ;;  %v1862_v13 = vpop.f32.mrf.mxu1 }
 0x1a1   : > { %v1641_v41 = vadd.f32 %v1640_v63, %v10921_v31 }
 0x1a2   : > { %v1642_v58 = vpop.f32.mrf.mxu0  ;;  %v1865_v20 = vpop.f32.mrf.mxu1 }
 0x1a3   : > { %v11154_v18 = vadd.f32 %v1865_v20, %v1641_v41  ;;  %v3315_v58 = vld [vmem:[%s15202_s3 + $0x270] sm:$0xff] }
 0x1a4   : > { %v1645_v34 = vpop.f32.mrf.mxu0  ;;  %v1867_v35 = vpop.f32.mrf.mxu1 }
 0x1a5   : > { %v1646_v1 = vadd.f32 %v1645_v34, %v10928_v6  ;;  %v3244_v6 = vld [vmem:[%s15202_s3 + $0x38] sm:$0xff]  ;;  %v3330_v34 = vld [vmem:[%s15202_s3 + $0x2e8] sm:$0xff] }
 0x1a6   : > { %v1647_v3 = vpop.f32.mrf.mxu0  ;;  %v1870_v46 = vpop.f32.mrf.mxu1  ;;  %8309 = vmatpush3.msra.mxu1 %v3244_v6 }
 0x1a7   : > { %v11157_v27 = vadd.f32 %v1870_v46, %v1646_v1  ;;  %v3259_v1 = vld [vmem:[%s15202_s3 + $0xb0] sm:$0xff] }
 0x1a8   : > { %v1650_v51 = vpop.f32.mrf.mxu0  ;;  %v1872_v33 = vpop.f32.mrf.mxu1  ;;  %8310 = vmatprep.subr.mxu1 %v3259_v1  ;;  %v3328_v1 = vld [vmem:[%s15202_s3 + $0x2d8] sm:$0xff] }
 0x1a9   : > { %v1651_v31 = vadd.f32 %v1650_v51, %v10935_v22  ;;  %v3332_v22 = vld [vmem:[%s15202_s3 + $0x2f8] sm:$0xff] }
 0x1aa   : > { %v1652_v52 = vpop.f32.mrf.mxu0  ;;  %v1875_v32 = vpop.f32.mrf.mxu1  ;;  %8404 = vmatprep.subr.mxu0 %v3332_v22 }
 0x1ab   : > { %v11163_v37 = vadd.f32 %v1875_v32, %v1651_v31  ;;  %8405 = vmatpush3.msra.mxu0 %v3316_v44 }
 0x1ac   : > { %v1655_v14 = vpop.f32.mrf.mxu0  ;;  %v1877_v53 = vpop.f32.mrf.mxu1 }
 0x1ad   : > { %v1656_v54 = vadd.f32 %v1655_v14, %v10942_v56  ;;  %v3331_v56 = vld [vmem:[%s15202_s3 + $0x2f0] sm:$0xff] }
 0x1ae   : > { %v1657_v12 = vpop.f32.mrf.mxu0  ;;  %v1880_v42 = vpop.f32.mrf.mxu1  ;;  %8406 = vmatprep.subr.mxu0 %v3331_v56  ;;  %v3243_v53 = vld [vmem:[%s15202_s3 + $0x30] sm:$0xff] }
 0x1af   : > { %v11172_v5 = vadd.f32 %v1880_v42, %v1656_v54  ;;  %8407 = vmatpush3.msra.mxu0 %v3315_v58  ;;  %8311 = vmatpush3.msra.mxu1 %v3243_v53 }
 0x1b0   : > { %v1660_v25 = vpop.f32.mrf.mxu0  ;;  %v1882_v39 = vpop.f32.mrf.mxu1  ;;  %8408 = vmatprep.subr.mxu0 %v3330_v34 }
 0x1b1   : > { %v1661_v45 = vadd.f32 %v1660_v25, %v10949_v0  ;;  %v3329_v25 = vld [vmem:[%s15202_s3 + $0x2e0] sm:$0xff] }
 0x1b2   : > { %v1662_v26 = vpop.f32.mrf.mxu0  ;;  %v1885_v2 = vpop.f32.mrf.mxu1 }
 0x1b3   : > { %v11181_v63 = vadd.f32 %v1885_v2, %v1661_v45 }
 0x1b4   : > { %v1665_v13 = vpop.f32.mrf.mxu0  ;;  %v1887_v41 = vpop.f32.mrf.mxu1 }
 0x1b5   : > { %v1666_v20 = vadd.f32 %v1665_v13, %v10958_v36 }
 0x1b6   : > { %v1667_v35 = vpop.f32.mrf.mxu0  ;;  %v1890_v0 = vpop.f32.mrf.mxu1 }
 0x1b7   : > { %v11193_v3 = vadd.f32 %v1890_v0, %v1666_v20  ;;  %v3313_v35 = vld [vmem:[%s15202_s3 + $0x260] sm:$0xff] }
 0x1b8   : > { %v1670_v46 = vpop.f32.mrf.mxu0  ;;  %v1892_v51 = vpop.f32.mrf.mxu1 }
 0x1b9   : > { %v1671_v33 = vadd.f32 %v1670_v46, %v10968_v9  ;;  %v3314_v9 = vld [vmem:[%s15202_s3 + $0x268] sm:$0xff] }
 0x1ba   : > { %v1672_v36 = vpop.f32.mrf.mxu0  ;;  %v1895_v29 = vpop.f32.mrf.mxu1  ;;  %8409 = vmatpush3.msra.mxu0 %v3314_v9 }
 0x1bb   : > { %v11196_v31 = vadd.f32 %v1895_v29, %v1671_v33  ;;  %8410 = vmatprep.subr.mxu0 %v3329_v25  ;;  %v3327_v36 = vld [vmem:[%s15202_s3 + $0x2d0] sm:$0xff] }
 0x1bc   : > { %v1675_v52 = vpop.f32.mrf.mxu0  ;;  %v1897_v32 = vpop.f32.mrf.mxu1  ;;  %8411 = vmatpush3.msra.mxu0 %v3313_v35 }
 0x1bd   : > { %v1676_v14 = vadd.f32 %v1675_v52, %v10985_v17  ;;  %v3258_v17 = vld [vmem:[%s15202_s3 + $0xa8] sm:$0xff]  ;;  %8412 = vmatprep.subr.mxu0 %v3328_v1  ;;  %v3308_v1 = vld [vmem:[%s15202_s3 + $0x238] sm:$0xff] }
 0x1be   : > { %v1677_v6 = vpop.f32.mrf.mxu0  ;;  %v1900_v54 = vpop.f32.mrf.mxu1  ;;  %8312 = vmatprep.subr.mxu1 %v3258_v17  ;;  %v3242_v52 = vld [vmem:[%s15202_s3 + $0x28] sm:$0xff] }
 0x1bf   : > { %v11202_v12 = vadd.f32 %v1900_v54, %v1676_v14  ;;  %8313 = vmatpush3.msra.mxu1 %v3242_v52  ;;  %v3311_v14 = vld [vmem:[%s15202_s3 + $0x250] sm:$0xff]  ;;  %v3326_v54 = vld [vmem:[%s15202_s3 + $0x2c8] sm:$0xff] }
 0x1c0   : > { %v1680_v42 = vpop.f32.mrf.mxu0  ;;  %v1902_v22 = vpop.f32.mrf.mxu1 }
 0x1c1   : > { %v1681_v44 = vadd.f32 %v1680_v42, %v10995_v62 }
 0x1c2   : > { %v1682_v39 = vpop.f32.mrf.mxu0  ;;  %v1905_v56 = vpop.f32.mrf.mxu1 }
 0x1c3   : > { %v11214_v45 = vadd.f32 %v1905_v56, %v1681_v44 }
 0x1c4   : > { %v1685_v26 = vpop.f32.mrf.mxu0  ;;  %v1907_v2 = vpop.f32.mrf.mxu1 }
 0x1c5   : > { %v1686_v13 = vadd.f32 %v1685_v26, %v11003_v8  ;;  %v3312_v8 = vld [vmem:[%s15202_s3 + $0x258] sm:$0xff]  ;;  %v3257_v26 = vld [vmem:[%s15202_s3 + $0xa0] sm:$0xff]  ;;  %v3310_v2 = vld [vmem:[%s15202_s3 + $0x248] sm:$0xff] }
 0x1c6   : > { %v1687_v62 = vpop.f32.mrf.mxu0  ;;  %v1910_v41 = vpop.f32.mrf.mxu1  ;;  %8413 = vmatpush3.msra.mxu0 %v3312_v8  ;;  %8314 = vmatprep.subr.mxu1 %v3257_v26 }
 0x1c7   : > { %v11217_v58 = vadd.f32 %v1910_v41, %v1686_v13  ;;  %8414 = vmatprep.subr.mxu0 %v3327_v36 }
 0x1c8   : > { %v1690_v20 = vpop.f32.mrf.mxu0  ;;  %v1912_v34 = vpop.f32.mrf.mxu1  ;;  %8415 = vmatpush3.msra.mxu0 %v3311_v14 }
 0x1c9   : > { %v1691_v0 = vadd.f32 %v1690_v20, %v11008_v11  ;;  %8416 = vmatprep.subr.mxu0 %v3326_v54  ;;  %v3309_v20 = vld [vmem:[%s15202_s3 + $0x240] sm:$0xff] }
 0x1ca   : > { %v1692_v46 = vpop.f32.mrf.mxu0  ;;  %v1915_v51 = vpop.f32.mrf.mxu1  ;;  %8417 = vmatpush3.msra.mxu0 %v3310_v2 }
 0x1cb   : > { %v11229_v33 = vadd.f32 %v1915_v51, %v1691_v0  ;;  %v3323_v51 = vld [vmem:[%s15202_s3 + $0x2b0] sm:$0xff] }
 0x1cc   : > { %v1695_v11 = vpop.f32.mrf.mxu0  ;;  %v1917_v29 = vpop.f32.mrf.mxu1 }
 0x1cd   : > { %v1696_v32 = vadd.f32 %v1695_v11, %v11013_v60  ;;  %v3241_v11 = vld [vmem:[%s15202_s3 + $0x20] sm:$0xff] }
 0x1ce   : > { %v1697_v53 = vpop.f32.mrf.mxu0  ;;  %v1920_v6 = vpop.f32.mrf.mxu1  ;;  %8315 = vmatpush3.msra.mxu1 %v3241_v11  ;;  %v3254_v11 = vld [vmem:[%s15202_s3 + $0x88] sm:$0xff] }
 0x1cf   : > { %v11244_v42 = vadd.f32 %v1920_v6, %v1696_v32 }
 0x1d0   : > { %v1700_v22 = vpop.f32.mrf.mxu0  ;;  %v1922_v9 = vpop.f32.mrf.mxu1 }
 0x1d1   : > { %v1701_v44 = vadd.f32 %v1700_v22, %v11021_v30  ;;  %v3325_v30 = vld [vmem:[%s15202_s3 + $0x2c0] sm:$0xff] }
 0x1d2   : > { %v1702_v60 = vpop.f32.mrf.mxu0  ;;  %v1925_v17 = vpop.f32.mrf.mxu1  ;;  %8418 = vmatprep.subr.mxu0 %v3325_v30 }
 0x1d3   : > { %v11247_v25 = vadd.f32 %v1925_v17, %v1701_v44  ;;  %8419 = vmatpush3.msra.mxu0 %v3309_v20  ;;  %v3307_v44 = vld [vmem:[%s15202_s3 + $0x230] sm:$0xff] }
 0x1d4   : > { %v1705_v39 = vpop.f32.mrf.mxu0  ;;  %v1927_v56 = vpop.f32.mrf.mxu1 }
 0x1d5   : > { %v1706_v13 = vadd.f32 %v1705_v39, %v11029_v28  ;;  %v3324_v28 = vld [vmem:[%s15202_s3 + $0x2b8] sm:$0xff] }
 0x1d6   : > { %v1707_v62 = vpop.f32.mrf.mxu0  ;;  %v1930_v41 = vpop.f32.mrf.mxu1  ;;  %8420 = vmatprep.subr.mxu0 %v3324_v28  ;;  %v3256_v39 = vld [vmem:[%s15202_s3 + $0x98] sm:$0xff] }
 0x1d7   : > { %v11262_v34 = vadd.f32 %v1930_v41, %v1706_v13  ;;  %8421 = vmatpush3.msra.mxu0 %v3308_v1  ;;  %8316 = vmatprep.subr.mxu1 %v3256_v39  ;;  %v3240_v28 = vld [vmem:[%s15202_s3 + $0x18] sm:$0xff]  ;;  %v3321_v1 = vld [vmem:[%s15202_s3 + $0x2a0] sm:$0xff] }
 0x1d8   : > { %v1710_v35 = vpop.f32.mrf.mxu0  ;;  %v1932_v0 = vpop.f32.mrf.mxu1  ;;  %8422 = vmatprep.subr.mxu0 %v3323_v51  ;;  %8317 = vmatpush3.msra.mxu1 %v3240_v28 }
 0x1d9   : > { %v1711_v46 = vadd.f32 %v1710_v35, %v11037_v10  ;;  %8423 = vmatpush3.msra.mxu0 %v3307_v44  ;;  %v3306_v35 = vld [vmem:[%s15202_s3 + $0x228] sm:$0xff] }
 0x1da   : > { %v1712_v8 = vpop.f32.mrf.mxu0  ;;  %v1935_v36 = vpop.f32.mrf.mxu1 }
 0x1db   : > { %v11277_v29 = vadd.f32 %v1935_v36, %v1711_v46  ;;  %v3239_v8 = vld [vmem:[%s15202_s3 + $0x10] sm:$0xff] }
 0x1dc   : > { %v1715_v52 = vpop.f32.mrf.mxu0  ;;  %v1937_v32 = vpop.f32.mrf.mxu1 }
 0x1dd   : > { %v1716_v14 = vadd.f32 %v1715_v52, %v11045_v7  ;;  %v3322_v7 = vld [vmem:[%s15202_s3 + $0x2a8] sm:$0xff]  ;;  %v3320_v52 = vld [vmem:[%s15202_s3 + $0x298] sm:$0xff] }
 0x1de   : > { %v1717_v10 = vpop.f32.mrf.mxu0  ;;  %v1940_v53 = vpop.f32.mrf.mxu1  ;;  %8424 = vmatprep.subr.mxu0 %v3322_v7 }
 0x1df   : > { %v11280_v6 = vadd.f32 %v1940_v53, %v1716_v14  ;;  %8425 = vmatpush3.msra.mxu0 %v3306_v35 }
 0x1e0   : > { %v1720_v54 = vpop.f32.mrf.mxu0  ;;  %v1942_v22 = vpop.f32.mrf.mxu1  ;;  %8426 = vmatprep.subr.mxu0 %v3321_v1  ;;  %v3237_v1 = vld [vmem:[%s15202_s3] sm:$0xff] }
 0x1e1   : > { %v1721_v9 = vadd.f32 %v1720_v54, %v11053_v4 }
 0x1e2   : > { %v1722_v60 = vpop.f32.mrf.mxu0  ;;  %v1945_v17 = vpop.f32.mrf.mxu1 }
 0x1e3   : > { %v11292_v56 = vadd.f32 %v1945_v17, %v1721_v9 }
 0x1e4   : > { %v1725_v4 = vpop.f32.mrf.mxu0  ;;  %v1947_v26 = vpop.f32.mrf.mxu1 }
 0x1e5   : > { %v1726_v2 = vadd.f32 %v1725_v4, %v11061_v57  ;;  %v3255_v57 = vld [vmem:[%s15202_s3 + $0x90] sm:$0xff] }
 0x1e6   : > { %v1727_v13 = vpop.f32.mrf.mxu0  ;;  %v1950_v30 = vpop.f32.mrf.mxu1  ;;  %8318 = vmatprep.subr.mxu1 %v3255_v57 }
 0x1e7   : > { %v11295_v62 = vadd.f32 %v1950_v30, %v1726_v2  ;;  %8319 = vmatpush3.msra.mxu1 %v3239_v8  ;;  %v3238_v2 = vld [vmem:[%s15202_s3 + $0x8] sm:$0xff]  ;;  %v3319_v30 = vld [vmem:[%s15202_s3 + $0x290] sm:$0xff] }
 0x1e8   : > { %v1730_v41 = vpop.f32.mrf.mxu0  ;;  %v1952_v20 = vpop.f32.mrf.mxu1  ;;  %8320 = vmatprep.subr.mxu1 %v3254_v11 }
 0x1e9   : > { %v1731_v0 = vadd.f32 %v1730_v41, %v11069_v61  ;;  %v3305_v61 = vld [vmem:[%s15202_s3 + $0x220] sm:$0xff]  ;;  %8321 = vmatpush3.msra.mxu1 %v3238_v2  ;;  %v3218_v41 = vld [vmem:[#allocation3 + $0x8] sm:$0x3] }
 0x1ea   : > { %v1732_v46 = vpop.f32.mrf.mxu0  ;;  %v1955_v51 = vpop.f32.mrf.mxu1  ;;  %8427 = vmatpush3.msra.mxu0 %v3305_v61  ;;  %v3399_v35 = vrot.slane %v3218_v41, 1  ;;  %v3318_v61 = vld [vmem:[%s15202_s3 + $0x288] sm:$0xff] }
 0x1eb   : > { %v11316_v36 = vadd.f32 %v1955_v51, %v1731_v0  ;;  %8428 = vmatprep.subr.mxu0 %v3320_v52  ;;  %v3303_v51 = vld [vmem:[%s15202_s3 + $0x210] sm:$0xff] }
 0x1ec   : > { %v1735_v32 = vpop.f32.mrf.mxu0  ;;  %v1957_v14 = vpop.f32.mrf.mxu1  ;;  %v3400_v46 = vsel %vm833_vm0, %v10975_v40, %v3399_v35 }
 0x1ed   : > { %v1736_v10 = vadd.f32 %v1735_v32, %v11077_v59  ;;  %v3304_v59 = vld [vmem:[%s15202_s3 + $0x218] sm:$0xff]  ;;  %3552 = vmatprep.mubr.f32.mxu1 %v3400_v46 }
 0x1ee   : > { %v1737_v53 = vpop.f32.mrf.mxu0  ;;  %v1960_v54 = vpop.f32.mrf.mxu1  ;;  %8429 = vmatpush3.msra.mxu0 %v3304_v59 }
 0x1ef   : > { %v11325_v22 = vadd.f32 %v1960_v54, %v1736_v10  ;;  %8430 = vmatprep.subr.mxu0 %v3319_v30  ;;  %v3302_v54 = vld [vmem:[%s15202_s3 + $0x208] sm:$0xff] }
 0x1f0   : > { %v1740_v9 = vpop.f32.mrf.mxu0  ;;  %v1962_v44 = vpop.f32.mrf.mxu1  ;;  %8431 = vmatpush3.msra.mxu0 %v3303_v51  ;;  %v2292_v51 = vlaneseq }
 0x1f1   : > { %v1741_v60 = vadd.f32 %v1740_v9, %v11085_v24  ;;  %v3253_v24 = vld [vmem:[%s15202_s3 + $0x80] sm:$0xff]  ;;  %8432 = vmatprep.subr.mxu0 %v3318_v61 }
 0x1f2   : > { %v1742_v17 = vpop.f32.mrf.mxu0  ;;  %v1965_v39 = vpop.f32.mrf.mxu1  ;;  %8322 = vmatprep.subr.mxu1 %v3253_v24  ;;  %8433 = vmatpush3.msra.mxu0 %v3302_v54 }
 0x1f3   : > { %v11328_v7 = vadd.f32 %v1965_v39, %v1741_v60  ;;  %8323 = vmatpush3.msra.mxu1 %v3237_v1  ;;  %v9618_v1 = vmov 1983009808  }
 0x1f4   : > { %v1745_v4 = vpop.f32.mrf.mxu0  ;;  %v1967_v26 = vpop.f32.mrf.mxu1  ;;  %3553 = vmatmul.mubr.f32.vlgmr.msra.gmra.mxu1 %v10972_v23  ;;  %v3317_v23 = vld [vmem:[%s15202_s3 + $0x280] sm:$0xff]  ;;  %v2290_v46 = vunpack.c.l.s4 %v9618_v1 }
 0x1f5   : > { %v1746_v13 = vadd.f32 %v1745_v4, %v11093_v38  ;;  %8434 = vmatprep.subr.mxu0 %v3317_v23 }
 0x1f6   : > { %v1747_v20 = vpop.f32.mrf.mxu0  ;;  %v1970_v28 = vpop.f32.mrf.mxu1 }
 0x1f7   : > { %v11343_v0 = vadd.f32 %v1970_v28, %v1746_v13 }
 0x1f8   : > { %v1750_v57 = vpop.f32.mrf.mxu0  ;;  %v1972_v38 = vpop.f32.mrf.mxu1 }
 0x1f9   : > { %v1751_v8 = vadd.f32 %v1750_v57, %v11101_v43 }
 0x1fa   : > { %v1752_v11 = vpop.f32.mrf.mxu0  ;;  %v1975_v52 = vpop.f32.mrf.mxu1 }
 0x1fb   : > { %v11358_v32 = vadd.f32 %v1975_v52, %v1751_v8  ;;  %v2291_v52 = vunpack.c.0.s8 %v2290_v46 }
 0x1fc   : > { %v1755_v40 = vpop.f32.mrf.mxu0  ;;  %v1977_v14 = vpop.f32.mrf.mxu1 }
 0x1fd   : > { %v1756_v10 = vadd.f32 %v1755_v40, %v11110_v19  ;;  %v3301_v19 = vld [vmem:[%s15202_s3 + $0x200] sm:$0xff]  ;;  %v2293_v40 = vshrl.u32 %v2292_v51, 7 }
 0x1fe   : > { %v1757_v53 = vpop.f32.mrf.mxu0  ;;  %v1980_v43 = vpop.f32.mrf.mxu1  ;;  %8435 = vmatpush3.msra.mxu0 %v3301_v19 }
 0x1ff   : > { %v11364_v9 = vadd.f32 %v1980_v43, %v1756_v10  ;;  %v11384_v23 = vsub.s32 %v2291_v52, %v2293_v40 }
 0x200   : > { %v1760_v44 = vpop.f32.mrf.mxu0  ;;  %v1982_v60 = vpop.f32.mrf.mxu1 }
 0x201   : > { %v1761_v17 = vadd.f32 %v1760_v44, %v11119_v48 }
 0x202   : > { %v1762_v39 = vpop.f32.mrf.mxu0  ;;  %v1985_v4 = vpop.f32.mrf.mxu1 }
 0x203   : > { %v11373_v26 = vadd.f32 %v1985_v4, %v1761_v17 }
 0x204   : > { %v1765_v2 = vpop.f32.mrf.mxu0  ;;  %v1987_v59 = vpop.f32.mrf.mxu1 }
 0x205   : > { %v1766_v13 = vadd.f32 %v1765_v2, %v11127_v15 }
 0x206   : > { %v1767_v24 = vpop.f32.mrf.mxu0  ;;  %v1990_v30 = vpop.f32.mrf.mxu1 }
 0x207   : > { %v11376_v41 = vadd.f32 %v1990_v30, %v1766_v13 }
 0x208   : > { %v1770_v20 = vpop.f32.mrf.mxu0  ;;  %v1992_v28 = vpop.f32.mrf.mxu1 }
 0x209   : > { %v1771_v35 = vadd.f32 %v1770_v20, %v11133_v55 }
 0x20a   : > { %v1772_v57 = vpop.f32.mrf.mxu0  ;;  %v1995_v38 = vpop.f32.mrf.mxu1 }
 0x20b   : > { %v11379_v48 = vadd.f32 %v1995_v38, %v1771_v35 }
 0x20c   : > { %v9090_v8 = vpop.f32.mrf.mxu0  ;;  %v1997_v61 = vpop.f32.mrf.mxu1 }
 0x20d   : > { %v2071_v15 = vadd.f32 %v9090_v8, %v11142_v47 }
 0x20e   : > { %v2065_v11 = vpop.f32.mrf.mxu0 }
 0x20f   : > { %v2066_v10 = vadd.f32 %v2065_v11, %v11139_v50  ;;  %v2225_v43 = vmax.f32 %v2071_v15, 0.0 }
 0x210   : > { %v9093_v14 = vpop.f32.mrf.mxu0 }
 0x211   : > { %v2081_v53 = vadd.f32 %v9093_v14, %v11148_v21  ;;  %v2224_v19 = vmax.f32 %v2066_v10, 0.0 }
 0x212   : > { %v2075_v55 = vpop.f32.mrf.mxu0 }
 0x213   : > { %v2227_v54 = vmax.f32 %v2081_v53, 0.0  ;;  %v2076_v44 = vadd.f32 %v2075_v55, %v11145_v16 }
 0x214   : > { %v9096_v60 = vpop.f32.mrf.mxu0 }
 0x215   : > { %v2257_v17 = vmax.f32 %v2225_v43, %v2227_v54  ;;  %v2226_v39 = vmax.f32 %v2076_v44, 0.0  ;;  %v11388_v47 = vadd.f32 %v9096_v60, %v11154_v18 }
 0x216   : > { %v2085_v4 = vpop.f32.mrf.mxu0 }
 0x217   : > { %v2305_v2 = vcombine.high %v2257_v17, %v2257_v17  ;;  %v2312_v50 = vrot.slane %v2257_v17, %v11384_v23  ;;  %v2256_v21 = vmax.f32 %v2224_v19, %v2226_v39  ;;  %v2229_v59 = vmax.f32 %v11388_v47, 0.0 }
 0x218   : > { %v9099_v13 = vpop.f32.mrf.mxu0  ;;  %v11396_v18 = vadd.f32 %v2085_v4, %v11151_v49 }
 0x219   : > { %v2319_v24 = vrot.slane %v2305_v2, %v11384_v23  ;;  %v2320_v30 = vcombine.high %v2312_v50, %v2312_v50  ;;  %v2653_v16 = vsel %vm2624_vm2, %v2312_v50, -inf  ;;  %v2288_v20 = vcombine.high %v2256_v21, %v2256_v21 }
 0x21a   : > { %v2654_v28 = vrot.slane %v2653_v16, 4  ;;  %v2295_v35 = vrot.slane %v2256_v21, %v11384_v23  ;;  %v11399_v57 = vadd.f32 %v9099_v13, %v11163_v37  ;;  %v2095_v52 = vpop.f32.mrf.mxu0 }
 0x21b   : > { %v2321_v38 = vcombine.high %v2319_v24, %v2319_v24  ;;  %v2660_v1 = vsel %vm2624_vm2, %v2320_v30, -inf  ;;  %v2667_v46 = vsel %vm2624_vm2, %v2319_v24, -inf  ;;  %v2302_v51 = vrot.slane %v2288_v20, %v11384_v23 }
 0x21c   : > { %v2655_v8 = vmax.f32 %v2653_v16, %v2654_v28  ;;  %v2661_v61 = vrot.slane %v2660_v1, 4  ;;  %v2668_v11 = vrot.slane %v2667_v46, 4  ;;  %v2303_v15 = vcombine.high %v2295_v35, %v2295_v35  ;;  %v9102_v50 = vpop.f32.mrf.mxu0 }
 0x21d   : > { %v2674_v40 = vsel %vm2624_vm2, %v2321_v38, -inf  ;;  %v2304_v14 = vcombine.high %v2302_v51, %v2302_v51  ;;  %v2625_v49 = vsel %vm2624_vm2, %v2295_v35, -inf  ;;  %v2639_v37 = vsel %vm2624_vm2, %v2302_v51, -inf }
 0x21e   : > { %v2656_v10 = vrot.slane %v2655_v8, 2  ;;  %v2662_v53 = vmax.f32 %v2660_v1, %v2661_v61  ;;  %v2669_v55 = vmax.f32 %v2667_v46, %v2668_v11  ;;  %v2675_v43 = vrot.slane %v2674_v40, 4 }
 0x21f   : > { %v2626_v54 = vrot.slane %v2625_v49, 4  ;;  %v2632_v44 = vsel %vm2624_vm2, %v2303_v15, -inf  ;;  %v2640_v60 = vrot.slane %v2639_v37, 4  ;;  %v2646_v19 = vsel %vm2624_vm2, %v2304_v14, -inf }
 0x220   : > { %v2657_v17 = vmax.f32 %v2655_v8, %v2656_v10  ;;  %v2663_v39 = vrot.slane %v2662_v53, 2  ;;  %v2670_v4 = vrot.slane %v2669_v55, 2  ;;  %v2676_v2 = vmax.f32 %v2674_v40, %v2675_v43  ;;  %v2105_v40 = vpop.f32.mrf.mxu0 }
 0x221   : > { %v2627_v21 = vmax.f32 %v2625_v49, %v2626_v54  ;;  %v2633_v13 = vrot.slane %v2632_v44, 4  ;;  %v2641_v24 = vmax.f32 %v2639_v37, %v2640_v60  ;;  %v2647_v30 = vrot.slane %v2646_v19, 4 }
 0x222   : > { %v2658_v16 = vrot.slane %v2657_v17, 1  ;;  %v2664_v20 = vmax.f32 %v2662_v53, %v2663_v39  ;;  %v2671_v28 = vmax.f32 %v2669_v55, %v2670_v4  ;;  %v2677_v35 = vrot.slane %v2676_v2, 2 }
 0x223   : > { %v2628_v38 = vrot.slane %v2627_v21, 2  ;;  %v2634_v1 = vmax.f32 %v2632_v44, %v2633_v13  ;;  %v2642_v46 = vrot.slane %v2641_v24, 2  ;;  %v2648_v51 = vmax.f32 %v2646_v19, %v2647_v30 }
 0x224   : > { %v2665_v61 = vrot.slane %v2664_v20, 1  ;;  %v2672_v8 = vrot.slane %v2671_v28, 1  ;;  %v2678_v11 = vmax.f32 %v2676_v2, %v2677_v35  ;;  %v2228_v15 = vmax.f32 %v11396_v18, 0.0 }
 0x225   : > { %v2629_v14 = vmax.f32 %v2627_v21, %v2628_v38  ;;  %v2635_v49 = vrot.slane %v2634_v1, 2  ;;  %v2643_v37 = vmax.f32 %v2641_v24, %v2642_v46  ;;  %v2649_v10 = vrot.slane %v2648_v51, 2 }
 0x226   : > { %v2659_v53 = vmax.f32 %v2657_v17, %v2658_v16  ;;  %v2666_v55 = vmax.f32 %v2664_v20, %v2665_v61  ;;  %v2679_v43 = vrot.slane %v2678_v11, 1  ;;  %v2231_v54 = vmax.f32 %v11399_v57, 0.0  ;;  %v9105_v17 = vpop.f32.mrf.mxu0 }
 0x227   : > { %v2630_v44 = vrot.slane %v2629_v14, 1  ;;  %v2636_v60 = vmax.f32 %v2634_v1, %v2635_v49  ;;  %v2644_v19 = vrot.slane %v2643_v37, 1  ;;  %v2650_v39 = vmax.f32 %v2648_v51, %v2649_v10 }
 0x228   : > { %v2673_v4 = vmax.f32 %v2671_v28, %v2672_v8  ;;  %v2259_v18 = vmax.f32 %v2229_v59, %v2231_v54  ;;  %v2096_v2 = vadd.f32 %v2095_v52, %v11157_v27  ;;  %v11415_v21 = vadd.f32 %v9102_v50, %v11181_v63 }
 0x229   : > { %v2680_v13 = vmax.f32 %v2678_v11, %v2679_v43  ;;  %v2631_v24 = vmax.f32 %v2629_v14, %v2630_v44  ;;  %v2637_v30 = vrot.slane %v2636_v60, 1  ;;  %v2651_v57 = vrot.slane %v2650_v39, 1 }
 0x22a   : > { %v2645_v16 = vmax.f32 %v2643_v37, %v2644_v19  ;;  %v2339_v20 = vcombine.high %v2259_v18, %v2259_v18  ;;  %v2346_v35 = vrot.slane %v2259_v18, %v11384_v23  ;;  %v2230_v38 = vmax.f32 %v2096_v2, 0.0 }
 0x22b   : > { %v2638_v28 = vmax.f32 %v2636_v60, %v2637_v30  ;;  %v2652_v1 = vmax.f32 %v2650_v39, %v2651_v57  ;;  %v2233_v47 = vmax.f32 %v11415_v21, 0.0  ;;  %v11420_v59 = vadd.f32 %v9105_v17, %v11196_v31  ;;  %v2115_v60 = vpop.f32.mrf.mxu0  ;;  %v3300_v17 = vld [vmem:[%s15202_s3 + $0x1f8] sm:$0xff] }
 0x22c   : > { %v2353_v27 = vrot.slane %v2339_v20, %v11384_v23  ;;  %v2354_v63 = vcombine.high %v2346_v35, %v2346_v35  ;;  %v2709_v52 = vsel %vm2624_vm2, %v2346_v35, -inf  ;;  %v2258_v50 = vmax.f32 %v2228_v15, %v2230_v38  ;;  %8348 = vmatprep.subr.mxu1 %v3300_v17 }
 0x22d   : > { %v3138_v46 = vsel %vm3137_vm3, %v2638_v28, %v2631_v24  ;;  %v2710_v51 = vrot.slane %v2709_v52, 4  ;;  %v11426_v61 = vadd.f32 %v2105_v40, %v11172_v5  ;;  %v2235_v8 = vmax.f32 %v11420_v59, 0.0  ;;  %v3299_v28 = vld [vmem:[%s15202_s3 + $0x1f0] sm:$0xff] }
 0x22e   : > { %v3140_v11 = vsel %vm3139_vm4, %v2645_v16, %v3138_v46  ;;  %v2355_v14 = vcombine.high %v2353_v27, %v2353_v27  ;;  %v2716_v31 = vsel %vm2624_vm2, %v2354_v63, -inf  ;;  %v2723_v49 = vsel %vm2624_vm2, %v2353_v27, -inf  ;;  %v3284_v16 = vld [vmem:[%s15202_s3 + $0x178] sm:$0xff]  ;;  %v11451_v63 = vpop.f32.mrf.mxu0 }
 0x22f   : > { %v3142_v37 = vsel %vm3141_vm5, %v2652_v1, %v3140_v11  ;;  %v2711_v10 = vmax.f32 %v2709_v52, %v2710_v51  ;;  %v2717_v43 = vrot.slane %v2716_v31, 4  ;;  %v2724_v15 = vrot.slane %v2723_v49, 4  ;;  %8349 = vmatpush3.msra.mxu1 %v3284_v16 }
 0x230   : > { %v3144_v54 = vsel %vm3143_vm6, %v2659_v53, %v3142_v37  ;;  %v2730_v44 = vsel %vm2624_vm2, %v2355_v14, -inf  ;;  %v2322_v5 = vcombine.high %v2258_v50, %v2258_v50  ;;  %v2329_v40 = vrot.slane %v2258_v50, %v11384_v23  ;;  %8350 = vmatprep.subr.mxu1 %v3299_v28 }
 0x231   : > { %v3146_v19 = vsel %vm3145_vm7, %v2666_v55, %v3144_v54  ;;  %v2712_v39 = vrot.slane %v2711_v10, 2  ;;  %v2718_v18 = vmax.f32 %v2716_v31, %v2717_v43  ;;  %v2725_v2 = vmax.f32 %v2723_v49, %v2724_v15 }
 0x232   : > { %v3148_v24 = vsel %vm3147_vm8, %v2673_v4, %v3146_v19  ;;  %v2731_v30 = vrot.slane %v2730_v44, 4  ;;  %v2336_v53 = vrot.slane %v2322_v5, %v11384_v23  ;;  %v2337_v57 = vcombine.high %v2329_v40, %v2329_v40 }
 0x233   : > { %v3150_v55 = vsel %vm3149_vm9, %v2680_v13, %v3148_v24  ;;  %v2713_v20 = vmax.f32 %v2711_v10, %v2712_v39  ;;  %v2719_v35 = vrot.slane %v2718_v18, 2  ;;  %v2726_v38 = vrot.slane %v2725_v2, 2 }
 0x234   : > { %3209 = vst [vmem:[#allocation3 + $0x11] sm:$0xff] %v3150_v55  ;;  %v2732_v4 = vmax.f32 %v2730_v44, %v2731_v30  ;;  %v2338_v1 = vcombine.high %v2336_v53, %v2336_v53  ;;  %v2681_v59 = vsel %vm2624_vm2, %v2329_v40, -inf  ;;  %v2688_v27 = vsel %vm2624_vm2, %v2337_v57, -inf  ;;  %v11458_v40 = vpop.f32.mrf.mxu0 }
 0x235   : > { %v2714_v52 = vrot.slane %v2713_v20, 1  ;;  %v2720_v13 = vmax.f32 %v2718_v18, %v2719_v35  ;;  %v2727_v50 = vmax.f32 %v2725_v2, %v2726_v38  ;;  %v2682_v46 = vrot.slane %v2681_v59, 4 }
 0x236   : > { %v2733_v51 = vrot.slane %v2732_v4, 2  ;;  %v2689_v11 = vrot.slane %v2688_v27, 4  ;;  %v2695_v14 = vsel %vm2624_vm2, %v2336_v53, -inf  ;;  %v2702_v31 = vsel %vm2624_vm2, %v2338_v1, -inf  ;;  %v3283_v53 = vld [vmem:[%s15202_s3 + $0x170] sm:$0xff] }
 0x237   : > { %v2721_v49 = vrot.slane %v2720_v13, 1  ;;  %v2728_v37 = vrot.slane %v2727_v50, 1  ;;  %v2683_v10 = vmax.f32 %v2681_v59, %v2682_v46  ;;  %v2232_v43 = vmax.f32 %v11426_v61, 0.0  ;;  %8351 = vmatpush3.msra.mxu1 %v3283_v53 }
 0x238   : > { %v11456_v15 = vmax.f32 %v2732_v4, %v2733_v51  ;;  %v2690_v54 = vmax.f32 %v2688_v27, %v2689_v11  ;;  %v2696_v44 = vrot.slane %v2695_v14, 4  ;;  %v2703_v5 = vrot.slane %v2702_v31, 4 }
 0x239   : > { %v11460_v19 = vmax.f32 %v2713_v20, %v2714_v52  ;;  %v11462_v39 = vmax.f32 %v2720_v13, %v2721_v49  ;;  %v2684_v18 = vrot.slane %v2683_v10, 2  ;;  %v2261_v2 = vmax.f32 %v2233_v47, %v2235_v8  ;;  %v11474_v8 = vpop.f32.mrf.mxu0 }
 0x23a   : > { %v11466_v17 = vmax.f32 %v2727_v50, %v2728_v37  ;;  %v2691_v24 = vrot.slane %v2690_v54, 2  ;;  %v2697_v30 = vmax.f32 %v2695_v14, %v2696_v44  ;;  %v2704_v61 = vmax.f32 %v2702_v31, %v2703_v5 }
 0x23b   : > { %v2735_v57 = vrot.slane %v11456_v15, 1  ;;  %v2685_v16 = vmax.f32 %v2683_v10, %v2684_v18  ;;  %v2373_v55 = vcombine.high %v2261_v2, %v2261_v2  ;;  %v2380_v20 = vrot.slane %v2261_v2, %v11384_v23  ;;  %v11483_v10 = vpop.f32.mrf.mxu0 }
 0x23c   : > { %v2692_v35 = vmax.f32 %v2690_v54, %v2691_v24  ;;  %v2698_v38 = vrot.slane %v2697_v30, 2  ;;  %v2705_v21 = vrot.slane %v2704_v61, 2  ;;  %v2116_v47 = vadd.f32 %v2115_v60, %v11193_v3  ;;  %v3298_v3 = vld [vmem:[%s15202_s3 + $0x1e8] sm:$0xff]  ;;  %v3297_v24 = vld [vmem:[%s15202_s3 + $0x1e0] sm:$0xff] }
 0x23d   : > { %v2686_v28 = vrot.slane %v2685_v16, 1  ;;  %v2387_v4 = vrot.slane %v2373_v55, %v11384_v23  ;;  %v2388_v1 = vcombine.high %v2380_v20, %v2380_v20  ;;  %v2765_v59 = vsel %vm2624_vm2, %v2380_v20, -inf  ;;  %8352 = vmatprep.subr.mxu1 %v3298_v3  ;;  %v3282_v54 = vld [vmem:[%s15202_s3 + $0x168] sm:$0xff]  ;;  %v3281_v55 = vld [vmem:[%s15202_s3 + $0x160] sm:$0xff] }
 0x23e   : > { %v2693_v27 = vrot.slane %v2692_v35, 1  ;;  %v2699_v52 = vmax.f32 %v2697_v30, %v2698_v38  ;;  %v2706_v13 = vmax.f32 %v2704_v61, %v2705_v21  ;;  %v2766_v50 = vrot.slane %v2765_v59, 4  ;;  %8353 = vmatpush3.msra.mxu1 %v3282_v54 }
 0x23f   : > { %v2687_v46 = vmax.f32 %v2685_v16, %v2686_v28  ;;  %v2389_v51 = vcombine.high %v2387_v4, %v2387_v4  ;;  %v2772_v11 = vsel %vm2624_vm2, %v2388_v1, -inf  ;;  %v2779_v14 = vsel %vm2624_vm2, %v2387_v4, -inf  ;;  %8354 = vmatprep.subr.mxu1 %v3297_v24  ;;  %v11502_v28 = vld [vmem:[%s15202_s3 + $0x478] sm:$0xff] }
 0x240   : > { %v2694_v60 = vmax.f32 %v2692_v35, %v2693_v27  ;;  %v2700_v31 = vrot.slane %v2699_v52, 1  ;;  %v2707_v49 = vrot.slane %v2706_v13, 1  ;;  %v2767_v37 = vmax.f32 %v2765_v59, %v2766_v50  ;;  %8355 = vmatpush3.msra.mxu1 %v3281_v55  ;;  %9136 = vmatprep.subr.mxu0 %v11502_v28 }
 0x241   : > { %v2773_v44 = vrot.slane %v2772_v11, 4  ;;  %v2780_v5 = vrot.slane %v2779_v14, 4  ;;  %v2786_v18 = vsel %vm2624_vm2, %v2389_v51, -inf  ;;  %v2234_v2 = vmax.f32 %v2116_v47, 0.0  ;;  %v3296_v47 = vld [vmem:[%s15202_s3 + $0x1d8] sm:$0xff] }
 0x242   : > { %v2701_v30 = vmax.f32 %v2699_v52, %v2700_v31  ;;  %v2708_v61 = vmax.f32 %v2706_v13, %v2707_v49  ;;  %v3151_v53 = vsel %vm3137_vm3, %v2694_v60, %v2687_v46  ;;  %v2768_v16 = vrot.slane %v2767_v37, 2  ;;  %8356 = vmatprep.subr.mxu1 %v3296_v47  ;;  %v3280_v52 = vld [vmem:[%s15202_s3 + $0x158] sm:$0xff] }
 0x243   : > { %v2774_v20 = vmax.f32 %v2772_v11, %v2773_v44  ;;  %v2781_v35 = vmax.f32 %v2779_v14, %v2780_v5  ;;  %v2787_v38 = vrot.slane %v2786_v18, 4  ;;  %v2260_v21 = vmax.f32 %v2232_v43, %v2234_v2  ;;  %v11510_v43 = vpop.f32.mrf.mxu0  ;;  %8357 = vmatpush3.msra.mxu1 %v3280_v52  ;;  %v3279_v14 = vld [vmem:[%s15202_s3 + $0x150] sm:$0xff] }
 0x244   : > { %v2736_v4 = vmax.f32 %v11456_v15, %v2735_v57  ;;  %v3152_v1 = vsel %vm3139_vm4, %v2701_v30, %v3151_v53  ;;  %v2769_v59 = vmax.f32 %v2767_v37, %v2768_v16  ;;  %v11508_v27 = vadd.f32 %v11451_v63, %v11214_v45  ;;  %v3295_v45 = vld [vmem:[%s15202_s3 + $0x1d0] sm:$0xff] }
 0x245   : > { %v3153_v13 = vsel %vm3141_vm5, %v2708_v61, %v3152_v1  ;;  %v2775_v50 = vrot.slane %v2774_v20, 2  ;;  %v2782_v46 = vrot.slane %v2781_v35, 2  ;;  %v2788_v51 = vmax.f32 %v2786_v18, %v2787_v38  ;;  %8358 = vmatprep.subr.mxu1 %v3295_v45  ;;  %v2145_v18 = vpop.f32.mrf.mxu0  ;;  %v3291_v1 = vld [vmem:[%s15202_s3 + $0x1b0] sm:$0xff] }
 0x246   : > { %v3154_v63 = vsel %vm3143_vm6, %v11460_v19, %v3153_v13  ;;  %v2770_v15 = vrot.slane %v2769_v59, 1  ;;  %v2356_v57 = vcombine.high %v2260_v21, %v2260_v21  ;;  %v2363_v11 = vrot.slane %v2260_v21, %v11384_v23  ;;  %8359 = vmatpush3.msra.mxu1 %v3279_v14  ;;  %v3294_v19 = vld [vmem:[%s15202_s3 + $0x1c8] sm:$0xff] }
 0x247   : > { %v3155_v3 = vsel %vm3145_vm7, %v11462_v39, %v3154_v63  ;;  %v2776_v60 = vmax.f32 %v2774_v20, %v2775_v50  ;;  %v2783_v31 = vmax.f32 %v2781_v35, %v2782_v46  ;;  %v2789_v49 = vrot.slane %v2788_v51, 2  ;;  %8360 = vmatprep.subr.mxu1 %v3294_v19  ;;  %v3278_v39 = vld [vmem:[%s15202_s3 + $0x148] sm:$0xff]  ;;  %v3292_v20 = vld [vmem:[%s15202_s3 + $0x1b8] sm:$0xff] }
 0x248   : > { %v3156_v37 = vsel %vm3147_vm8, %v11466_v17, %v3155_v3  ;;  %v2370_v54 = vrot.slane %v2356_v57, %v11384_v23  ;;  %v2371_v44 = vcombine.high %v2363_v11, %v2363_v11  ;;  %v11536_v5 = vadd.f32 %v11458_v40, %v11202_v12  ;;  %8361 = vmatpush3.msra.mxu1 %v3278_v39  ;;  %v3293_v17 = vld [vmem:[%s15202_s3 + $0x1c0] sm:$0xff]  ;;  %v3276_v35 = vld [vmem:[%s15202_s3 + $0x138] sm:$0xff] }
 0x249   : > { %v3157_v2 = vsel %vm3149_vm9, %v2736_v4, %v3156_v37  ;;  %v2777_v24 = vrot.slane %v2776_v60, 1  ;;  %v2784_v30 = vrot.slane %v2783_v31, 1  ;;  %v2790_v61 = vmax.f32 %v2788_v51, %v2789_v49  ;;  %v3277_v12 = vld [vmem:[%s15202_s3 + $0x140] sm:$0xff]  ;;  %8362 = vmatprep.subr.mxu1 %v3293_v17  ;;  %v9117_v51 = vpop.f32.mrf.mxu0  ;;  %v3274_v49 = vld [vmem:[%s15202_s3 + $0x128] sm:$0xff] }
 0x24a   : > { %3210 = vst [vmem:[#allocation3 + $0x21] sm:$0xff] %v3157_v2  ;;  %v2372_v40 = vcombine.high %v2370_v54, %v2370_v54  ;;  %v2737_v53 = vsel %vm2624_vm2, %v2363_v11, -inf  ;;  %v2744_v16 = vsel %vm2624_vm2, %v2371_v44, -inf  ;;  %v2751_v55 = vsel %vm2624_vm2, %v2370_v54, -inf  ;;  %8363 = vmatpush3.msra.mxu1 %v3277_v12  ;;  %v3290_v11 = vld [vmem:[%s15202_s3 + $0x1a8] sm:$0xff]  ;;  %v3273_v2 = vld [vmem:[%s15202_s3 + $0x120] sm:$0xff] }
 0x24b   : > { %v11557_v38 = vmax.f32 %v2769_v59, %v2770_v15  ;;  %v11559_v21 = vmax.f32 %v2776_v60, %v2777_v24  ;;  %v2791_v47 = vrot.slane %v2790_v61, 1  ;;  %v2738_v4 = vrot.slane %v2737_v53, 4  ;;  %8364 = vmatprep.subr.mxu1 %v3292_v20  ;;  %v3275_v59 = vld [vmem:[%s15202_s3 + $0x130] sm:$0xff]  ;;  %v2155_v39 = vpop.f32.mrf.mxu0 }
 0x24c   : > { %v11564_v52 = vmax.f32 %v2783_v31, %v2784_v30  ;;  %v2745_v13 = vrot.slane %v2744_v16, 4  ;;  %v2752_v50 = vrot.slane %v2751_v55, 4  ;;  %v2758_v46 = vsel %vm2624_vm2, %v2372_v40, -inf  ;;  %8365 = vmatpush3.msra.mxu1 %v3276_v35  ;;  %v3288_v30 = vld [vmem:[%s15202_s3 + $0x198] sm:$0xff] }
 0x24d   : > { %v11570_v45 = vmax.f32 %v2790_v61, %v2791_v47  ;;  %v2739_v63 = vmax.f32 %v2737_v53, %v2738_v4  ;;  %v2759_v15 = vrot.slane %v2758_v46, 4  ;;  %v2237_v57 = vmax.f32 %v11508_v27, 0.0  ;;  %8366 = vmatprep.subr.mxu1 %v3291_v1  ;;  %v3272_v53 = vld [vmem:[%s15202_s3 + $0x118] sm:$0xff] }
 0x24e   : > { %v2746_v14 = vmax.f32 %v2744_v16, %v2745_v13  ;;  %v2753_v3 = vmax.f32 %v2751_v55, %v2752_v50  ;;  %v2141_v60 = vadd.f32 %v11474_v8, %v11229_v33  ;;  %v2136_v31 = vadd.f32 %v11483_v10, %v11217_v58  ;;  %8367 = vmatpush3.msra.mxu1 %v3275_v59  ;;  %v3289_v33 = vld [vmem:[%s15202_s3 + $0x1a0] sm:$0xff]  ;;  %v3271_v13 = vld [vmem:[%s15202_s3 + $0x110] sm:$0xff] }
 0x24f   : > { %v2740_v19 = vrot.slane %v2739_v63, 2  ;;  %v2760_v27 = vmax.f32 %v2758_v46, %v2759_v15  ;;  %v2236_v37 = vmax.f32 %v11536_v5, 0.0  ;;  %v11586_v54 = vadd.f32 %v11510_v43, %v11247_v25  ;;  %8368 = vmatprep.subr.mxu1 %v3290_v11  ;;  %v3270_v11 = vld [vmem:[%s15202_s3 + $0x108] sm:$0xff] }
 0x250   : > { %v2747_v8 = vrot.slane %v2746_v14, 2  ;;  %v2754_v58 = vrot.slane %v2753_v3, 2  ;;  %v2239_v10 = vmax.f32 %v2141_v60, 0.0  ;;  %v2238_v44 = vmax.f32 %v2136_v31, 0.0  ;;  %8369 = vmatpush3.msra.mxu1 %v3274_v49  ;;  %v3285_v49 = vld [vmem:[%s15202_s3 + $0x180] sm:$0xff] }
 0x251   : > { %v2741_v5 = vmax.f32 %v2739_v63, %v2740_v19  ;;  %v2761_v24 = vrot.slane %v2760_v27, 2  ;;  %v2241_v25 = vmax.f32 %v11586_v54, 0.0  ;;  %v11596_v43 = vadd.f32 %v2145_v18, %v11244_v42  ;;  %8370 = vmatprep.subr.mxu1 %v3289_v33  ;;  %v3287_v18 = vld [vmem:[%s15202_s3 + $0x190] sm:$0xff] }
 0x252   : > { %v2748_v61 = vmax.f32 %v2746_v14, %v2747_v8  ;;  %v2755_v17 = vmax.f32 %v2753_v3, %v2754_v58  ;;  %v2263_v12 = vmax.f32 %v2237_v57, %v2239_v10  ;;  %v2262_v40 = vmax.f32 %v2236_v37, %v2238_v44  ;;  %8371 = vmatpush3.msra.mxu1 %v3273_v2  ;;  %v3269_v8 = vld [vmem:[%s15202_s3 + $0x100] sm:$0xff]  ;;  %v3364_v2 = vld [vmem:[%s15202_s3 + $0x3f8] sm:$0xff] }
 0x253   : > { %v2742_v16 = vrot.slane %v2741_v5, 1  ;;  %v2762_v55 = vmax.f32 %v2760_v27, %v2761_v24  ;;  %v11605_v20 = vadd.f32 %v9117_v51, %v11277_v29  ;;  %v11608_v42 = vadd.f32 %v2155_v39, %v11262_v34  ;;  %8372 = vmatprep.subr.mxu1 %v3288_v30  ;;  %v3286_v51 = vld [vmem:[%s15202_s3 + $0x188] sm:$0xff] }
 0x254   : > { %v2749_v35 = vrot.slane %v2748_v61, 1  ;;  %v2756_v47 = vrot.slane %v2755_v17, 1  ;;  %v2407_v4 = vcombine.high %v2263_v12, %v2263_v12  ;;  %v2414_v1 = vrot.slane %v2263_v12, %v11384_v23  ;;  %8373 = vmatpush3.msra.mxu1 %v3272_v53 }
 0x255   : > { %v2743_v29 = vmax.f32 %v2741_v5, %v2742_v16  ;;  %v2763_v50 = vrot.slane %v2762_v55, 1  ;;  %v2390_v46 = vcombine.high %v2262_v40, %v2262_v40  ;;  %v2397_v34 = vrot.slane %v2262_v40, %v11384_v23  ;;  %8374 = vmatprep.subr.mxu1 %v3287_v18 }
 0x256   : > { %v2750_v59 = vmax.f32 %v2748_v61, %v2749_v35  ;;  %v2757_v63 = vmax.f32 %v2755_v17, %v2756_v47  ;;  %v2421_v15 = vrot.slane %v2407_v4, %v11384_v23  ;;  %v2422_v57 = vcombine.high %v2414_v1, %v2414_v1  ;;  %8375 = vmatpush3.msra.mxu1 %v3271_v13 }
 0x257   : > { %v2764_v14 = vmax.f32 %v2762_v55, %v2763_v50  ;;  %v2821_v3 = vsel %vm2624_vm2, %v2414_v1, -inf  ;;  %v2404_v60 = vrot.slane %v2390_v46, %v11384_v23  ;;  %v2405_v31 = vcombine.high %v2397_v34, %v2397_v34  ;;  %8376 = vmatprep.subr.mxu1 %v3286_v51 }
 0x258   : > { %v3158_v19 = vsel %vm3137_vm3, %v2750_v59, %v2743_v29  ;;  %v2423_v27 = vcombine.high %v2421_v15, %v2421_v15  ;;  %v2822_v37 = vrot.slane %v2821_v3, 4  ;;  %v2828_v33 = vsel %vm2624_vm2, %v2422_v57, -inf  ;;  %8377 = vmatpush3.msra.mxu1 %v3270_v11 }
 0x259   : > { %v3159_v58 = vsel %vm3139_vm4, %v2757_v63, %v3158_v19  ;;  %v2829_v10 = vrot.slane %v2828_v33, 4  ;;  %v2835_v44 = vsel %vm2624_vm2, %v2421_v15, -inf  ;;  %v2406_v39 = vcombine.high %v2404_v60, %v2404_v60  ;;  %8378 = vmatprep.subr.mxu1 %v3285_v49  ;;  %v9120_v49 = vpop.f32.mrf.mxu0 }
 0x25a   : > { %v3160_v5 = vsel %vm3141_vm5, %v2764_v14, %v3159_v58  ;;  %v2823_v24 = vmax.f32 %v2821_v3, %v2822_v37  ;;  %v2836_v30 = vrot.slane %v2835_v44, 4  ;;  %v2842_v61 = vsel %vm2624_vm2, %v2423_v27, -inf  ;;  %8379 = vmatpush3.msra.mxu1 %v3269_v8 }
 0x25b   : > { %v3161_v17 = vsel %vm3143_vm6, %v11557_v38, %v3160_v5  ;;  %v2830_v12 = vmax.f32 %v2828_v33, %v2829_v10  ;;  %v2843_v40 = vrot.slane %v2842_v61, 4  ;;  %v2793_v53 = vsel %vm2624_vm2, %v2397_v34, -inf  ;;  %8460 = vmatprep.subr.mxu1 %v3364_v2 }
 0x25c   : > { %v3162_v16 = vsel %vm3145_vm7, %v11559_v21, %v3161_v17  ;;  %v2824_v55 = vrot.slane %v2823_v24, 2  ;;  %v2837_v18 = vmax.f32 %v2835_v44, %v2836_v30  ;;  %v2794_v35 = vrot.slane %v2793_v53, 4  ;;  %v2165_v17 = vpop.f32.mrf.mxu0 }
 0x25d   : > { %v3163_v47 = vsel %vm3147_vm8, %v11564_v52, %v3162_v16  ;;  %v2831_v4 = vrot.slane %v2830_v12, 2  ;;  %v2844_v1 = vmax.f32 %v2842_v61, %v2843_v40  ;;  %v2800_v13 = vsel %vm2624_vm2, %v2405_v31, -inf }
 0x25e   : > { %v3164_v38 = vsel %vm3149_vm9, %v11570_v45, %v3163_v47  ;;  %v2825_v29 = vmax.f32 %v2823_v24, %v2824_v55  ;;  %v2838_v50 = vrot.slane %v2837_v18, 2  ;;  %v2795_v46 = vmax.f32 %v2793_v53, %v2794_v35 }
 0x25f   : > { %3211 = vst [vmem:[#allocation3 + $0x31] sm:$0xff] %v3164_v38  ;;  %v2832_v34 = vmax.f32 %v2830_v12, %v2831_v4  ;;  %v2845_v21 = vrot.slane %v2844_v1, 2  ;;  %v2801_v51 = vrot.slane %v2800_v13, 4  ;;  %v2807_v59 = vsel %vm2624_vm2, %v2404_v60, -inf }
 0x260   : > { %v2826_v63 = vrot.slane %v2825_v29, 1  ;;  %v2839_v15 = vmax.f32 %v2837_v18, %v2838_v50  ;;  %v2796_v57 = vrot.slane %v2795_v46, 2  ;;  %v2808_v52 = vrot.slane %v2807_v59, 4 }
 0x261   : > { %v2833_v11 = vrot.slane %v2832_v34, 1  ;;  %v2846_v14 = vmax.f32 %v2844_v1, %v2845_v21  ;;  %v2802_v3 = vmax.f32 %v2800_v13, %v2801_v51  ;;  %v2814_v31 = vsel %vm2624_vm2, %v2406_v39, -inf }
 0x262   : > { %v2840_v45 = vrot.slane %v2839_v15, 1  ;;  %v2797_v19 = vmax.f32 %v2795_v46, %v2796_v57  ;;  %v2809_v27 = vmax.f32 %v2807_v59, %v2808_v52  ;;  %v2240_v37 = vmax.f32 %v11596_v43, 0.0 }
 0x263   : > { %v2827_v33 = vmax.f32 %v2825_v29, %v2826_v63  ;;  %v2847_v8 = vrot.slane %v2846_v14, 1  ;;  %v2803_v58 = vrot.slane %v2802_v3, 2  ;;  %v2815_v10 = vrot.slane %v2814_v31, 4 }
 0x264   : > { %v2834_v60 = vmax.f32 %v2832_v34, %v2833_v11  ;;  %v2798_v44 = vrot.slane %v2797_v19, 1  ;;  %v2810_v2 = vrot.slane %v2809_v27, 2  ;;  %v2243_v5 = vmax.f32 %v11605_v20, 0.0 }
 0x265   : > { %v2841_v24 = vmax.f32 %v2839_v15, %v2840_v45  ;;  %v2804_v30 = vmax.f32 %v2802_v3, %v2803_v58  ;;  %v2816_v61 = vmax.f32 %v2814_v31, %v2815_v10  ;;  %v2242_v39 = vmax.f32 %v11608_v42, 0.0 }
 0x266   : > { %v2848_v12 = vmax.f32 %v2846_v14, %v2847_v8  ;;  %v2799_v40 = vmax.f32 %v2797_v19, %v2798_v44  ;;  %v2811_v53 = vmax.f32 %v2809_v27, %v2810_v2  ;;  %v2265_v43 = vmax.f32 %v2241_v25, %v2243_v5 }
 0x267   : > { %v2805_v16 = vrot.slane %v2804_v30, 1  ;;  %v2817_v55 = vrot.slane %v2816_v61, 2  ;;  %v2264_v18 = vmax.f32 %v2240_v37, %v2242_v39  ;;  %v11660_v35 = vadd.f32 %v9120_v49, %v11292_v56 }
 0x268   : > { %v2812_v47 = vrot.slane %v2811_v53, 1  ;;  %v2441_v20 = vcombine.high %v2265_v43, %v2265_v43  ;;  %v2448_v4 = vrot.slane %v2265_v43, %v11384_v23  ;;  %v11664_v1 = vadd.f32 %v2165_v17, %v11280_v6  ;;  %v9123_v17 = vpop.f32.mrf.mxu0 }
 0x269   : > { %v2806_v42 = vmax.f32 %v2804_v30, %v2805_v16  ;;  %v2818_v13 = vmax.f32 %v2816_v61, %v2817_v55  ;;  %v2424_v38 = vcombine.high %v2264_v18, %v2264_v18  ;;  %v2431_v29 = vrot.slane %v2264_v18, %v11384_v23 }
 0x26a   : > { %v2813_v54 = vmax.f32 %v2811_v53, %v2812_v47  ;;  %v2455_v25 = vrot.slane %v2441_v20, %v11384_v23  ;;  %v2456_v50 = vcombine.high %v2448_v4, %v2448_v4  ;;  %v2877_v46 = vsel %vm2624_vm2, %v2448_v4, -inf }
 0x26b   : > { %v2819_v56 = vrot.slane %v2818_v13, 1  ;;  %v3165_v34 = vsel %vm3137_vm3, %v2806_v42, %v2799_v40  ;;  %v2878_v21 = vrot.slane %v2877_v46, 4  ;;  %v2438_v51 = vrot.slane %v2424_v38, %v11384_v23 }
 0x26c   : > { %v3166_v6 = vsel %vm3139_vm4, %v2813_v54, %v3165_v34  ;;  %v2457_v59 = vcombine.high %v2455_v25, %v2455_v25  ;;  %v2884_v63 = vsel %vm2624_vm2, %v2456_v50, -inf  ;;  %v2891_v15 = vsel %vm2624_vm2, %v2455_v25, -inf }
 0x26d   : > { %v2820_v57 = vmax.f32 %v2818_v13, %v2819_v56  ;;  %v2879_v52 = vmax.f32 %v2877_v46, %v2878_v21  ;;  %v2885_v11 = vrot.slane %v2884_v63, 4  ;;  %v2892_v14 = vrot.slane %v2891_v15, 4 }
 0x26e   : > { %v2898_v3 = vsel %vm2624_vm2, %v2457_v59, -inf  ;;  %v2439_v31 = vcombine.high %v2431_v29, %v2431_v29  ;;  %v2440_v49 = vcombine.high %v2438_v51, %v2438_v51  ;;  %v2849_v45 = vsel %vm2624_vm2, %v2431_v29, -inf }
 0x26f   : > { %v3167_v19 = vsel %vm3141_vm5, %v2820_v57, %v3166_v6  ;;  %v2880_v27 = vrot.slane %v2879_v52, 2  ;;  %v2886_v37 = vmax.f32 %v2884_v63, %v2885_v11  ;;  %v2893_v8 = vmax.f32 %v2891_v15, %v2892_v14 }
 0x270   : > { %v3168_v58 = vsel %vm3143_vm6, %v2827_v33, %v3167_v19  ;;  %v2899_v10 = vrot.slane %v2898_v3, 4  ;;  %v2850_v44 = vrot.slane %v2849_v45, 4  ;;  %v2856_v2 = vsel %vm2624_vm2, %v2439_v31, -inf  ;;  %v3220_v31 = vld [vmem:[#allocation3 + $0x18] sm:$0x3] }
 0x271   : > { %v3169_v5 = vsel %vm3145_vm7, %v2834_v60, %v3168_v58  ;;  %v2881_v30 = vmax.f32 %v2879_v52, %v2880_v27  ;;  %v2887_v61 = vrot.slane %v2886_v37, 2  ;;  %v2894_v39 = vrot.slane %v2893_v8, 2 }
 0x272   : > { %v3170_v40 = vsel %vm3147_vm8, %v2841_v24, %v3169_v5  ;;  %v2900_v53 = vmax.f32 %v2898_v3, %v2899_v10  ;;  %v2851_v43 = vmax.f32 %v2849_v45, %v2850_v44  ;;  %v2857_v16 = vrot.slane %v2856_v2, 4  ;;  %v2175_v24 = vpop.f32.mrf.mxu0  ;;  %v11693_v3 = vld [vmem:[#allocation3 + $0x10] sm:$0xff] }
 0x273   : > { %v3171_v55 = vsel %vm3149_vm9, %v2848_v12, %v3170_v40  ;;  %v2882_v18 = vrot.slane %v2881_v30, 1  ;;  %v2888_v47 = vmax.f32 %v2886_v37, %v2887_v61  ;;  %v2895_v33 = vmax.f32 %v2893_v8, %v2894_v39 }
 0x274   : > { %3212 = vst [vmem:[#allocation3 + $0x41] sm:$0xff] %v3171_v55  ;;  %v2901_v20 = vrot.slane %v2900_v53, 2  ;;  %v2852_v4 = vrot.slane %v2851_v43, 2  ;;  %v2858_v42 = vmax.f32 %v2856_v2, %v2857_v16  ;;  %v2863_v60 = vsel %vm2624_vm2, %v2438_v51, -inf  ;;  %v9126_v14 = vpop.f32.mrf.mxu0 }
 0x275   : > { %v2889_v13 = vrot.slane %v2888_v47, 1  ;;  %v2896_v38 = vrot.slane %v2895_v33, 1  ;;  %v2864_v29 = vrot.slane %v2863_v60, 4  ;;  %v2245_v54 = vmax.f32 %v11660_v35, 0.0 }
 0x276   : > { %v2902_v25 = vmax.f32 %v2900_v53, %v2901_v20  ;;  %v2853_v50 = vmax.f32 %v2851_v43, %v2852_v4  ;;  %v2859_v46 = vrot.slane %v2858_v42, 2  ;;  %v2870_v12 = vsel %vm2624_vm2, %v2440_v49, -inf }
 0x277   : > { %v11685_v56 = vmax.f32 %v2881_v30, %v2882_v18  ;;  %v11687_v34 = vmax.f32 %v2888_v47, %v2889_v13  ;;  %v2865_v21 = vmax.f32 %v2863_v60, %v2864_v29  ;;  %v2871_v6 = vrot.slane %v2870_v12, 4  ;;  %v3379_v29 = vld [vmem:[%s15202_s3 + $0x470] sm:$0xff] }
 0x278   : > { %v11689_v59 = vmax.f32 %v2895_v33, %v2896_v38  ;;  %v2903_v51 = vrot.slane %v2902_v25, 1  ;;  %v2854_v63 = vrot.slane %v2853_v50, 1  ;;  %v2860_v15 = vmax.f32 %v2858_v42, %v2859_v46 }
 0x279   : > { %v2866_v57 = vrot.slane %v2865_v21, 2  ;;  %v2872_v52 = vmax.f32 %v2870_v12, %v2871_v6  ;;  %v2181_v35 = vadd.f32 %v9123_v17, %v11316_v36  ;;  %v2176_v11 = vadd.f32 %v2175_v24, %v11295_v62  ;;  %v2185_v17 = vpop.f32.mrf.mxu0  ;;  %v3378_v6 = vld [vmem:[%s15202_s3 + $0x468] sm:$0xff] }
 0x27a   : > { %v11695_v49 = vmax.f32 %v2902_v25, %v2903_v51  ;;  %v2855_v45 = vmax.f32 %v2853_v50, %v2854_v63  ;;  %v2861_v19 = vrot.slane %v2860_v15, 1  ;;  %v2244_v27 = vmax.f32 %v11664_v1, 0.0 }
 0x27b   : > { %v2867_v37 = vmax.f32 %v2865_v21, %v2866_v57  ;;  %v2873_v8 = vrot.slane %v2872_v52, 2  ;;  %v2247_v58 = vmax.f32 %v2181_v35, 0.0  ;;  %v2246_v10 = vmax.f32 %v2176_v11, 0.0 }
 0x27c   : > { %v2862_v44 = vmax.f32 %v2860_v15, %v2861_v19  ;;  %v11699_v2 = vadd.f32 %v9126_v14, %v11328_v7  ;;  %v3401_v62 = vrot.slane %v11693_v3, 1  ;;  %v3402_v36 = vrot.slane %v3220_v31, 1 }
 0x27d   : > { %v2868_v5 = vrot.slane %v2867_v37, 1  ;;  %v2874_v30 = vmax.f32 %v2872_v52, %v2873_v8  ;;  %v2267_v61 = vmax.f32 %v2245_v54, %v2247_v58  ;;  %v2266_v39 = vmax.f32 %v2244_v27, %v2246_v10  ;;  %v9129_v27 = vpop.f32.mrf.mxu0  ;;  %v3376_v10 = vld [vmem:[%s15202_s3 + $0x458] sm:$0xff] }
 0x27e   : > { %v3172_v40 = vsel %vm3137_vm3, %v2862_v44, %v2855_v45  ;;  %v3403_v1 = vsel %vm833_vm0, %v3401_v62, %v3402_v36  ;;  %v3433_v53 = vrot.slane %v11693_v3, 2  ;;  %v3434_v43 = vrot.slane %v3220_v31, 2 }
 0x27f   : > { %v2869_v16 = vmax.f32 %v2867_v37, %v2868_v5  ;;  %v2875_v55 = vrot.slane %v2874_v30, 1  ;;  %v2475_v18 = vcombine.high %v2267_v61, %v2267_v61  ;;  %v2482_v7 = vrot.slane %v2267_v61, %v11384_v23  ;;  %3557 = vmatprep.mubr.f32.mxu1 %v3403_v1 }
 0x280   : > { %v2458_v47 = vcombine.high %v2266_v39, %v2266_v39  ;;  %v2465_v33 = vrot.slane %v2266_v39, %v11384_v23  ;;  %v11708_v20 = vsel %vm946_vm1, %v3433_v53, %v3434_v43  ;;  %3558 = vmatmul.mubr.f32.gmra.mxu1 %v11693_v3  ;;  %v11712_v4 = vadd.f32 %v2185_v17, %v11325_v22  ;;  %v3375_v39 = vld [vmem:[%s15202_s3 + $0x450] sm:$0xff]  ;;  %v2195_v43 = vpop.f32.mrf.mxu0 }
 0x281   : > { %v2876_v42 = vmax.f32 %v2874_v30, %v2875_v55  ;;  %v3173_v60 = vsel %vm3139_vm4, %v2869_v16, %v3172_v40  ;;  %v2489_v13 = vrot.slane %v2475_v18, %v11384_v23  ;;  %v2490_v38 = vcombine.high %v2482_v7, %v2482_v7  ;;  %3762 = vmatprep.mubr.f32.mxu0 %v11708_v20 }
 0x282   : > { %v2933_v54 = vsel %vm2624_vm2, %v2482_v7, -inf  ;;  %v2472_v24 = vrot.slane %v2458_v47, %v11384_v23  ;;  %v2473_v25 = vcombine.high %v2465_v33, %v2465_v33  ;;  %v2905_v22 = vsel %vm2624_vm2, %v2465_v33, -inf  ;;  %3763 = vmatmul.mubr.f32.vlgmr.msra.gmra.mxu0 %v3403_v1  ;;  %v3374_v47 = vld [vmem:[%s15202_s3 + $0x448] sm:$0xff] }
 0x283   : > { %v3174_v50 = vsel %vm3141_vm5, %v2876_v42, %v3173_v60  ;;  %v2491_v46 = vcombine.high %v2489_v13, %v2489_v13  ;;  %v2934_v12 = vrot.slane %v2933_v54, 4  ;;  %v2940_v21 = vsel %vm2624_vm2, %v2490_v38, -inf  ;;  %9137 = vmatpush3.msra.mxu0 %v11502_v28  ;;  %v3377_v28 = vld [vmem:[%s15202_s3 + $0x460] sm:$0xff] }
 0x284   : > { %v3175_v51 = vsel %vm3143_vm6, %v11685_v56, %v3174_v50  ;;  %v2941_v63 = vrot.slane %v2940_v21, 4  ;;  %v2947_v15 = vsel %vm2624_vm2, %v2489_v13, -inf  ;;  %v2474_v57 = vcombine.high %v2472_v24, %v2472_v24  ;;  %9138 = vmatprep.subr.mxu0 %v3379_v29 }
 0x285   : > { %v3176_v52 = vsel %vm3145_vm7, %v11687_v34, %v3175_v51  ;;  %v2935_v35 = vmax.f32 %v2933_v54, %v2934_v12  ;;  %v2948_v11 = vrot.slane %v2947_v15, 4  ;;  %v2954_v14 = vsel %vm2624_vm2, %v2491_v46, -inf  ;;  %9139 = vmatpush3.msra.mxu0 %v3379_v29 }
 0x286   : > { %v3177_v56 = vsel %vm3147_vm8, %v11689_v59, %v3176_v52  ;;  %v2942_v31 = vmax.f32 %v2940_v21, %v2941_v63  ;;  %v2955_v45 = vrot.slane %v2954_v14, 4  ;;  %v2906_v19 = vrot.slane %v2905_v22, 4  ;;  %9140 = vmatprep.subr.mxu0 %v3378_v6  ;;  %v9132_v21 = vpop.f32.mrf.mxu0  ;;  %v3222_v52 = vld [vmem:[#allocation3 + $0x28] sm:$0x3] }
 0x287   : > { %v3178_v34 = vsel %vm3149_vm9, %v11695_v49, %v3177_v56  ;;  %v2936_v37 = vrot.slane %v2935_v35, 2  ;;  %v2949_v8 = vmax.f32 %v2947_v15, %v2948_v11  ;;  %v2912_v58 = vsel %vm2624_vm2, %v2473_v25, -inf  ;;  %9141 = vmatpush3.msra.mxu0 %v3378_v6  ;;  %v3373_v25 = vld [vmem:[%s15202_s3 + $0x440] sm:$0xff]  ;;  %v3372_v6 = vld [vmem:[%s15202_s3 + $0x438] sm:$0xff] }
 0x288   : > { %3213 = vst [vmem:[#allocation3 + $0x51] sm:$0xff] %v3178_v34  ;;  %v2943_v44 = vrot.slane %v2942_v31, 2  ;;  %v2956_v59 = vmax.f32 %v2954_v14, %v2955_v45  ;;  %v2907_v62 = vmax.f32 %v2905_v22, %v2906_v19  ;;  %v2913_v36 = vrot.slane %v2912_v58, 4  ;;  %9142 = vmatprep.subr.mxu0 %v3377_v28  ;;  %v3371_v34 = vld [vmem:[%s15202_s3 + $0x430] sm:$0xff] }
 0x289   : > { %v2937_v5 = vmax.f32 %v2935_v35, %v2936_v37  ;;  %v2950_v30 = vrot.slane %v2949_v8, 2  ;;  %v2919_v61 = vsel %vm2624_vm2, %v2472_v24, -inf  ;;  %v2926_v49 = vsel %vm2624_vm2, %v2474_v57, -inf  ;;  %9143 = vmatpush3.msra.mxu0 %v3377_v28  ;;  %v11767_v57 = vld [vmem:[#allocation3 + $0x20] sm:$0xff] }
 0x28a   : > { %v2944_v17 = vmax.f32 %v2942_v31, %v2943_v44  ;;  %v2957_v40 = vrot.slane %v2956_v59, 2  ;;  %v2908_v1 = vrot.slane %v2907_v62, 2  ;;  %v2914_v53 = vmax.f32 %v2912_v58, %v2913_v36  ;;  %9144 = vmatprep.subr.mxu0 %v3376_v10 }
 0x28b   : > { %v2938_v16 = vrot.slane %v2937_v5, 1  ;;  %v2951_v55 = vmax.f32 %v2949_v8, %v2950_v30  ;;  %v2920_v18 = vrot.slane %v2919_v61, 4  ;;  %v2927_v7 = vrot.slane %v2926_v49, 4  ;;  %9145 = vmatpush3.msra.mxu0 %v3376_v10 }
 0x28c   : > { %v2945_v33 = vrot.slane %v2944_v17, 1  ;;  %v2958_v42 = vmax.f32 %v2956_v59, %v2957_v40  ;;  %v2909_v60 = vmax.f32 %v2907_v62, %v2908_v1  ;;  %v2915_v13 = vrot.slane %v2914_v53, 2  ;;  %9146 = vmatprep.subr.mxu0 %v3375_v39  ;;  %v2205_v59 = vpop.f32.mrf.mxu0 }
 0x28d   : > { %v2952_v38 = vrot.slane %v2951_v55, 1  ;;  %v2921_v29 = vmax.f32 %v2919_v61, %v2920_v18  ;;  %v2928_v54 = vmax.f32 %v2926_v49, %v2927_v7  ;;  %v2249_v24 = vmax.f32 %v11699_v2, 0.0  ;;  %9147 = vmatpush3.msra.mxu0 %v3375_v39 }
 0x28e   : > { %v11758_v22 = vmax.f32 %v2937_v5, %v2938_v16  ;;  %v11760_v50 = vmax.f32 %v2944_v17, %v2945_v33  ;;  %v2910_v46 = vrot.slane %v2909_v60, 1  ;;  %v2916_v12 = vmax.f32 %v2914_v53, %v2915_v13  ;;  %9148 = vmatprep.subr.mxu0 %v3374_v47  ;;  %v3370_v5 = vld [vmem:[%s15202_s3 + $0x428] sm:$0xff] }
 0x28f   : > { %v11765_v51 = vmax.f32 %v2951_v55, %v2952_v38  ;;  %v2959_v2 = vrot.slane %v2958_v42, 1  ;;  %v2922_v63 = vrot.slane %v2921_v29, 2  ;;  %v2929_v15 = vrot.slane %v2928_v54, 2  ;;  %9149 = vmatpush3.msra.mxu0 %v3374_v47 }
 0x290   : > { %v2911_v35 = vmax.f32 %v2909_v60, %v2910_v46  ;;  %v2917_v11 = vrot.slane %v2916_v12, 1  ;;  %v2248_v14 = vmax.f32 %v11712_v4, 0.0  ;;  %v2201_v28 = vadd.f32 %v9129_v27, %v11358_v32  ;;  %9150 = vmatprep.subr.mxu0 %v3373_v25  ;;  %v3368_v60 = vld [vmem:[%s15202_s3 + $0x418] sm:$0xff] }
 0x291   : > { %v2923_v56 = vmax.f32 %v2921_v29, %v2922_v63  ;;  %v2930_v31 = vmax.f32 %v2928_v54, %v2929_v15  ;;  %v2196_v45 = vadd.f32 %v2195_v43, %v11343_v0  ;;  %v11773_v19 = vadd.f32 %v9132_v21, %v11373_v26  ;;  %9151 = vmatpush3.msra.mxu0 %v3373_v25  ;;  %v3369_v43 = vld [vmem:[%s15202_s3 + $0x420] sm:$0xff] }
 0x292   : > { %v2918_v37 = vmax.f32 %v2916_v12, %v2917_v11  ;;  %v2251_v8 = vmax.f32 %v2201_v28, 0.0  ;;  %v3404_v58 = vrot.slane %v11767_v57, 1  ;;  %v3405_v4 = vrot.slane %v3222_v52, 1  ;;  %9152 = vmatprep.subr.mxu0 %v3372_v6  ;;  %v3366_v11 = vld [vmem:[%s15202_s3 + $0x408] sm:$0xff] }
 0x293   : > { %v2960_v32 = vmax.f32 %v2958_v42, %v2959_v2  ;;  %v2924_v27 = vrot.slane %v2923_v56, 1  ;;  %v2931_v10 = vrot.slane %v2930_v31, 1  ;;  %v2250_v44 = vmax.f32 %v2196_v45, 0.0  ;;  %9153 = vmatpush3.msra.mxu0 %v3372_v6 }
 0x294   : > { %v3179_v0 = vsel %vm3137_vm3, %v2918_v37, %v2911_v35  ;;  %v2269_v26 = vmax.f32 %v2249_v24, %v2251_v8  ;;  %v11781_v62 = vsel %vm833_vm0, %v3404_v58, %v3405_v4  ;;  %v3436_v36 = vrot.slane %v11767_v57, 2  ;;  %9154 = vmatprep.subr.mxu0 %v3371_v34  ;;  %v3365_v8 = vld [vmem:[%s15202_s3 + $0x400] sm:$0xff] }
 0x295   : > { %v2925_v30 = vmax.f32 %v2923_v56, %v2924_v27  ;;  %v2932_v61 = vmax.f32 %v2930_v31, %v2931_v10  ;;  %v2268_v49 = vmax.f32 %v2248_v14, %v2250_v44  ;;  %3562 = vmatprep.mubr.f32.mxu1 %v11781_v62  ;;  %v3437_v39 = vrot.slane %v3222_v52, 2  ;;  %9155 = vmatpush3.msra.mxu0 %v3371_v34 }
 0x296   : > { %v2509_v17 = vcombine.high %v2269_v26, %v2269_v26  ;;  %v2516_v40 = vrot.slane %v2269_v26, %v11384_v23  ;;  %v2253_v1 = vmax.f32 %v11773_v19, 0.0  ;;  %3563 = vmatmul.mubr.f32.gmra.mxu1 %v11767_v57  ;;  %v11792_v53 = vadd.f32 %v2205_v59, %v11364_v9  ;;  %9156 = vmatprep.subr.mxu0 %v3370_v5  ;;  %v9135_v26 = vpop.f32.mrf.mxu0 }
 0x297   : > { %v3180_v16 = vsel %vm3139_vm4, %v2925_v30, %v3179_v0  ;;  %v2492_v55 = vcombine.high %v2268_v49, %v2268_v49  ;;  %v2499_v18 = vrot.slane %v2268_v49, %v11384_v23  ;;  %v11800_v7 = vsel %vm946_vm1, %v3436_v36, %v3437_v39  ;;  %9157 = vmatpush3.msra.mxu0 %v3370_v5 }
 0x298   : > { %v3181_v47 = vsel %vm3141_vm5, %v2932_v61, %v3180_v16  ;;  %v2523_v33 = vrot.slane %v2509_v17, %v11384_v23  ;;  %v2524_v42 = vcombine.high %v2516_v40, %v2516_v40  ;;  %v2989_v9 = vsel %vm2624_vm2, %v2516_v40, -inf  ;;  %3767 = vmatprep.mubr.f32.mxu0 %v11800_v7  ;;  %9158 = vmatprep.subr.mxu0 %v3369_v43 }
 0x299   : > { %v3182_v13 = vsel %vm3143_vm6, %v11758_v22, %v3181_v47  ;;  %v2990_v38 = vrot.slane %v2989_v9, 4  ;;  %v2506_v29 = vrot.slane %v2492_v55, %v11384_v23  ;;  %v2507_v54 = vcombine.high %v2499_v18, %v2499_v18  ;;  %3768 = vmatmul.mubr.f32.gmra.mxu0 %v11781_v62  ;;  %v3367_v22 = vld [vmem:[%s15202_s3 + $0x410] sm:$0xff] }
 0x29a   : > { %v3183_v24 = vsel %vm3145_vm7, %v11760_v50, %v3182_v13  ;;  %v2525_v25 = vcombine.high %v2523_v33, %v2523_v33  ;;  %v2996_v46 = vsel %vm2624_vm2, %v2524_v42, -inf  ;;  %v3003_v12 = vsel %vm2624_vm2, %v2523_v33, -inf  ;;  %9159 = vmatpush3.msra.mxu0 %v3369_v43  ;;  %v11835_v13 = vld [vmem:[#allocation3 + $0x30] sm:$0xff] }
 0x29b   : > { %v3184_v21 = vsel %vm3147_vm8, %v11765_v51, %v3183_v24  ;;  %v2991_v6 = vmax.f32 %v2989_v9, %v2990_v38  ;;  %v2997_v2 = vrot.slane %v2996_v46, 4  ;;  %v3004_v63 = vrot.slane %v3003_v12, 4  ;;  %9160 = vmatprep.subr.mxu0 %v3368_v60 }
 0x29c   : > { %v3185_v15 = vsel %vm3149_vm9, %v2960_v32, %v3184_v21  ;;  %v3010_v50 = vsel %vm2624_vm2, %v2525_v25, -inf  ;;  %v2508_v52 = vcombine.high %v2506_v29, %v2506_v29  ;;  %v2961_v35 = vsel %vm2624_vm2, %v2499_v18, -inf  ;;  %9161 = vmatpush3.msra.mxu0 %v3368_v60  ;;  %v2215_v60 = vpop.f32.mrf.mxu0  ;;  %v3224_v21 = vld [vmem:[#allocation3 + $0x38] sm:$0x3] }
 0x29d   : > { %3214 = vst [vmem:[#allocation3 + $0x61] sm:$0xff] %v3185_v15  ;;  %v2992_v14 = vrot.slane %v2991_v6, 2  ;;  %v2998_v28 = vmax.f32 %v2996_v46, %v2997_v2  ;;  %v3005_v51 = vmax.f32 %v3003_v12, %v3004_v63  ;;  %v3011_v56 = vrot.slane %v3010_v50, 4  ;;  %9162 = vmatprep.subr.mxu0 %v3367_v22 }
 0x29e   : > { %v2962_v31 = vrot.slane %v2961_v35, 4  ;;  %v2968_v45 = vsel %vm2624_vm2, %v2507_v54, -inf  ;;  %v2975_v34 = vsel %vm2624_vm2, %v2506_v29, -inf  ;;  %v2982_v37 = vsel %vm2624_vm2, %v2508_v52, -inf  ;;  %9163 = vmatpush3.msra.mxu0 %v3367_v22 }
 0x29f   : > { %v2993_v58 = vmax.f32 %v2991_v6, %v2992_v14  ;;  %v2999_v4 = vrot.slane %v2998_v28, 2  ;;  %v3006_v32 = vrot.slane %v3005_v51, 2  ;;  %v3012_v27 = vmax.f32 %v3010_v50, %v3011_v56  ;;  %9164 = vmatprep.subr.mxu0 %v3366_v11  ;;  %v11843_v56 = vld [vmem:[#allocation3 + $0x40] sm:$0xff] }
 0x2a0   : > { %v2963_v10 = vmax.f32 %v2961_v35, %v2962_v31  ;;  %v2969_v44 = vrot.slane %v2968_v45, 4  ;;  %v2976_v59 = vrot.slane %v2975_v34, 4  ;;  %v2983_v0 = vrot.slane %v2982_v37, 4  ;;  %9165 = vmatpush3.msra.mxu0 %v3366_v11 }
 0x2a1   : > { %v2994_v36 = vrot.slane %v2993_v58, 1  ;;  %v3000_v5 = vmax.f32 %v2998_v28, %v2999_v4  ;;  %v3007_v30 = vmax.f32 %v3005_v51, %v3006_v32  ;;  %v3013_v61 = vrot.slane %v3012_v27, 2  ;;  %9166 = vmatprep.subr.mxu0 %v3365_v8 }
 0x2a2   : > { %v2964_v49 = vrot.slane %v2963_v10, 2  ;;  %v2970_v39 = vmax.f32 %v2968_v45, %v2969_v44  ;;  %v2977_v17 = vmax.f32 %v2975_v34, %v2976_v59  ;;  %v2984_v40 = vmax.f32 %v2982_v37, %v2983_v0  ;;  %9167 = vmatpush3.msra.mxu0 %v3365_v8 }
 0x2a3   : > { %v3001_v43 = vrot.slane %v3000_v5, 1  ;;  %v3008_v16 = vrot.slane %v3007_v30, 1  ;;  %v3014_v55 = vmax.f32 %v3012_v27, %v3013_v61  ;;  %v2221_v18 = vadd.f32 %v9135_v26, %v11379_v48 }
 0x2a4   : > { %v2965_v47 = vmax.f32 %v2963_v10, %v2964_v49  ;;  %v2971_v33 = vrot.slane %v2970_v39, 2  ;;  %v2978_v42 = vrot.slane %v2977_v17, 2  ;;  %v2985_v9 = vrot.slane %v2984_v40, 2 }
 0x2a5   : > { %v2995_v38 = vmax.f32 %v2993_v58, %v2994_v36  ;;  %v3002_v29 = vmax.f32 %v3000_v5, %v3001_v43  ;;  %v3009_v54 = vmax.f32 %v3007_v30, %v3008_v16  ;;  %v3015_v24 = vrot.slane %v3014_v55, 1 }
 0x2a6   : > { %v2966_v25 = vrot.slane %v2965_v47, 1  ;;  %v2972_v46 = vmax.f32 %v2970_v39, %v2971_v33  ;;  %v2979_v12 = vmax.f32 %v2977_v17, %v2978_v42  ;;  %v2986_v22 = vmax.f32 %v2984_v40, %v2985_v9  ;;  %v3226_v42 = vld [vmem:[#allocation3 + $0x48] sm:$0x3] }
 0x2a7   : > { %v2252_v6 = vmax.f32 %v11792_v53, 0.0  ;;  %v2255_v2 = vmax.f32 %v2221_v18, 0.0  ;;  %v2216_v48 = vadd.f32 %v2215_v60, %v11376_v41  ;;  %v3407_v63 = vrot.slane %v11835_v13, 1 }
 0x2a8   : > { %v2967_v15 = vmax.f32 %v2965_v47, %v2966_v25  ;;  %v2973_v50 = vrot.slane %v2972_v46, 1  ;;  %v2980_v52 = vrot.slane %v2979_v12, 1  ;;  %v2987_v35 = vrot.slane %v2986_v22, 1 }
 0x2a9   : > { %v2271_v11 = vmax.f32 %v2253_v1, %v2255_v2  ;;  %v2254_v14 = vmax.f32 %v2216_v48, 0.0  ;;  %v3408_v28 = vrot.slane %v3224_v21, 1  ;;  %v3439_v51 = vrot.slane %v11835_v13, 2 }
 0x2aa   : > { %v2974_v31 = vmax.f32 %v2972_v46, %v2973_v50  ;;  %v2981_v53 = vmax.f32 %v2979_v12, %v2980_v52  ;;  %v2988_v45 = vmax.f32 %v2986_v22, %v2987_v35  ;;  %v3440_v34 = vrot.slane %v3224_v21, 2 }
 0x2ab   : > { %v2543_v41 = vcombine.high %v2271_v11, %v2271_v11  ;;  %v2550_v37 = vrot.slane %v2271_v11, %v11384_v23  ;;  %v2270_v8 = vmax.f32 %v2252_v6, %v2254_v14  ;;  %v11847_v58 = vsel %vm833_vm0, %v3407_v63, %v3408_v28 }
 0x2ac   : > { %v3016_v4 = vmax.f32 %v3014_v55, %v3015_v24  ;;  %v3186_v19 = vsel %vm3137_vm3, %v2974_v31, %v2967_v15  ;;  %3567 = vmatprep.mubr.f32.mxu1 %v11847_v58  ;;  %v11852_v1 = vsel %vm946_vm1, %v3439_v51, %v3440_v34  ;;  %v3410_v32 = vrot.slane %v11843_v56, 1 }
 0x2ad   : > { %v3187_v27 = vsel %vm3139_vm4, %v2981_v53, %v3186_v19  ;;  %v2557_v10 = vrot.slane %v2543_v41, %v11384_v23  ;;  %v2558_v44 = vcombine.high %v2550_v37, %v2550_v37  ;;  %v3045_v59 = vsel %vm2624_vm2, %v2550_v37, -inf  ;;  %3772 = vmatprep.mubr.f32.mxu0 %v11852_v1  ;;  %3568 = vmatmul.mubr.f32.gmra.mxu1 %v11835_v13 }
 0x2ae   : > { %v3188_v0 = vsel %vm3141_vm5, %v2988_v45, %v3187_v27  ;;  %v3046_v26 = vrot.slane %v3045_v59, 4  ;;  %v2526_v36 = vcombine.high %v2270_v8, %v2270_v8  ;;  %v2533_v5 = vrot.slane %v2270_v8, %v11384_v23  ;;  %3773 = vmatmul.mubr.f32.gmra.mxu0 %v11847_v58  ;;  %v11881_v8 = vld [vmem:[#allocation3 + $0x50] sm:$0xff] }
 0x2af   : > { %v3189_v30 = vsel %vm3143_vm6, %v2995_v38, %v3188_v0  ;;  %v2559_v61 = vcombine.high %v2557_v10, %v2557_v10  ;;  %v3052_v49 = vsel %vm2624_vm2, %v2558_v44, -inf  ;;  %v3059_v39 = vsel %vm2624_vm2, %v2557_v10, -inf }
 0x2b0   : > { %v3190_v17 = vsel %vm3145_vm7, %v3002_v29, %v3189_v30  ;;  %v3047_v40 = vmax.f32 %v3045_v59, %v3046_v26  ;;  %v3053_v43 = vrot.slane %v3052_v49, 4  ;;  %v3060_v16 = vrot.slane %v3059_v39, 4 }
 0x2b1   : > { %v3191_v55 = vsel %vm3147_vm8, %v3009_v54, %v3190_v17  ;;  %v3066_v18 = vsel %vm2624_vm2, %v2559_v61, -inf  ;;  %v2540_v47 = vrot.slane %v2526_v36, %v11384_v23  ;;  %v2541_v33 = vcombine.high %v2533_v5, %v2533_v5  ;;  %v3228_v36 = vld [vmem:[#allocation3 + $0x58] sm:$0x3] }
 0x2b2   : > { %v3192_v9 = vsel %vm3149_vm9, %v3016_v4, %v3191_v55  ;;  %v3048_v60 = vrot.slane %v3047_v40, 2  ;;  %v3054_v38 = vmax.f32 %v3052_v49, %v3053_v43  ;;  %v3061_v24 = vmax.f32 %v3059_v39, %v3060_v16  ;;  %v11893_v43 = vld [vmem:[#allocation3 + $0x60] sm:$0xff]  ;;  %v3230_v16 = vld [vmem:[#allocation3 + $0x68] sm:$0x3] }
 0x2b3   : > { %3215 = vst [vmem:[#allocation3 + $0x71] sm:$0xff] %v3192_v9  ;;  %v3067_v25 = vrot.slane %v3066_v18, 4  ;;  %v2542_v46 = vcombine.high %v2540_v47, %v2540_v47  ;;  %v3017_v29 = vsel %vm2624_vm2, %v2533_v5, -inf  ;;  %v3024_v12 = vsel %vm2624_vm2, %v2541_v33, -inf }
 0x2b4   : > { %v3055_v22 = vrot.slane %v3054_v38, 2  ;;  %v3062_v54 = vrot.slane %v3061_v24, 2  ;;  %v3018_v21 = vrot.slane %v3017_v29, 4  ;;  %v3411_v6 = vrot.slane %v3226_v42, 1 }
 0x2b5   : > { %v3068_v2 = vmax.f32 %v3066_v18, %v3067_v25  ;;  %v3025_v48 = vrot.slane %v3024_v12, 4  ;;  %v3031_v63 = vsel %vm2624_vm2, %v2540_v47, -inf  ;;  %v3038_v15 = vsel %vm2624_vm2, %v2542_v46, -inf }
 0x2b6   : > { %v3049_v50 = vmax.f32 %v3047_v40, %v3048_v60  ;;  %v11875_v52 = vmax.f32 %v3054_v38, %v3055_v22  ;;  %v11877_v35 = vmax.f32 %v3061_v24, %v3062_v54  ;;  %v3019_v11 = vmax.f32 %v3017_v29, %v3018_v21 }
 0x2b7   : > { %v3069_v14 = vrot.slane %v3068_v2, 2  ;;  %v3026_v28 = vmax.f32 %v3024_v12, %v3025_v48  ;;  %v3032_v51 = vrot.slane %v3031_v63, 4  ;;  %v3039_v31 = vrot.slane %v3038_v15, 4 }
 0x2b8   : > { %v3020_v53 = vrot.slane %v3019_v11, 2  ;;  %v3050_v4 = vrot.slane %v3049_v50, 1  ;;  %v3057_v19 = vrot.slane %v11875_v52, 1  ;;  %v11885_v10 = vsel %vm833_vm0, %v3410_v32, %v3411_v6 }
 0x2b9   : > { %v11879_v45 = vmax.f32 %v3068_v2, %v3069_v14  ;;  %v3027_v34 = vrot.slane %v3026_v28, 2  ;;  %v3033_v41 = vmax.f32 %v3031_v63, %v3032_v51  ;;  %v3040_v37 = vmax.f32 %v3038_v15, %v3039_v31  ;;  %3572 = vmatprep.mubr.f32.mxu1 %v11885_v10 }
 0x2ba   : > { %v3021_v27 = vmax.f32 %v3019_v11, %v3020_v53  ;;  %v3064_v44 = vrot.slane %v11877_v35, 1  ;;  %v3442_v30 = vrot.slane %v11843_v56, 2  ;;  %v3443_v61 = vrot.slane %v3226_v42, 2  ;;  %3573 = vmatmul.mubr.f32.gmra.mxu1 %v11843_v56  ;;  %v11900_v24 = vld [vmem:[#allocation3 + $0x70] sm:$0xff]  ;;  %v3232_v25 = vld [vmem:[#allocation3 + $0x78] sm:$0x3] }
 0x2bb   : > { %v3028_v59 = vmax.f32 %v3026_v28, %v3027_v34  ;;  %v3034_v0 = vrot.slane %v3033_v41, 2  ;;  %v3041_v26 = vrot.slane %v3040_v37, 2  ;;  %v3413_v49 = vrot.slane %v11881_v8, 1 }
 0x2bc   : > { %v3022_v5 = vrot.slane %v3021_v27, 1  ;;  %v3071_v39 = vrot.slane %v11879_v45, 1  ;;  %v11896_v18 = vsel %vm946_vm1, %v3442_v30, %v3443_v61  ;;  %v3414_v47 = vrot.slane %v3228_v36, 1  ;;  %v3363_v30 = vld [vmem:[%s15202_s3 + $0x3f0] sm:$0xff] }
 0x2bd   : > { %v3029_v32 = vrot.slane %v3028_v59, 1  ;;  %v3035_v17 = vmax.f32 %v3033_v41, %v3034_v0  ;;  %v3042_v40 = vmax.f32 %v3040_v37, %v3041_v26  ;;  %v3445_v33 = vrot.slane %v11881_v8, 2  ;;  %3777 = vmatprep.mubr.f32.mxu0 %v11896_v18  ;;  %v9604_v26 = vld [vmem:[#allocation3 + $0x8] sm:$0x3]  ;;  %v3347_v61 = vld [vmem:[%s15202_s3 + $0x370] sm:$0xff] }
 0x2be   : > { %v3023_v55 = vmax.f32 %v3021_v27, %v3022_v5  ;;  %v3446_v38 = vrot.slane %v3228_v36, 2  ;;  %3778 = vmatmul.mubr.f32.gmra.mxu0 %v11885_v10  ;;  %v11904_v46 = vsel %vm833_vm0, %v3413_v49, %v3414_v47  ;;  %v3416_v29 = vrot.slane %v11893_v43, 1  ;;  %v3348_v5 = vld [vmem:[%s15202_s3 + $0x378] sm:$0xff]  ;;  %v3361_v47 = vld [vmem:[%s15202_s3 + $0x3e0] sm:$0xff] }
 0x2bf   : > { %v3030_v42 = vmax.f32 %v3028_v59, %v3029_v32  ;;  %v3036_v9 = vrot.slane %v3035_v17, 1  ;;  %v3043_v60 = vrot.slane %v3042_v40, 1  ;;  %v3417_v12 = vrot.slane %v3230_v16, 1  ;;  %3577 = vmatprep.mubr.f32.mxu1 %v11904_v46  ;;  %v11940_v59 = vld [vmem:[#allocation2] sm:$0xff]  ;;  %v3346_v32 = vld [vmem:[%s15202_s3 + $0x368] sm:$0xff] }
 0x2c0   : > { %v3448_v22 = vrot.slane %v11893_v43, 2  ;;  %v11911_v2 = vsel %vm946_vm1, %v3445_v33, %v3446_v38  ;;  %3578 = vmatmul.mubr.f32.gmra.mxu1 %v11881_v8  ;;  %v3449_v63 = vrot.slane %v3230_v16, 2  ;;  %v3419_v15 = vrot.slane %v11900_v24, 1  ;;  %v3345_v33 = vld [vmem:[%s15202_s3 + $0x360] sm:$0xff]  ;;  %v3359_v38 = vld [vmem:[%s15202_s3 + $0x3d0] sm:$0xff] }
 0x2c1   : > { %v3037_v54 = vmax.f32 %v3035_v17, %v3036_v9  ;;  %v3044_v21 = vmax.f32 %v3042_v40, %v3043_v60  ;;  %v3193_v6 = vsel %vm3137_vm3, %v3030_v42, %v3023_v55  ;;  %3782 = vmatprep.mubr.f32.mxu0 %v11911_v2  ;;  %v11916_v48 = vsel %vm833_vm0, %v3416_v29, %v3417_v12  ;;  %v3360_v60 = vld [vmem:[%s15202_s3 + $0x3d8] sm:$0xff]  ;;  %v3358_v29 = vld [vmem:[%s15202_s3 + $0x3c8] sm:$0xff]  ;;  %v3357_v12 = vld [vmem:[%s15202_s3 + $0x3c0] sm:$0xff] }
 0x2c2   : > { %v3420_v11 = vrot.slane %v3232_v25, 1  ;;  %v3051_v14 = vmax.f32 %v3049_v50, %v3050_v4  ;;  %3582 = vmatprep.mubr.f32.mxu1 %v11916_v48  ;;  %v3451_v51 = vrot.slane %v11900_v24, 2  ;;  %v3452_v31 = vrot.slane %v3232_v25, 2  ;;  %3783 = vmatmul.mubr.f32.gmra.mxu0 %v11904_v46  ;;  %v3343_v25 = vld [vmem:[%s15202_s3 + $0x350] sm:$0xff] }
 0x2c3   : > { %v3194_v28 = vsel %vm3139_vm4, %v3037_v54, %v3193_v6  ;;  %v3058_v53 = vmax.f32 %v11875_v52, %v3057_v19  ;;  %v11926_v41 = vsel %vm946_vm1, %v3448_v22, %v3449_v63  ;;  %v3065_v50 = vmax.f32 %v11877_v35, %v3064_v44  ;;  %v3341_v22 = vld [vmem:[%s15202_s3 + $0x340] sm:$0xff]  ;;  %v12017_v54 = vld [vmem:[#allocation3 + $0x98] sm:$0x3]  ;;  %v3355_v6 = vld [vmem:[%s15202_s3 + $0x3b0] sm:$0xff] }
 0x2c4   : > { %v3195_v34 = vsel %vm3141_vm5, %v3044_v21, %v3194_v28  ;;  %v11929_v37 = vsel %vm833_vm0, %v3419_v15, %v3420_v11  ;;  %3787 = vmatprep.mubr.f32.mxu0 %v11926_v41  ;;  %v3072_v27 = vmax.f32 %v11879_v45, %v3071_v39  ;;  %3583 = vmatmul.mubr.f32.gmra.mxu1 %v11893_v43  ;;  %v3430_v0 = vrot.slane %v11940_v59, 2  ;;  %v3356_v21 = vld [vmem:[%s15202_s3 + $0x3b8] sm:$0xff]  ;;  %v3339_v15 = vld [vmem:[%s15202_s3 + $0x330] sm:$0xff]  ;;  %v3354_v11 = vld [vmem:[%s15202_s3 + $0x3a8] sm:$0xff] }
 0x2c5   : > { %v3196_v4 = vsel %vm3143_vm6, %v3051_v14, %v3195_v34  ;;  %v11938_v19 = vsel %vm946_vm1, %v3451_v51, %v3452_v31  ;;  %v3431_v36 = vrot.slane %v9604_v26, 2  ;;  %3587 = vmatprep.mubr.f32.mxu1 %v11929_v37  ;;  %v3479_v63 = vrot.slane %v12017_v54, 2  ;;  %v3338_v14 = vld [vmem:[%s15202_s3 + $0x328] sm:$0xff]  ;;  %v3337_v51 = vld [vmem:[%s15202_s3 + $0x320] sm:$0xff]  ;;  %v3352_v31 = vld [vmem:[%s15202_s3 + $0x398] sm:$0xff] }
 0x2c6   : > { %v3197_v52 = vsel %vm3145_vm7, %v3058_v53, %v3196_v4  ;;  %3788 = vmatmul.mubr.f32.gmra.mxu0 %v11916_v48  ;;  %v3336_v53 = vld [vmem:[%s15202_s3 + $0x318] sm:$0xff]  ;;  %v3335_v34 = vld [vmem:[%s15202_s3 + $0x310] sm:$0xff]  ;;  %v3334_v4 = vld [vmem:[%s15202_s3 + $0x308] sm:$0xff] }
 0x2c7   : > { %v3198_v35 = vsel %vm3147_vm8, %v3065_v50, %v3197_v52  ;;  %3792 = vmatprep.mubr.f32.mxu0 %v11938_v19  ;;  %v3432_v45 = vsel %vm946_vm1, %v3430_v0, %v3431_v36  ;;  %v3480_v28 = vsel %vm946_vm1, %v3430_v0, %v3479_v63  ;;  %v3350_v50 = vld [vmem:[%s15202_s3 + $0x388] sm:$0xff]  ;;  %v4296_v52 = vld [vmem:[%s15204_s5 + $0xe0] sm:$0xff]  ;;  %v4295_v26 = vld [vmem:[%s15204_s5 + $0xd8] sm:$0xff] }
 0x2c8   : > { %v3199_v44 = vsel %vm3149_vm9, %v3072_v27, %v3198_v35  ;;  %3588 = vmatmul.mubr.f32.gmra.mxu1 %v11900_v24  ;;  %v3333_v27 = vld [vmem:[%s15202_s3 + $0x300] sm:$0xff]  ;;  %v4329_v0 = vld [vmem:[%s15204_s5 + $0x1e8] sm:$0xff]  ;;  %v4279_v35 = vld [vmem:[%s15204_s5 + $0x58] sm:$0xff] }
 0x2c9   : > { %3216 = vst [vmem:[#allocation3 + $0x81] sm:$0xff] %v3199_v44  ;;  %3657 = vmatprep.mubr.f32.mxu1 %v11693_v3  ;;  %v3362_v3 = vld [vmem:[%s15202_s3 + $0x3e8] sm:$0xff]  ;;  %v4328_v44 = vld [vmem:[%s15204_s5 + $0x1e0] sm:$0xff] }
 0x2ca   : > { %3793 = vmatmul.mubr.f32.gmra.mxu0 %v11929_v37  ;;  %v4313_v36 = vld [vmem:[%s15204_s5 + $0x168] sm:$0xff]  ;;  %v4272_v63 = vld [vmem:[%s15204_s5 + $0x20] sm:$0xff] }
 0x2cc   : > { %3658 = vmatmul.mubr.f32.vlgmr.msra.gmra.mxu1 %v3432_v45  ;;  %v4294_v45 = vld [vmem:[%s15204_s5 + $0xd0] sm:$0xff] }
 0x2cd   : > { %3662 = vmatprep.mubr.f32.mxu1 %v11767_v57  ;;  %8461 = vmatpush3.msra.mxu1 %v3348_v5  ;;  %v4312_v5 = vld [vmem:[%s15204_s5 + $0x160] sm:$0xff] }
 0x2ce   : > { %8462 = vmatprep.subr.mxu1 %v3363_v30  ;;  %v4278_v30 = vld [vmem:[%s15204_s5 + $0x50] sm:$0xff] }
 0x2cf   : > { %8463 = vmatpush3.msra.mxu1 %v3347_v61  ;;  %v4327_v61 = vld [vmem:[%s15204_s5 + $0x1d8] sm:$0xff] }
 0x2d0   : > { %v11967_v49 = vld [vmem:[#allocation3 + $0x80] sm:$0xff]  ;;  %v3234_v39 = vld [vmem:[#allocation3 + $0x88] sm:$0x3]  ;;  %3663 = vmatmul.mubr.f32.gmra.mxu1 %v11708_v20  ;;  %8464 = vmatprep.subr.mxu1 %v3362_v3  ;;  %v4293_v3 = vld [vmem:[%s15204_s5 + $0xc8] sm:$0xff] }
 0x2d1   : > { %v3468_v17 = vrot.slane %v11967_v49, 2  ;;  %v3469_v40 = vrot.slane %v3234_v39, 2  ;;  %v3464_v16 = vrot.slane %v11967_v49, 1  ;;  %v3465_v55 = vrot.slane %v3234_v39, 1  ;;  %3667 = vmatprep.mubr.f32.mxu1 %v11835_v13  ;;  %8465 = vmatpush3.msra.mxu1 %v3346_v32  ;;  %v3344_v20 = vld [vmem:[%s15202_s3 + $0x358] sm:$0xff]  ;;  %v4277_v39 = vld [vmem:[%s15204_s5 + $0x48] sm:$0xff] }
 0x2d2   : > { %8466 = vmatprep.subr.mxu1 %v3361_v47  ;;  %v4326_v32 = vld [vmem:[%s15204_s5 + $0x1d0] sm:$0xff]  ;;  %v4291_v47 = vld [vmem:[%s15204_s5 + $0xb8] sm:$0xff] }
 0x2d3   : > { %v3470_v42 = vsel %vm946_vm1, %v3468_v17, %v3469_v40  ;;  %v11983_v9 = vsel %vm833_vm0, %v3464_v16, %v3465_v55  ;;  %8467 = vmatpush3.msra.mxu1 %v3345_v33  ;;  %v4292_v17 = vld [vmem:[%s15204_s5 + $0xc0] sm:$0xff]  ;;  %v4310_v40 = vld [vmem:[%s15204_s5 + $0x150] sm:$0xff]  ;;  %v4325_v55 = vld [vmem:[%s15204_s5 + $0x1c8] sm:$0xff] }
 0x2d4   : > { %3797 = vmatprep.mubr.f32.mxu0 %v3470_v42  ;;  %3668 = vmatmul.mubr.f32.gmra.mxu1 %v11800_v7  ;;  %v4276_v16 = vld [vmem:[%s15204_s5 + $0x40] sm:$0xff]  ;;  %v4309_v33 = vld [vmem:[%s15204_s5 + $0x148] sm:$0xff] }
 0x2d5   : > { %3798 = vmatmul.mubr.f32.gmra.mxu0 %v11983_v9  ;;  %8468 = vmatprep.subr.mxu1 %v3360_v60  ;;  %v4290_v60 = vld [vmem:[%s15204_s5 + $0xb0] sm:$0xff] }
 0x2d6   : > { %9168 = vmatprep.mubr.f32.mxu0 %v11800_v7  ;;  %3672 = vmatprep.mubr.f32.mxu1 %v11843_v56  ;;  %v3342_v7 = vld [vmem:[%s15202_s3 + $0x348] sm:$0xff] }
 0x2d7   : > { %8469 = vmatpush3.msra.mxu1 %v3344_v20  ;;  %v4308_v20 = vld [vmem:[%s15204_s5 + $0x140] sm:$0xff] }
 0x2d8   : > { %8470 = vmatprep.subr.mxu1 %v3359_v38  ;;  %3673 = vmatmul.mubr.f32.gmra.mxu1 %v11852_v1  ;;  %v12205_v38 = vpop.f32.mrf.mxu1 }
 0x2d9   : > { %9169 = vmatmul.mubr.f32.vlgmr.msra.gmra.mxu0 %v11852_v1  ;;  %8471 = vmatpush3.msra.mxu1 %v3343_v25  ;;  %v3340_v1 = vld [vmem:[%s15202_s3 + $0x338] sm:$0xff]  ;;  %v4274_v25 = vld [vmem:[%s15204_s5 + $0x30] sm:$0xff] }
 0x2da   : > { %9171 = vmatprep.mubr.f32.mxu0 %v11896_v18  ;;  %8472 = vmatprep.subr.mxu1 %v3358_v29  ;;  %v4323_v29 = vld [vmem:[%s15204_s5 + $0x1b8] sm:$0xff] }
 0x2db   : > { %3677 = vmatprep.mubr.f32.mxu1 %v11881_v8  ;;  %8473 = vmatpush3.msra.mxu1 %v3342_v7  ;;  %v4289_v7 = vld [vmem:[%s15204_s5 + $0xa8] sm:$0xff] }
 0x2dc   : > { %8474 = vmatprep.subr.mxu1 %v3357_v12  ;;  %3678 = vmatmul.mubr.f32.gmra.mxu1 %v11896_v18  ;;  %v3353_v18 = vld [vmem:[%s15202_s3 + $0x3a0] sm:$0xff]  ;;  %v4307_v12 = vld [vmem:[%s15204_s5 + $0x138] sm:$0xff] }
 0x2dd   : > { %9172 = vmatmul.mubr.f32.gmra.mxu0 %v11911_v2  ;;  %8475 = vmatpush3.msra.mxu1 %v3341_v22  ;;  %v4273_v22 = vld [vmem:[%s15204_s5 + $0x28] sm:$0xff] }
 0x2de   : > { %9174 = vmatprep.mubr.f32.mxu0 %v11926_v41  ;;  %8476 = vmatprep.subr.mxu1 %v3356_v21  ;;  %v4288_v21 = vld [vmem:[%s15204_s5 + $0xa0] sm:$0xff] }
 0x2df   : > { %3682 = vmatprep.mubr.f32.mxu1 %v11893_v43  ;;  %8477 = vmatpush3.msra.mxu1 %v3340_v1  ;;  %v4306_v1 = vld [vmem:[%s15204_s5 + $0x130] sm:$0xff] }
 0x2e0   : > { %8478 = vmatprep.subr.mxu1 %v3355_v6  ;;  %3683 = vmatmul.mubr.f32.gmra.mxu1 %v11911_v2  ;;  %v3351_v2 = vld [vmem:[%s15202_s3 + $0x390] sm:$0xff]  ;;  %v12231_v6 = vpop.f32.mrf.mxu1 }
 0x2e1   : > { %9175 = vmatmul.mubr.f32.gmra.mxu0 %v11938_v19  ;;  %8479 = vmatpush3.msra.mxu1 %v3339_v15  ;;  %v4321_v15 = vld [vmem:[%s15204_s5 + $0x1a8] sm:$0xff] }
 0x2e2   : > { %9177 = vmatprep.mubr.f32.mxu0 %v3470_v42  ;;  %8480 = vmatprep.subr.mxu1 %v3354_v11  ;;  %v4275_v42 = vld [vmem:[%s15204_s5 + $0x38] sm:$0xff] }
 0x2e3   : > { %3687 = vmatprep.mubr.f32.mxu1 %v11900_v24  ;;  %8481 = vmatpush3.msra.mxu1 %v3338_v14  ;;  %v4287_v11 = vld [vmem:[%s15204_s5 + $0x98] sm:$0xff]  ;;  %v4305_v14 = vld [vmem:[%s15204_s5 + $0x128] sm:$0xff] }
 0x2e4   : > { %8482 = vmatprep.subr.mxu1 %v3353_v18  ;;  %3688 = vmatmul.mubr.f32.gmra.mxu1 %v11926_v41  ;;  %v3349_v41 = vld [vmem:[%s15202_s3 + $0x380] sm:$0xff]  ;;  %v4271_v18 = vld [vmem:[%s15204_s5 + $0x18] sm:$0xff] }
 0x2e5   : > { %9178 = vmatmul.mubr.f32.gmra.mxu0 %v3480_v28  ;;  %8483 = vmatpush3.msra.mxu1 %v3337_v51  ;;  %v4320_v28 = vld [vmem:[%s15204_s5 + $0x1a0] sm:$0xff]  ;;  %v4286_v51 = vld [vmem:[%s15204_s5 + $0x90] sm:$0xff] }
 0x2e6   : > { %8484 = vmatprep.subr.mxu1 %v3352_v31  ;;  %3692 = vmatprep.mubr.f32.mxu1 %v11967_v49  ;;  %v4304_v31 = vld [vmem:[%s15204_s5 + $0x120] sm:$0xff] }
 0x2e7   : > { %8485 = vmatpush3.msra.mxu1 %v3336_v53 }
 0x2e8   : > { %8486 = vmatprep.subr.mxu1 %v3351_v2  ;;  %3693 = vmatmul.mubr.f32.gmra.mxu1 %v11938_v19  ;;  %v4314_v19 = vld [vmem:[%s15204_s5 + $0x170] sm:$0xff] }
 0x2e9   : > { %8487 = vmatpush3.msra.mxu1 %v3335_v34  ;;  %3867 = vmatprep.mubr.f32.mxu1 %v11781_v62  ;;  %v3475_v62 = vrot.slane %v12017_v54, 1  ;;  %v4322_v54 = vld [vmem:[%s15204_s5 + $0x1b0] sm:$0xff]  ;;  %v4319_v34 = vld [vmem:[%s15204_s5 + $0x198] sm:$0xff] }
 0x2ea   : > { %8488 = vmatprep.subr.mxu1 %v3350_v50  ;;  %v4270_v2 = vld [vmem:[%s15204_s5 + $0x10] sm:$0xff]  ;;  %v4285_v50 = vld [vmem:[%s15204_s5 + $0x88] sm:$0xff] }
 0x2eb   : > { %8489 = vmatpush3.msra.mxu1 %v3334_v4  ;;  %v4303_v4 = vld [vmem:[%s15204_s5 + $0x118] sm:$0xff] }
 0x2ec   : > { %8490 = vmatprep.subr.mxu1 %v3349_v41  ;;  %v4269_v41 = vld [vmem:[%s15204_s5 + $0x8] sm:$0xff] }
 0x2ed   : > { %8491 = vmatpush3.msra.mxu1 %v3333_v27  ;;  %v4318_v27 = vld [vmem:[%s15204_s5 + $0x190] sm:$0xff] }
 0x2ee   : > { %3868 = vmatmul.mubr.f32.vlgmr.msra.gmra.mxu1 %v11767_v57  ;;  %v3474_v57 = vrot.slane %v11940_v59, 1 }
 0x2ef   : > { %3872 = vmatprep.mubr.f32.mxu1 %v11847_v58  ;;  %v4283_v58 = vld [vmem:[%s15204_s5 + $0x78] sm:$0xff] }
 0x2f2   : > { %3873 = vmatmul.mubr.f32.gmra.mxu1 %v11835_v13  ;;  %v3476_v13 = vsel %vm833_vm0, %v3474_v57, %v3475_v62  ;;  %v4284_v57 = vld [vmem:[%s15204_s5 + $0x80] sm:$0xff]  ;;  %v4302_v62 = vld [vmem:[%s15204_s5 + $0x110] sm:$0xff] }
 0x2f3   : > { %3877 = vmatprep.mubr.f32.mxu1 %v11885_v10  ;;  %v4282_v10 = vld [vmem:[%s15204_s5 + $0x70] sm:$0xff] }
 0x2f6   : > { %3878 = vmatmul.mubr.f32.gmra.mxu1 %v11843_v56  ;;  %v4299_v56 = vld [vmem:[%s15204_s5 + $0xf8] sm:$0xff] }
 0x2f7   : > { %3882 = vmatprep.mubr.f32.mxu1 %v11904_v46  ;;  %8540 = vmatprep.subr.mxu1 %v4299_v56  ;;  %v4315_v46 = vld [vmem:[%s15204_s5 + $0x178] sm:$0xff]  ;;  %v4268_v56 = vld [vmem:[%s15204_s5] sm:$0xff] }
 0x2f8   : > { %8541 = vmatpush3.msra.mxu1 %v4283_v58  ;;  %v4317_v58 = vld [vmem:[%s15204_s5 + $0x188] sm:$0xff] }
 0x2fa   : > { %3883 = vmatmul.mubr.f32.gmra.mxu1 %v11881_v8  ;;  %v4298_v8 = vld [vmem:[%s15204_s5 + $0xf0] sm:$0xff] }
 0x2fb   : > { %3887 = vmatprep.mubr.f32.mxu1 %v11916_v48  ;;  %8542 = vmatprep.subr.mxu1 %v4298_v8  ;;  %v4281_v48 = vld [vmem:[%s15204_s5 + $0x68] sm:$0xff] }
 0x2fc   : > { %8543 = vmatpush3.msra.mxu1 %v4282_v10  ;;  %v4301_v8 = vld [vmem:[%s15204_s5 + $0x108] sm:$0xff]  ;;  %v4363_v10 = vld [vmem:[%s15204_s5 + $0x2f8] sm:$0xff] }
 0x2fe   : > { %3888 = vmatmul.mubr.f32.gmra.mxu1 %v11893_v43  ;;  %v4331_v43 = vld [vmem:[%s15204_s5 + $0x1f8] sm:$0xff] }
 0x2ff   : > { %3892 = vmatprep.mubr.f32.mxu1 %v11929_v37  ;;  %8578 = vmatprep.subr.mxu0 %v4331_v43  ;;  %v4330_v37 = vld [vmem:[%s15204_s5 + $0x1f0] sm:$0xff] }
 0x300   : > { %8579 = vmatpush3.msra.mxu0 %v4315_v46  ;;  %v4300_v46 = vld [vmem:[%s15204_s5 + $0x100] sm:$0xff] }
 0x301   : > { %8580 = vmatprep.subr.mxu0 %v4330_v37 }
 0x302   : > { %3893 = vmatmul.mubr.f32.gmra.mxu1 %v11900_v24  ;;  %v4297_v24 = vld [vmem:[%s15204_s5 + $0xe8] sm:$0xff]  ;;  %8581 = vmatpush3.msra.mxu0 %v4314_v19 }
 0x303   : > { %3897 = vmatprep.mubr.f32.mxu1 %v11983_v9  ;;  %8544 = vmatprep.subr.mxu1 %v4297_v24  ;;  %v4324_v9 = vld [vmem:[%s15204_s5 + $0x1c0] sm:$0xff] }
 0x304   : > { %8545 = vmatpush3.msra.mxu1 %v4281_v48  ;;  %8582 = vmatprep.subr.mxu0 %v4329_v0  ;;  %v4316_v24 = vld [vmem:[%s15204_s5 + $0x180] sm:$0xff]  ;;  %v4395_v48 = vld [vmem:[%s15204_s5 + $0x3f8] sm:$0xff] }
 0x305   : > { %8546 = vmatprep.subr.mxu1 %v4296_v52  ;;  %8583 = vmatpush3.msra.mxu0 %v4313_v36 }
 0x306   : > { %3898 = vmatmul.mubr.f32.gmra.mxu1 %v11967_v49  ;;  %8584 = vmatprep.subr.mxu0 %v4328_v44  ;;  %v4311_v49 = vld [vmem:[%s15204_s5 + $0x158] sm:$0xff] }
 0x307   : > { %3902 = vmatprep.mubr.f32.mxu1 %v3476_v13  ;;  %8585 = vmatpush3.msra.mxu0 %v4312_v5 }
 0x308   : > { %8586 = vmatprep.subr.mxu0 %v4327_v61 }
 0x309   : > { %8587 = vmatpush3.msra.mxu0 %v4311_v49 }
 0x30a   : > { %3903 = vmatmul.mubr.f32.gmra.mxu1 %v11940_v59  ;;  %v4280_v59 = vld [vmem:[%s15204_s5 + $0x60] sm:$0xff]  ;;  %8588 = vmatprep.subr.mxu0 %v4326_v32 }
 0x30b   : > { %8547 = vmatpush3.msra.mxu1 %v4280_v59  ;;  %8589 = vmatpush3.msra.mxu0 %v4310_v40 }
 0x30c   : > { %8548 = vmatprep.subr.mxu1 %v4295_v26  ;;  %8590 = vmatprep.subr.mxu0 %v4325_v55 }
 0x30d   : > { %8549 = vmatpush3.msra.mxu1 %v4279_v35  ;;  %8591 = vmatpush3.msra.mxu0 %v4309_v33 }
 0x30e   : > { %8550 = vmatprep.subr.mxu1 %v4294_v45  ;;  %8592 = vmatprep.subr.mxu0 %v4324_v9 }
 0x30f   : > { %8551 = vmatpush3.msra.mxu1 %v4278_v30  ;;  %8593 = vmatpush3.msra.mxu0 %v4308_v20 }
 0x310   : > { %8552 = vmatprep.subr.mxu1 %v4293_v3  ;;  %8594 = vmatprep.subr.mxu0 %v4323_v29 }
 0x311   : > { %8553 = vmatpush3.msra.mxu1 %v4277_v39  ;;  %8595 = vmatpush3.msra.mxu0 %v4307_v12 }
 0x312   : > { %8554 = vmatprep.subr.mxu1 %v4292_v17  ;;  %8596 = vmatprep.subr.mxu0 %v4322_v54 }
 0x313   : > { %8555 = vmatpush3.msra.mxu1 %v4276_v16  ;;  %8597 = vmatpush3.msra.mxu0 %v4306_v1 }
 0x314   : > { %8556 = vmatprep.subr.mxu1 %v4291_v47  ;;  %8598 = vmatprep.subr.mxu0 %v4321_v15 }
 0x315   : > { %8557 = vmatpush3.msra.mxu1 %v4275_v42  ;;  %8599 = vmatpush3.msra.mxu0 %v4305_v14 }
 0x316   : > { %8558 = vmatprep.subr.mxu1 %v4290_v60  ;;  %8600 = vmatprep.subr.mxu0 %v4320_v28 }
 0x317   : > { %8559 = vmatpush3.msra.mxu1 %v4274_v25  ;;  %8601 = vmatpush3.msra.mxu0 %v4304_v31  ;;  %v12353_v31 = vld [vmem:[%s15203_s4] ss:$0 sm:$0xff] }
 0x318   : > { %8560 = vmatprep.subr.mxu1 %v4289_v7  ;;  %8602 = vmatprep.subr.mxu0 %v4319_v34 }
 0x319   : > { %8561 = vmatpush3.msra.mxu1 %v4273_v22  ;;  %8603 = vmatpush3.msra.mxu0 %v4303_v4 }
 0x31a   : > { %8562 = vmatprep.subr.mxu1 %v4288_v21  ;;  %8604 = vmatprep.subr.mxu0 %v4318_v27 }
 0x31b   : > { %8563 = vmatpush3.msra.mxu1 %v4272_v63  ;;  %8605 = vmatpush3.msra.mxu0 %v4302_v62 }
 0x31c   : > { %8564 = vmatprep.subr.mxu1 %v4287_v11  ;;  %8606 = vmatprep.subr.mxu0 %v4317_v58  ;;  %v8326_v11 = vadd.f32 %v12231_v6, %v12205_v38  ;;  %v12361_v58 = vld [vmem:[#allocation4] sm:$0x3f] }
 0x31d   : > { %8565 = vmatpush3.msra.mxu1 %v4271_v18  ;;  %8607 = vmatpush3.msra.mxu0 %v4301_v8 }
 0x31e   : > { %8566 = vmatprep.subr.mxu1 %v4286_v51  ;;  %8608 = vmatprep.subr.mxu0 %v4316_v24  ;;  %v3555_v34 = vadd.f32 %v8326_v11, %v12353_v31 }
 0x31f   : > { %8567 = vmatpush3.msra.mxu1 %v4270_v2  ;;  %8609 = vmatpush3.msra.mxu0 %v4300_v46 }
 0x320   : > { %8568 = vmatprep.subr.mxu1 %v4285_v50  ;;  %8654 = vmatprep.subr.mxu0 %v4395_v48 }
 0x321   : > { %8569 = vmatpush3.msra.mxu1 %v4269_v41 }
 0x322   : > { %8570 = vmatprep.subr.mxu1 %v4284_v57 }
 0x323   : > { %8571 = vmatpush3.msra.mxu1 %v4268_v56 }
 0x324   : > { %8616 = vmatprep.subr.mxu1 %v4363_v10 }
 0x340   : > { %v12257_v53 = vpop.f32.mrf.mxu1 }
 0x342   : > { %v12283_v13 = vpop.f32.mrf.mxu1  ;;  %v8436_v0 = vpop.f32.mrf.mxu0 }
 0x343   : > { %v8329_v50 = vadd.f32 %v12283_v13, %v12257_v53  ;;  %v12365_v53 = vcombine.high %v12361_v58, %v12361_v58 }
 0x344   : > { %v8437_v35 = vpop.f32.mrf.mxu0 }
 0x345   : > { %v3560_v57 = vadd.f32 %v8329_v50, %v12353_v31  ;;  %v8438_v62 = vadd.f32 %v8437_v35, %v8436_v0  ;;  %v8153_v35 = vrot.slane %v12361_v58, 9 }
 0x356   : > { %v8330_v43 = vpop.f32.mrf.mxu1 }
 0x358   : > { %v8331_v37 = vpop.f32.mrf.mxu1 }
 0x359   : > { %v8439_v45 = vpop.f32.mrf.mxu0  ;;  %v8332_v56 = vadd.f32 %v8331_v37, %v8330_v43 }
 0x35b   : > { %v8440_v61 = vpop.f32.mrf.mxu0  ;;  %v3565_v13 = vadd.f32 %v8332_v56, %v12353_v31 }
 0x36d   : > { %v12306_v52 = vpop.f32.mrf.mxu1 }
 0x36e   : > { %v12324_v49 = vpop.f32.mrf.mxu0 }
 0x36f   : > { %v12308_v19 = vpop.f32.mrf.mxu1 }
 0x370   : > { %v12328_v17 = vpop.f32.mrf.mxu0  ;;  %v8335_v0 = vadd.f32 %v12308_v19, %v12306_v52  ;;  %v8157_v52 = vrot.slane %v12361_v58, 10 }
 0x372   : > { %v3570_v19 = vadd.f32 %v8335_v0, %v12353_v31 }
 0x37a   : > { %v12310_v59 = vpop.f32.mrf.mxu1 }
 0x37c   : > { %v12312_v26 = vpop.f32.mrf.mxu1 }
 0x37e   : > { %v12330_v16 = vpop.f32.mrf.mxu0 }
 0x380   : > { %v12314_v36 = vpop.f32.mrf.mxu1  ;;  %v12332_v33 = vpop.f32.mrf.mxu0 }
 0x382   : > { %v12316_v44 = vpop.f32.mrf.mxu1  ;;  %v12334_v9 = vpop.f32.mrf.mxu0 }
 0x383   : > { %v8341_v50 = vadd.f32 %v12316_v44, %v12314_v36  ;;  %v4444_v36 = vrot.slane %v12365_v53, 6 }
 0x384   : > { %v12318_v5 = vpop.f32.mrf.mxu1  ;;  %v12336_v25 = vpop.f32.mrf.mxu0 }
 0x386   : > { %v12320_v30 = vpop.f32.mrf.mxu1  ;;  %v12338_v7 = vpop.f32.mrf.mxu0 }
 0x388   : > { %v12322_v3 = vpop.f32.mrf.mxu1  ;;  %v12340_v54 = vpop.f32.mrf.mxu0 }
 0x38a   : > { %v12326_v39 = vpop.f32.mrf.mxu1  ;;  %v12342_v1 = vpop.f32.mrf.mxu0 }
 0x38c   : > { %v8380_v32 = vpop.f32.mrf.mxu1  ;;  %v12346_v14 = vpop.f32.mrf.mxu0 }
 0x38e   : > { %v8381_v40 = vpop.f32.mrf.mxu1 }
 0x38f   : > { %v8382_v28 = vadd.f32 %v8381_v40, %v8380_v32 }
 0x390   : > { %v8383_v55 = vpop.f32.mrf.mxu1 }
 0x391   : > { %v3660_v41 = vadd.f32 %v8382_v28, %v3555_v34  ;;  %v8338_v34 = vadd.f32 %v12312_v26, %v12310_v59 }
 0x392   : > { %v8384_v47 = vpop.f32.mrf.mxu1 }
 0x393   : > { %v8385_v38 = vadd.f32 %v8384_v47, %v8383_v55  ;;  %v3765_v48 = vadd.f32 %v8438_v62, %v3660_v41  ;;  %v8441_v55 = vadd.f32 %v8440_v61, %v8439_v45  ;;  %v4426_v45 = vrot.slane %v12365_v53, 5 }
 0x394   : > { %v8386_v42 = vpop.f32.mrf.mxu1  ;;  %v8444_v61 = vadd.f32 %v12328_v17, %v12324_v49  ;;  %v8347_v49 = vadd.f32 %v12326_v39, %v12322_v3 }
 0x395   : > { %v12348_v51 = vpop.f32.mrf.mxu0  ;;  %v3665_v10 = vadd.f32 %v8385_v38, %v3560_v57 }
 0x396   : > { %v8387_v60 = vpop.f32.mrf.mxu1 }
 0x397   : > { %v12358_v6 = vpop.f32.mrf.mxu0  ;;  %v8388_v46 = vadd.f32 %v8387_v60, %v8386_v42  ;;  %v3770_v60 = vadd.f32 %v8441_v55, %v3665_v10  ;;  %v3575_v10 = vadd.f32 %v8338_v34, %v12353_v31 }
 0x398   : > { %v8389_v20 = vpop.f32.mrf.mxu1 }
 0x399   : > { %v9170_v24 = vpop.f32.mrf.mxu0  ;;  %v3670_v47 = vadd.f32 %v8388_v46, %v3565_v13  ;;  %v3580_v46 = vadd.f32 %v8341_v50, %v12353_v31  ;;  %v8450_v13 = vadd.f32 %v12336_v25, %v12334_v9  ;;  %v8459_v9 = vadd.f32 %v12358_v6, %v12348_v51 }
 0x39a   : > { %v8390_v29 = vpop.f32.mrf.mxu1 }
 0x39b   : > { %v3974_v11 = vpop.f32.mrf.mxu0  ;;  %v8391_v42 = vadd.f32 %v8390_v29, %v8389_v20  ;;  %v8344_v29 = vadd.f32 %v12320_v30, %v12318_v5  ;;  %v3775_v56 = vadd.f32 %v8444_v61, %v3670_v47  ;;  %v8447_v5 = vadd.f32 %v12332_v33, %v12330_v16 }
 0x39c   : > { %v8392_v12 = vpop.f32.mrf.mxu1  ;;  %v3590_v16 = vadd.f32 %v8347_v49, %v12353_v31 }
 0x39d   : > { %v9173_v44 = vpop.f32.mrf.mxu0  ;;  %v3675_v57 = vadd.f32 %v8391_v42, %v3570_v19 }
 0x39e   : > { %v8393_v22 = vpop.f32.mrf.mxu1 }
 0x39f   : > { %v3984_v55 = vpop.f32.mrf.mxu0  ;;  %v3780_v3 = vadd.f32 %v8447_v5, %v3675_v57 }
 0x3a0   : > { %v8395_v21 = vpop.f32.mrf.mxu1 }
 0x3a1   : > { %v12402_v34 = vpop.f32.mrf.mxu0 }
 0x3a2   : > { %v8396_v63 = vpop.f32.mrf.mxu1 }
 0x3a3   : > { %v8397_v59 = vadd.f32 %v8396_v63, %v8395_v21  ;;  %v3585_v21 = vadd.f32 %v8344_v29, %v12353_v31 }
 0x3a4   : > { %v8398_v15 = vpop.f32.mrf.mxu1 }
 0x3a6   : > { %v8399_v18 = vpop.f32.mrf.mxu1 }
 0x3a7   : > { %v8400_v17 = vadd.f32 %v8399_v18, %v8398_v15  ;;  %v8453_v15 = vadd.f32 %v12340_v54, %v12338_v7 }
 0x3a8   : > { %v8401_v2 = vpop.f32.mrf.mxu1 }
 0x3a9   : > { %v3690_v33 = vadd.f32 %v8400_v17, %v3585_v21 }
 0x3aa   : > { %v8402_v4 = vpop.f32.mrf.mxu1 }
 0x3ae   : > { %v8492_v27 = vpop.f32.mrf.mxu1 }
 0x3b0   : > { %v8493_v8 = vpop.f32.mrf.mxu1 }
 0x3b1   : > { %v8494_v32 = vadd.f32 %v8493_v8, %v8492_v27  ;;  %v8394_v27 = vadd.f32 %v8393_v22, %v8392_v12 }
 0x3b2   : > { %v8495_v40 = vpop.f32.mrf.mxu1 }
 0x3b3   : > { %v3870_v43 = vadd.f32 %v8494_v32, %v3765_v48  ;;  %v3680_v63 = vadd.f32 %v8394_v27, %v3575_v10  ;;  %v8403_v32 = vadd.f32 %v8402_v4, %v8401_v2 }
 0x3b4   : > { %v8496_v37 = vpop.f32.mrf.mxu1 }
 0x3b5   : > { %v8497_v28 = vadd.f32 %v8496_v37, %v8495_v40  ;;  %v3975_v38 = vadd.f32 %v3974_v11, %v3870_v43  ;;  %v8456_v37 = vadd.f32 %v12346_v14, %v12342_v1  ;;  %v3695_v25 = vadd.f32 %v8403_v32, %v3590_v16 }
 0x3b6   : > { %v8498_v41 = vpop.f32.mrf.mxu1  ;;  %v3785_v11 = vadd.f32 %v8450_v13, %v3680_v63 }
 0x3b7   : > { %v3875_v20 = vadd.f32 %v8497_v28, %v3770_v60  ;;  %v4013_v30 = vmax.f32 %v3975_v38, 0.0  ;;  %v12404_v19 = vadd.f32 %v8456_v37, %v3690_v33 }
 0x3b8   : > { %v8499_v26 = vpop.f32.mrf.mxu1 }
 0x3b9   : > { %v3980_v62 = vadd.f32 %v9170_v24, %v3875_v20  ;;  %v8500_v8 = vadd.f32 %v8499_v26, %v8498_v41  ;;  %v3685_v24 = vadd.f32 %v8397_v59, %v3580_v46 }
 0x3ba   : > { %v8501_v48 = vpop.f32.mrf.mxu1 }
 0x3bb   : > { %v4014_v12 = vmax.f32 %v3980_v62, 0.0  ;;  %v3880_v22 = vadd.f32 %v8500_v8, %v3775_v56  ;;  %v3790_v60 = vadd.f32 %v8453_v15, %v3685_v24  ;;  %v12409_v56 = vadd.f32 %v8459_v9, %v3695_v25  ;;  %v3994_v8 = vpop.f32.mrf.mxu0 }
 0x3bc   : > { %v8502_v40 = vpop.f32.mrf.mxu1 }
 0x3bd   : > { %v4021_v0 = vmax.f32 %v4013_v30, %v4014_v12  ;;  %v8503_v39 = vadd.f32 %v8502_v40, %v8501_v48  ;;  %v3985_v18 = vadd.f32 %v3984_v55, %v3880_v22 }
 0x3be   : > { %v8504_v43 = vpop.f32.mrf.mxu1 }
 0x3bf   : > { %v4029_v2 = vcombine.high %v4021_v0, %v4021_v0  ;;  %v4036_v4 = vrot.slane %v4021_v0, %v11384_v23  ;;  %v3885_v47 = vadd.f32 %v8503_v39, %v3780_v3  ;;  %v4015_v14 = vmax.f32 %v3985_v18, 0.0 }
 0x3c0   : > { %v8505_v42 = vpop.f32.mrf.mxu1 }
 0x3c1   : > { %v4043_v7 = vrot.slane %v4029_v2, %v11384_v23  ;;  %v4044_v54 = vcombine.high %v4036_v4, %v4036_v4  ;;  %v4113_v31 = vsel %vm2624_vm2, %v4036_v4, -inf  ;;  %v3990_v28 = vadd.f32 %v9173_v44, %v3885_v47 }
 0x3c2   : > { %v4114_v1 = vrot.slane %v4113_v31, 4  ;;  %v8506_v50 = vadd.f32 %v8505_v42, %v8504_v43  ;;  %v8507_v41 = vpop.f32.mrf.mxu1 }
 0x3c3   : > { %v4045_v61 = vcombine.high %v4043_v7, %v4043_v7  ;;  %v4120_v51 = vsel %vm2624_vm2, %v4044_v54, -inf  ;;  %v4127_v6 = vsel %vm2624_vm2, %v4043_v7, -inf  ;;  %v4016_v38 = vmax.f32 %v3990_v28, 0.0 }
 0x3c4   : > { %v4115_v20 = vmax.f32 %v4113_v31, %v4114_v1  ;;  %v4121_v29 = vrot.slane %v4120_v51, 4  ;;  %v4128_v27 = vrot.slane %v4127_v6, 4  ;;  %v3890_v59 = vadd.f32 %v8506_v50, %v3785_v11  ;;  %v8508_v26 = vpop.f32.mrf.mxu1  ;;  %v9179_v50 = vpop.f32.mrf.mxu0 }
 0x3c5   : > { %v4134_v44 = vsel %vm2624_vm2, %v4045_v61, -inf  ;;  %v4022_v57 = vmax.f32 %v4015_v14, %v4016_v38  ;;  %v8509_v62 = vadd.f32 %v8508_v26, %v8507_v41 }
 0x3c6   : > { %v4116_v10 = vrot.slane %v4115_v20, 2  ;;  %v4122_v46 = vmax.f32 %v4120_v51, %v4121_v29  ;;  %v4129_v49 = vmax.f32 %v4127_v6, %v4128_v27  ;;  %v4135_v17 = vrot.slane %v4134_v44, 4  ;;  %v8510_v48 = vpop.f32.mrf.mxu1 }
 0x3c7   : > { %v4046_v5 = vcombine.high %v4022_v57, %v4022_v57  ;;  %v4053_v30 = vrot.slane %v4022_v57, %v11384_v23  ;;  %v3995_v12 = vadd.f32 %v3994_v8, %v3890_v59  ;;  %v3895_v22 = vadd.f32 %v8509_v62, %v3790_v60 }
 0x3c8   : > { %v4117_v21 = vmax.f32 %v4115_v20, %v4116_v10  ;;  %v4123_v63 = vrot.slane %v4122_v46, 2  ;;  %v4130_v24 = vrot.slane %v4129_v49, 2  ;;  %v4136_v32 = vmax.f32 %v4134_v44, %v4135_v17  ;;  %v8511_v40 = vpop.f32.mrf.mxu1  ;;  %v4004_v17 = vpop.f32.mrf.mxu0 }
 0x3c9   : > { %v4060_v13 = vrot.slane %v4046_v5, %v11384_v23  ;;  %v4061_v55 = vcombine.high %v4053_v30, %v4053_v30  ;;  %v4141_v0 = vsel %vm2624_vm2, %v4053_v30, -inf  ;;  %v4017_v3 = vmax.f32 %v3995_v12, 0.0 }
 0x3ca   : > { %v4118_v39 = vrot.slane %v4117_v21, 1  ;;  %v4124_v15 = vmax.f32 %v4122_v46, %v4123_v63  ;;  %v4131_v16 = vmax.f32 %v4129_v49, %v4130_v24  ;;  %v4137_v33 = vrot.slane %v4136_v32, 2  ;;  %v8513_v4 = vpop.f32.mrf.mxu1  ;;  %v5088_v24 = vld [vmem:[%s15206_s7 + $0xf8] sm:$0xff] }
 0x3cb   : > { %v4062_v18 = vcombine.high %v4060_v13, %v4060_v13  ;;  %v4142_v43 = vrot.slane %v4141_v0, 4  ;;  %v4148_v37 = vsel %vm2624_vm2, %v4061_v55, -inf  ;;  %v4155_v2 = vsel %vm2624_vm2, %v4060_v13, -inf }
 0x3cc   : > { %v4119_v47 = vmax.f32 %v4117_v21, %v4118_v39  ;;  %v4125_v9 = vrot.slane %v4124_v15, 1  ;;  %v4132_v25 = vrot.slane %v4131_v16, 1  ;;  %v4138_v11 = vmax.f32 %v4136_v32, %v4137_v33  ;;  %v8514_v38 = vpop.f32.mrf.mxu1 }
 0x3cd   : > { %v4143_v42 = vmax.f32 %v4141_v0, %v4142_v43  ;;  %v4149_v60 = vrot.slane %v4148_v37, 4  ;;  %v4156_v7 = vrot.slane %v4155_v2, 4  ;;  %v4162_v54 = vsel %vm2624_vm2, %v4062_v18, -inf }
 0x3ce   : > { %v4126_v31 = vmax.f32 %v4124_v15, %v4125_v9  ;;  %v4133_v28 = vmax.f32 %v4131_v16, %v4132_v25  ;;  %v4139_v1 = vrot.slane %v4138_v11, 1  ;;  %v4163_v14 = vrot.slane %v4162_v54, 4 }
 0x3cf   : > { %v4144_v41 = vrot.slane %v4143_v42, 2  ;;  %v4150_v61 = vmax.f32 %v4148_v37, %v4149_v60  ;;  %v4157_v51 = vmax.f32 %v4155_v2, %v4156_v7  ;;  %v4000_v6 = vadd.f32 %v12402_v34, %v3895_v22  ;;  %v4408_v34 = vld [vmem:[%s15204_s5 + $0x460] sm:$0xff] }
 0x3d0   : > { %v4140_v20 = vmax.f32 %v4138_v11, %v4139_v1  ;;  %v4241_v29 = vsel %vm3137_vm3, %v4126_v31, %v4119_v47  ;;  %v4164_v27 = vmax.f32 %v4162_v54, %v4163_v14  ;;  %v8512_v59 = vadd.f32 %v8511_v40, %v8510_v48 }
 0x3d1   : > { %v4242_v26 = vsel %vm3139_vm4, %v4133_v28, %v4241_v29  ;;  %v4145_v44 = vmax.f32 %v4143_v42, %v4144_v41  ;;  %v4151_v57 = vrot.slane %v4150_v61, 2  ;;  %v4158_v62 = vrot.slane %v4157_v51, 2 }
 0x3d2   : > { %v4243_v8 = vsel %vm3141_vm5, %v4140_v20, %v4242_v26  ;;  %v4165_v10 = vrot.slane %v4164_v27, 2  ;;  %v4018_v46 = vmax.f32 %v4000_v6, 0.0  ;;  %v8515_v49 = vadd.f32 %v8514_v38, %v8513_v4 }
 0x3d3   : > { %4258 = vst [vmem:[#allocation4 + $0x9] sm:$0xf] %v4243_v8  ;;  %v4146_v5 = vrot.slane %v4145_v44, 1  ;;  %v4152_v48 = vmax.f32 %v4150_v61, %v4151_v57  ;;  %v4159_v30 = vmax.f32 %v4157_v51, %v4158_v62  ;;  %v3900_v12 = vadd.f32 %v8512_v59, %v12404_v19 }
 0x3d4   : > { %v4166_v22 = vmax.f32 %v4164_v27, %v4165_v10  ;;  %v4023_v21 = vmax.f32 %v4017_v3, %v4018_v46  ;;  %v3905_v63 = vadd.f32 %v8515_v49, %v12409_v56  ;;  %v12441_v19 = vsel %vm12423_vm13, %v8153_v35, %v4426_v45 }
 0x3d5   : > { %v4153_v32 = vrot.slane %v4152_v48, 1  ;;  %v4160_v40 = vrot.slane %v4159_v30, 1  ;;  %v4005_v13 = vadd.f32 %v4004_v17, %v3900_v12  ;;  %v4147_v39 = vmax.f32 %v4145_v44, %v4146_v5 }
 0x3d6   : > { %v4167_v55 = vrot.slane %v4166_v22, 1  ;;  %v4063_v0 = vcombine.high %v4023_v21, %v4023_v21  ;;  %v4070_v56 = vrot.slane %v4023_v21, %v11384_v23  ;;  %v4010_v3 = vadd.f32 %v9179_v50, %v3905_v63 }
 0x3d7   : > { %v4154_v15 = vmax.f32 %v4152_v48, %v4153_v32  ;;  %v4161_v16 = vmax.f32 %v4159_v30, %v4160_v40  ;;  %v12450_v33 = vsel %vm12431_vm14, %v8157_v52, %v4444_v36  ;;  %v4019_v4 = vmax.f32 %v4005_v13, 0.0 }
 0x3d8   : > { %v4168_v18 = vmax.f32 %v4166_v22, %v4167_v55  ;;  %v4077_v35 = vrot.slane %v4063_v0, %v11384_v23  ;;  %v4078_v45 = vcombine.high %v4070_v56, %v4070_v56  ;;  %v4169_v43 = vsel %vm2624_vm2, %v4070_v56, -inf }
 0x3d9   : > { %v4244_v37 = vsel %vm3137_vm3, %v4154_v15, %v4147_v39  ;;  %v4170_v2 = vrot.slane %v4169_v43, 4  ;;  %v4020_v47 = vmax.f32 %v4010_v3, 0.0 }
 0x3da   : > { %v4245_v9 = vsel %vm3139_vm4, %v4161_v16, %v4244_v37  ;;  %v4079_v53 = vcombine.high %v4077_v35, %v4077_v35  ;;  %v4176_v25 = vsel %vm2624_vm2, %v4078_v45, -inf  ;;  %v4183_v11 = vsel %vm2624_vm2, %v4077_v35, -inf  ;;  %v12458_v52 = vld [vmem:[#allocation4 + $0x8] sm:$0x3f] }
 0x3db   : > { %v4246_v36 = vsel %vm3141_vm5, %v4168_v18, %v4245_v9  ;;  %v4171_v42 = vmax.f32 %v4169_v43, %v4170_v2  ;;  %v4177_v60 = vrot.slane %v4176_v25, 4  ;;  %v4184_v7 = vrot.slane %v4183_v11, 4 }
 0x3dc   : > { %4259 = vst [vmem:[#allocation4 + $0x11] sm:$0xf] %v4246_v36  ;;  %v4190_v54 = vsel %vm2624_vm2, %v4079_v53, -inf  ;;  %v4024_v31 = vmax.f32 %v4019_v4, %v4020_v47  ;;  %v4418_v28 = vcombine.high %v12458_v52, %v12458_v52  ;;  %v8154_v1 = vrot.slane %v12458_v52, 9 }
 0x3dd   : > { %v4172_v14 = vrot.slane %v4171_v42, 2  ;;  %v4178_v50 = vmax.f32 %v4176_v25, %v4177_v60  ;;  %v4185_v41 = vmax.f32 %v4183_v11, %v4184_v7  ;;  %v4191_v61 = vrot.slane %v4190_v54, 4 }
 0x3de   : > { %v4080_v51 = vcombine.high %v4024_v31, %v4024_v31  ;;  %v4087_v6 = vrot.slane %v4024_v31, %v11384_v23  ;;  %v4430_v38 = vrot.slane %v4418_v28, 5  ;;  %v8158_v20 = vrot.slane %v12458_v52, 10 }
 0x3df   : > { %v4173_v29 = vmax.f32 %v4171_v42, %v4172_v14  ;;  %v4179_v27 = vrot.slane %v4178_v50, 2  ;;  %v4186_v59 = vrot.slane %v4185_v41, 2  ;;  %v4192_v26 = vmax.f32 %v4190_v54, %v4191_v61 }
 0x3e0   : > { %v4094_v44 = vrot.slane %v4080_v51, %v11384_v23  ;;  %v4095_v57 = vcombine.high %v4087_v6, %v4087_v6  ;;  %v4197_v62 = vsel %vm2624_vm2, %v4087_v6, -inf  ;;  %v12471_v8 = vsel %vm12423_vm13, %v8154_v1, %v4430_v38  ;;  %v4394_v6 = vld [vmem:[%s15204_s5 + $0x3f0] sm:$0xff] }
 0x3e1   : > { %v4174_v10 = vrot.slane %v4173_v29, 1  ;;  %v4180_v46 = vmax.f32 %v4178_v50, %v4179_v27  ;;  %v4187_v49 = vmax.f32 %v4185_v41, %v4186_v59  ;;  %v4193_v17 = vrot.slane %v4192_v26, 2  ;;  %v4379_v41 = vld [vmem:[%s15204_s5 + $0x378] sm:$0xff] }
 0x3e2   : > { %v4096_v5 = vcombine.high %v4094_v44, %v4094_v44  ;;  %v4198_v48 = vrot.slane %v4197_v62, 4  ;;  %v4204_v30 = vsel %vm2624_vm2, %v4095_v57, -inf  ;;  %v4211_v12 = vsel %vm2624_vm2, %v4094_v44, -inf  ;;  %v4360_v44 = vld [vmem:[%s15204_s5 + $0x2e0] sm:$0xff]  ;;  %v4393_v57 = vld [vmem:[%s15204_s5 + $0x3e8] sm:$0xff] }
 0x3e3   : > { %v4175_v22 = vmax.f32 %v4173_v29, %v4174_v10  ;;  %v4181_v21 = vrot.slane %v4180_v46, 1  ;;  %v4188_v23 = vrot.slane %v4187_v49, 1  ;;  %v4194_v63 = vmax.f32 %v4192_v26, %v4193_v17  ;;  %v12479_v4 = vld [vmem:[#allocation4 + $0x10] sm:$0x3f]  ;;  %v4359_v17 = vld [vmem:[%s15204_s5 + $0x2d8] sm:$0xff] }
 0x3e4   : > { %v4199_v32 = vmax.f32 %v4197_v62, %v4198_v48  ;;  %v4205_v40 = vrot.slane %v4204_v30, 4  ;;  %v4212_v13 = vrot.slane %v4211_v12, 4  ;;  %v4218_v55 = vsel %vm2624_vm2, %v4096_v5, -inf  ;;  %v4344_v10 = vld [vmem:[%s15204_s5 + $0x260] sm:$0xff] }
 0x3e5   : > { %v4182_v0 = vmax.f32 %v4180_v46, %v4181_v21  ;;  %v4189_v56 = vmax.f32 %v4187_v49, %v4188_v23  ;;  %v4195_v3 = vrot.slane %v4194_v63, 1  ;;  %v4219_v39 = vrot.slane %v4218_v55, 4  ;;  %v4377_v46 = vld [vmem:[%s15204_s5 + $0x368] sm:$0xff]  ;;  %v4392_v5 = vld [vmem:[%s15204_s5 + $0x3e0] sm:$0xff]  ;;  %v4358_v23 = vld [vmem:[%s15204_s5 + $0x2d0] sm:$0xff] }
 0x3e6   : > { %v4200_v15 = vrot.slane %v4199_v32, 2  ;;  %v4206_v16 = vmax.f32 %v4204_v30, %v4205_v40  ;;  %v4213_v18 = vmax.f32 %v4211_v12, %v4212_v13  ;;  %v4448_v35 = vrot.slane %v4418_v28, 6  ;;  %v4362_v28 = vld [vmem:[%s15204_s5 + $0x2f0] sm:$0xff]  ;;  %v4343_v30 = vld [vmem:[%s15204_s5 + $0x258] sm:$0xff]  ;;  %v4376_v12 = vld [vmem:[%s15204_s5 + $0x360] sm:$0xff] }
 0x3e7   : > { %v4196_v45 = vmax.f32 %v4194_v63, %v4195_v3  ;;  %v4247_v43 = vsel %vm3137_vm3, %v4182_v0, %v4175_v22  ;;  %v4220_v37 = vmax.f32 %v4218_v55, %v4219_v39  ;;  %v4482_v2 = vcombine.low %v12441_v19, %v12471_v8  ;;  %v4347_v19 = vld [vmem:[%s15204_s5 + $0x278] sm:$0xff]  ;;  %v4342_v13 = vld [vmem:[%s15204_s5 + $0x250] sm:$0xff]  ;;  %v4357_v0 = vld [vmem:[%s15204_s5 + $0x2c8] sm:$0xff] }
 0x3e8   : > { %v4248_v47 = vsel %vm3139_vm4, %v4189_v56, %v4247_v43  ;;  %v4201_v9 = vmax.f32 %v4199_v32, %v4200_v15  ;;  %v4207_v53 = vrot.slane %v4206_v16, 2  ;;  %v4214_v25 = vrot.slane %v4213_v18, 2  ;;  %v4391_v63 = vld [vmem:[%s15204_s5 + $0x3d8] sm:$0xff]  ;;  %v4390_v56 = vld [vmem:[%s15204_s5 + $0x3d0] sm:$0xff]  ;;  %v4389_v43 = vld [vmem:[%s15204_s5 + $0x3c8] sm:$0xff] }
 0x3e9   : > { %v4249_v11 = vsel %vm3141_vm5, %v4196_v45, %v4248_v47  ;;  %v4221_v36 = vrot.slane %v4220_v37, 2  ;;  %v12485_v42 = vsel %vm12431_vm14, %v8158_v20, %v4448_v35  ;;  %4578 = vmatprep.mubr.f32.mxu1 %v4482_v2  ;;  %v4478_v60 = vcombine.low %v12361_v58, %v12458_v52  ;;  %v4346_v58 = vld [vmem:[%s15204_s5 + $0x270] sm:$0xff]  ;;  %v4375_v55 = vld [vmem:[%s15204_s5 + $0x358] sm:$0xff]  ;;  %v4356_v45 = vld [vmem:[%s15204_s5 + $0x2c0] sm:$0xff] }
 0x3ea   : > { %4260 = vst [vmem:[#allocation4 + $0x19] sm:$0xf] %v4249_v11  ;;  %v4202_v7 = vrot.slane %v4201_v9, 1  ;;  %v4208_v54 = vmax.f32 %v4206_v16, %v4207_v53  ;;  %v4215_v31 = vmax.f32 %v4213_v18, %v4214_v25  ;;  %v4490_v1 = vcombine.low %v12458_v52, %v12479_v4  ;;  %v4361_v52 = vld [vmem:[%s15204_s5 + $0x2e8] sm:$0xff]  ;;  %v4378_v20 = vld [vmem:[%s15204_s5 + $0x370] sm:$0xff]  ;;  %v4355_v11 = vld [vmem:[%s15204_s5 + $0x2b8] sm:$0xff] }
 0x3eb   : > { %v4222_v14 = vmax.f32 %v4220_v37, %v4221_v36  ;;  %4579 = vmatmul.mubr.f32.vlgmr.msra.gmra.mxu1 %v4478_v60  ;;  %v4486_v50 = vcombine.low %v12450_v33, %v12485_v42  ;;  %v4345_v33 = vld [vmem:[%s15204_s5 + $0x268] sm:$0xff]  ;;  %v12519_v29 = vcombine.high %v12479_v4, %v12479_v4  ;;  %v8155_v3 = vrot.slane %v12479_v4, 9  ;;  %v4374_v35 = vld [vmem:[%s15204_s5 + $0x350] sm:$0xff] }
 0x3ec   : > { %v4209_v61 = vrot.slane %v4208_v54, 1  ;;  %v4216_v51 = vrot.slane %v4215_v31, 1  ;;  %8617 = vmatpush3.msra.mxu1 %v4347_v19  ;;  %4653 = vmatprep.mubr.f32.mxu0 %v4490_v1  ;;  %v4203_v27 = vmax.f32 %v4201_v9, %v4202_v7  ;;  %v4341_v18 = vld [vmem:[%s15204_s5 + $0x248] sm:$0xff]  ;;  %v8159_v47 = vrot.slane %v12479_v4, 10  ;;  %v4340_v9 = vld [vmem:[%s15204_s5 + $0x240] sm:$0xff]  ;;  %v4354_v1 = vld [vmem:[%s15204_s5 + $0x2b0] sm:$0xff] }
 0x3ed   : > { %v4223_v38 = vrot.slane %v4222_v14, 1  ;;  %8618 = vmatprep.subr.mxu1 %v4362_v28  ;;  %4654 = vmatmul.mubr.f32.vlgmr.msra.gmra.mxu0 %v4486_v50  ;;  %v4434_v40 = vrot.slane %v12519_v29, 5  ;;  %v4452_v16 = vrot.slane %v12519_v29, 6  ;;  %v4373_v36 = vld [vmem:[%s15204_s5 + $0x348] sm:$0xff]  ;;  %v4388_v19 = vld [vmem:[%s15204_s5 + $0x3c0] sm:$0xff]  ;;  %v4339_v28 = vld [vmem:[%s15204_s5 + $0x238] sm:$0xff] }
 0x3ee   : > { %v4210_v59 = vmax.f32 %v4208_v54, %v4209_v61  ;;  %v4217_v26 = vmax.f32 %v4215_v31, %v4216_v51  ;;  %8619 = vmatpush3.msra.mxu1 %v4346_v58  ;;  %8655 = vmatpush3.msra.mxu0 %v4379_v41  ;;  %v4338_v41 = vld [vmem:[%s15204_s5 + $0x230] sm:$0xff]  ;;  %v4353_v51 = vld [vmem:[%s15204_s5 + $0x2a8] sm:$0xff]  ;;  %v4336_v29 = vld [vmem:[%s15204_s5 + $0x220] sm:$0xff]  ;;  %vm5873_vm2 = vcmask 523264  }
 0x3ef   : > { %v4224_v62 = vmax.f32 %v4222_v14, %v4223_v38  ;;  %8620 = vmatprep.subr.mxu1 %v4361_v52  ;;  %8656 = vmatprep.subr.mxu0 %v4394_v6  ;;  %v12588_v37 = vsel %vm12423_vm13, %v8155_v3, %v4434_v40  ;;  %v4453_v60 = vsel %vm12431_vm14, %v8159_v47, %v4452_v16  ;;  %v4371_v52 = vld [vmem:[%s15204_s5 + $0x338] sm:$0xff]  ;;  %v4337_v6 = vld [vmem:[%s15204_s5 + $0x228] sm:$0xff]  ;;  %v4386_v38 = vld [vmem:[%s15204_s5 + $0x3b0] sm:$0xff] }
 0x3f0   : > { %v4250_v49 = vsel %vm3137_vm3, %v4210_v59, %v4203_v27  ;;  %8621 = vmatpush3.msra.mxu1 %v4345_v33  ;;  %8657 = vmatpush3.msra.mxu0 %v4378_v20  ;;  %v4498_v58 = vcombine.low %v12485_v42, %v4453_v60  ;;  %v4387_v42 = vld [vmem:[%s15204_s5 + $0x3b8] sm:$0xff]  ;;  %v4352_v33 = vld [vmem:[%s15204_s5 + $0x2a0] sm:$0xff]  ;;  %v4370_v20 = vld [vmem:[%s15204_s5 + $0x330] sm:$0xff]  ;;  %v4494_v16 = vcombine.low %v12471_v8, %v12588_v37 }
 0x3f1   : > { %v4251_v48 = vsel %vm3139_vm4, %v4217_v26, %v4250_v49  ;;  %8622 = vmatprep.subr.mxu1 %v4360_v44  ;;  %8658 = vmatprep.subr.mxu0 %v4393_v57  ;;  %v12547_v22 = vld [vmem:[#allocation4 + $0x18] sm:$0x3f]  ;;  %v4351_v26 = vld [vmem:[%s15204_s5 + $0x298] sm:$0xff]  ;;  %v4368_v49 = vld [vmem:[%s15204_s5 + $0x320] sm:$0xff] }
 0x3f2   : > { %v4252_v21 = vsel %vm3141_vm5, %v4224_v62, %v4251_v48  ;;  %8623 = vmatpush3.msra.mxu1 %v4344_v10  ;;  %8659 = vmatpush3.msra.mxu0 %v4377_v46  ;;  %v4420_v32 = vcombine.high %v12547_v22, %v12547_v22  ;;  %v8156_v39 = vrot.slane %v12547_v22, 9  ;;  %v8160_v7 = vrot.slane %v12547_v22, 10  ;;  %v4385_v59 = vld [vmem:[%s15204_s5 + $0x3a8] sm:$0xff]  ;;  %v12674_v44 = vld [vmem:[#allocation4 + $0x28] sm:$0x3f]  ;;  %v4384_v10 = vld [vmem:[%s15204_s5 + $0x3a0] sm:$0xff] }
 0x3f3   : > { %4261 = vst [vmem:[#allocation4 + $0x21] sm:$0xf] %v4252_v21  ;;  %8624 = vmatprep.subr.mxu1 %v4359_v17  ;;  %8660 = vmatprep.subr.mxu0 %v4392_v5  ;;  %v12616_v31 = vcombine.low %v12479_v4, %v12547_v22  ;;  %v4372_v4 = vld [vmem:[%s15204_s5 + $0x340] sm:$0xff]  ;;  %v4369_v57 = vld [vmem:[%s15204_s5 + $0x328] sm:$0xff]  ;;  %v4335_v62 = vld [vmem:[%s15204_s5 + $0x218] sm:$0xff]  ;;  %v12696_v5 = vcombine.high %v12674_v44, %v12674_v44 }
 0x3f4   : > { %8625 = vmatpush3.msra.mxu1 %v4343_v30  ;;  %8661 = vmatpush3.msra.mxu0 %v4376_v12  ;;  %v4438_v15 = vrot.slane %v4420_v32, 5  ;;  %v4456_v25 = vrot.slane %v4420_v32, 6  ;;  %v4350_v46 = vld [vmem:[%s15204_s5 + $0x290] sm:$0xff]  ;;  %v4383_v48 = vld [vmem:[%s15204_s5 + $0x398] sm:$0xff]  ;;  %v4349_v30 = vld [vmem:[%s15204_s5 + $0x288] sm:$0xff] }
 0x3f5   : > { %8626 = vmatprep.subr.mxu1 %v4358_v23  ;;  %8662 = vmatprep.subr.mxu0 %v4391_v63  ;;  %v4334_v17 = vld [vmem:[%s15204_s5 + $0x210] sm:$0xff]  ;;  %v4333_v21 = vld [vmem:[%s15204_s5 + $0x208] sm:$0xff]  ;;  %v4348_v63 = vld [vmem:[%s15204_s5 + $0x280] sm:$0xff] }
 0x3f6   : > { %8627 = vmatpush3.msra.mxu1 %v4342_v13  ;;  %8663 = vmatpush3.msra.mxu0 %v4375_v55  ;;  %v12592_v2 = vsel %vm12423_vm13, %v8156_v39, %v4438_v15  ;;  %v12626_v14 = vsel %vm12431_vm14, %v8160_v7, %v4456_v25  ;;  %v4382_v23 = vld [vmem:[%s15204_s5 + $0x390] sm:$0xff]  ;;  %v4332_v55 = vld [vmem:[%s15204_s5 + $0x200] sm:$0xff]  ;;  %v4381_v3 = vld [vmem:[%s15204_s5 + $0x388] sm:$0xff] }
 0x3f7   : > { %8628 = vmatprep.subr.mxu1 %v4357_v0  ;;  %8664 = vmatprep.subr.mxu0 %v4390_v56  ;;  %v4483_v53 = vcombine.low %v12588_v37, %v12592_v2  ;;  %v12642_v61 = vcombine.low %v4453_v60, %v12626_v14  ;;  %v4366_v13 = vld [vmem:[%s15204_s5 + $0x310] sm:$0xff]  ;;  %v8163_v0 = vrot.slane %v12674_v44, 9  ;;  %v4472_v56 = vrot.slane %v12696_v5, 5  ;;  %v4364_v37 = vld [vmem:[%s15204_s5 + $0x300] sm:$0xff]  ;;  %v4409_v25 = vld [vmem:[%s15204_s5 + $0x468] sm:$0xff] }
 0x3f8   : > { %8629 = vmatpush3.msra.mxu1 %v4341_v18  ;;  %8665 = vmatpush3.msra.mxu0 %v4374_v35  ;;  %v4365_v18 = vld [vmem:[%s15204_s5 + $0x308] sm:$0xff]  ;;  %v4411_v35 = vld [vmem:[%s15204_s5 + $0x478] sm:$0xff]  ;;  %v4406_v60 = vld [vmem:[%s15204_s5 + $0x450] sm:$0xff] }
 0x3f9   : > { %8630 = vmatprep.subr.mxu1 %v4356_v45  ;;  %8666 = vmatprep.subr.mxu0 %v4389_v43  ;;  %v4380_v45 = vld [vmem:[%s15204_s5 + $0x380] sm:$0xff]  ;;  %v4473_v47 = vsel %vm12423_vm13, %v8163_v0, %v4472_v56 }
 0x3fa   : > { %8631 = vmatpush3.msra.mxu1 %v4340_v9  ;;  %v12612_v54 = vld [vmem:[#allocation4 + $0x20] sm:$0x3f]  ;;  %4583 = vmatprep.mubr.f32.mxu1 %v4483_v53  ;;  %v4404_v7 = vld [vmem:[%s15204_s5 + $0x440] sm:$0xff] }
 0x3fb   : > { %8632 = vmatprep.subr.mxu1 %v4355_v11  ;;  %8667 = vmatpush3.msra.mxu0 %v4373_v36  ;;  %v4491_v50 = vcombine.low %v12547_v22, %v12612_v54  ;;  %v4459_v27 = vcombine.high %v12612_v54, %v12612_v54  ;;  %v4367_v22 = vld [vmem:[%s15204_s5 + $0x318] sm:$0xff]  ;;  %v8162_v32 = vrot.slane %v12612_v54, 10  ;;  %v8161_v15 = vrot.slane %v12612_v54, 9  ;;  %v4410_v9 = vld [vmem:[%s15204_s5 + $0x470] sm:$0xff] }
 0x3fc   : > { %4584 = vmatmul.mubr.f32.gmra.mxu1 %v12616_v31  ;;  %8668 = vmatprep.subr.mxu0 %v4388_v19  ;;  %v4502_v36 = vcombine.low %v12612_v54, %v12674_v44  ;;  %v4405_v19 = vld [vmem:[%s15204_s5 + $0x448] sm:$0xff]  ;;  %v4403_v54 = vld [vmem:[%s15204_s5 + $0x438] sm:$0xff] }
 0x3fd   : > { %8633 = vmatpush3.msra.mxu1 %v4339_v28  ;;  %4728 = vmatprep.mubr.f32.mxu1 %v4498_v58  ;;  %v4466_v12 = vrot.slane %v4459_v27, 6  ;;  %v4462_v40 = vrot.slane %v4459_v27, 5  ;;  %v4401_v28 = vld [vmem:[%s15204_s5 + $0x428] sm:$0xff]  ;;  %v8164_v58 = vrot.slane %v12674_v44, 10  ;;  %v5085_v27 = vld [vmem:[%s15206_s7 + $0xe0] sm:$0xff]  ;;  %v5068_v44 = vld [vmem:[%s15206_s7 + $0x58] sm:$0xff] }
 0x3fe   : > { %8634 = vmatprep.subr.mxu1 %v4354_v1  ;;  %8669 = vmatpush3.msra.mxu0 %v4372_v4  ;;  %v4400_v1 = vld [vmem:[%s15204_s5 + $0x420] sm:$0xff]  ;;  %v4476_v4 = vrot.slane %v12696_v5, 6  ;;  %v5080_v5 = vld [vmem:[%s15206_s7 + $0xb8] sm:$0xff] }
 0x3ff   : > { %4658 = vmatprep.mubr.f32.mxu0 %v4491_v50  ;;  %8635 = vmatpush3.msra.mxu1 %v4338_v41  ;;  %v12730_v39 = vsel %vm12431_vm14, %v8162_v32, %v4466_v12  ;;  %v4463_v43 = vsel %vm12423_vm13, %v8161_v15, %v4462_v40  ;;  %v4398_v50 = vld [vmem:[%s15204_s5 + $0x410] sm:$0xff]  ;;  %v4397_v41 = vld [vmem:[%s15204_s5 + $0x408] sm:$0xff] }
 0x400   : > { %8670 = vmatprep.subr.mxu0 %v4387_v42  ;;  %4659 = vmatmul.mubr.f32.gmra.mxu0 %v12642_v61  ;;  %v4499_v8 = vcombine.low %v12626_v14, %v12730_v39  ;;  %v4495_v11 = vcombine.low %v12592_v2, %v4463_v43  ;;  %v4407_v2 = vld [vmem:[%s15204_s5 + $0x458] sm:$0xff]  ;;  %v4477_v42 = vsel %vm12431_vm14, %v8164_v58, %v4476_v4  ;;  %v5063_v12 = vld [vmem:[%s15206_s7 + $0x30] sm:$0xff] }
 0x401   : > { %8636 = vmatprep.subr.mxu1 %v4353_v51  ;;  %8671 = vmatpush3.msra.mxu0 %v4371_v52  ;;  %v4399_v14 = vld [vmem:[%s15204_s5 + $0x418] sm:$0xff]  ;;  %v4506_v51 = vcombine.low %v12730_v39, %v4477_v42  ;;  %v4891_v52 = vld [vmem:[%s15210_s11] sm:$0xff] }
 0x402   : > { %8637 = vmatpush3.msra.mxu1 %v4337_v6  ;;  %8672 = vmatprep.subr.mxu0 %v4386_v38  ;;  %v5072_v6 = vld [vmem:[%s15206_s7 + $0x78] sm:$0xff]  ;;  %v5087_v38 = vld [vmem:[%s15206_s7 + $0xf0] sm:$0xff] }
 0x403   : > { %4803 = vmatprep.mubr.f32.mxu0 %v4483_v53  ;;  %8638 = vmatprep.subr.mxu1 %v4352_v33  ;;  %v4504_v53 = vcombine.low %v4463_v43, %v4473_v47  ;;  %v5071_v33 = vld [vmem:[%s15206_s7 + $0x70] sm:$0xff]  ;;  %v8165_v43 = vld [vmem:[%s15205_s6] ss:$0 sm:$0xff] }
 0x404   : > { %8673 = vmatpush3.msra.mxu0 %v4370_v20  ;;  %8639 = vmatpush3.msra.mxu1 %v4336_v29  ;;  %v5086_v20 = vld [vmem:[%s15206_s7 + $0xe8] sm:$0xff] }
 0x405   : > { %8674 = vmatprep.subr.mxu0 %v4385_v59  ;;  %8640 = vmatprep.subr.mxu1 %v4351_v26  ;;  %v5070_v29 = vld [vmem:[%s15206_s7 + $0x68] sm:$0xff]  ;;  %v5069_v59 = vld [vmem:[%s15206_s7 + $0x60] sm:$0xff]  ;;  %v5084_v26 = vld [vmem:[%s15206_s7 + $0xd8] sm:$0xff] }
 0x406   : > { %8675 = vmatpush3.msra.mxu0 %v4369_v57  ;;  %8641 = vmatpush3.msra.mxu1 %v4335_v62  ;;  %v5083_v57 = vld [vmem:[%s15206_s7 + $0xd0] sm:$0xff] }
 0x407   : > { %8676 = vmatprep.subr.mxu0 %v4384_v10  ;;  %8642 = vmatprep.subr.mxu1 %v4350_v46  ;;  %v5067_v62 = vld [vmem:[%s15206_s7 + $0x50] sm:$0xff]  ;;  %v5082_v10 = vld [vmem:[%s15206_s7 + $0xc8] sm:$0xff] }
 0x408   : > { %8677 = vmatpush3.msra.mxu0 %v4368_v49  ;;  %8643 = vmatpush3.msra.mxu1 %v4334_v17  ;;  %v5066_v46 = vld [vmem:[%s15206_s7 + $0x48] sm:$0xff]  ;;  %v5081_v49 = vld [vmem:[%s15206_s7 + $0xc0] sm:$0xff] }
 0x409   : > { %8678 = vmatprep.subr.mxu0 %v4383_v48  ;;  %8644 = vmatprep.subr.mxu1 %v4349_v30  ;;  %v5065_v17 = vld [vmem:[%s15206_s7 + $0x40] sm:$0xff]  ;;  %v5064_v48 = vld [vmem:[%s15206_s7 + $0x38] sm:$0xff]  ;;  %v5079_v30 = vld [vmem:[%s15206_s7 + $0xb0] sm:$0xff] }
 0x40a   : > { %8679 = vmatpush3.msra.mxu0 %v4367_v22  ;;  %8645 = vmatpush3.msra.mxu1 %v4333_v21  ;;  %v5078_v22 = vld [vmem:[%s15206_s7 + $0xa8] sm:$0xff] }
 0x40b   : > { %8680 = vmatprep.subr.mxu0 %v4382_v23  ;;  %8646 = vmatprep.subr.mxu1 %v4348_v63  ;;  %v5062_v21 = vld [vmem:[%s15206_s7 + $0x28] sm:$0xff] }
 0x40c   : > { %8681 = vmatpush3.msra.mxu0 %v4366_v13  ;;  %8647 = vmatpush3.msra.mxu1 %v4332_v55 }
 0x40d   : > { %8682 = vmatprep.subr.mxu0 %v4381_v3  ;;  %4729 = vmatmul.mubr.f32.vlgmr.msra.gmra.mxu1 %v4494_v16 }
 0x40e   : > { %8683 = vmatpush3.msra.mxu0 %v4365_v18  ;;  %9180 = vmatprep.subr.mxu1 %v4411_v35 }
 0x40f   : > { %4733 = vmatprep.mubr.f32.mxu1 %v4499_v8  ;;  %8684 = vmatprep.subr.mxu0 %v4380_v45 }
 0x410   : > { %9181 = vmatpush3.msra.mxu1 %v4411_v35  ;;  %8685 = vmatpush3.msra.mxu0 %v4364_v37 }
 0x411   : > { %9182 = vmatprep.subr.mxu1 %v4410_v9  ;;  %4804 = vmatmul.mubr.f32.vlgmr.msra.gmra.mxu0 %v12616_v31  ;;  %v4402_v31 = vld [vmem:[%s15204_s5 + $0x430] sm:$0xff] }
 0x412   : > { %9183 = vmatpush3.msra.mxu1 %v4410_v9  ;;  %4808 = vmatprep.mubr.f32.mxu0 %v4504_v53 }
 0x413   : > { %4734 = vmatmul.mubr.f32.gmra.mxu1 %v4495_v11  ;;  %9184 = vmatprep.subr.mxu1 %v4409_v25 }
 0x414   : > { %9185 = vmatpush3.msra.mxu1 %v4409_v25  ;;  %9212 = vmatprep.mubr.f32.mxu1 %v12642_v61  ;;  %v4396_v61 = vld [vmem:[%s15204_s5 + $0x400] sm:$0xff] }
 0x415   : > { %9186 = vmatprep.subr.mxu1 %v4408_v34  ;;  %4809 = vmatmul.mubr.f32.gmra.mxu0 %v4502_v36 }
 0x416   : > { %9187 = vmatpush3.msra.mxu1 %v4408_v34  ;;  %8720 = vmatprep.subr.mxu0 %v5088_v24  ;;  %v5104_v24 = vld [vmem:[%s15206_s7 + $0x178] sm:$0xff] }
 0x417   : > { %9188 = vmatprep.subr.mxu1 %v4407_v2  ;;  %8721 = vmatpush3.msra.mxu0 %v5072_v6  ;;  %v5119_v6 = vld [vmem:[%s15206_s7 + $0x1f0] sm:$0xff] }
 0x418   : > { %9189 = vmatpush3.msra.mxu1 %v4407_v2  ;;  %8722 = vmatprep.subr.mxu0 %v5087_v38  ;;  %v5103_v38 = vld [vmem:[%s15206_s7 + $0x170] sm:$0xff] }
 0x419   : > { %9190 = vmatprep.subr.mxu1 %v4406_v60  ;;  %8723 = vmatpush3.msra.mxu0 %v5071_v33  ;;  %v4894_v33 = vld [vmem:[%s15210_s11 + $0x18] sm:$0xff] }
 0x41a   : > { %9191 = vmatpush3.msra.mxu1 %v4406_v60  ;;  %8724 = vmatprep.subr.mxu0 %v5086_v20  ;;  %v5118_v20 = vld [vmem:[%s15206_s7 + $0x1e8] sm:$0xff] }
 0x41b   : > { %9192 = vmatprep.subr.mxu1 %v4405_v19  ;;  %8725 = vmatpush3.msra.mxu0 %v5070_v29  ;;  %v4895_v29 = vld [vmem:[%s15210_s11 + $0x20] sm:$0xff] }
 0x41c   : > { %9193 = vmatpush3.msra.mxu1 %v4405_v19  ;;  %8726 = vmatprep.subr.mxu0 %v5085_v27  ;;  %v5102_v27 = vld [vmem:[%s15206_s7 + $0x168] sm:$0xff] }
 0x41d   : > { %9194 = vmatprep.subr.mxu1 %v4404_v7  ;;  %8727 = vmatpush3.msra.mxu0 %v5069_v59  ;;  %v5117_v59 = vld [vmem:[%s15206_s7 + $0x1e0] sm:$0xff] }
 0x41e   : > { %9195 = vmatpush3.msra.mxu1 %v4404_v7  ;;  %8728 = vmatprep.subr.mxu0 %v5084_v26  ;;  %v5101_v26 = vld [vmem:[%s15206_s7 + $0x160] sm:$0xff] }
 0x41f   : > { %9196 = vmatprep.subr.mxu1 %v4403_v54  ;;  %8729 = vmatpush3.msra.mxu0 %v5068_v44  ;;  %v4896_v44 = vld [vmem:[%s15210_s11 + $0x28] sm:$0xff] }
 0x420   : > { %9197 = vmatpush3.msra.mxu1 %v4403_v54  ;;  %8730 = vmatprep.subr.mxu0 %v5083_v57  ;;  %v5116_v57 = vld [vmem:[%s15206_s7 + $0x1d8] sm:$0xff] }
 0x421   : > { %9198 = vmatprep.subr.mxu1 %v4402_v31  ;;  %8731 = vmatpush3.msra.mxu0 %v5067_v62  ;;  %v4897_v62 = vld [vmem:[%s15210_s11 + $0x30] sm:$0xff] }
 0x422   : > { %9199 = vmatpush3.msra.mxu1 %v4402_v31  ;;  %8732 = vmatprep.subr.mxu0 %v5082_v10  ;;  %v5100_v10 = vld [vmem:[%s15206_s7 + $0x158] sm:$0xff] }
 0x423   : > { %9200 = vmatprep.subr.mxu1 %v4401_v28  ;;  %8733 = vmatpush3.msra.mxu0 %v5066_v46  ;;  %v5115_v46 = vld [vmem:[%s15206_s7 + $0x1d0] sm:$0xff] }
 0x424   : > { %9201 = vmatpush3.msra.mxu1 %v4401_v28  ;;  %8734 = vmatprep.subr.mxu0 %v5081_v49  ;;  %v5099_v49 = vld [vmem:[%s15206_s7 + $0x150] sm:$0xff] }
 0x425   : > { %9202 = vmatprep.subr.mxu1 %v4400_v1  ;;  %8735 = vmatpush3.msra.mxu0 %v5065_v17  ;;  %v4898_v17 = vld [vmem:[%s15210_s11 + $0x38] sm:$0xff] }
 0x426   : > { %9203 = vmatpush3.msra.mxu1 %v4400_v1  ;;  %8736 = vmatprep.subr.mxu0 %v5080_v5  ;;  %v5114_v5 = vld [vmem:[%s15206_s7 + $0x1c8] sm:$0xff] }
 0x427   : > { %9204 = vmatprep.subr.mxu1 %v4399_v14  ;;  %8737 = vmatpush3.msra.mxu0 %v5064_v48  ;;  %v5098_v48 = vld [vmem:[%s15206_s7 + $0x148] sm:$0xff] }
 0x428   : > { %9205 = vmatpush3.msra.mxu1 %v4399_v14  ;;  %8738 = vmatprep.subr.mxu0 %v5079_v30  ;;  %v5113_v30 = vld [vmem:[%s15206_s7 + $0x1c0] sm:$0xff] }
 0x429   : > { %9206 = vmatprep.subr.mxu1 %v4398_v50  ;;  %8739 = vmatpush3.msra.mxu0 %v5063_v12  ;;  %v5097_v12 = vld [vmem:[%s15206_s7 + $0x140] sm:$0xff] }
 0x42a   : > { %9207 = vmatpush3.msra.mxu1 %v4398_v50  ;;  %8740 = vmatprep.subr.mxu0 %v5078_v22  ;;  %v5112_v22 = vld [vmem:[%s15206_s7 + $0x1b8] sm:$0xff] }
 0x42b   : > { %9208 = vmatprep.subr.mxu1 %v4397_v41  ;;  %8741 = vmatpush3.msra.mxu0 %v5062_v21  ;;  %v5096_v21 = vld [vmem:[%s15206_s7 + $0x138] sm:$0xff] }
 0x42c   : > { %9209 = vmatpush3.msra.mxu1 %v4397_v41 }
 0x42d   : > { %9210 = vmatprep.subr.mxu1 %v4396_v61 }
 0x42e   : > { %9211 = vmatpush3.msra.mxu1 %v4396_v61  ;;  %v4892_v61 = vld [vmem:[%s15210_s11 + $0x8] sm:$0xff] }
 0x42f   : > { %9213 = vmatmul.mubr.f32.vlgmr.msra.gmra.mxu1 %v4506_v51  ;;  %v5120_v51 = vld [vmem:[%s15206_s7 + $0x1f8] sm:$0xff] }
 0x430   : > { %9219 = vmatprep.mubr.msk.f32.mxu1 %vm4899_vm15, %v4891_v52  ;;  %v4893_v52 = vld [vmem:[%s15210_s11 + $0x10] sm:$0xff] }
 0x4ab   : > { %v8572_v23 = vpop.f32.mrf.mxu1 }
 0x4ad   : > { %v8573_v63 = vpop.f32.mrf.mxu1  ;;  %v8610_v32 = vpop.f32.mrf.mxu0 }
 0x4ae   : > { %v8574_v45 = vadd.f32 %v8573_v63, %v8572_v23  ;;  %v5111_v23 = vld [vmem:[%s15206_s7 + $0x1b0] sm:$0xff] }
 0x4af   : > { %v8611_v13 = vpop.f32.mrf.mxu0  ;;  %v5095_v63 = vld [vmem:[%s15206_s7 + $0x130] sm:$0xff] }
 0x4b0   : > { %v4581_v53 = vadd.f32 %v8574_v45, %v8165_v43  ;;  %v8612_v25 = vadd.f32 %v8611_v13, %v8610_v32  ;;  %v5077_v32 = vld [vmem:[%s15206_s7 + $0xa0] sm:$0xff]  ;;  %v5074_v45 = vld [vmem:[%s15206_s7 + $0x88] sm:$0xff] }
 0x4b1   : > { %8742 = vmatprep.subr.mxu0 %v5077_v32  ;;  %v5061_v13 = vld [vmem:[%s15206_s7 + $0x20] sm:$0xff] }
 0x4b2   : > { %v4656_v60 = vadd.f32 %v8612_v25, %v4581_v53  ;;  %8743 = vmatpush3.msra.mxu0 %v5061_v13  ;;  %v5106_v53 = vld [vmem:[%s15206_s7 + $0x188] sm:$0xff]  ;;  %v5057_v25 = vld [vmem:[%s15206_s7] sm:$0xff] }
 0x4bc   : > { %v8575_v40 = vpop.f32.mrf.mxu1 }
 0x4be   : > { %v8576_v55 = vpop.f32.mrf.mxu1 }
 0x4bf   : > { %v8577_v35 = vadd.f32 %v8576_v55, %v8575_v40  ;;  %v5110_v40 = vld [vmem:[%s15206_s7 + $0x1a8] sm:$0xff] }
 0x4c0   : > { %v8613_v0 = vpop.f32.mrf.mxu0  ;;  %v5094_v55 = vld [vmem:[%s15206_s7 + $0x128] sm:$0xff] }
 0x4c1   : > { %v4586_v47 = vadd.f32 %v8577_v35, %v8165_v43  ;;  %v5092_v35 = vld [vmem:[%s15206_s7 + $0x118] sm:$0xff]  ;;  %v5107_v43 = vld [vmem:[%s15206_s7 + $0x190] sm:$0xff] }
 0x4c2   : > { %v8614_v3 = vpop.f32.mrf.mxu0 }
 0x4c3   : > { %v8615_v9 = vadd.f32 %v8614_v3, %v8613_v0  ;;  %v5076_v0 = vld [vmem:[%s15206_s7 + $0x98] sm:$0xff] }
 0x4c4   : > { %8744 = vmatprep.subr.mxu0 %v5076_v0  ;;  %v5060_v3 = vld [vmem:[%s15206_s7 + $0x18] sm:$0xff] }
 0x4c5   : > { %v4661_v36 = vadd.f32 %v8615_v9, %v4586_v47  ;;  %8745 = vmatpush3.msra.mxu0 %v5060_v3  ;;  %v13017_v47 = vld [vmem:[#allocation3 + $0x8] sm:$0x3]  ;;  %v5073_v9 = vld [vmem:[%s15206_s7 + $0x80] sm:$0xff] }
 0x4c6   : > { %v5251_v32 = vrot.slane %v13017_v47, 2 }
 0x4cd   : > { %v8648_v56 = vpop.f32.mrf.mxu1 }
 0x4cf   : > { %v8649_v39 = vpop.f32.mrf.mxu1 }
 0x4d0   : > { %v8650_v2 = vadd.f32 %v8649_v39, %v8648_v56  ;;  %v5109_v56 = vld [vmem:[%s15206_s7 + $0x1a0] sm:$0xff] }
 0x4d1   : > { %v8686_v15 = vpop.f32.mrf.mxu0  ;;  %v5093_v39 = vld [vmem:[%s15206_s7 + $0x120] sm:$0xff] }
 0x4d2   : > { %v4731_v54 = vadd.f32 %v8650_v2, %v4656_v60  ;;  %v5090_v2 = vld [vmem:[%s15206_s7 + $0x108] sm:$0xff] }
 0x4d3   : > { %v8651_v16 = vpop.f32.mrf.mxu1  ;;  %v8687_v18 = vpop.f32.mrf.mxu0 }
 0x4d4   : > { %v8688_v31 = vadd.f32 %v8687_v18, %v8686_v15  ;;  %v5075_v15 = vld [vmem:[%s15206_s7 + $0x90] sm:$0xff] }
 0x4d5   : > { %v8652_v8 = vpop.f32.mrf.mxu1  ;;  %v8689_v37 = vpop.f32.mrf.mxu0  ;;  %v5059_v18 = vld [vmem:[%s15206_s7 + $0x10] sm:$0xff]  ;;  %8746 = vmatprep.subr.mxu0 %v5075_v15 }
 0x4d6   : > { %v8653_v11 = vadd.f32 %v8652_v8, %v8651_v16  ;;  %v4806_v58 = vadd.f32 %v8688_v31, %v4731_v54  ;;  %v5108_v16 = vld [vmem:[%s15206_s7 + $0x198] sm:$0xff]  ;;  %v5058_v8 = vld [vmem:[%s15206_s7 + $0x8] sm:$0xff]  ;;  %8747 = vmatpush3.msra.mxu0 %v5059_v18 }
 0x4d7   : > { %v8690_v34 = vpop.f32.mrf.mxu0  ;;  %8748 = vmatprep.subr.mxu0 %v5074_v45  ;;  %v5152_v54 = vld [vmem:[%s15206_s7 + $0x2f8] sm:$0xff] }
 0x4d8   : > { %v4736_v19 = vadd.f32 %v8653_v11, %v4661_v36  ;;  %v8691_v7 = vadd.f32 %v8690_v34, %v8689_v37  ;;  %v5091_v37 = vld [vmem:[%s15206_s7 + $0x110] sm:$0xff]  ;;  %v13028_v11 = vld [vmem:[#allocation2] sm:$0xff]  ;;  %v5219_v36 = vrot.slane %v13017_v47, 1  ;;  %8749 = vmatpush3.msra.mxu0 %v5058_v8  ;;  %v5136_v31 = vld [vmem:[%s15206_s7 + $0x278] sm:$0xff] }
 0x4d9   : > { %v5218_v34 = vrot.slane %v13028_v11, 1  ;;  %8750 = vmatprep.subr.mxu0 %v5073_v9  ;;  %v5183_v8 = vld [vmem:[%s15206_s7 + $0x3f0] sm:$0xff] }
 0x4da   : > { %v4811_v28 = vadd.f32 %v8691_v7, %v4736_v19  ;;  %v5105_v19 = vld [vmem:[%s15206_s7 + $0x180] sm:$0xff]  ;;  %8751 = vmatpush3.msra.mxu0 %v5057_v25  ;;  %v5167_v47 = vld [vmem:[%s15206_s7 + $0x370] sm:$0xff] }
 0x4db   : > { %v5220_v60 = vsel %vm833_vm0, %v5218_v34, %v5219_v36  ;;  %v5089_v7 = vld [vmem:[%s15206_s7 + $0x100] sm:$0xff]  ;;  %8832 = vmatprep.subr.mxu0 %v5152_v54  ;;  %v5182_v36 = vld [vmem:[%s15206_s7 + $0x3e8] sm:$0xff] }
 0x4dc   : > { %5372 = vmatprep.mubr.f32.mxu0 %v5220_v60 }
 0x4dd   : > { %5373 = vmatmul.mubr.f32.vlgmr.msra.gmra.mxu0 %v13028_v11 }
 0x4de   : > { %8833 = vmatpush3.msra.mxu0 %v5136_v31  ;;  %v5166_v31 = vld [vmem:[%s15206_s7 + $0x368] sm:$0xff] }
 0x4ef   : > { %v9214_v1 = vpop.f32.mrf.mxu1 }
 0x4f0   : > { %v4886_v14 = vadd.f32 %v9214_v1, %v4811_v28  ;;  %v5184_v28 = vld [vmem:[%s15206_s7 + $0x3f8] sm:$0xff]  ;;  %v5151_v1 = vld [vmem:[%s15206_s7 + $0x2f0] sm:$0xff] }
 0x4f1   : > { %v4880_v4 = vpop.f32.mrf.mxu1  ;;  %8834 = vmatprep.subr.mxu0 %v5151_v1 }
 0x4f2   : > { %v4890_v50 = vmax.f32 %v4886_v14, 0.0  ;;  %v4881_v41 = vadd.f32 %v4880_v4, %v4806_v58  ;;  %v5135_v14 = vld [vmem:[%s15206_s7 + $0x270] sm:$0xff]  ;;  %v5150_v58 = vld [vmem:[%s15206_s7 + $0x2e8] sm:$0xff] }
 0x4f3   : > { %8835 = vmatpush3.msra.mxu0 %v5135_v14  ;;  %v5134_v4 = vld [vmem:[%s15206_s7 + $0x268] sm:$0xff]  ;;  %v5181_v14 = vld [vmem:[%s15206_s7 + $0x3e0] sm:$0xff] }
 0x4f4   : > { %v4889_v42 = vmax.f32 %v4881_v41, 0.0  ;;  %9215 = vmatprep.subr.mxu1 %v4890_v50  ;;  %8836 = vmatprep.subr.mxu0 %v5150_v58  ;;  %v5133_v41 = vld [vmem:[%s15206_s7 + $0x260] sm:$0xff] }
 0x4f5   : > { %9216 = vmatpush3.msra.mxu1 %v4890_v50  ;;  %8837 = vmatpush3.msra.mxu0 %v5134_v4  ;;  %v5149_v50 = vld [vmem:[%s15206_s7 + $0x2e0] sm:$0xff] }
 0x4f6   : > { %9217 = vmatprep.subr.mxu1 %v4889_v42  ;;  %8838 = vmatprep.subr.mxu0 %v5149_v50 }
 0x4f7   : > { %9218 = vmatpush3.msra.mxu1 %v4889_v42  ;;  %8839 = vmatpush3.msra.mxu0 %v5133_v41  ;;  %v5148_v42 = vld [vmem:[%s15206_s7 + $0x2d8] sm:$0xff] }
 0x4f8   : > { %9220 = vmatmul.mubr.msk.f32.vlgmr.msra.gmra.mxu1 %vm4899_vm15, %v4892_v61  ;;  %8776 = vmatprep.subr.mxu1 %v5120_v51  ;;  %v5132_v61 = vld [vmem:[%s15206_s7 + $0x258] sm:$0xff]  ;;  %v5147_v51 = vld [vmem:[%s15206_s7 + $0x2d0] sm:$0xff] }
 0x4f9   : > { %9222 = vmatprep.mubr.msk.f32.mxu1 %vm4899_vm15, %v4893_v52  ;;  %8777 = vmatpush3.msra.mxu1 %v5104_v24  ;;  %v5131_v52 = vld [vmem:[%s15206_s7 + $0x250] sm:$0xff]  ;;  %v5146_v24 = vld [vmem:[%s15206_s7 + $0x2c8] sm:$0xff] }
 0x4fa   : > { %8778 = vmatprep.subr.mxu1 %v5119_v6  ;;  %8840 = vmatprep.subr.mxu0 %v5148_v42  ;;  %v5130_v6 = vld [vmem:[%s15206_s7 + $0x248] sm:$0xff]  ;;  %v5165_v42 = vld [vmem:[%s15206_s7 + $0x360] sm:$0xff] }
 0x4fb   : > { %8779 = vmatpush3.msra.mxu1 %v5103_v38  ;;  %8841 = vmatpush3.msra.mxu0 %v5132_v61  ;;  %v5145_v38 = vld [vmem:[%s15206_s7 + $0x2c0] sm:$0xff] }
 0x4fc   : > { %9223 = vmatmul.mubr.msk.f32.gmra.mxu1 %vm4899_vm15, %v4894_v33  ;;  %8780 = vmatprep.subr.mxu1 %v5118_v20  ;;  %v5129_v33 = vld [vmem:[%s15206_s7 + $0x240] sm:$0xff]  ;;  %v5144_v20 = vld [vmem:[%s15206_s7 + $0x2b8] sm:$0xff] }
 0x4fd   : > { %9225 = vmatprep.mubr.msk.f32.mxu1 %vm4899_vm15, %v4895_v29  ;;  %8781 = vmatpush3.msra.mxu1 %v5102_v27  ;;  %v5128_v29 = vld [vmem:[%s15206_s7 + $0x238] sm:$0xff]  ;;  %v5143_v27 = vld [vmem:[%s15206_s7 + $0x2b0] sm:$0xff] }
 0x4fe   : > { %8782 = vmatprep.subr.mxu1 %v5117_v59  ;;  %8842 = vmatprep.subr.mxu0 %v5147_v51  ;;  %v5127_v59 = vld [vmem:[%s15206_s7 + $0x230] sm:$0xff]  ;;  %v5180_v51 = vld [vmem:[%s15206_s7 + $0x3d8] sm:$0xff] }
 0x4ff   : > { %8783 = vmatpush3.msra.mxu1 %v5101_v26  ;;  %8843 = vmatpush3.msra.mxu0 %v5131_v52  ;;  %v5142_v26 = vld [vmem:[%s15206_s7 + $0x2a8] sm:$0xff] }
 0x500   : > { %9226 = vmatmul.mubr.msk.f32.gmra.mxu1 %vm4899_vm15, %v4896_v44  ;;  %8784 = vmatprep.subr.mxu1 %v5116_v57  ;;  %v5126_v44 = vld [vmem:[%s15206_s7 + $0x228] sm:$0xff]  ;;  %v5141_v57 = vld [vmem:[%s15206_s7 + $0x2a0] sm:$0xff] }
 0x501   : > { %9228 = vmatprep.mubr.msk.f32.mxu1 %vm4899_vm15, %v4897_v62  ;;  %8785 = vmatpush3.msra.mxu1 %v5100_v10  ;;  %v5125_v62 = vld [vmem:[%s15206_s7 + $0x220] sm:$0xff]  ;;  %v5140_v10 = vld [vmem:[%s15206_s7 + $0x298] sm:$0xff] }
 0x502   : > { %8786 = vmatprep.subr.mxu1 %v5115_v46  ;;  %8844 = vmatprep.subr.mxu0 %v5146_v24  ;;  %v5124_v46 = vld [vmem:[%s15206_s7 + $0x218] sm:$0xff] }
 0x503   : > { %8787 = vmatpush3.msra.mxu1 %v5099_v49  ;;  %8845 = vmatpush3.msra.mxu0 %v5130_v6  ;;  %v5139_v49 = vld [vmem:[%s15206_s7 + $0x290] sm:$0xff]  ;;  %v5164_v6 = vld [vmem:[%s15206_s7 + $0x358] sm:$0xff] }
 0x504   : > { %9229 = vmatmul.mubr.msk.f32.gmra.mxu1 %vm4899_vm15, %v4898_v17  ;;  %8788 = vmatprep.subr.mxu1 %v5114_v5  ;;  %v5123_v17 = vld [vmem:[%s15206_s7 + $0x210] sm:$0xff]  ;;  %v5138_v5 = vld [vmem:[%s15206_s7 + $0x288] sm:$0xff] }
 0x505   : > { %8789 = vmatpush3.msra.mxu1 %v5098_v48  ;;  %8846 = vmatprep.subr.mxu0 %v5145_v38  ;;  %v5122_v48 = vld [vmem:[%s15206_s7 + $0x208] sm:$0xff] }
 0x506   : > { %8790 = vmatprep.subr.mxu1 %v5113_v30  ;;  %8847 = vmatpush3.msra.mxu0 %v5129_v33  ;;  %v5137_v30 = vld [vmem:[%s15206_s7 + $0x280] sm:$0xff] }
 0x507   : > { %8791 = vmatpush3.msra.mxu1 %v5097_v12  ;;  %8848 = vmatprep.subr.mxu0 %v5144_v20  ;;  %v5121_v12 = vld [vmem:[%s15206_s7 + $0x200] sm:$0xff] }
 0x508   : > { %8792 = vmatprep.subr.mxu1 %v5112_v22  ;;  %8849 = vmatpush3.msra.mxu0 %v5128_v29  ;;  %v5179_v29 = vld [vmem:[%s15206_s7 + $0x3d0] sm:$0xff] }
 0x509   : > { %8793 = vmatpush3.msra.mxu1 %v5096_v21  ;;  %8850 = vmatprep.subr.mxu0 %v5143_v27 }
 0x50a   : > { %8794 = vmatprep.subr.mxu1 %v5111_v23  ;;  %8851 = vmatpush3.msra.mxu0 %v5127_v59 }
 0x50b   : > { %8795 = vmatpush3.msra.mxu1 %v5095_v63  ;;  %8852 = vmatprep.subr.mxu0 %v5142_v26  ;;  %v5250_v63 = vrot.slane %v13028_v11, 2  ;;  %v5163_v26 = vld [vmem:[%s15206_s7 + $0x350] sm:$0xff] }
 0x50c   : > { %8796 = vmatprep.subr.mxu1 %v5110_v40  ;;  %8853 = vmatpush3.msra.mxu0 %v5126_v44 }
 0x50d   : > { %8797 = vmatpush3.msra.mxu1 %v5094_v55  ;;  %8854 = vmatprep.subr.mxu0 %v5141_v57 }
 0x50e   : > { %8798 = vmatprep.subr.mxu1 %v5109_v56  ;;  %8855 = vmatpush3.msra.mxu0 %v5125_v62  ;;  %v5252_v56 = vsel %vm946_vm1, %v5250_v63, %v5251_v32  ;;  %v5178_v62 = vld [vmem:[%s15206_s7 + $0x3c8] sm:$0xff] }
 0x50f   : > { %8799 = vmatpush3.msra.mxu1 %v5093_v39  ;;  %8856 = vmatprep.subr.mxu0 %v5140_v10  ;;  %v5168_v39 = vld [vmem:[%s15206_s7 + $0x378] sm:$0xff] }
 0x510   : > { %8800 = vmatprep.subr.mxu1 %v5108_v16  ;;  %8857 = vmatpush3.msra.mxu0 %v5124_v46  ;;  %v5162_v46 = vld [vmem:[%s15206_s7 + $0x348] sm:$0xff] }
 0x511   : > { %8801 = vmatpush3.msra.mxu1 %v5092_v35  ;;  %8858 = vmatprep.subr.mxu0 %v5139_v49 }
 0x512   : > { %8802 = vmatprep.subr.mxu1 %v5107_v43  ;;  %8859 = vmatpush3.msra.mxu0 %v5123_v17  ;;  %v5177_v17 = vld [vmem:[%s15206_s7 + $0x3c0] sm:$0xff] }
 0x513   : > { %8803 = vmatpush3.msra.mxu1 %v5091_v37  ;;  %8860 = vmatprep.subr.mxu0 %v5138_v5 }
 0x514   : > { %8804 = vmatprep.subr.mxu1 %v5106_v53  ;;  %8861 = vmatpush3.msra.mxu0 %v5122_v48 }
 0x515   : > { %8805 = vmatpush3.msra.mxu1 %v5090_v2  ;;  %8862 = vmatprep.subr.mxu0 %v5137_v30 }
 0x516   : > { %8806 = vmatprep.subr.mxu1 %v5105_v19  ;;  %8863 = vmatpush3.msra.mxu0 %v5121_v12 }
 0x517   : > { %8807 = vmatpush3.msra.mxu1 %v5089_v7  ;;  %6738 = vmatprep.subr.mxu0 %v13028_v11 }
 0x518   : > { %8888 = vmatprep.subr.mxu1 %v5184_v28 }
 0x5b8   : > { %v9221_v22 = vpop.f32.mrf.mxu1 }
 0x5b9   : > { %5030 = vst [vmem:[#allocation3 + $0x21] sm:$0xff] %v9221_v22  ;;  %v5161_v22 = vld [vmem:[%s15206_s7 + $0x340] sm:$0xff] }
 0x5ba   : > { %v4990_v21 = vpop.f32.mrf.mxu1 }
 0x5bb   : > { %5029 = vst [vmem:[#allocation3 + $0x11] sm:$0xff] %v4990_v21 }
 0x5bc   : > { %v9224_v23 = vpop.f32.mrf.mxu1 }
 0x5bd   : > { %5032 = vst [vmem:[#allocation3 + $0x41] sm:$0xff] %v9224_v23  ;;  %v5176_v23 = vld [vmem:[%s15206_s7 + $0x3b8] sm:$0xff] }
 0x5be   : > { %v5000_v40 = vpop.f32.mrf.mxu1 }
 0x5bf   : > { %5031 = vst [vmem:[#allocation3 + $0x31] sm:$0xff] %v5000_v40 }
 0x5c0   : > { %v13147_v13 = vld [vmem:[#allocation3 + $0x20] sm:$0xff]  ;;  %v9227_v55 = vpop.f32.mrf.mxu1  ;;  %v5042_v0 = vld [vmem:[#allocation3 + $0x28] sm:$0x3] }
 0x5c1   : > { %5034 = vst [vmem:[#allocation3 + $0x61] sm:$0xff] %v9227_v55  ;;  %v5224_v18 = vrot.slane %v13147_v13, 1  ;;  %v5225_v37 = vrot.slane %v5042_v0, 1  ;;  %v5256_v58 = vrot.slane %v13147_v13, 2  ;;  %v5257_v4 = vrot.slane %v5042_v0, 2  ;;  %v5160_v55 = vld [vmem:[%s15206_s7 + $0x338] sm:$0xff] }
 0x5c2   : > { %v5039_v3 = vld [vmem:[#allocation3 + $0x10] sm:$0xff]  ;;  %v5040_v15 = vld [vmem:[#allocation3 + $0x18] sm:$0x3]  ;;  %v5010_v16 = vpop.f32.mrf.mxu1 }
 0x5c3   : > { %v5253_v35 = vrot.slane %v5039_v3, 2  ;;  %5477 = vmatprep.mubr.f32.mxu1 %v5039_v3  ;;  %v5221_v45 = vrot.slane %v5039_v3, 1  ;;  %v5222_v43 = vrot.slane %v5040_v15, 1  ;;  %5033 = vst [vmem:[#allocation3 + $0x51] sm:$0xff] %v5010_v16  ;;  %v5254_v9 = vrot.slane %v5040_v15, 2 }
 0x5c4   : > { %5478 = vmatmul.mubr.f32.vlgmr.msra.gmra.mxu1 %v5252_v56  ;;  %v9230_v53 = vpop.f32.mrf.mxu1  ;;  %v13173_v7 = vsel %vm833_vm0, %v5224_v18, %v5225_v37  ;;  %v13188_v50 = vld [vmem:[#allocation3 + $0x40] sm:$0xff]  ;;  %v5046_v41 = vld [vmem:[#allocation3 + $0x48] sm:$0x3]  ;;  %v13211_v20 = vsel %vm946_vm1, %v5256_v58, %v5257_v4  ;;  %v5158_v37 = vld [vmem:[%s15206_s7 + $0x328] sm:$0xff] }
 0x5c5   : > { %5482 = vmatprep.mubr.f32.mxu1 %v13147_v13  ;;  %8889 = vmatpush3.msra.mxu1 %v5168_v39  ;;  %v13164_v25 = vsel %vm833_vm0, %v5221_v45, %v5222_v43  ;;  %5036 = vst [vmem:[#allocation3 + $0x81] sm:$0xff] %v9230_v53  ;;  %v13176_v54 = vsel %vm946_vm1, %v5253_v35, %v5254_v9  ;;  %v5230_v38 = vrot.slane %v13188_v50, 1  ;;  %v5231_v33 = vrot.slane %v5046_v41, 1  ;;  %v5175_v39 = vld [vmem:[%s15206_s7 + $0x3b0] sm:$0xff]  ;;  %v5174_v43 = vld [vmem:[%s15206_s7 + $0x3a8] sm:$0xff]  ;;  %v5173_v9 = vld [vmem:[%s15206_s7 + $0x3a0] sm:$0xff] }
 0x5c6   : > { %5377 = vmatprep.mubr.f32.mxu0 %v13164_v25  ;;  %8890 = vmatprep.subr.mxu1 %v5183_v8  ;;  %v13170_v2 = vld [vmem:[#allocation3 + $0x30] sm:$0xff]  ;;  %v5044_v60 = vld [vmem:[#allocation3 + $0x38] sm:$0x3]  ;;  %v5020_v19 = vpop.f32.mrf.mxu1  ;;  %v5262_v5 = vrot.slane %v13188_v50, 2  ;;  %v5263_v48 = vrot.slane %v5046_v41, 2  ;;  %v5159_v18 = vld [vmem:[%s15206_s7 + $0x330] sm:$0xff] }
 0x5c7   : > { %5378 = vmatmul.mubr.f32.gmra.mxu0 %v5039_v3  ;;  %8891 = vmatpush3.msra.mxu1 %v5167_v47  ;;  %v5227_v28 = vrot.slane %v13170_v2, 1  ;;  %v5228_v1 = vrot.slane %v5044_v60, 1  ;;  %5035 = vst [vmem:[#allocation3 + $0x71] sm:$0xff] %v5020_v19  ;;  %v5259_v27 = vrot.slane %v13170_v2, 2  ;;  %v5260_v59 = vrot.slane %v5044_v60, 2  ;;  %v5157_v60 = vld [vmem:[%s15206_s7 + $0x320] sm:$0xff] }
 0x5c8   : > { %5382 = vmatprep.mubr.f32.mxu0 %v13173_v7  ;;  %5483 = vmatmul.mubr.f32.gmra.mxu1 %v13176_v54  ;;  %v13229_v10 = vsel %vm833_vm0, %v5230_v38, %v5231_v33  ;;  %v13242_v30 = vld [vmem:[#allocation3 + $0x60] sm:$0xff]  ;;  %v5050_v12 = vld [vmem:[#allocation3 + $0x68] sm:$0x3]  ;;  %v13264_v3 = vsel %vm946_vm1, %v5262_v5, %v5263_v48  ;;  %v5169_v38 = vld [vmem:[%s15206_s7 + $0x380] sm:$0xff] }
 0x5c9   : > { %8892 = vmatprep.subr.mxu1 %v5182_v36  ;;  %5487 = vmatprep.mubr.f32.mxu1 %v13170_v2  ;;  %v13195_v61 = vsel %vm833_vm0, %v5227_v28, %v5228_v1  ;;  %v13236_v49 = vsel %vm946_vm1, %v5259_v27, %v5260_v59  ;;  %v5236_v0 = vrot.slane %v13242_v30, 1  ;;  %v5237_v56 = vrot.slane %v5050_v12, 1  ;;  %v5156_v28 = vld [vmem:[%s15206_s7 + $0x318] sm:$0xff]  ;;  %v5153_v33 = vld [vmem:[%s15206_s7 + $0x300] sm:$0xff]  ;;  %v5198_v27 = vld [vmem:[%s15206_s7 + $0x468] sm:$0xff] }
 0x5ca   : > { %8893 = vmatpush3.msra.mxu1 %v5166_v31  ;;  %v13200_v52 = vld [vmem:[#allocation3 + $0x50] sm:$0xff]  ;;  %v13202_v24 = vld [vmem:[#allocation3 + $0x58] sm:$0x3]  ;;  %v5268_v53 = vrot.slane %v13242_v30, 2  ;;  %v5269_v36 = vrot.slane %v5050_v12, 2  ;;  %v5172_v31 = vld [vmem:[%s15206_s7 + $0x398] sm:$0xff] }
 0x5cb   : > { %8894 = vmatprep.subr.mxu1 %v5181_v14  ;;  %5383 = vmatmul.mubr.f32.gmra.mxu0 %v13147_v13  ;;  %v5233_v44 = vrot.slane %v13200_v52, 1  ;;  %v5234_v57 = vrot.slane %v13202_v24, 1  ;;  %v5265_v15 = vrot.slane %v13200_v52, 2  ;;  %v5266_v16 = vrot.slane %v13202_v24, 2  ;;  %v5171_v14 = vld [vmem:[%s15206_s7 + $0x390] sm:$0xff]  ;;  %v5154_v24 = vld [vmem:[%s15206_s7 + $0x308] sm:$0xff] }
 0x5cc   : > { %8895 = vmatpush3.msra.mxu1 %v5165_v42  ;;  %5387 = vmatprep.mubr.f32.mxu0 %v13195_v61  ;;  %v13282_v8 = vsel %vm833_vm0, %v5236_v0, %v5237_v56  ;;  %v13312_v1 = vsel %vm946_vm1, %v5268_v53, %v5269_v36  ;;  %v13319_v41 = vld [vmem:[#allocation3 + $0x80] sm:$0xff]  ;;  %v5054_v59 = vld [vmem:[#allocation3 + $0x88] sm:$0x3]  ;;  %v5189_v5 = vld [vmem:[%s15206_s7 + $0x420] sm:$0xff] }
 0x5cd   : > { %5488 = vmatmul.mubr.f32.gmra.mxu1 %v13211_v20  ;;  %8896 = vmatprep.subr.mxu1 %v5180_v51  ;;  %v13249_v21 = vsel %vm833_vm0, %v5233_v44, %v5234_v57  ;;  %v13289_v47 = vsel %vm946_vm1, %v5265_v15, %v5266_v16  ;;  %v5155_v42 = vld [vmem:[%s15206_s7 + $0x310] sm:$0xff]  ;;  %v5170_v51 = vld [vmem:[%s15206_s7 + $0x388] sm:$0xff]  ;;  %v5284_v44 = vrot.slane %v13319_v41, 1  ;;  %v5285_v57 = vrot.slane %v5054_v59, 1  ;;  %v13441_v56 = vld [vmem:[%s15207_s8] ss:$0 sm:$0xff] }
 0x5ce   : > { %5492 = vmatprep.mubr.f32.mxu1 %v13188_v50  ;;  %8897 = vmatpush3.msra.mxu1 %v5164_v6  ;;  %v13255_v32 = vld [vmem:[#allocation3 + $0x70] sm:$0xff]  ;;  %v5052_v40 = vld [vmem:[#allocation3 + $0x78] sm:$0x3] }
 0x5cf   : > { %8898 = vmatprep.subr.mxu1 %v5179_v29  ;;  %5388 = vmatmul.mubr.f32.gmra.mxu0 %v13170_v2  ;;  %v5239_v35 = vrot.slane %v13255_v32, 1  ;;  %v5240_v45 = vrot.slane %v5052_v40, 1  ;;  %v5271_v58 = vrot.slane %v13255_v32, 2  ;;  %v5272_v4 = vrot.slane %v5052_v40, 2  ;;  %v5200_v29 = vld [vmem:[%s15206_s7 + $0x478] sm:$0xff] }
 0x5d0   : > { %8899 = vmatpush3.msra.mxu1 %v5163_v26  ;;  %5392 = vmatprep.mubr.f32.mxu0 %v13229_v10  ;;  %v5191_v26 = vld [vmem:[%s15206_s7 + $0x430] sm:$0xff]  ;;  %v5286_v48 = vsel %vm833_vm0, %v5284_v44, %v5285_v57  ;;  %v6293_v57 = vld [vmem:[%s15208_s9 + $0x60] sm:$0xff] }
 0x5d1   : > { %5493 = vmatmul.mubr.f32.gmra.mxu1 %v13236_v49  ;;  %8900 = vmatprep.subr.mxu1 %v5178_v62  ;;  %v13300_v19 = vsel %vm833_vm0, %v5239_v35, %v5240_v45  ;;  %v13333_v6 = vsel %vm946_vm1, %v5271_v58, %v5272_v4  ;;  %v5190_v62 = vld [vmem:[%s15206_s7 + $0x428] sm:$0xff] }
 0x5d2   : > { %5497 = vmatprep.mubr.f32.mxu1 %v13200_v52  ;;  %8901 = vmatpush3.msra.mxu1 %v5162_v46  ;;  %v5289_v46 = vrot.slane %v5054_v59, 2 }
 0x5d3   : > { %8902 = vmatprep.subr.mxu1 %v5177_v17  ;;  %5393 = vmatmul.mubr.f32.gmra.mxu0 %v13188_v50 }
 0x5d4   : > { %8903 = vmatpush3.msra.mxu1 %v5161_v22  ;;  %5397 = vmatprep.mubr.f32.mxu0 %v13249_v21 }
 0x5d5   : > { %5498 = vmatmul.mubr.f32.gmra.mxu1 %v13264_v3  ;;  %8904 = vmatprep.subr.mxu1 %v5176_v23  ;;  %v5186_v23 = vld [vmem:[%s15206_s7 + $0x408] sm:$0xff] }
 0x5d6   : > { %5502 = vmatprep.mubr.f32.mxu1 %v13242_v30  ;;  %8905 = vmatpush3.msra.mxu1 %v5160_v55 }
 0x5d7   : > { %8906 = vmatprep.subr.mxu1 %v5175_v39  ;;  %5398 = vmatmul.mubr.f32.gmra.mxu0 %v13200_v52 }
 0x5d8   : > { %8907 = vmatpush3.msra.mxu1 %v5159_v18  ;;  %5402 = vmatprep.mubr.f32.mxu0 %v13282_v8 }
 0x5d9   : > { %5503 = vmatmul.mubr.f32.gmra.mxu1 %v13289_v47  ;;  %8908 = vmatprep.subr.mxu1 %v5174_v43 }
 0x5da   : > { %5507 = vmatprep.mubr.f32.mxu1 %v13255_v32  ;;  %8909 = vmatpush3.msra.mxu1 %v5158_v37 }
 0x5db   : > { %8910 = vmatprep.subr.mxu1 %v5173_v9  ;;  %5403 = vmatmul.mubr.f32.gmra.mxu0 %v13242_v30 }
 0x5dc   : > { %8911 = vmatpush3.msra.mxu1 %v5157_v60  ;;  %5407 = vmatprep.mubr.f32.mxu0 %v13300_v19 }
 0x5dd   : > { %5508 = vmatmul.mubr.f32.gmra.mxu1 %v13312_v1  ;;  %8912 = vmatprep.subr.mxu1 %v5172_v31 }
 0x5de   : > { %5512 = vmatprep.mubr.f32.mxu1 %v13319_v41  ;;  %8913 = vmatpush3.msra.mxu1 %v5156_v28 }
 0x5df   : > { %8914 = vmatprep.subr.mxu1 %v5171_v14  ;;  %5408 = vmatmul.mubr.f32.gmra.mxu0 %v13255_v32 }
 0x5e0   : > { %8915 = vmatpush3.msra.mxu1 %v5155_v42  ;;  %5582 = vmatprep.mubr.f32.mxu0 %v13176_v54  ;;  %v5199_v54 = vld [vmem:[%s15206_s7 + $0x470] sm:$0xff] }
 0x5e1   : > { %5513 = vmatmul.mubr.f32.gmra.mxu1 %v13333_v6  ;;  %8916 = vmatprep.subr.mxu1 %v5170_v51 }
 0x5e2   : > { %8917 = vmatpush3.msra.mxu1 %v5154_v24  ;;  %5687 = vmatprep.mubr.f32.mxu1 %v13173_v7 }
 0x5e3   : > { %8918 = vmatprep.subr.mxu1 %v5169_v38  ;;  %5583 = vmatmul.mubr.f32.vlgmr.msra.gmra.mxu0 %v13164_v25  ;;  %v5197_v25 = vld [vmem:[%s15206_s7 + $0x460] sm:$0xff] }
 0x5e4   : > { %8919 = vmatpush3.msra.mxu1 %v5153_v33  ;;  %5587 = vmatprep.mubr.f32.mxu0 %v13211_v20 }
 0x5e5   : > { %5688 = vmatmul.mubr.f32.vlgmr.msra.gmra.mxu1 %v13147_v13  ;;  %9231 = vmatprep.subr.mxu1 %v5200_v29  ;;  %v5196_v13 = vld [vmem:[%s15206_s7 + $0x458] sm:$0xff] }
 0x5e6   : > { %5692 = vmatprep.mubr.f32.mxu1 %v13195_v61  ;;  %9232 = vmatpush3.msra.mxu1 %v5200_v29 }
 0x5e7   : > { %9233 = vmatprep.subr.mxu1 %v5199_v54  ;;  %5588 = vmatmul.mubr.f32.gmra.mxu0 %v13173_v7  ;;  %v5195_v7 = vld [vmem:[%s15206_s7 + $0x450] sm:$0xff] }
 0x5e8   : > { %9234 = vmatpush3.msra.mxu1 %v5199_v54  ;;  %5592 = vmatprep.mubr.f32.mxu0 %v13236_v49 }
 0x5e9   : > { %5693 = vmatmul.mubr.f32.gmra.mxu1 %v13170_v2  ;;  %9235 = vmatprep.subr.mxu1 %v5198_v27  ;;  %v5194_v2 = vld [vmem:[%s15206_s7 + $0x448] sm:$0xff] }
 0x5ea   : > { %5697 = vmatprep.mubr.f32.mxu1 %v13229_v10  ;;  %9236 = vmatpush3.msra.mxu1 %v5198_v27 }
 0x5eb   : > { %9237 = vmatprep.subr.mxu1 %v5197_v25  ;;  %5593 = vmatmul.mubr.f32.gmra.mxu0 %v13195_v61  ;;  %v5193_v61 = vld [vmem:[%s15206_s7 + $0x440] sm:$0xff] }
 0x5ec   : > { %9238 = vmatpush3.msra.mxu1 %v5197_v25  ;;  %5597 = vmatprep.mubr.f32.mxu0 %v13264_v3 }
 0x5ed   : > { %5698 = vmatmul.mubr.f32.gmra.mxu1 %v13188_v50  ;;  %9239 = vmatprep.subr.mxu1 %v5196_v13  ;;  %v5192_v50 = vld [vmem:[%s15206_s7 + $0x438] sm:$0xff] }
 0x5ee   : > { %5702 = vmatprep.mubr.f32.mxu1 %v13249_v21  ;;  %9240 = vmatpush3.msra.mxu1 %v5196_v13 }
 0x5ef   : > { %9241 = vmatprep.subr.mxu1 %v5195_v7  ;;  %5598 = vmatmul.mubr.f32.gmra.mxu0 %v13229_v10  ;;  %v5288_v10 = vrot.slane %v13319_v41, 2 }
 0x5f0   : > { %9242 = vmatpush3.msra.mxu1 %v5195_v7  ;;  %5602 = vmatprep.mubr.f32.mxu0 %v13289_v47 }
 0x5f1   : > { %5703 = vmatmul.mubr.f32.gmra.mxu1 %v13200_v52  ;;  %9243 = vmatprep.subr.mxu1 %v5194_v2  ;;  %v5056_v52 = vld [vmem:[#allocation3 + $0x98] sm:$0x3]  ;;  %v5290_v12 = vsel %vm946_vm1, %v5288_v10, %v5289_v46  ;;  %v6292_v46 = vld [vmem:[%s15208_s9 + $0x58] sm:$0xff] }
 0x5f2   : > { %5707 = vmatprep.mubr.f32.mxu1 %v13282_v8  ;;  %9244 = vmatpush3.msra.mxu1 %v5194_v2  ;;  %v5295_v17 = vrot.slane %v5056_v52, 1  ;;  %v6296_v2 = vld [vmem:[%s15208_s9 + $0x78] sm:$0xff] }
 0x5f3   : > { %9245 = vmatprep.subr.mxu1 %v5193_v61  ;;  %5603 = vmatmul.mubr.f32.gmra.mxu0 %v13249_v21  ;;  %v5187_v21 = vld [vmem:[%s15206_s7 + $0x410] sm:$0xff] }
 0x5f4   : > { %9246 = vmatpush3.msra.mxu1 %v5193_v61  ;;  %5607 = vmatprep.mubr.f32.mxu0 %v13312_v1  ;;  %v5296_v22 = vsel %vm833_vm0, %v5218_v34, %v5295_v17  ;;  %v5185_v34 = vld [vmem:[%s15206_s7 + $0x400] sm:$0xff]  ;;  %v6295_v61 = vld [vmem:[%s15208_s9 + $0x70] sm:$0xff] }
 0x5f5   : > { %5708 = vmatmul.mubr.f32.gmra.mxu1 %v13242_v30  ;;  %9247 = vmatprep.subr.mxu1 %v5192_v50  ;;  %v5188_v30 = vld [vmem:[%s15206_s7 + $0x418] sm:$0xff] }
 0x5f6   : > { %5712 = vmatprep.mubr.f32.mxu1 %v13300_v19  ;;  %9248 = vmatpush3.msra.mxu1 %v5192_v50 }
 0x5f7   : > { %9249 = vmatprep.subr.mxu1 %v5191_v26  ;;  %5608 = vmatmul.mubr.f32.gmra.mxu0 %v13282_v8 }
 0x5f8   : > { %9250 = vmatpush3.msra.mxu1 %v5191_v26  ;;  %5612 = vmatprep.mubr.f32.mxu0 %v13333_v6  ;;  %v6294_v26 = vld [vmem:[%s15208_s9 + $0x68] sm:$0xff] }
 0x5f9   : > { %5713 = vmatmul.mubr.f32.gmra.mxu1 %v13255_v32  ;;  %9251 = vmatprep.subr.mxu1 %v5190_v62  ;;  %v5299_v32 = vrot.slane %v5056_v52, 2 }
 0x5fa   : > { %5717 = vmatprep.mubr.f32.mxu1 %v5286_v48  ;;  %9252 = vmatpush3.msra.mxu1 %v5190_v62 }
 0x5fb   : > { %9253 = vmatprep.subr.mxu1 %v5189_v5  ;;  %5613 = vmatmul.mubr.f32.gmra.mxu0 %v13300_v19  ;;  %v5300_v40 = vsel %vm946_vm1, %v5250_v63, %v5299_v32 }
 0x5fc   : > { %9254 = vmatpush3.msra.mxu1 %v5189_v5  ;;  %5617 = vmatprep.mubr.f32.mxu0 %v5290_v12 }
 0x5fd   : > { %5718 = vmatmul.mubr.f32.gmra.mxu1 %v13319_v41  ;;  %9255 = vmatprep.subr.mxu1 %v5188_v30 }
 0x5fe   : > { %9256 = vmatpush3.msra.mxu1 %v5188_v30  ;;  %5722 = vmatprep.mubr.f32.mxu1 %v5296_v22  ;;  %v6290_v22 = vld [vmem:[%s15208_s9 + $0x48] sm:$0xff] }
 0x5ff   : > { %9257 = vmatprep.subr.mxu1 %v5187_v21  ;;  %5618 = vmatmul.mubr.f32.gmra.mxu0 %v5286_v48  ;;  %v6291_v48 = vld [vmem:[%s15208_s9 + $0x50] sm:$0xff] }
 0x600   : > { %9258 = vmatpush3.msra.mxu1 %v5187_v21  ;;  %6739 = vmatpush1.msra.mxu0 %v6296_v2  ;;  %v6283_v2 = vld [vmem:[%s15208_s9 + $0x10] sm:$0xff] }
 0x601   : > { %5723 = vmatmul.mubr.f32.gmra.mxu1 %v13028_v11  ;;  %9259 = vmatprep.subr.mxu1 %v5186_v23 }
 0x602   : > { %9260 = vmatpush3.msra.mxu1 %v5186_v23  ;;  %9263 = vmatprep.mubr.f32.mxu1 %v13211_v20  ;;  %v5841_v20 = vld [vmem:[%s15211_s12] sm:$0xff] }
 0x603   : > { %9261 = vmatprep.subr.mxu1 %v5185_v34  ;;  %6740 = vmatprep.subr.mxu0 %v13028_v11 }
 0x604   : > { %9262 = vmatpush3.msra.mxu1 %v5185_v34  ;;  %6741 = vmatpush1.msra.mxu0 %v6295_v61  ;;  %v6289_v34 = vld [vmem:[%s15208_s9 + $0x40] sm:$0xff] }
 0x605   : > { %9264 = vmatmul.mubr.f32.vlgmr.msra.gmra.mxu1 %v13236_v49  ;;  %v8752_v49 = vpop.f32.mrf.mxu0  ;;  %6742 = vmatprep.subr.mxu0 %v13028_v11 }
 0x606   : > { %9266 = vmatprep.mubr.f32.mxu1 %v13264_v3  ;;  %6743 = vmatpush1.msra.mxu0 %v6294_v26 }
 0x607   : > { %v8753_v55 = vpop.f32.mrf.mxu0  ;;  %6744 = vmatprep.subr.mxu0 %v13028_v11 }
 0x608   : > { %v8754_v0 = vadd.f32 %v8753_v55, %v8752_v49  ;;  %6745 = vmatpush1.msra.mxu0 %v6293_v57  ;;  %v6282_v57 = vld [vmem:[%s15208_s9 + $0x8] sm:$0xff] }
 0x609   : > { %9267 = vmatmul.mubr.f32.gmra.mxu1 %v13289_v47  ;;  %6746 = vmatprep.subr.mxu0 %v13028_v11 }
 0x60a   : > { %9269 = vmatprep.mubr.f32.mxu1 %v13312_v1  ;;  %v5375_v39 = vadd.f32 %v8754_v0, %v13441_v56  ;;  %6747 = vmatpush1.msra.mxu0 %v6292_v46  ;;  %v6287_v0 = vld [vmem:[%s15208_s9 + $0x30] sm:$0xff] }
 0x60b   : > { %6748 = vmatprep.subr.mxu0 %v13028_v11 }
 0x60c   : > { %6749 = vmatpush1.msra.mxu0 %v6291_v48 }
 0x60d   : > { %9270 = vmatmul.mubr.f32.gmra.mxu1 %v13333_v6  ;;  %6750 = vmatprep.subr.mxu0 %v13028_v11 }
 0x60e   : > { %9272 = vmatprep.mubr.f32.mxu1 %v5290_v12  ;;  %6751 = vmatpush1.msra.mxu0 %v6290_v22  ;;  %v6281_v22 = vld [vmem:[%s15208_s9] sm:$0xff] }
 0x60f   : > { %6752 = vmatprep.subr.mxu0 %v13028_v11 }
 0x610   : > { %6753 = vmatpush1.msra.mxu0 %v6289_v34 }
 0x611   : > { %9273 = vmatmul.mubr.f32.gmra.mxu1 %v5300_v40  ;;  %6754 = vmatprep.subr.mxu0 %v13028_v11 }
 0x612   : > { %9291 = vmatprep.mubr.msk.f32.mxu1 %vm5873_vm2, %v5841_v20  ;;  %v6288_v20 = vld [vmem:[%s15208_s9 + $0x38] sm:$0xff] }
 0x613   : > { %6755 = vmatpush1.msra.mxu0 %v6288_v20  ;;  %v6312_v20 = vld [vmem:[%s15208_s9 + $0xf8] sm:$0xff] }
 0x614   : > { %6756 = vmatprep.subr.mxu0 %v13028_v11 }
 0x615   : > { %6757 = vmatpush1.msra.mxu0 %v6287_v0 }
 0x616   : > { %6758 = vmatprep.subr.mxu0 %v13028_v11 }
 0x684   : > { %v8808_v3 = vpop.f32.mrf.mxu1 }
 0x686   : > { %v8809_v63 = vpop.f32.mrf.mxu1 }
 0x687   : > { %v8810_v15 = vadd.f32 %v8809_v63, %v8808_v3  ;;  %v8755_v16 = vpop.f32.mrf.mxu0  ;;  %v6286_v63 = vld [vmem:[%s15208_s9 + $0x28] sm:$0xff] }
 0x688   : > { %v8811_v18 = vpop.f32.mrf.mxu1  ;;  %6759 = vmatpush1.msra.mxu0 %v6286_v63 }
 0x689   : > { %v13444_v35 = vadd.f32 %v8810_v15, %v5375_v39  ;;  %v8756_v45 = vpop.f32.mrf.mxu0  ;;  %6760 = vmatprep.subr.mxu0 %v13028_v11 }
 0x68a   : > { %v8757_v43 = vadd.f32 %v8756_v45, %v8755_v16  ;;  %v8812_v8 = vpop.f32.mrf.mxu1 }
 0x68b   : > { %v8813_v37 = vadd.f32 %v8812_v8, %v8811_v18  ;;  %v13446_v47 = vpop.f32.mrf.mxu0  ;;  %v6285_v18 = vld [vmem:[%s15208_s9 + $0x20] sm:$0xff]  ;;  %v6284_v8 = vld [vmem:[%s15208_s9 + $0x18] sm:$0xff] }
 0x68c   : > { %v5380_v9 = vadd.f32 %v8757_v43, %v13441_v56  ;;  %6761 = vmatpush1.msra.mxu0 %v6285_v18 }
 0x68d   : > { %v13449_v53 = vpop.f32.mrf.mxu1  ;;  %v13451_v36 = vpop.f32.mrf.mxu0  ;;  %6762 = vmatprep.subr.mxu0 %v13028_v11 }
 0x68e   : > { %v13453_v60 = vadd.f32 %v8813_v37, %v5380_v9  ;;  %6763 = vmatpush1.msra.mxu0 %v6284_v8  ;;  %v6311_v8 = vld [vmem:[%s15208_s9 + $0xf0] sm:$0xff] }
 0x68f   : > { %v13455_v19 = vpop.f32.mrf.mxu1  ;;  %v13457_v31 = vpop.f32.mrf.mxu0  ;;  %6764 = vmatprep.subr.mxu0 %v13028_v11 }
 0x690   : > { %6765 = vmatpush1.msra.mxu0 %v6283_v2 }
 0x691   : > { %v13459_v28 = vpop.f32.mrf.mxu1  ;;  %v13461_v1 = vpop.f32.mrf.mxu0  ;;  %6766 = vmatprep.subr.mxu0 %v13028_v11 }
 0x692   : > { %6767 = vmatpush1.msra.mxu0 %v6282_v57 }
 0x693   : > { %v13463_v14 = vpop.f32.mrf.mxu1  ;;  %v13465_v58 = vpop.f32.mrf.mxu0  ;;  %6768 = vmatprep.subr.mxu0 %v13028_v11 }
 0x694   : > { %6769 = vmatpush1.msra.mxu0 %v6281_v22 }
 0x695   : > { %v13467_v4 = vpop.f32.mrf.mxu1  ;;  %v13469_v41 = vpop.f32.mrf.mxu0  ;;  %6770 = vmatprep.subr.mxu0 %v13028_v11 }
 0x696   : > { %6771 = vmatpush2.msra.mxu0 %v6312_v20 }
 0x697   : > { %v13471_v42 = vpop.f32.mrf.mxu1  ;;  %v13473_v51 = vpop.f32.mrf.mxu0  ;;  %6772 = vmatprep.subr.mxu0 %v13028_v11 }
 0x698   : > { %6773 = vmatpush2.msra.mxu0 %v6311_v8 }
 0x699   : > { %v13475_v24 = vpop.f32.mrf.mxu1  ;;  %v13477_v6 = vpop.f32.mrf.mxu0  ;;  %6774 = vmatprep.subr.mxu0 %v13028_v11 }
 0x69a   : > { %v8769_v2 = vadd.f32 %v13477_v6, %v13473_v51 }
 0x69b   : > { %v13479_v38 = vpop.f32.mrf.mxu1  ;;  %v13481_v33 = vpop.f32.mrf.mxu0 }
 0x69d   : > { %v13483_v29 = vpop.f32.mrf.mxu1  ;;  %v13485_v54 = vpop.f32.mrf.mxu0 }
 0x69f   : > { %v13487_v27 = vpop.f32.mrf.mxu1  ;;  %v13489_v25 = vpop.f32.mrf.mxu0 }
 0x6a1   : > { %v13491_v13 = vpop.f32.mrf.mxu1  ;;  %v13493_v7 = vpop.f32.mrf.mxu0 }
 0x6a2   : > { %v8775_v18 = vadd.f32 %v13493_v7, %v13489_v25  ;;  %v6310_v25 = vld [vmem:[%s15208_s9 + $0xe8] sm:$0xff]  ;;  %v8766_v7 = vadd.f32 %v13469_v41, %v13465_v58  ;;  %v5400_v58 = vadd.f32 %v8769_v2, %v13441_v56  ;;  %v8825_v41 = vadd.f32 %v13479_v38, %v13475_v24 }
 0x6a3   : > { %v13501_v50 = vpop.f32.mrf.mxu1  ;;  %v13503_v59 = vpop.f32.mrf.mxu0  ;;  %6775 = vmatpush2.msra.mxu0 %v6310_v25  ;;  %v8822_v38 = vadd.f32 %v13471_v42, %v13467_v4 }
 0x6a4   : > { %v5410_v51 = vadd.f32 %v8775_v18, %v13441_v56  ;;  %v8831_v6 = vadd.f32 %v13501_v50, %v13491_v13  ;;  %v8828_v13 = vadd.f32 %v13487_v27, %v13483_v29  ;;  %6776 = vmatprep.subr.mxu0 %v13028_v11  ;;  %v5395_v24 = vadd.f32 %v8766_v7, %v13441_v56 }
 0x6a5   : > { %v13509_v52 = vpop.f32.mrf.mxu1  ;;  %v13511_v44 = vpop.f32.mrf.mxu0 }
 0x6a6   : > { %15394 = vst [vmem:[#allocation7_spill] sm:$0xff] %v13509_v52 }
 0x6a7   : > { %v13517_v62 = vpop.f32.mrf.mxu1  ;;  %v13519_v10 = vpop.f32.mrf.mxu0 }
 0x6a8   : > { %15395 = vst [vmem:[#allocation8_spill] sm:$0xff] %v13517_v62  ;;  %v8772_v62 = vadd.f32 %v13485_v54, %v13481_v33  ;;  %v6309_v33 = vld [vmem:[%s15208_s9 + $0xe0] sm:$0xff]  ;;  %v8763_v54 = vadd.f32 %v13461_v1, %v13457_v31  ;;  %v6308_v31 = vld [vmem:[%s15208_s9 + $0xd8] sm:$0xff]  ;;  %v8760_v1 = vadd.f32 %v13451_v36, %v13446_v47  ;;  %v8819_v47 = vadd.f32 %v13463_v14, %v13459_v28 }
 0x6a9   : > { %v13525_v17 = vpop.f32.mrf.mxu1  ;;  %v13527_v5 = vpop.f32.mrf.mxu0  ;;  %6777 = vmatpush2.msra.mxu0 %v6309_v33  ;;  %v5505_v36 = vadd.f32 %v8825_v41, %v5400_v58  ;;  %v8816_v14 = vadd.f32 %v13455_v19, %v13449_v53  ;;  %v8866_v58 = vadd.f32 %v13511_v44, %v13503_v59 }
 0x6aa   : > { %v5405_v18 = vadd.f32 %v8772_v62, %v13441_v56  ;;  %v5515_v62 = vadd.f32 %v8831_v6, %v5410_v51  ;;  %6778 = vmatprep.subr.mxu0 %v13028_v11  ;;  %v5390_v2 = vadd.f32 %v8763_v54, %v13441_v56  ;;  %v13668_v11 = vld [vmem:[#allocation2] sm:$0xff]  ;;  %v5385_v28 = vadd.f32 %v8760_v1, %v13441_v56 }
 0x6ab   : > { %v13533_v30 = vpop.f32.mrf.mxu1  ;;  %v13535_v12 = vpop.f32.mrf.mxu0  ;;  %6779 = vmatpush2.msra.mxu0 %v6308_v31  ;;  %v6305_v56 = vld [vmem:[%s15208_s9 + $0xc0] sm:$0xff]  ;;  %v8869_v51 = vadd.f32 %v13527_v5, %v13519_v10 }
 0x6ac   : > { %v5510_v4 = vadd.f32 %v8828_v13, %v5405_v18  ;;  %6780 = vmatprep.subr.mxu0 %v13668_v11  ;;  %v5495_v53 = vadd.f32 %v8819_v47, %v5390_v2  ;;  %v8925_v59 = vadd.f32 %v13533_v30, %v13525_v17  ;;  %v6301_v1 = vld [vmem:[%s15208_s9 + $0xa0] sm:$0xff] }
 0x6ad   : > { %v13541_v21 = vpop.f32.mrf.mxu1  ;;  %v13543_v23 = vpop.f32.mrf.mxu0  ;;  %v5590_v31 = vadd.f32 %v8869_v51, %v13453_v60  ;;  %v6318_v51 = vld [vmem:[%s15208_s9 + $0x128] sm:$0xff] }
 0x6ae   : > { %v8872_v19 = vadd.f32 %v13543_v23, %v13535_v12 }
 0x6af   : > { %v13549_v32 = vpop.f32.mrf.mxu1  ;;  %v13551_v40 = vpop.f32.mrf.mxu0  ;;  %v15397_v60 = vld [vmem:[#allocation8_spill] sm:$0xff] }
 0x6b0   : > { %v8928_v10 = vadd.f32 %v13549_v32, %v13541_v21 }
 0x6b1   : > { %v13557_v49 = vpop.f32.mrf.mxu1  ;;  %v13559_v55 = vpop.f32.mrf.mxu0 }
 0x6b2   : > { %v8875_v7 = vadd.f32 %v13559_v55, %v13551_v40 }
 0x6b3   : > { %v13565_v3 = vpop.f32.mrf.mxu1  ;;  %v13567_v39 = vpop.f32.mrf.mxu0 }
 0x6b4   : > { %v5600_v6 = vadd.f32 %v8875_v7, %v5495_v53  ;;  %v8931_v12 = vadd.f32 %v13565_v3, %v13557_v49  ;;  %v6325_v7 = vld [vmem:[%s15208_s9 + $0x160] sm:$0xff]  ;;  %v6322_v53 = vld [vmem:[%s15208_s9 + $0x148] sm:$0xff] }
 0x6b5   : > { %v13573_v15 = vpop.f32.mrf.mxu1  ;;  %v13575_v16 = vpop.f32.mrf.mxu0 }
 0x6b6   : > { %v8878_v42 = vadd.f32 %v13575_v16, %v13567_v39  ;;  %v5705_v44 = vadd.f32 %v8931_v12, %v5600_v6  ;;  %v6317_v6 = vld [vmem:[%s15208_s9 + $0x120] sm:$0xff]  ;;  %v5855_v12 = vld [vmem:[%s15211_s12 + $0x70] sm:$0xff] }
 0x6b7   : > { %v13581_v45 = vpop.f32.mrf.mxu1  ;;  %v8879_v43 = vpop.f32.mrf.mxu0 }
 0x6b9   : > { %v13587_v37 = vpop.f32.mrf.mxu1  ;;  %v8880_v9 = vpop.f32.mrf.mxu0 }
 0x6ba   : > { %v8881_v29 = vadd.f32 %v8880_v9, %v8879_v43 }
 0x6bb   : > { %v13593_v61 = vpop.f32.mrf.mxu1  ;;  %v8882_v26 = vpop.f32.mrf.mxu0 }
 0x6bc   : > { %v5610_v16 = vadd.f32 %v8881_v29, %v5505_v36 }
 0x6bd   : > { %v13599_v46 = vpop.f32.mrf.mxu1  ;;  %v8883_v48 = vpop.f32.mrf.mxu0 }
 0x6be   : > { %v8884_v27 = vadd.f32 %v8883_v48, %v8882_v26  ;;  %v6306_v26 = vld [vmem:[%s15208_s9 + $0xc8] sm:$0xff]  ;;  %v5500_v48 = vadd.f32 %v8822_v38, %v5395_v24  ;;  %v5585_v24 = vadd.f32 %v8866_v58, %v13444_v35  ;;  %v15396_v38 = vld [vmem:[#allocation7_spill] sm:$0xff] }
 0x6bf   : > { %v13605_v34 = vpop.f32.mrf.mxu1  ;;  %v8885_v0 = vpop.f32.mrf.mxu0  ;;  %v6314_v58 = vld [vmem:[%s15208_s9 + $0x108] sm:$0xff] }
 0x6c0   : > { %v5605_v55 = vadd.f32 %v8878_v42, %v5500_v48  ;;  %v6326_v48 = vld [vmem:[%s15208_s9 + $0x168] sm:$0xff] }
 0x6c1   : > { %v8941_v63 = vpop.f32.mrf.mxu1  ;;  %v8886_v22 = vpop.f32.mrf.mxu0 }
 0x6c2   : > { %v8887_v50 = vadd.f32 %v8886_v22, %v8885_v0  ;;  %v6307_v0 = vld [vmem:[%s15208_s9 + $0xd0] sm:$0xff]  ;;  %v8940_v22 = vadd.f32 %v13605_v34, %v13599_v46  ;;  %v6304_v46 = vld [vmem:[%s15208_s9 + $0xb8] sm:$0xff]  ;;  %v5490_v34 = vadd.f32 %v8816_v14, %v5385_v28  ;;  %v5845_v14 = vld [vmem:[%s15211_s12 + $0x20] sm:$0xff] }
 0x6c3   : > { %v8942_v57 = vpop.f32.mrf.mxu1  ;;  %6781 = vmatpush2.msra.mxu0 %v6307_v0  ;;  %v5695_v0 = vadd.f32 %v8925_v59, %v5590_v31  ;;  %v5844_v28 = vld [vmem:[%s15211_s12 + $0x18] sm:$0xff]  ;;  %v6341_v31 = vld [vmem:[%s15208_s9 + $0x1e0] sm:$0xff]  ;;  %v5862_v59 = vld [vmem:[%s15211_s12 + $0xa8] sm:$0xff] }
 0x6c4   : > { %v5620_v43 = vadd.f32 %v8887_v50, %v5515_v62  ;;  %v8943_v9 = vadd.f32 %v8942_v57, %v8941_v63  ;;  %v8937_v63 = vadd.f32 %v13593_v61, %v13587_v37  ;;  %v5615_v57 = vadd.f32 %v8884_v27, %v5510_v4  ;;  %6782 = vmatprep.subr.mxu0 %v13668_v11  ;;  %v6302_v50 = vld [vmem:[%s15208_s9 + $0xa8] sm:$0xff]  ;;  %v6300_v27 = vld [vmem:[%s15208_s9 + $0x98] sm:$0xff] }
 0x6c5   : > { %v13627_v52 = vpop.f32.mrf.mxu1  ;;  %6783 = vmatpush2.msra.mxu0 %v6306_v26  ;;  %v8934_v37 = vadd.f32 %v13581_v45, %v13573_v15  ;;  %v6303_v45 = vld [vmem:[%s15208_s9 + $0xb0] sm:$0xff]  ;;  %v5595_v41 = vadd.f32 %v8872_v19, %v5490_v34  ;;  %v8922_v62 = vadd.f32 %v15397_v60, %v15396_v38  ;;  %v6321_v19 = vld [vmem:[%s15208_s9 + $0x140] sm:$0xff]  ;;  %v6338_v38 = vld [vmem:[%s15208_s9 + $0x1c8] sm:$0xff] }
 0x6c6   : > { %v5725_v61 = vadd.f32 %v8943_v9, %v5620_v43  ;;  %6784 = vmatprep.subr.mxu0 %v13668_v11  ;;  %v5715_v23 = vadd.f32 %v8937_v63, %v5610_v16  ;;  %v5720_v15 = vadd.f32 %v8940_v22, %v5615_v57  ;;  %v5843_v9 = vld [vmem:[%s15211_s12 + $0x10] sm:$0xff]  ;;  %v6324_v63 = vld [vmem:[%s15208_s9 + $0x158] sm:$0xff]  ;;  %v5853_v34 = vld [vmem:[%s15211_s12 + $0x60] sm:$0xff] }
 0x6c7   : > { %v13641_v20 = vpop.f32.mrf.mxu1  ;;  %6785 = vmatpush2.msra.mxu0 %v6305_v56  ;;  %v5710_v49 = vadd.f32 %v8934_v37, %v5605_v55  ;;  %v5700_v17 = vadd.f32 %v8928_v10, %v5595_v41  ;;  %v5690_v47 = vadd.f32 %v8922_v62, %v5585_v24  ;;  %v6327_v26 = vld [vmem:[%s15208_s9 + $0x170] sm:$0xff]  ;;  %v5848_v22 = vld [vmem:[%s15211_s12 + $0x38] sm:$0xff]  ;;  %v5849_v56 = vld [vmem:[%s15211_s12 + $0x40] sm:$0xff] }
 0x6c8   : > { %6786 = vmatprep.subr.mxu0 %v13668_v11  ;;  %v5847_v16 = vld [vmem:[%s15211_s12 + $0x30] sm:$0xff]  ;;  %v6320_v37 = vld [vmem:[%s15208_s9 + $0x138] sm:$0xff]  ;;  %v6313_v41 = vld [vmem:[%s15208_s9 + $0x100] sm:$0xff] }
 0x6c9   : > { %v13655_v8 = vpop.f32.mrf.mxu1  ;;  %6787 = vmatpush2.msra.mxu0 %v6304_v46  ;;  %v5795_v4 = vadd.f32 %v13641_v20, %v5690_v47  ;;  %v6328_v20 = vld [vmem:[%s15208_s9 + $0x178] sm:$0xff]  ;;  %v6323_v57 = vld [vmem:[%s15208_s9 + $0x150] sm:$0xff]  ;;  %v5858_v10 = vld [vmem:[%s15211_s12 + $0x88] sm:$0xff] }
 0x6ca   : > { %6788 = vmatprep.subr.mxu0 %v13668_v11  ;;  %v5810_v29 = vadd.f32 %v13655_v8, %v5705_v44  ;;  %v5800_v8 = vadd.f32 %v13627_v52, %v5695_v0  ;;  %v5842_v52 = vld [vmem:[%s15211_s12 + $0x8] sm:$0xff]  ;;  %v5851_v55 = vld [vmem:[%s15211_s12 + $0x50] sm:$0xff]  ;;  %v5852_v46 = vld [vmem:[%s15211_s12 + $0x58] sm:$0xff] }
 0x6cb   : > { %v13664_v25 = vpop.f32.mrf.mxu1  ;;  %6789 = vmatpush2.msra.mxu0 %v6303_v45  ;;  %v5833_v43 = vmax.f32 %v5795_v4, 0.0  ;;  %v5857_v45 = vld [vmem:[%s15211_s12 + $0x80] sm:$0xff]  ;;  %v5863_v44 = vld [vmem:[%s15211_s12 + $0xb0] sm:$0xff]  ;;  %v5866_v62 = vld [vmem:[%s15211_s12 + $0xc8] sm:$0xff] }
 0x6cc   : > { %6790 = vmatprep.subr.mxu0 %v13668_v11  ;;  %v5805_v35 = vadd.f32 %v13664_v25, %v5700_v17  ;;  %v5836_v36 = vmax.f32 %v5810_v29, 0.0  ;;  %v5834_v25 = vmax.f32 %v5800_v8, 0.0  ;;  %v5865_v24 = vld [vmem:[%s15211_s12 + $0xc0] sm:$0xff]  ;;  %v5867_v29 = vld [vmem:[%s15211_s12 + $0xd0] sm:$0xff]  ;;  %v6336_v17 = vld [vmem:[%s15208_s9 + $0x1b8] sm:$0xff] }
 0x6cd   : > { %v9271_v39 = vpop.f32.mrf.mxu1  ;;  %6791 = vmatpush2.msra.mxu0 %v6302_v50  ;;  %v6342_v50 = vld [vmem:[%s15208_s9 + $0x1e8] sm:$0xff]  ;;  %v6337_v60 = vld [vmem:[%s15208_s9 + $0x1c0] sm:$0xff]  ;;  %v5872_v8 = vld [vmem:[%s15211_s12 + $0xf8] sm:$0xff] }
 0x6ce   : > { %v5820_v18 = vadd.f32 %v9271_v39, %v5715_v23  ;;  %6792 = vmatprep.subr.mxu0 %v13668_v11  ;;  %v5835_v42 = vmax.f32 %v5805_v35, 0.0  ;;  %v5846_v39 = vld [vmem:[%s15211_s12 + $0x28] sm:$0xff]  ;;  %v6316_v23 = vld [vmem:[%s15208_s9 + $0x118] sm:$0xff]  ;;  %v5869_v0 = vld [vmem:[%s15211_s12 + $0xe0] sm:$0xff] }
 0x6cf   : > { %v5814_v40 = vpop.f32.mrf.mxu1  ;;  %6793 = vmatpush2.msra.mxu0 %v6301_v1  ;;  %v5864_v1 = vld [vmem:[%s15211_s12 + $0xb8] sm:$0xff]  ;;  %v5870_v35 = vld [vmem:[%s15211_s12 + $0xe8] sm:$0xff]  ;;  %v6299_v47 = vld [vmem:[%s15208_s9 + $0x90] sm:$0xff] }
 0x6d0   : > { %v5815_v21 = vadd.f32 %v5814_v40, %v5710_v49  ;;  %v5838_v30 = vmax.f32 %v5820_v18, 0.0  ;;  %6794 = vmatprep.subr.mxu0 %v13668_v11  ;;  %v5850_v40 = vld [vmem:[%s15211_s12 + $0x48] sm:$0xff]  ;;  %v6344_v18 = vld [vmem:[%s15208_s9 + $0x1f8] sm:$0xff]  ;;  %v6343_v49 = vld [vmem:[%s15208_s9 + $0x1f0] sm:$0xff] }
 0x6d1   : > { %v9274_v33 = vpop.f32.mrf.mxu1  ;;  %6795 = vmatpush2.msra.mxu0 %v6300_v27  ;;  %v5868_v27 = vld [vmem:[%s15211_s12 + $0xd8] sm:$0xff]  ;;  %v6298_v4 = vld [vmem:[%s15208_s9 + $0x88] sm:$0xff] }
 0x6d2   : > { %v5830_v54 = vadd.f32 %v9274_v33, %v5725_v61  ;;  %v5837_v2 = vmax.f32 %v5815_v21, 0.0  ;;  %6796 = vmatprep.subr.mxu0 %v13668_v11  ;;  %v6319_v61 = vld [vmem:[%s15208_s9 + $0x130] sm:$0xff]  ;;  %v5854_v33 = vld [vmem:[%s15211_s12 + $0x68] sm:$0xff]  ;;  %v6340_v21 = vld [vmem:[%s15208_s9 + $0x1d8] sm:$0xff] }
 0x6d3   : > { %v5824_v5 = vpop.f32.mrf.mxu1  ;;  %6797 = vmatpush2.msra.mxu0 %v6299_v47 }
 0x6d4   : > { %v5840_v3 = vmax.f32 %v5830_v54, 0.0  ;;  %v5825_v13 = vadd.f32 %v5824_v5, %v5720_v15  ;;  %v6315_v54 = vld [vmem:[%s15208_s9 + $0x110] sm:$0xff]  ;;  %v5856_v15 = vld [vmem:[%s15211_s12 + $0x78] sm:$0xff]  ;;  %6798 = vmatprep.subr.mxu0 %v13668_v11 }
 0x6d5   : > { %v5859_v5 = vld [vmem:[%s15211_s12 + $0x90] sm:$0xff]  ;;  %6799 = vmatpush2.msra.mxu0 %v6298_v4 }
 0x6d6   : > { %v5839_v32 = vmax.f32 %v5825_v13, 0.0  ;;  %9275 = vmatprep.subr.mxu1 %v5840_v3  ;;  %v5861_v13 = vld [vmem:[%s15211_s12 + $0xa0] sm:$0xff]  ;;  %6800 = vmatprep.subr.mxu0 %v13668_v11 }
 0x6d7   : > { %9276 = vmatpush3.msra.mxu1 %v5840_v3  ;;  %v5860_v3 = vld [vmem:[%s15211_s12 + $0x98] sm:$0xff] }
 0x6d8   : > { %9277 = vmatprep.subr.mxu1 %v5839_v32 }
 0x6d9   : > { %9278 = vmatpush3.msra.mxu1 %v5839_v32  ;;  %v6339_v32 = vld [vmem:[%s15208_s9 + $0x1d0] sm:$0xff] }
 0x6da   : > { %9279 = vmatprep.subr.mxu1 %v5838_v30 }
 0x6db   : > { %9280 = vmatpush3.msra.mxu1 %v5838_v30  ;;  %v6335_v30 = vld [vmem:[%s15208_s9 + $0x1b0] sm:$0xff] }
 0x6dc   : > { %9281 = vmatprep.subr.mxu1 %v5837_v2 }
 0x6dd   : > { %9282 = vmatpush3.msra.mxu1 %v5837_v2  ;;  %v5871_v2 = vld [vmem:[%s15211_s12 + $0xf0] sm:$0xff] }
 0x6de   : > { %9283 = vmatprep.subr.mxu1 %v5836_v36 }
 0x6df   : > { %9284 = vmatpush3.msra.mxu1 %v5836_v36  ;;  %v6334_v36 = vld [vmem:[%s15208_s9 + $0x1a8] sm:$0xff] }
 0x6e0   : > { %9285 = vmatprep.subr.mxu1 %v5835_v42 }
 0x6e1   : > { %9286 = vmatpush3.msra.mxu1 %v5835_v42  ;;  %v6474_v42 = vrot.slane %v13668_v11, 1 }
 0x6e2   : > { %9287 = vmatprep.subr.mxu1 %v5834_v25 }
 0x6e3   : > { %9288 = vmatpush3.msra.mxu1 %v5834_v25  ;;  %v6333_v25 = vld [vmem:[%s15208_s9 + $0x1a0] sm:$0xff]  ;;  %6802 = vmatprep.mubr.f32.mxu0 %v6474_v42 }
 0x6e4   : > { %9289 = vmatprep.subr.mxu1 %v5833_v43 }
 0x6e5   : > { %9290 = vmatpush3.msra.mxu1 %v5833_v43  ;;  %v6297_v43 = vld [vmem:[%s15208_s9 + $0x80] sm:$0xff] }
 0x6e6   : > { %9292 = vmatmul.mubr.msk.f32.vlgmr.msra.gmra.mxu1 %vm5873_vm2, %v5842_v52  ;;  %6963 = vmatprep.subr.mxu1 %v13668_v11  ;;  %v6332_v52 = vld [vmem:[%s15208_s9 + $0x198] sm:$0xff] }
 0x6e7   : > { %9294 = vmatprep.mubr.msk.f32.mxu1 %vm5873_vm2, %v5843_v9  ;;  %6964 = vmatpush1.msra.mxu1 %v6328_v20  ;;  %v13983_v9 = vld [vmem:[#allocation2 + $0x10] sm:$0x3] }
 0x6e8   : > { %6965 = vmatprep.subr.mxu1 %v13668_v11  ;;  %6801 = vmatpush2.msra.mxu0 %v6297_v43  ;;  %v6331_v20 = vld [vmem:[%s15208_s9 + $0x190] sm:$0xff] }
 0x6e9   : > { %6966 = vmatpush1.msra.mxu1 %v6327_v26  ;;  %v6360_v26 = vld [vmem:[%s15208_s9 + $0x278] sm:$0xff]  ;;  %6803 = vmatmul.mubr.f32.vlgmr.msra.gmra.mxu0 %v13668_v11 }
 0x6ea   : > { %9295 = vmatmul.mubr.msk.f32.gmra.mxu1 %vm5873_vm2, %v5844_v28  ;;  %6967 = vmatprep.subr.mxu1 %v13668_v11  ;;  %v6477_v28 = vrot.slane %v13983_v9, 1 }
 0x6eb   : > { %9297 = vmatprep.mubr.msk.f32.mxu1 %vm5873_vm2, %v5845_v14  ;;  %6968 = vmatpush1.msra.mxu1 %v6326_v48  ;;  %v6330_v48 = vld [vmem:[%s15208_s9 + $0x188] sm:$0xff] }
 0x6ec   : > { %6969 = vmatprep.subr.mxu1 %v13668_v11  ;;  %7188 = vmatprep.subr.mxu0 %v13668_v11  ;;  %v6478_v14 = vsel %vm833_vm0, %v6474_v42, %v6477_v28  ;;  %v6390_v28 = vld [vmem:[%s15208_s9 + $0x368] sm:$0xff] }
 0x6ed   : > { %6970 = vmatpush1.msra.mxu1 %v6325_v7  ;;  %7189 = vmatpush1.msra.mxu0 %v6360_v26  ;;  %v6329_v7 = vld [vmem:[%s15208_s9 + $0x180] sm:$0xff] }
 0x6ee   : > { %9298 = vmatmul.mubr.msk.f32.gmra.mxu1 %vm5873_vm2, %v5846_v39  ;;  %6971 = vmatprep.subr.mxu1 %v13668_v11  ;;  %v6359_v39 = vld [vmem:[%s15208_s9 + $0x270] sm:$0xff] }
 0x6ef   : > { %9300 = vmatprep.mubr.msk.f32.mxu1 %vm5873_vm2, %v5847_v16  ;;  %6972 = vmatpush1.msra.mxu1 %v6324_v63  ;;  %v6358_v16 = vld [vmem:[%s15208_s9 + $0x268] sm:$0xff]  ;;  %v6357_v63 = vld [vmem:[%s15208_s9 + $0x260] sm:$0xff] }
 0x6f0   : > { %6973 = vmatprep.subr.mxu1 %v13668_v11  ;;  %6807 = vmatprep.mubr.f32.mxu0 %v6478_v14 }
 0x6f1   : > { %6974 = vmatpush1.msra.mxu1 %v6323_v57  ;;  %6808 = vmatmul.mubr.f32.gmra.mxu0 %v13668_v11  ;;  %v6356_v57 = vld [vmem:[%s15208_s9 + $0x258] sm:$0xff] }
 0x6f2   : > { %9301 = vmatmul.mubr.msk.f32.gmra.mxu1 %vm5873_vm2, %v5848_v22  ;;  %6975 = vmatprep.subr.mxu1 %v13668_v11  ;;  %v6355_v22 = vld [vmem:[%s15208_s9 + $0x250] sm:$0xff] }
 0x6f3   : > { %9303 = vmatprep.mubr.msk.f32.mxu1 %vm5873_vm2, %v5849_v56  ;;  %6976 = vmatpush1.msra.mxu1 %v6322_v53  ;;  %v6354_v56 = vld [vmem:[%s15208_s9 + $0x248] sm:$0xff]  ;;  %v6353_v53 = vld [vmem:[%s15208_s9 + $0x240] sm:$0xff] }
 0x6f4   : > { %6977 = vmatprep.subr.mxu1 %v13668_v11  ;;  %7190 = vmatprep.subr.mxu0 %v13668_v11 }
 0x6f5   : > { %6978 = vmatpush1.msra.mxu1 %v6321_v19  ;;  %7191 = vmatpush1.msra.mxu0 %v6359_v39  ;;  %v6352_v19 = vld [vmem:[%s15208_s9 + $0x238] sm:$0xff] }
 0x6f6   : > { %9304 = vmatmul.mubr.msk.f32.gmra.mxu1 %vm5873_vm2, %v5850_v40  ;;  %6979 = vmatprep.subr.mxu1 %v13668_v11  ;;  %v6351_v40 = vld [vmem:[%s15208_s9 + $0x230] sm:$0xff] }
 0x6f7   : > { %9306 = vmatprep.mubr.msk.f32.mxu1 %vm5873_vm2, %v5851_v55  ;;  %6980 = vmatpush1.msra.mxu1 %v6320_v37  ;;  %v6350_v55 = vld [vmem:[%s15208_s9 + $0x228] sm:$0xff]  ;;  %v6349_v37 = vld [vmem:[%s15208_s9 + $0x220] sm:$0xff] }
 0x6f8   : > { %6981 = vmatprep.subr.mxu1 %v13668_v11  ;;  %7192 = vmatprep.subr.mxu0 %v13668_v11 }
 0x6f9   : > { %6982 = vmatpush1.msra.mxu1 %v6319_v61  ;;  %7193 = vmatpush1.msra.mxu0 %v6358_v16  ;;  %v6348_v61 = vld [vmem:[%s15208_s9 + $0x218] sm:$0xff] }
 0x6fa   : > { %9307 = vmatmul.mubr.msk.f32.gmra.mxu1 %vm5873_vm2, %v5852_v46  ;;  %6983 = vmatprep.subr.mxu1 %v13668_v11  ;;  %v6347_v46 = vld [vmem:[%s15208_s9 + $0x210] sm:$0xff] }
 0x6fb   : > { %9309 = vmatprep.mubr.msk.f32.mxu1 %vm5873_vm2, %v5853_v34  ;;  %6984 = vmatpush1.msra.mxu1 %v6318_v51  ;;  %v6346_v34 = vld [vmem:[%s15208_s9 + $0x208] sm:$0xff]  ;;  %v6345_v51 = vld [vmem:[%s15208_s9 + $0x200] sm:$0xff] }
 0x6fc   : > { %6985 = vmatprep.subr.mxu1 %v13668_v11  ;;  %7194 = vmatprep.subr.mxu0 %v13668_v11 }
 0x6fd   : > { %6986 = vmatpush1.msra.mxu1 %v6317_v6  ;;  %7195 = vmatpush1.msra.mxu0 %v6357_v63  ;;  %v6376_v6 = vld [vmem:[%s15208_s9 + $0x2f8] sm:$0xff] }
 0x6fe   : > { %9310 = vmatmul.mubr.msk.f32.gmra.mxu1 %vm5873_vm2, %v5854_v33  ;;  %6987 = vmatprep.subr.mxu1 %v13668_v11  ;;  %v6375_v33 = vld [vmem:[%s15208_s9 + $0x2f0] sm:$0xff] }
 0x6ff   : > { %9312 = vmatprep.mubr.msk.f32.mxu1 %vm5873_vm2, %v5855_v12  ;;  %6988 = vmatpush1.msra.mxu1 %v6316_v23  ;;  %v6374_v12 = vld [vmem:[%s15208_s9 + $0x2e8] sm:$0xff]  ;;  %v6373_v23 = vld [vmem:[%s15208_s9 + $0x2e0] sm:$0xff] }
 0x700   : > { %6989 = vmatprep.subr.mxu1 %v13668_v11  ;;  %7196 = vmatprep.subr.mxu0 %v13668_v11 }
 0x701   : > { %6990 = vmatpush1.msra.mxu1 %v6315_v54  ;;  %7197 = vmatpush1.msra.mxu0 %v6356_v57  ;;  %v6372_v54 = vld [vmem:[%s15208_s9 + $0x2d8] sm:$0xff]  ;;  %v6389_v57 = vld [vmem:[%s15208_s9 + $0x360] sm:$0xff] }
 0x702   : > { %9313 = vmatmul.mubr.msk.f32.gmra.mxu1 %vm5873_vm2, %v5856_v15  ;;  %6991 = vmatprep.subr.mxu1 %v13668_v11  ;;  %v6371_v15 = vld [vmem:[%s15208_s9 + $0x2d0] sm:$0xff] }
 0x703   : > { %9315 = vmatprep.mubr.msk.f32.mxu1 %vm5873_vm2, %v5857_v45  ;;  %6992 = vmatpush1.msra.mxu1 %v6314_v58  ;;  %v6370_v45 = vld [vmem:[%s15208_s9 + $0x2c8] sm:$0xff]  ;;  %v6369_v58 = vld [vmem:[%s15208_s9 + $0x2c0] sm:$0xff] }
 0x704   : > { %6993 = vmatprep.subr.mxu1 %v13668_v11  ;;  %7198 = vmatprep.subr.mxu0 %v13668_v11 }
 0x705   : > { %6994 = vmatpush1.msra.mxu1 %v6313_v41  ;;  %7199 = vmatpush1.msra.mxu0 %v6355_v22  ;;  %v6368_v41 = vld [vmem:[%s15208_s9 + $0x2b8] sm:$0xff] }
 0x706   : > { %9316 = vmatmul.mubr.msk.f32.gmra.mxu1 %vm5873_vm2, %v5858_v10  ;;  %6995 = vmatprep.subr.mxu1 %v13668_v11  ;;  %v6367_v10 = vld [vmem:[%s15208_s9 + $0x2b0] sm:$0xff] }
 0x707   : > { %9318 = vmatprep.mubr.msk.f32.mxu1 %vm5873_vm2, %v5859_v5  ;;  %6996 = vmatpush2.msra.mxu1 %v6344_v18  ;;  %v6366_v5 = vld [vmem:[%s15208_s9 + $0x2a8] sm:$0xff]  ;;  %v6365_v18 = vld [vmem:[%s15208_s9 + $0x2a0] sm:$0xff] }
 0x708   : > { %6997 = vmatprep.subr.mxu1 %v13668_v11  ;;  %7200 = vmatprep.subr.mxu0 %v13668_v11 }
 0x709   : > { %6998 = vmatpush2.msra.mxu1 %v6343_v49  ;;  %7201 = vmatpush1.msra.mxu0 %v6354_v56  ;;  %v6364_v49 = vld [vmem:[%s15208_s9 + $0x298] sm:$0xff] }
 0x70a   : > { %9319 = vmatmul.mubr.msk.f32.gmra.mxu1 %vm5873_vm2, %v5860_v3  ;;  %6999 = vmatprep.subr.mxu1 %v13668_v11  ;;  %v6363_v3 = vld [vmem:[%s15208_s9 + $0x290] sm:$0xff] }
 0x70b   : > { %9321 = vmatprep.mubr.msk.f32.mxu1 %vm5873_vm2, %v5861_v13  ;;  %7000 = vmatpush2.msra.mxu1 %v6342_v50  ;;  %v6362_v50 = vld [vmem:[%s15208_s9 + $0x288] sm:$0xff] }
 0x70c   : > { %7001 = vmatprep.subr.mxu1 %v13668_v11  ;;  %7202 = vmatprep.subr.mxu0 %v13668_v11 }
 0x70d   : > { %7002 = vmatpush2.msra.mxu1 %v6341_v31  ;;  %7203 = vmatpush1.msra.mxu0 %v6353_v53 }
 0x70e   : > { %9322 = vmatmul.mubr.msk.f32.gmra.mxu1 %vm5873_vm2, %v5862_v59  ;;  %7003 = vmatprep.subr.mxu1 %v13668_v11 }
 0x70f   : > { %9324 = vmatprep.mubr.msk.f32.mxu1 %vm5873_vm2, %v5863_v44  ;;  %7004 = vmatpush2.msra.mxu1 %v6340_v21  ;;  %v6361_v44 = vld [vmem:[%s15208_s9 + $0x280] sm:$0xff]  ;;  %v6586_v21 = vrot.slane %v13668_v11, 2 }
 0x710   : > { %7005 = vmatprep.subr.mxu1 %v13668_v11  ;;  %7204 = vmatprep.subr.mxu0 %v13668_v11 }
 0x711   : > { %7006 = vmatpush2.msra.mxu1 %v6339_v32  ;;  %7205 = vmatpush1.msra.mxu0 %v6352_v19  ;;  %v6388_v19 = vld [vmem:[%s15208_s9 + $0x358] sm:$0xff] }
 0x712   : > { %9325 = vmatmul.mubr.msk.f32.gmra.mxu1 %vm5873_vm2, %v5864_v1  ;;  %7007 = vmatprep.subr.mxu1 %v13668_v11  ;;  %v14134_v1 = vld [vmem:[%s15208_s9 + $0x478] sm:$0xff] }
 0x713   : > { %9327 = vmatprep.mubr.msk.f32.mxu1 %vm5873_vm2, %v5865_v24  ;;  %7008 = vmatpush2.msra.mxu1 %v6338_v38  ;;  %v6589_v38 = vrot.slane %v13983_v9, 2 }
 0x714   : > { %7009 = vmatprep.subr.mxu1 %v13668_v11  ;;  %7206 = vmatprep.subr.mxu0 %v13668_v11 }
 0x715   : > { %7010 = vmatpush2.msra.mxu1 %v6337_v60  ;;  %7207 = vmatpush1.msra.mxu0 %v6351_v40  ;;  %v6392_v60 = vld [vmem:[%s15208_s9 + $0x378] sm:$0xff] }
 0x716   : > { %9328 = vmatmul.mubr.msk.f32.gmra.mxu1 %vm5873_vm2, %v5866_v62  ;;  %7011 = vmatprep.subr.mxu1 %v13668_v11 }
 0x717   : > { %9330 = vmatprep.mubr.msk.f32.mxu1 %vm5873_vm2, %v5867_v29  ;;  %7012 = vmatpush2.msra.mxu1 %v6336_v17 }
 0x718   : > { %7013 = vmatprep.subr.mxu1 %v13668_v11  ;;  %7208 = vmatprep.subr.mxu0 %v13668_v11 }
 0x719   : > { %7014 = vmatpush2.msra.mxu1 %v6335_v30  ;;  %7209 = vmatpush1.msra.mxu0 %v6350_v55 }
 0x71a   : > { %9331 = vmatmul.mubr.msk.f32.gmra.mxu1 %vm5873_vm2, %v5868_v27  ;;  %7015 = vmatprep.subr.mxu1 %v13668_v11 }
 0x71b   : > { %9333 = vmatprep.mubr.msk.f32.mxu1 %vm5873_vm2, %v5869_v0  ;;  %7016 = vmatpush2.msra.mxu1 %v6334_v36  ;;  %v6590_v36 = vsel %vm946_vm1, %v6586_v21, %v6589_v38 }
 0x71c   : > { %7017 = vmatprep.subr.mxu1 %v13668_v11  ;;  %7210 = vmatprep.subr.mxu0 %v13668_v11 }
 0x71d   : > { %7018 = vmatpush2.msra.mxu1 %v6333_v25  ;;  %7211 = vmatpush1.msra.mxu0 %v6349_v37 }
 0x71e   : > { %9334 = vmatmul.mubr.msk.f32.gmra.mxu1 %vm5873_vm2, %v5870_v35  ;;  %7019 = vmatprep.subr.mxu1 %v13668_v11 }
 0x71f   : > { %9336 = vmatprep.mubr.msk.f32.mxu1 %vm5873_vm2, %v5871_v2  ;;  %7020 = vmatpush2.msra.mxu1 %v6332_v52  ;;  %v6391_v2 = vld [vmem:[%s15208_s9 + $0x370] sm:$0xff] }
 0x720   : > { %7021 = vmatprep.subr.mxu1 %v13668_v11  ;;  %7212 = vmatprep.subr.mxu0 %v13668_v11 }
 0x721   : > { %7022 = vmatpush2.msra.mxu1 %v6331_v20  ;;  %7213 = vmatpush1.msra.mxu0 %v6348_v61 }
 0x722   : > { %9337 = vmatmul.mubr.msk.f32.gmra.mxu1 %vm5873_vm2, %v5872_v8  ;;  %7023 = vmatprep.subr.mxu1 %v13668_v11 }
 0x723   : > { %7024 = vmatpush2.msra.mxu1 %v6330_v48  ;;  %7214 = vmatprep.subr.mxu0 %v13668_v11 }
 0x724   : > { %7025 = vmatprep.subr.mxu1 %v13668_v11  ;;  %7215 = vmatpush1.msra.mxu0 %v6347_v46 }
 0x725   : > { %7026 = vmatpush2.msra.mxu1 %v6329_v7  ;;  %7216 = vmatprep.subr.mxu0 %v13668_v11 }
 0x726   : > { %7413 = vmatprep.subr.mxu1 %v13668_v11  ;;  %7217 = vmatpush1.msra.mxu0 %v6346_v34 }
 0x727   : > { %7218 = vmatprep.subr.mxu0 %v13668_v11 }
 0x728   : > { %7219 = vmatpush1.msra.mxu0 %v6345_v51 }
 0x729   : > { %7220 = vmatprep.subr.mxu0 %v13668_v11 }
 0x72a   : > { %7221 = vmatpush2.msra.mxu0 %v6376_v6 }
 0x72b   : > { %7222 = vmatprep.subr.mxu0 %v13668_v11 }
 0x72c   : > { %7223 = vmatpush2.msra.mxu0 %v6375_v33  ;;  %v6387_v33 = vld [vmem:[%s15208_s9 + $0x350] sm:$0xff] }
 0x72d   : > { %7224 = vmatprep.subr.mxu0 %v13668_v11 }
 0x72e   : > { %7225 = vmatpush2.msra.mxu0 %v6374_v12 }
 0x72f   : > { %7226 = vmatprep.subr.mxu0 %v13668_v11 }
 0x730   : > { %7227 = vmatpush2.msra.mxu0 %v6373_v23 }
 0x731   : > { %7228 = vmatprep.subr.mxu0 %v13668_v11 }
 0x732   : > { %7229 = vmatpush2.msra.mxu0 %v6372_v54 }
 0x733   : > { %7230 = vmatprep.subr.mxu0 %v13668_v11 }
 0x734   : > { %7231 = vmatpush2.msra.mxu0 %v6371_v15 }
 0x735   : > { %7232 = vmatprep.subr.mxu0 %v13668_v11 }
 0x736   : > { %7233 = vmatpush2.msra.mxu0 %v6370_v45 }
 0x737   : > { %7234 = vmatprep.subr.mxu0 %v13668_v11 }
 0x738   : > { %7235 = vmatpush2.msra.mxu0 %v6369_v58 }
 0x739   : > { %7236 = vmatprep.subr.mxu0 %v13668_v11 }
 0x73a   : > { %7237 = vmatpush2.msra.mxu0 %v6368_v41  ;;  %v6386_v41 = vld [vmem:[%s15208_s9 + $0x348] sm:$0xff] }
 0x73b   : > { %7238 = vmatprep.subr.mxu0 %v13668_v11 }
 0x73c   : > { %7239 = vmatpush2.msra.mxu0 %v6367_v10 }
 0x73d   : > { %7240 = vmatprep.subr.mxu0 %v13668_v11 }
 0x73e   : > { %7241 = vmatpush2.msra.mxu0 %v6366_v5 }
 0x73f   : > { %7242 = vmatprep.subr.mxu0 %v13668_v11 }
 0x740   : > { %7243 = vmatpush2.msra.mxu0 %v6365_v18 }
 0x741   : > { %7244 = vmatprep.subr.mxu0 %v13668_v11 }
 0x742   : > { %7245 = vmatpush2.msra.mxu0 %v6364_v49 }
 0x743   : > { %7246 = vmatprep.subr.mxu0 %v13668_v11 }
 0x744   : > { %7247 = vmatpush2.msra.mxu0 %v6363_v3  ;;  %v6385_v3 = vld [vmem:[%s15208_s9 + $0x340] sm:$0xff] }
 0x745   : > { %7248 = vmatprep.subr.mxu0 %v13668_v11 }
 0x746   : > { %7249 = vmatpush2.msra.mxu0 %v6362_v50 }
 0x747   : > { %7250 = vmatprep.subr.mxu0 %v13668_v11 }
 0x748   : > { %7251 = vmatpush2.msra.mxu0 %v6361_v44 }
 0x749   : > { %9339 = vmatprep.subr.mxu0 %v14134_v1 }
 0x7a6   : > { %v9293_v13 = vpop.f32.mrf.mxu1 }
 0x7a7   : > { %6196 = vst [vmem:[#allocation2 + $0x21] sm:$0xff] %v9293_v13 }
 0x7a8   : > { %v6036_v31 = vpop.f32.mrf.mxu1 }
 0x7a9   : > { %6195 = vst [vmem:[#allocation2 + $0x19] sm:$0xff] %v6036_v31 }
 0x7aa   : > { %v9296_v59 = vpop.f32.mrf.mxu1 }
 0x7ab   : > { %6198 = vst [vmem:[#allocation2 + $0x39] sm:$0xff] %v9296_v59 }
 0x7ac   : > { %v6046_v32 = vpop.f32.mrf.mxu1 }
 0x7ad   : > { %6197 = vst [vmem:[#allocation2 + $0x31] sm:$0xff] %v6046_v32 }
 0x7ae   : > { %v9299_v24 = vpop.f32.mrf.mxu1  ;;  %v14143_v17 = vld [vmem:[#allocation2 + $0x28] sm:$0x3] }
 0x7af   : > { %6200 = vst [vmem:[#allocation2 + $0x51] sm:$0xff] %v9299_v24  ;;  %v6482_v47 = vrot.slane %v14143_v17, 1  ;;  %v6594_v40 = vrot.slane %v14143_v17, 2  ;;  %v6384_v24 = vld [vmem:[%s15208_s9 + $0x338] sm:$0xff] }
 0x7b0   : > { %v6230_v62 = vld [vmem:[#allocation2 + $0x18] sm:$0xff]  ;;  %v14141_v29 = vld [vmem:[#allocation2 + $0x20] sm:$0xff]  ;;  %v6056_v30 = vpop.f32.mrf.mxu1 }
 0x7b1   : > { %7027 = vmatprep.mubr.f32.mxu1 %v6230_v62  ;;  %v6479_v27 = vrot.slane %v6230_v62, 1  ;;  %v6480_v0 = vrot.slane %v14141_v29, 1  ;;  %6199 = vst [vmem:[#allocation2 + $0x49] sm:$0xff] %v6056_v30  ;;  %v6591_v4 = vrot.slane %v6230_v62, 2  ;;  %v6592_v52 = vrot.slane %v14141_v29, 2 }
 0x7b2   : > { %7028 = vmatmul.mubr.f32.vlgmr.msra.gmra.mxu1 %v6586_v21  ;;  %v9302_v35 = vpop.f32.mrf.mxu1  ;;  %v14171_v14 = vld [vmem:[#allocation2 + $0x40] sm:$0x3] }
 0x7b3   : > { %7032 = vmatprep.mubr.f32.mxu1 %v14141_v29  ;;  %v14151_v8 = vsel %vm833_vm0, %v6479_v27, %v6480_v0  ;;  %6202 = vst [vmem:[#allocation2 + $0x69] sm:$0xff] %v9302_v35  ;;  %7414 = vmatpush1.msra.mxu1 %v6392_v60  ;;  %v14163_v9 = vsel %vm833_vm0, %v6480_v0, %v6482_v47  ;;  %v6487_v56 = vrot.slane %v14171_v14, 1  ;;  %v6599_v18 = vrot.slane %v14171_v14, 2  ;;  %v6383_v27 = vld [vmem:[%s15208_s9 + $0x330] sm:$0xff] }
 0x7b4   : > { %6812 = vmatprep.mubr.f32.mxu0 %v14151_v8  ;;  %v14156_v42 = vld [vmem:[#allocation2 + $0x30] sm:$0xff]  ;;  %v14158_v25 = vld [vmem:[#allocation2 + $0x38] sm:$0xff]  ;;  %v6066_v43 = vpop.f32.mrf.mxu1  ;;  %7415 = vmatprep.subr.mxu1 %v13668_v11  ;;  %v14187_v22 = vsel %vm946_vm1, %v6591_v4, %v6592_v52  ;;  %v14206_v34 = vsel %vm946_vm1, %v6592_v52, %v6594_v40 }
 0x7b5   : > { %6813 = vmatmul.mubr.f32.gmra.mxu0 %v6230_v62  ;;  %v6484_v20 = vrot.slane %v14156_v42, 1  ;;  %v6485_v26 = vrot.slane %v14158_v25, 1  ;;  %6201 = vst [vmem:[#allocation2 + $0x61] sm:$0xff] %v6066_v43  ;;  %7416 = vmatpush1.msra.mxu1 %v6391_v2  ;;  %v6596_v51 = vrot.slane %v14156_v42, 2  ;;  %v6597_v6 = vrot.slane %v14158_v25, 2 }
 0x7b6   : > { %6817 = vmatprep.mubr.f32.mxu0 %v14163_v9  ;;  %7033 = vmatmul.mubr.f32.gmra.mxu1 %v6590_v36  ;;  %v9305_v48 = vpop.f32.mrf.mxu1  ;;  %v14215_v12 = vld [vmem:[#allocation2 + $0x58] sm:$0x3]  ;;  %v6382_v36 = vld [vmem:[%s15208_s9 + $0x328] sm:$0xff] }
 0x7b7   : > { %7037 = vmatprep.mubr.f32.mxu1 %v14156_v42  ;;  %v14175_v7 = vsel %vm833_vm0, %v6484_v20, %v6485_v26  ;;  %6204 = vst [vmem:[#allocation2 + $0x81] sm:$0xff] %v9305_v48  ;;  %7417 = vmatprep.subr.mxu1 %v13668_v11  ;;  %v14203_v46 = vsel %vm833_vm0, %v6485_v26, %v6487_v56  ;;  %v6492_v5 = vrot.slane %v14215_v12, 1  ;;  %v6604_v2 = vrot.slane %v14215_v12, 2  ;;  %v14288_v20 = vld [vmem:[#allocation2] sm:$0xff] }
 0x7b8   : > { %v14178_v39 = vld [vmem:[#allocation2 + $0x48] sm:$0xff]  ;;  %v14180_v16 = vld [vmem:[#allocation2 + $0x50] sm:$0xff]  ;;  %v6076_v63 = vpop.f32.mrf.mxu1  ;;  %7418 = vmatpush1.msra.mxu1 %v6390_v28  ;;  %v14231_v10 = vsel %vm946_vm1, %v6596_v51, %v6597_v6  ;;  %v14250_v44 = vsel %vm946_vm1, %v6597_v6, %v6599_v18  ;;  %v6381_v48 = vld [vmem:[%s15208_s9 + $0x320] sm:$0xff] }
 0x7b9   : > { %6818 = vmatmul.mubr.f32.gmra.mxu0 %v14141_v29  ;;  %6203 = vst [vmem:[#allocation2 + $0x79] sm:$0xff] %v6076_v63  ;;  %7419 = vmatprep.subr.mxu1 %v13668_v11  ;;  %v6489_v55 = vrot.slane %v14178_v39, 1  ;;  %v6490_v37 = vrot.slane %v14180_v16, 1  ;;  %v6601_v21 = vrot.slane %v14178_v39, 2  ;;  %v6602_v32 = vrot.slane %v14180_v16, 2 }
 0x7ba   : > { %7038 = vmatmul.mubr.f32.gmra.mxu1 %v14187_v22  ;;  %6822 = vmatprep.mubr.f32.mxu0 %v14175_v7  ;;  %v9308_v53 = vpop.f32.mrf.mxu1  ;;  %v14259_v38 = vld [vmem:[#allocation2 + $0x70] sm:$0x3] }
 0x7bb   : > { %7042 = vmatprep.mubr.f32.mxu1 %v14158_v25  ;;  %6206 = vst [vmem:[#allocation2 + $0x99] sm:$0xff] %v9308_v53  ;;  %7420 = vmatpush1.msra.mxu1 %v6389_v57  ;;  %v14219_v54 = vsel %vm833_vm0, %v6489_v55, %v6490_v37  ;;  %v14247_v59 = vsel %vm833_vm0, %v6490_v37, %v6492_v5  ;;  %v6497_v35 = vrot.slane %v14259_v38, 1  ;;  %v6380_v55 = vld [vmem:[%s15208_s9 + $0x318] sm:$0xff]  ;;  %v6609_v51 = vrot.slane %v14259_v38, 2  ;;  %v6377_v38 = vld [vmem:[%s15208_s9 + $0x300] sm:$0xff] }
 0x7bc   : > { %v6086_v61 = vpop.f32.mrf.mxu1  ;;  %7421 = vmatprep.subr.mxu1 %v13668_v11  ;;  %v14222_v15 = vld [vmem:[#allocation2 + $0x60] sm:$0xff]  ;;  %v14224_v45 = vld [vmem:[#allocation2 + $0x68] sm:$0xff]  ;;  %v14275_v0 = vsel %vm946_vm1, %v6601_v21, %v6602_v32  ;;  %v14296_v26 = vsel %vm946_vm1, %v6602_v32, %v6604_v2  ;;  %v6408_v2 = vld [vmem:[%s15208_s9 + $0x3f8] sm:$0xff] }
 0x7bd   : > { %6823 = vmatmul.mubr.f32.gmra.mxu0 %v14156_v42  ;;  %6205 = vst [vmem:[#allocation2 + $0x91] sm:$0xff] %v6086_v61  ;;  %7422 = vmatpush1.msra.mxu1 %v6388_v19  ;;  %v6494_v13 = vrot.slane %v14222_v15, 1  ;;  %v6495_v50 = vrot.slane %v14224_v45, 1  ;;  %v6606_v28 = vrot.slane %v14222_v15, 2  ;;  %v6607_v14 = vrot.slane %v14224_v45, 2 }
 0x7be   : > { %6827 = vmatprep.mubr.f32.mxu0 %v14203_v46  ;;  %7043 = vmatmul.mubr.f32.gmra.mxu1 %v14206_v34  ;;  %v9311_v23 = vpop.f32.mrf.mxu1  ;;  %v14305_v63 = vld [vmem:[#allocation2 + $0x88] sm:$0x3] }
 0x7bf   : > { %7047 = vmatprep.mubr.f32.mxu1 %v14178_v39  ;;  %6208 = vst [vmem:[#allocation2 + $0xb1] sm:$0xff] %v9311_v23  ;;  %7423 = vmatprep.subr.mxu1 %v13668_v11  ;;  %v14263_v62 = vsel %vm833_vm0, %v6494_v13, %v6495_v50  ;;  %v14321_v37 = vsel %vm946_vm1, %v6606_v28, %v6607_v14  ;;  %v6502_v61 = vrot.slane %v14305_v63, 1 }
 0x7c0   : > { %v6096_v58 = vpop.f32.mrf.mxu1  ;;  %7424 = vmatpush1.msra.mxu1 %v6387_v33  ;;  %v14266_v29 = vld [vmem:[#allocation2 + $0x78] sm:$0xff]  ;;  %v14268_v17 = vld [vmem:[#allocation2 + $0x80] sm:$0xff]  ;;  %v6379_v33 = vld [vmem:[%s15208_s9 + $0x310] sm:$0xff]  ;;  %v14340_v5 = vsel %vm946_vm1, %v6607_v14, %v6609_v51 }
 0x7c1   : > { %6828 = vmatmul.mubr.f32.gmra.mxu0 %v14158_v25  ;;  %6207 = vst [vmem:[#allocation2 + $0xa9] sm:$0xff] %v6096_v58  ;;  %7425 = vmatprep.subr.mxu1 %v13668_v11  ;;  %v6499_v4 = vrot.slane %v14266_v29, 1  ;;  %v6500_v43 = vrot.slane %v14268_v17, 1  ;;  %v6611_v18 = vrot.slane %v14266_v29, 2 }
 0x7c2   : > { %7048 = vmatmul.mubr.f32.gmra.mxu1 %v14231_v10  ;;  %6832 = vmatprep.mubr.f32.mxu0 %v14219_v54  ;;  %v9314_v49 = vpop.f32.mrf.mxu1  ;;  %v14349_v13 = vld [vmem:[#allocation2 + $0xa0] sm:$0x3] }
 0x7c3   : > { %7052 = vmatprep.mubr.f32.mxu1 %v14180_v16  ;;  %6210 = vst [vmem:[#allocation2 + $0xc9] sm:$0xff] %v9314_v49  ;;  %7426 = vmatpush1.msra.mxu1 %v6386_v41  ;;  %v14309_v56 = vsel %vm833_vm0, %v6499_v4, %v6500_v43  ;;  %v14337_v41 = vsel %vm833_vm0, %v6500_v43, %v6502_v61  ;;  %v6612_v49 = vrot.slane %v14268_v17, 2 }
 0x7c4   : > { %v6106_v31 = vpop.f32.mrf.mxu1  ;;  %7427 = vmatprep.subr.mxu1 %v13668_v11  ;;  %v14312_v53 = vld [vmem:[#allocation2 + $0x90] sm:$0xff]  ;;  %v14314_v19 = vld [vmem:[#allocation2 + $0x98] sm:$0xff] }
 0x7c5   : > { %6833 = vmatmul.mubr.f32.gmra.mxu0 %v14178_v39  ;;  %6209 = vst [vmem:[#allocation2 + $0xc1] sm:$0xff] %v6106_v31  ;;  %7428 = vmatpush1.msra.mxu1 %v6385_v3  ;;  %v6504_v12 = vrot.slane %v14312_v53, 1  ;;  %v6505_v23 = vrot.slane %v14314_v19, 1  ;;  %v6378_v3 = vld [vmem:[%s15208_s9 + $0x308] sm:$0xff]  ;;  %v6616_v28 = vrot.slane %v14312_v53, 2  ;;  %v6617_v14 = vrot.slane %v14314_v19, 2 }
 0x7c6   : > { %6837 = vmatprep.mubr.f32.mxu0 %v14247_v59  ;;  %7053 = vmatmul.mubr.f32.gmra.mxu1 %v14250_v44  ;;  %v9317_v60 = vpop.f32.mrf.mxu1 }
 0x7c7   : > { %7057 = vmatprep.mubr.f32.mxu1 %v14222_v15  ;;  %6212 = vst [vmem:[#allocation2 + $0xe1] sm:$0xff] %v9317_v60  ;;  %7429 = vmatprep.subr.mxu1 %v13668_v11  ;;  %v14353_v31 = vsel %vm833_vm0, %v6504_v12, %v6505_v23  ;;  %v14365_v60 = vsel %vm946_vm1, %v6611_v18, %v6612_v49 }
 0x7c8   : > { %v6116_v30 = vpop.f32.mrf.mxu1  ;;  %7430 = vmatpush1.msra.mxu1 %v6384_v24  ;;  %v14356_v21 = vld [vmem:[#allocation2 + $0xa8] sm:$0xff]  ;;  %v14358_v32 = vld [vmem:[#allocation2 + $0xb0] sm:$0xff] }
 0x7c9   : > { %6838 = vmatmul.mubr.f32.gmra.mxu0 %v14180_v16  ;;  %6211 = vst [vmem:[#allocation2 + $0xd9] sm:$0xff] %v6116_v30  ;;  %7431 = vmatprep.subr.mxu1 %v13668_v11  ;;  %v14293_v11 = vsel %vm833_vm0, %v6495_v50, %v6497_v35  ;;  %v6507_v30 = vrot.slane %v14349_v13, 1 }
 0x7ca   : > { %7058 = vmatmul.mubr.f32.gmra.mxu1 %v14275_v0  ;;  %6842 = vmatprep.mubr.f32.mxu0 %v14263_v62  ;;  %v9320_v47 = vpop.f32.mrf.mxu1 }
 0x7cb   : > { %7062 = vmatprep.mubr.f32.mxu1 %v14224_v45  ;;  %6214 = vst [vmem:[#allocation2 + $0xf9] sm:$0xff] %v9320_v47  ;;  %7432 = vmatpush1.msra.mxu1 %v6383_v27  ;;  %v6614_v27 = vrot.slane %v14305_v63, 2  ;;  %v6509_v47 = vrot.slane %v14356_v21, 1  ;;  %v14381_v43 = vsel %vm833_vm0, %v6505_v23, %v6507_v30  ;;  %v14393_v63 = vld [vmem:[#allocation2 + $0xb8] sm:$0x3]  ;;  %v6619_v23 = vrot.slane %v14349_v13, 2 }
 0x7cc   : > { %v6126_v52 = vpop.f32.mrf.mxu1  ;;  %7433 = vmatprep.subr.mxu1 %v14288_v20  ;;  %v14402_v61 = vld [vmem:[#allocation2 + $0xc8] sm:$0xff]  ;;  %v6512_v12 = vrot.slane %v14393_v63, 1  ;;  %v6622_v30 = vrot.slane %v14358_v32, 2 }
 0x7cd   : > { %6843 = vmatmul.mubr.f32.gmra.mxu0 %v14222_v15  ;;  %6213 = vst [vmem:[#allocation2 + $0xf1] sm:$0xff] %v6126_v52  ;;  %7434 = vmatpush1.msra.mxu1 %v6382_v36  ;;  %v6510_v36 = vrot.slane %v14358_v32, 1  ;;  %v14384_v52 = vsel %vm946_vm1, %v6612_v49, %v6614_v27  ;;  %15398 = vst [vmem:[#allocation6_spill] sm:$0xff] %v14402_v61  ;;  %v6404_v27 = vld [vmem:[%s15208_s9 + $0x3d8] sm:$0xff] }
 0x7ce   : > { %6847 = vmatprep.mubr.f32.mxu0 %v14293_v11  ;;  %7063 = vmatmul.mubr.f32.gmra.mxu1 %v14296_v26  ;;  %v9323_v57 = vpop.f32.mrf.mxu1 }
 0x7cf   : > { %7067 = vmatprep.mubr.f32.mxu1 %v14266_v29  ;;  %6216 = vst [vmem:[#allocation2 + $0x111] sm:$0xff] %v9323_v57  ;;  %7435 = vmatprep.subr.mxu1 %v14288_v20 }
 0x7d0   : > { %v6136_v40 = vpop.f32.mrf.mxu1  ;;  %7436 = vmatpush1.msra.mxu1 %v6381_v48  ;;  %v6407_v48 = vld [vmem:[%s15208_s9 + $0x3f0] sm:$0xff] }
 0x7d1   : > { %6848 = vmatmul.mubr.f32.gmra.mxu0 %v14224_v45  ;;  %6215 = vst [vmem:[#allocation2 + $0x109] sm:$0xff] %v6136_v40  ;;  %7437 = vmatprep.subr.mxu1 %v14288_v20  ;;  %v14397_v40 = vsel %vm833_vm0, %v6509_v47, %v6510_v36  ;;  %v14442_v47 = vld [vmem:[#allocation2 + $0xd8] sm:$0xff] }
 0x7d2   : > { %7068 = vmatmul.mubr.f32.gmra.mxu1 %v14321_v37  ;;  %6852 = vmatprep.mubr.f32.mxu0 %v14309_v56  ;;  %v9326_v6 = vpop.f32.mrf.mxu1  ;;  %15399 = vst [vmem:[#allocation11_spill] sm:$0xff] %v14442_v47 }
 0x7d3   : > { %7072 = vmatprep.mubr.f32.mxu1 %v14268_v17  ;;  %6218 = vst [vmem:[#allocation2 + $0x129] sm:$0xff] %v9326_v6  ;;  %7438 = vmatpush1.msra.mxu1 %v6380_v55  ;;  %v14400_v55 = vld [vmem:[#allocation2 + $0xc0] sm:$0xff]  ;;  %v6406_v6 = vld [vmem:[%s15208_s9 + $0x3e8] sm:$0xff] }
 0x7d4   : > { %v6146_v58 = vpop.f32.mrf.mxu1  ;;  %7439 = vmatprep.subr.mxu1 %v14288_v20  ;;  %v6514_v49 = vrot.slane %v14400_v55, 1 }
 0x7d5   : > { %6853 = vmatmul.mubr.f32.gmra.mxu0 %v14266_v29  ;;  %6217 = vst [vmem:[#allocation2 + $0x121] sm:$0xff] %v6146_v58  ;;  %7440 = vmatpush1.msra.mxu1 %v6379_v33  ;;  %v14409_v33 = vsel %vm946_vm1, %v6616_v28, %v6617_v14  ;;  %v6405_v58 = vld [vmem:[%s15208_s9 + $0x3e0] sm:$0xff] }
 0x7d6   : > { %6857 = vmatprep.mubr.f32.mxu0 %v14337_v41  ;;  %7073 = vmatmul.mubr.f32.gmra.mxu1 %v14340_v5  ;;  %v9329_v50 = vpop.f32.mrf.mxu1 }
 0x7d7   : > { %7077 = vmatprep.mubr.f32.mxu1 %v14312_v53  ;;  %6220 = vst [vmem:[#allocation2 + $0x141] sm:$0xff] %v9329_v50  ;;  %7441 = vmatprep.subr.mxu1 %v14288_v20  ;;  %v14425_v50 = vsel %vm833_vm0, %v6510_v36, %v6512_v12  ;;  %v14444_v36 = vld [vmem:[#allocation2 + $0xe0] sm:$0xff] }
 0x7d8   : > { %v6156_v24 = vpop.f32.mrf.mxu1  ;;  %7442 = vmatpush1.msra.mxu1 %v6378_v3  ;;  %v6515_v3 = vrot.slane %v14402_v61, 1  ;;  %15400 = vst [vmem:[#allocation12_spill] sm:$0xff] %v14444_v36 }
 0x7d9   : > { %6858 = vmatmul.mubr.f32.gmra.mxu0 %v14268_v17  ;;  %6219 = vst [vmem:[#allocation2 + $0x139] sm:$0xff] %v6156_v24  ;;  %7443 = vmatprep.subr.mxu1 %v14288_v20  ;;  %v14428_v24 = vsel %vm946_vm1, %v6617_v14, %v6619_v23 }
 0x7da   : > { %7078 = vmatmul.mubr.f32.gmra.mxu1 %v14365_v60  ;;  %6862 = vmatprep.mubr.f32.mxu0 %v14353_v31  ;;  %v9332_v35 = vpop.f32.mrf.mxu1 }
 0x7db   : > { %7082 = vmatprep.mubr.f32.mxu1 %v14314_v19  ;;  %6222 = vst [vmem:[#allocation2 + $0x159] sm:$0xff] %v9332_v35  ;;  %7444 = vmatpush1.msra.mxu1 %v6377_v38  ;;  %v6621_v38 = vrot.slane %v14356_v21, 2  ;;  %v6253_v35 = vld [vmem:[#allocation2 + $0xd0] sm:$0x3] }
 0x7dc   : > { %v6166_v4 = vpop.f32.mrf.mxu1  ;;  %7445 = vmatprep.subr.mxu1 %v14288_v20  ;;  %v6517_v14 = vrot.slane %v6253_v35, 1 }
 0x7dd   : > { %6863 = vmatmul.mubr.f32.gmra.mxu0 %v14312_v53  ;;  %6221 = vst [vmem:[#allocation2 + $0x151] sm:$0xff] %v6166_v4  ;;  %7446 = vmatpush2.msra.mxu1 %v6408_v2  ;;  %v14439_v2 = vsel %vm833_vm0, %v6514_v49, %v6515_v3  ;;  %v6403_v4 = vld [vmem:[%s15208_s9 + $0x3d0] sm:$0xff]  ;;  %v14451_v28 = vsel %vm946_vm1, %v6621_v38, %v6622_v30  ;;  %v6401_v49 = vld [vmem:[%s15208_s9 + $0x3c0] sm:$0xff] }
 0x7de   : > { %6867 = vmatprep.mubr.f32.mxu0 %v14381_v43  ;;  %7083 = vmatmul.mubr.f32.gmra.mxu1 %v14384_v52  ;;  %v9335_v57 = vpop.f32.mrf.mxu1  ;;  %v14468_v12 = vsel %vm833_vm0, %v6515_v3, %v6517_v14 }
 0x7df   : > { %7087 = vmatprep.mubr.f32.mxu1 %v14356_v21  ;;  %7447 = vmatprep.subr.mxu1 %v14288_v20  ;;  %6224 = vst [vmem:[#allocation2 + $0x171] sm:$0xff] %v9335_v57  ;;  %v6402_v57 = vld [vmem:[%s15208_s9 + $0x3c8] sm:$0xff] }
 0x7e0   : > { %7448 = vmatpush2.msra.mxu1 %v6407_v48  ;;  %v6176_v51 = vpop.f32.mrf.mxu1  ;;  %v6624_v48 = vrot.slane %v14393_v63, 2  ;;  %v14464_v63 = vpop.f32.mrf.mxu0 }
 0x7e1   : > { %6868 = vmatmul.mubr.f32.gmra.mxu0 %v14314_v19  ;;  %7449 = vmatprep.subr.mxu1 %v14288_v20  ;;  %6223 = vst [vmem:[#allocation2 + $0x169] sm:$0xff] %v6176_v51  ;;  %v6519_v51 = vrot.slane %v14442_v47, 1  ;;  %15401 = vst [vmem:[#allocation5_spill] sm:$0xff] %v14464_v63 }
 0x7e2   : > { %7088 = vmatmul.mubr.f32.gmra.mxu1 %v14409_v33  ;;  %6872 = vmatprep.mubr.f32.mxu0 %v14397_v40  ;;  %v9338_v18 = vpop.f32.mrf.mxu1  ;;  %v14471_v23 = vsel %vm946_vm1, %v6622_v30, %v6624_v48  ;;  %v6806_v38 = vpop.f32.mrf.mxu0  ;;  %v14485_v30 = vld [vmem:[#allocation2 + $0xf0] sm:$0xff] }
 0x7e3   : > { %7092 = vmatprep.mubr.f32.mxu1 %v14358_v32  ;;  %7450 = vmatpush2.msra.mxu1 %v6406_v6  ;;  %6226 = vst [vmem:[#allocation2 + $0x189] sm:$0xff] %v9338_v18  ;;  %v6520_v6 = vrot.slane %v14444_v36, 1  ;;  %v6627_v18 = vrot.slane %v14402_v61, 2  ;;  %15403 = vst [vmem:[#allocation10_spill] sm:$0xff] %v14485_v30 }
 0x7e4   : > { %7451 = vmatprep.subr.mxu1 %v14288_v20  ;;  %v6186_v13 = vpop.f32.mrf.mxu1  ;;  %v14492_v14 = vpop.f32.mrf.mxu0 }
 0x7e5   : > { %6873 = vmatmul.mubr.f32.gmra.mxu0 %v14356_v21  ;;  %7452 = vmatpush2.msra.mxu1 %v6405_v58  ;;  %6225 = vst [vmem:[#allocation2 + $0x181] sm:$0xff] %v6186_v13  ;;  %v6626_v58 = vrot.slane %v14400_v55, 2  ;;  %v6256_v13 = vld [vmem:[#allocation2 + $0xe8] sm:$0x3]  ;;  %v14482_v3 = vsel %vm833_vm0, %v6519_v51, %v6520_v6  ;;  %15405 = vst [vmem:[#allocation17_spill] sm:$0xff] %v14492_v14  ;;  %v6629_v51 = vrot.slane %v6253_v35, 2 }
 0x7e6   : > { %6877 = vmatprep.mubr.f32.mxu0 %v14425_v50  ;;  %7093 = vmatmul.mubr.f32.gmra.mxu1 %v14428_v24  ;;  %15402 = vst [vmem:[#allocation13_spill] sm:$0xff] %v14482_v3  ;;  %v6811_v38 = vpop.f32.mrf.mxu0  ;;  %v6524_v14 = vrot.slane %v14485_v30, 1 }
 0x7e7   : > { %7097 = vmatprep.mubr.f32.mxu1 %v14400_v55  ;;  %7453 = vmatprep.subr.mxu1 %v14288_v20  ;;  %v14496_v48 = vsel %vm946_vm1, %v6626_v58, %v6627_v18  ;;  %v14513_v63 = vsel %vm946_vm1, %v6627_v18, %v6629_v51  ;;  %v6632_v38 = vrot.slane %v14444_v36, 2  ;;  %v14527_v18 = vld [vmem:[#allocation2 + $0x108] sm:$0xff]  ;;  %v6397_v51 = vld [vmem:[%s15208_s9 + $0x3a0] sm:$0xff] }
 0x7e8   : > { %7454 = vmatpush2.msra.mxu1 %v6404_v27  ;;  %v14487_v27 = vld [vmem:[#allocation2 + $0xf8] sm:$0xff]  ;;  %15407 = vst [vmem:[#allocation18_spill] sm:$0xff] %v14513_v63  ;;  %15409 = vst [vmem:[#allocation15_spill] sm:$0xff] %v14527_v18 }
 0x7e9   : > { %6878 = vmatmul.mubr.f32.gmra.mxu0 %v14358_v32  ;;  %7455 = vmatprep.subr.mxu1 %v14288_v20  ;;  %15404 = vst [vmem:[#allocation16_spill] sm:$0xff] %v14487_v27  ;;  %v6525_v58 = vrot.slane %v14487_v27, 1 }
 0x7ea   : > { %7098 = vmatmul.mubr.f32.gmra.mxu1 %v14451_v28  ;;  %6882 = vmatprep.mubr.f32.mxu0 %v14439_v2 }
 0x7eb   : > { %7102 = vmatprep.mubr.f32.mxu1 %v14402_v61  ;;  %7456 = vmatpush2.msra.mxu1 %v6403_v4  ;;  %v6400_v4 = vld [vmem:[%s15208_s9 + $0x3b8] sm:$0xff] }
 0x7ec   : > { %7457 = vmatprep.subr.mxu1 %v14288_v20 }
 0x7ed   : > { %6883 = vmatmul.mubr.f32.gmra.mxu0 %v14400_v55  ;;  %7458 = vmatpush2.msra.mxu1 %v6402_v57  ;;  %v6522_v57 = vrot.slane %v6256_v13, 1 }
 0x7ee   : > { %6887 = vmatprep.mubr.f32.mxu0 %v14468_v12  ;;  %7103 = vmatmul.mubr.f32.gmra.mxu1 %v14471_v23 }
 0x7ef   : > { %7107 = vmatprep.mubr.f32.mxu1 %v14442_v47  ;;  %7459 = vmatprep.subr.mxu1 %v14288_v20  ;;  %v14510_v35 = vsel %vm833_vm0, %v6520_v6, %v6522_v57  ;;  %v14524_v6 = vsel %vm833_vm0, %v6524_v14, %v6525_v58  ;;  %v14529_v57 = vld [vmem:[#allocation2 + $0x110] sm:$0xff]  ;;  %v6529_v14 = vrot.slane %v14527_v18, 1 }
 0x7f0   : > { %7460 = vmatpush2.msra.mxu1 %v6401_v49  ;;  %v6399_v49 = vld [vmem:[%s15208_s9 + $0x3b0] sm:$0xff]  ;;  %15406 = vst [vmem:[#allocation9_spill] sm:$0xff] %v14510_v35  ;;  %15408 = vst [vmem:[#allocation19_spill] sm:$0xff] %v14524_v6 }
 0x7f1   : > { %6888 = vmatmul.mubr.f32.gmra.mxu0 %v14402_v61  ;;  %7461 = vmatprep.subr.mxu1 %v14288_v20  ;;  %v6398_v61 = vld [vmem:[%s15208_s9 + $0x3a8] sm:$0xff]  ;;  %15410 = vst [vmem:[#allocation22_spill] sm:$0xff] %v14529_v57 }
 0x7f2   : > { %7108 = vmatmul.mubr.f32.gmra.mxu1 %v14496_v48  ;;  %6892 = vmatprep.mubr.f32.mxu0 %v14482_v3  ;;  %v6631_v3 = vrot.slane %v14442_v47, 2 }
 0x7f3   : > { %7112 = vmatprep.mubr.f32.mxu1 %v14444_v36  ;;  %7462 = vmatpush2.msra.mxu1 %v6400_v4  ;;  %v6259_v4 = vld [vmem:[#allocation2 + $0x100] sm:$0x3] }
 0x7f4   : > { %7463 = vmatprep.subr.mxu1 %v14288_v20 }
 0x7f5   : > { %6893 = vmatmul.mubr.f32.gmra.mxu0 %v14442_v47  ;;  %7464 = vmatpush2.msra.mxu1 %v6399_v49  ;;  %v14536_v49 = vsel %vm946_vm1, %v6631_v3, %v6632_v38  ;;  %v6634_v47 = vrot.slane %v6256_v13, 2 }
 0x7f6   : > { %6897 = vmatprep.mubr.f32.mxu0 %v14510_v35  ;;  %7113 = vmatmul.mubr.f32.gmra.mxu1 %v14513_v63  ;;  %15411 = vst [vmem:[#allocation23_spill] sm:$0xff] %v14536_v49  ;;  %v6527_v35 = vrot.slane %v6259_v4, 1  ;;  %v6395_v63 = vld [vmem:[%s15208_s9 + $0x390] sm:$0xff] }
 0x7f7   : > { %7117 = vmatprep.mubr.f32.mxu1 %v14485_v30  ;;  %7465 = vmatprep.subr.mxu1 %v14288_v20  ;;  %v14553_v3 = vsel %vm946_vm1, %v6632_v38, %v6634_v47  ;;  %v14567_v47 = vld [vmem:[#allocation2 + $0x120] sm:$0xff]  ;;  %v6394_v38 = vld [vmem:[%s15208_s9 + $0x388] sm:$0xff] }
 0x7f8   : > { %7466 = vmatpush2.msra.mxu1 %v6398_v61  ;;  %v6396_v61 = vld [vmem:[%s15208_s9 + $0x398] sm:$0xff]  ;;  %v14550_v13 = vsel %vm833_vm0, %v6525_v58, %v6527_v35  ;;  %15414 = vst [vmem:[#allocation25_spill] sm:$0xff] %v14567_v47  ;;  %v14569_v35 = vld [vmem:[#allocation2 + $0x128] sm:$0xff] }
 0x7f9   : > { %6898 = vmatmul.mubr.f32.gmra.mxu0 %v14444_v36  ;;  %7467 = vmatprep.subr.mxu1 %v14288_v20  ;;  %v6530_v36 = vrot.slane %v14529_v57, 1  ;;  %15412 = vst [vmem:[#allocation14_spill] sm:$0xff] %v14550_v13  ;;  %15415 = vst [vmem:[#allocation21_spill] sm:$0xff] %v14569_v35 }
 0x7fa   : > { %7118 = vmatmul.mubr.f32.gmra.mxu1 %v14536_v49  ;;  %6902 = vmatprep.mubr.f32.mxu0 %v14524_v6  ;;  %v6636_v6 = vrot.slane %v14485_v30, 2  ;;  %v6637_v49 = vrot.slane %v14487_v27, 2 }
 0x7fb   : > { %7122 = vmatprep.mubr.f32.mxu1 %v14487_v27  ;;  %7468 = vmatpush2.msra.mxu1 %v6397_v51  ;;  %v6262_v51 = vld [vmem:[#allocation2 + $0x118] sm:$0x3]  ;;  %v14564_v58 = vsel %vm833_vm0, %v6529_v14, %v6530_v36  ;;  %v6534_v14 = vrot.slane %v14567_v47, 1 }
 0x7fc   : > { %7469 = vmatprep.subr.mxu1 %v14288_v20  ;;  %15413 = vst [vmem:[#allocation24_spill] sm:$0xff] %v14564_v58 }
 0x7fd   : > { %6903 = vmatmul.mubr.f32.gmra.mxu0 %v14485_v30  ;;  %7470 = vmatpush2.msra.mxu1 %v6396_v61  ;;  %v14576_v61 = vsel %vm946_vm1, %v6636_v6, %v6637_v49  ;;  %v6639_v30 = vrot.slane %v6259_v4, 2 }
 0x7fe   : > { %6907 = vmatprep.mubr.f32.mxu0 %v14550_v13  ;;  %7123 = vmatmul.mubr.f32.gmra.mxu1 %v14553_v3  ;;  %15416 = vst [vmem:[#allocation28_spill] sm:$0xff] %v14576_v61  ;;  %v6532_v13 = vrot.slane %v6262_v51, 1 }
 0x7ff   : > { %7127 = vmatprep.mubr.f32.mxu1 %v14527_v18  ;;  %7471 = vmatprep.subr.mxu1 %v14288_v20  ;;  %v14593_v6 = vsel %vm946_vm1, %v6637_v49, %v6639_v30  ;;  %v14606_v30 = vld [vmem:[#allocation2 + $0x140] sm:$0xff] }
 0x800   : > { %7472 = vmatpush2.msra.mxu1 %v6395_v63  ;;  %v6393_v63 = vld [vmem:[%s15208_s9 + $0x380] sm:$0xff]  ;;  %v14590_v4 = vsel %vm833_vm0, %v6530_v36, %v6532_v13  ;;  %15418 = vst [vmem:[#allocation20_spill] sm:$0xff] %v14593_v6  ;;  %v14604_v36 = vld [vmem:[#allocation2 + $0x138] sm:$0xff]  ;;  %15421 = vst [vmem:[#allocation32_spill] sm:$0xff] %v14606_v30 }
 0x801   : > { %6908 = vmatmul.mubr.f32.gmra.mxu0 %v14487_v27  ;;  %7473 = vmatprep.subr.mxu1 %v14288_v20  ;;  %v6535_v27 = vrot.slane %v14569_v35, 1  ;;  %15417 = vst [vmem:[#allocation29_spill] sm:$0xff] %v14590_v4  ;;  %15420 = vst [vmem:[#allocation27_spill] sm:$0xff] %v14604_v36 }
 0x802   : > { %7128 = vmatmul.mubr.f32.gmra.mxu1 %v14576_v61  ;;  %6912 = vmatprep.mubr.f32.mxu0 %v14564_v58  ;;  %v6641_v58 = vrot.slane %v14527_v18, 2  ;;  %v6642_v61 = vrot.slane %v14529_v57, 2 }
 0x803   : > { %7132 = vmatprep.mubr.f32.mxu1 %v14529_v57  ;;  %7474 = vmatpush2.msra.mxu1 %v6394_v38  ;;  %v6265_v38 = vld [vmem:[#allocation2 + $0x130] sm:$0x3] }
 0x804   : > { %7475 = vmatprep.subr.mxu1 %v14288_v20  ;;  %v14601_v20 = vsel %vm833_vm0, %v6534_v14, %v6535_v27  ;;  %v14610_v49 = vsel %vm946_vm1, %v6641_v58, %v6642_v61  ;;  %v6537_v13 = vrot.slane %v6265_v38, 1  ;;  %v6539_v14 = vrot.slane %v14604_v36, 1 }
 0x805   : > { %6913 = vmatmul.mubr.f32.gmra.mxu0 %v14527_v18  ;;  %7476 = vmatpush2.msra.mxu1 %v6393_v63  ;;  %15419 = vst [vmem:[#allocation30_spill] sm:$0xff] %v14601_v20  ;;  %15422 = vst [vmem:[#allocation33_spill] sm:$0xff] %v14610_v49  ;;  %v6644_v63 = vrot.slane %v6262_v51, 2  ;;  %v6646_v51 = vrot.slane %v14567_v47, 2 }
 0x806   : > { %6917 = vmatprep.mubr.f32.mxu0 %v14590_v4  ;;  %7133 = vmatmul.mubr.f32.gmra.mxu1 %v14593_v6  ;;  %v6540_v4 = vrot.slane %v14606_v30, 1  ;;  %v14619_v18 = vsel %vm833_vm0, %v6535_v27, %v6537_v13  ;;  %v14632_v6 = vld [vmem:[#allocation2 + $0x150] sm:$0xff]  ;;  %v14634_v27 = vld [vmem:[#allocation2 + $0x158] sm:$0xff] }
 0x807   : > { %7137 = vmatprep.mubr.f32.mxu1 %v14567_v47  ;;  %9419 = vmatprep.subr.mxu1 %v14134_v1  ;;  %15423 = vst [vmem:[#allocation26_spill] sm:$0xff] %v14619_v18  ;;  %v14622_v58 = vsel %vm946_vm1, %v6642_v61, %v6644_v63  ;;  %15426 = vst [vmem:[#allocation36_spill] sm:$0xff] %v14634_v27  ;;  %v6649_v63 = vrot.slane %v6265_v38, 2  ;;  %v6651_v38 = vrot.slane %v14604_v36, 2 }
 0x808   : > { %15424 = vst [vmem:[#allocation34_spill] sm:$0xff] %v14622_v58 }
 0x809   : > { %6918 = vmatmul.mubr.f32.gmra.mxu0 %v14529_v57  ;;  %v6647_v57 = vrot.slane %v14569_v35, 2 }
 0x80a   : > { %7138 = vmatmul.mubr.f32.gmra.mxu1 %v14610_v49  ;;  %6922 = vmatprep.mubr.f32.mxu0 %v14601_v20  ;;  %v6268_v20 = vld [vmem:[#allocation2 + $0x148] sm:$0x3]  ;;  %v14630_v49 = vsel %vm833_vm0, %v6539_v14, %v6540_v4  ;;  %v6544_v14 = vrot.slane %v14632_v6, 1 }
 0x80b   : > { %7142 = vmatprep.mubr.f32.mxu1 %v14569_v35  ;;  %15425 = vst [vmem:[#allocation35_spill] sm:$0xff] %v14630_v49  ;;  %v14638_v61 = vsel %vm946_vm1, %v6646_v51, %v6647_v57  ;;  %v6542_v13 = vrot.slane %v6268_v20, 1  ;;  %v14650_v51 = vsel %vm946_vm1, %v6647_v57, %v6649_v63  ;;  %v6654_v63 = vrot.slane %v6268_v20, 2 }
 0x80c   : > { %15427 = vst [vmem:[#allocation37_spill] sm:$0xff] %v14638_v61  ;;  %v6656_v20 = vrot.slane %v14632_v6, 2 }
 0x80d   : > { %6923 = vmatmul.mubr.f32.gmra.mxu0 %v14567_v47  ;;  %v14647_v47 = vsel %vm833_vm0, %v6540_v4, %v6542_v13  ;;  %v14662_v4 = vld [vmem:[#allocation2 + $0x170] sm:$0xff] }
 0x80e   : > { %6927 = vmatprep.mubr.f32.mxu0 %v14619_v18  ;;  %7143 = vmatmul.mubr.f32.gmra.mxu1 %v14622_v58  ;;  %v6545_v18 = vrot.slane %v14634_v27, 1  ;;  %15428 = vst [vmem:[#allocation31_spill] sm:$0xff] %v14647_v47  ;;  %v14660_v58 = vld [vmem:[#allocation2 + $0x168] sm:$0xff] }
 0x80f   : > { %7147 = vmatprep.mubr.f32.mxu1 %v14604_v36 }
 0x811   : > { %6928 = vmatmul.mubr.f32.gmra.mxu0 %v14569_v35  ;;  %v6652_v35 = vrot.slane %v14606_v30, 2 }
 0x812   : > { %7148 = vmatmul.mubr.f32.gmra.mxu1 %v14638_v61  ;;  %6932 = vmatprep.mubr.f32.mxu0 %v14630_v49  ;;  %v6271_v49 = vld [vmem:[#allocation2 + $0x160] sm:$0x3]  ;;  %v14658_v61 = vsel %vm833_vm0, %v6544_v14, %v6545_v18  ;;  %v6549_v14 = vrot.slane %v14660_v58, 1 }
 0x813   : > { %7152 = vmatprep.mubr.f32.mxu1 %v14606_v30  ;;  %15429 = vst [vmem:[#allocation38_spill] sm:$0xff] %v14658_v61  ;;  %v14666_v57 = vsel %vm946_vm1, %v6651_v38, %v6652_v35  ;;  %v6547_v13 = vrot.slane %v6271_v49, 1  ;;  %v14678_v38 = vsel %vm946_vm1, %v6652_v35, %v6654_v63  ;;  %v14695_v63 = vld [vmem:[#allocation2 + $0x180] sm:$0xff] }
 0x814   : > { %15430 = vst [vmem:[#allocation7_spill] sm:$0xff] %v14666_v57 }
 0x815   : > { %6933 = vmatmul.mubr.f32.gmra.mxu0 %v14604_v36  ;;  %v14675_v36 = vsel %vm833_vm0, %v6545_v18, %v6547_v13  ;;  %v6659_v13 = vrot.slane %v6271_v49, 2  ;;  %v6662_v49 = vrot.slane %v14662_v4, 2 }
 0x816   : > { %6937 = vmatprep.mubr.f32.mxu0 %v14647_v47  ;;  %7153 = vmatmul.mubr.f32.gmra.mxu1 %v14650_v51  ;;  %v6550_v47 = vrot.slane %v14662_v4, 1 }
 0x817   : > { %7157 = vmatprep.mubr.f32.mxu1 %v14632_v6 }
 0x819   : > { %6938 = vmatmul.mubr.f32.gmra.mxu0 %v14606_v30  ;;  %v6657_v30 = vrot.slane %v14634_v27, 2 }
 0x81a   : > { %7158 = vmatmul.mubr.f32.gmra.mxu1 %v14666_v57  ;;  %6942 = vmatprep.mubr.f32.mxu0 %v14658_v61  ;;  %v6274_v61 = vld [vmem:[#allocation2 + $0x178] sm:$0x3]  ;;  %v14686_v57 = vsel %vm833_vm0, %v6549_v14, %v6550_v47 }
 0x81b   : > { %7162 = vmatprep.mubr.f32.mxu1 %v14634_v27  ;;  %15431 = vst [vmem:[#allocation8_spill] sm:$0xff] %v14686_v57  ;;  %v14690_v18 = vsel %vm946_vm1, %v6656_v20, %v6657_v30  ;;  %v6552_v35 = vrot.slane %v6274_v61, 1  ;;  %v6661_v20 = vrot.slane %v14660_v58, 2 }
 0x81d   : > { %6943 = vmatmul.mubr.f32.gmra.mxu0 %v14632_v6  ;;  %v14699_v14 = vsel %vm833_vm0, %v6550_v47, %v6552_v35  ;;  %v14713_v47 = vsel %vm946_vm1, %v6661_v20, %v6662_v49  ;;  %v6664_v35 = vrot.slane %v6274_v61, 2 }
 0x81e   : > { %6947 = vmatprep.mubr.f32.mxu0 %v14675_v36  ;;  %7163 = vmatmul.mubr.f32.gmra.mxu1 %v14678_v38 }
 0x81f   : > { %7167 = vmatprep.mubr.f32.mxu1 %v14660_v58 }
 0x821   : > { %6948 = vmatmul.mubr.f32.gmra.mxu0 %v14634_v27  ;;  %v14702_v27 = vsel %vm946_vm1, %v6657_v30, %v6659_v13  ;;  %v14720_v30 = vsel %vm946_vm1, %v6662_v49, %v6664_v35  ;;  %v6423_v13 = vld [vmem:[%s15208_s9 + $0x470] sm:$0xff]  ;;  %v15445_v35 = vld [vmem:[#allocation20_spill] sm:$0xff] }
 0x822   : > { %7168 = vmatmul.mubr.f32.gmra.mxu1 %v14690_v18  ;;  %6952 = vmatprep.mubr.f32.mxu0 %v14686_v57  ;;  %v14709_v57 = vld [vmem:[#allocation2 + $0x188] sm:$0xff] }
 0x823   : > { %7172 = vmatprep.mubr.f32.mxu1 %v14662_v4 }
 0x825   : > { %6953 = vmatmul.mubr.f32.gmra.mxu0 %v14660_v58 }
 0x826   : > { %6957 = vmatprep.mubr.f32.mxu0 %v14699_v14  ;;  %7173 = vmatmul.mubr.f32.gmra.mxu1 %v14702_v27 }
 0x827   : > { %7177 = vmatprep.mubr.f32.mxu1 %v14695_v63 }
 0x829   : > { %6958 = vmatmul.mubr.f32.gmra.mxu0 %v14662_v4 }
 0x82a   : > { %7178 = vmatmul.mubr.f32.gmra.mxu1 %v14713_v47  ;;  %7252 = vmatprep.mubr.f32.mxu0 %v14187_v22  ;;  %v6414_v22 = vld [vmem:[%s15208_s9 + $0x428] sm:$0xff] }
 0x82b   : > { %7182 = vmatprep.mubr.f32.mxu1 %v14709_v57 }
 0x82d   : > { %7253 = vmatmul.mubr.f32.vlgmr.msra.gmra.mxu0 %v14151_v8  ;;  %v6422_v8 = vld [vmem:[%s15208_s9 + $0x468] sm:$0xff] }
 0x82e   : > { %7183 = vmatmul.mubr.f32.gmra.mxu1 %v14720_v30  ;;  %7257 = vmatprep.mubr.f32.mxu0 %v14206_v34  ;;  %v6412_v34 = vld [vmem:[%s15208_s9 + $0x418] sm:$0xff] }
 0x82f   : > { %9340 = vmatpush3.msra.mxu0 %v14134_v1  ;;  %7477 = vmatprep.mubr.f32.mxu1 %v14175_v7 }
 0x830   : > { %9341 = vmatprep.subr.mxu0 %v6423_v13 }
 0x831   : > { %7258 = vmatmul.mubr.f32.gmra.mxu0 %v14163_v9  ;;  %v6421_v9 = vld [vmem:[%s15208_s9 + $0x460] sm:$0xff] }
 0x832   : > { %7262 = vmatprep.mubr.f32.mxu0 %v14231_v10  ;;  %7478 = vmatmul.mubr.f32.vlgmr.msra.gmra.mxu1 %v14156_v42  ;;  %v6419_v42 = vld [vmem:[%s15208_s9 + $0x450] sm:$0xff] }
 0x833   : > { %7482 = vmatprep.mubr.f32.mxu1 %v14203_v46  ;;  %9342 = vmatpush3.msra.mxu0 %v6423_v13 }
 0x834   : > { %9343 = vmatprep.subr.mxu0 %v6422_v8  ;;  %9435 = vmatpush3.msra.mxu1 %v14134_v1  ;;  %v6420_v1 = vld [vmem:[%s15208_s9 + $0x458] sm:$0xff] }
 0x835   : > { %7263 = vmatmul.mubr.f32.gmra.mxu0 %v14175_v7  ;;  %9420 = vmatprep.subr.mxu1 %v6423_v13  ;;  %v6417_v7 = vld [vmem:[%s15208_s9 + $0x440] sm:$0xff] }
 0x836   : > { %7267 = vmatprep.mubr.f32.mxu0 %v14250_v44  ;;  %7483 = vmatmul.mubr.f32.gmra.mxu1 %v14158_v25  ;;  %v6418_v25 = vld [vmem:[%s15208_s9 + $0x448] sm:$0xff] }
 0x837   : > { %7487 = vmatprep.mubr.f32.mxu1 %v14219_v54  ;;  %9344 = vmatpush3.msra.mxu0 %v6422_v8 }
 0x838   : > { %9345 = vmatprep.subr.mxu0 %v6421_v9  ;;  %9436 = vmatpush3.msra.mxu1 %v6423_v13  ;;  %v15446_v13 = vld [vmem:[#allocation16_spill] sm:$0xff] }
 0x839   : > { %7268 = vmatmul.mubr.f32.gmra.mxu0 %v14203_v46  ;;  %9421 = vmatprep.subr.mxu1 %v6422_v8  ;;  %v6413_v46 = vld [vmem:[%s15208_s9 + $0x420] sm:$0xff] }
 0x83a   : > { %7272 = vmatprep.mubr.f32.mxu0 %v14275_v0  ;;  %7488 = vmatmul.mubr.f32.gmra.mxu1 %v14178_v39  ;;  %v6416_v39 = vld [vmem:[%s15208_s9 + $0x438] sm:$0xff] }
 0x83b   : > { %7492 = vmatprep.mubr.f32.mxu1 %v14247_v59  ;;  %9346 = vmatpush3.msra.mxu0 %v6421_v9 }
 0x83c   : > { %9347 = vmatprep.subr.mxu0 %v6420_v1  ;;  %9437 = vmatpush3.msra.mxu1 %v6422_v8 }
 0x83d   : > { %7273 = vmatmul.mubr.f32.gmra.mxu0 %v14219_v54  ;;  %9422 = vmatprep.subr.mxu1 %v6421_v9  ;;  %v6411_v54 = vld [vmem:[%s15208_s9 + $0x410] sm:$0xff] }
 0x83e   : > { %7277 = vmatprep.mubr.f32.mxu0 %v14296_v26  ;;  %7493 = vmatmul.mubr.f32.gmra.mxu1 %v14180_v16  ;;  %v6415_v16 = vld [vmem:[%s15208_s9 + $0x430] sm:$0xff] }
 0x83f   : > { %7497 = vmatprep.mubr.f32.mxu1 %v14263_v62  ;;  %9348 = vmatpush3.msra.mxu0 %v6420_v1 }
 0x840   : > { %9349 = vmatprep.subr.mxu0 %v6419_v42  ;;  %9438 = vmatpush3.msra.mxu1 %v6421_v9 }
 0x841   : > { %7278 = vmatmul.mubr.f32.gmra.mxu0 %v14247_v59  ;;  %9423 = vmatprep.subr.mxu1 %v6420_v1  ;;  %v15432_v59 = vld [vmem:[#allocation18_spill] sm:$0xff] }
 0x842   : > { %7282 = vmatprep.mubr.f32.mxu0 %v14321_v37  ;;  %7498 = vmatmul.mubr.f32.gmra.mxu1 %v14222_v15  ;;  %v6410_v15 = vld [vmem:[%s15208_s9 + $0x408] sm:$0xff] }
 0x843   : > { %7502 = vmatprep.mubr.f32.mxu1 %v14293_v11  ;;  %9350 = vmatpush3.msra.mxu0 %v6419_v42 }
 0x844   : > { %9351 = vmatprep.subr.mxu0 %v6418_v25  ;;  %9439 = vmatpush3.msra.mxu1 %v6420_v1  ;;  %v15447_v1 = vld [vmem:[#allocation24_spill] sm:$0xff] }
 0x845   : > { %7283 = vmatmul.mubr.f32.gmra.mxu0 %v14263_v62  ;;  %9424 = vmatprep.subr.mxu1 %v6419_v42  ;;  %v15433_v62 = vld [vmem:[#allocation6_spill] sm:$0xff] }
 0x846   : > { %7287 = vmatprep.mubr.f32.mxu0 %v14340_v5  ;;  %7503 = vmatmul.mubr.f32.gmra.mxu1 %v14224_v45  ;;  %v6409_v45 = vld [vmem:[%s15208_s9 + $0x400] sm:$0xff] }
 0x847   : > { %7507 = vmatprep.mubr.f32.mxu1 %v14309_v56  ;;  %9352 = vmatpush3.msra.mxu0 %v6418_v25 }
 0x848   : > { %9353 = vmatprep.subr.mxu0 %v6417_v7  ;;  %9440 = vmatpush3.msra.mxu1 %v6419_v42 }
 0x849   : > { %7288 = vmatmul.mubr.f32.gmra.mxu0 %v14293_v11  ;;  %9425 = vmatprep.subr.mxu1 %v6418_v25  ;;  %v15436_v11 = vld [vmem:[#allocation11_spill] sm:$0xff] }
 0x84a   : > { %7292 = vmatprep.mubr.f32.mxu0 %v14365_v60  ;;  %7508 = vmatmul.mubr.f32.gmra.mxu1 %v14266_v29  ;;  %v15434_v29 = vld [vmem:[#allocation13_spill] sm:$0xff] }
 0x84b   : > { %7512 = vmatprep.mubr.f32.mxu1 %v14337_v41  ;;  %9354 = vmatpush3.msra.mxu0 %v6417_v7 }
 0x84c   : > { %9355 = vmatprep.subr.mxu0 %v6416_v39  ;;  %9441 = vmatpush3.msra.mxu1 %v6418_v25 }
 0x84d   : > { %7293 = vmatmul.mubr.f32.gmra.mxu0 %v14309_v56  ;;  %9426 = vmatprep.subr.mxu1 %v6417_v7  ;;  %v15437_v56 = vld [vmem:[#allocation9_spill] sm:$0xff] }
 0x84e   : > { %7297 = vmatprep.mubr.f32.mxu0 %v14384_v52  ;;  %7513 = vmatmul.mubr.f32.gmra.mxu1 %v14268_v17  ;;  %v15435_v17 = vld [vmem:[#allocation23_spill] sm:$0xff] }
 0x84f   : > { %7517 = vmatprep.mubr.f32.mxu1 %v14353_v31  ;;  %9356 = vmatpush3.msra.mxu0 %v6416_v39 }
 0x850   : > { %9357 = vmatprep.subr.mxu0 %v6415_v16  ;;  %9442 = vmatpush3.msra.mxu1 %v6417_v7 }
 0x851   : > { %7298 = vmatmul.mubr.f32.gmra.mxu0 %v14337_v41  ;;  %9427 = vmatprep.subr.mxu1 %v6416_v39  ;;  %v15439_v41 = vld [vmem:[#allocation19_spill] sm:$0xff] }
 0x852   : > { %7302 = vmatprep.mubr.f32.mxu0 %v14409_v33  ;;  %7518 = vmatmul.mubr.f32.gmra.mxu1 %v14312_v53  ;;  %v14836_v53 = vld [vmem:[%s15209_s10] ss:$0 sm:$0xff] }
 0x853   : > { %7522 = vmatprep.mubr.f32.mxu1 %v14381_v43  ;;  %9358 = vmatpush3.msra.mxu0 %v6415_v16 }
 0x854   : > { %9359 = vmatprep.subr.mxu0 %v6414_v22  ;;  %9443 = vmatpush3.msra.mxu1 %v6416_v39 }
 0x855   : > { %7303 = vmatmul.mubr.f32.gmra.mxu0 %v14353_v31  ;;  %9428 = vmatprep.subr.mxu1 %v6415_v16  ;;  %v15440_v31 = vld [vmem:[#allocation5_spill] sm:$0xff] }
 0x856   : > { %7307 = vmatprep.mubr.f32.mxu0 %v14428_v24  ;;  %7523 = vmatmul.mubr.f32.gmra.mxu1 %v14314_v19  ;;  %v15438_v19 = vld [vmem:[#allocation12_spill] sm:$0xff] }
 0x857   : > { %7527 = vmatprep.mubr.f32.mxu1 %v14397_v40  ;;  %9360 = vmatpush3.msra.mxu0 %v6414_v22 }
 0x858   : > { %9361 = vmatprep.subr.mxu0 %v6413_v46  ;;  %9444 = vmatpush3.msra.mxu1 %v6415_v16  ;;  %v15448_v16 = vld [vmem:[#allocation33_spill] sm:$0xff] }
 0x859   : > { %7308 = vmatmul.mubr.f32.gmra.mxu0 %v14381_v43  ;;  %9429 = vmatprep.subr.mxu1 %v6414_v22  ;;  %v15441_v43 = vld [vmem:[#allocation28_spill] sm:$0xff] }
 0x85a   : > { %7312 = vmatprep.mubr.f32.mxu0 %v14451_v28  ;;  %7528 = vmatmul.mubr.f32.gmra.mxu1 %v14356_v21  ;;  %v6805_v21 = vadd.f32 %v14836_v53, %v15440_v31  ;;  %v15453_v31 = vld [vmem:[#allocation30_spill] sm:$0xff] }
 0x85b   : > { %7532 = vmatprep.mubr.f32.mxu1 %v14425_v50  ;;  %9362 = vmatpush3.msra.mxu0 %v6413_v46 }
 0x85c   : > { %9363 = vmatprep.subr.mxu0 %v6412_v34  ;;  %9445 = vmatpush3.msra.mxu1 %v6414_v22  ;;  %v15449_v22 = vld [vmem:[#allocation15_spill] sm:$0xff] }
 0x85d   : > { %7313 = vmatmul.mubr.f32.gmra.mxu0 %v14397_v40  ;;  %9430 = vmatprep.subr.mxu1 %v6413_v46  ;;  %v15442_v40 = vld [vmem:[#allocation10_spill] sm:$0xff] }
 0x85e   : > { %7317 = vmatprep.mubr.f32.mxu0 %v14471_v23  ;;  %7533 = vmatmul.mubr.f32.gmra.mxu1 %v14358_v32 }
 0x85f   : > { %7537 = vmatprep.mubr.f32.mxu1 %v14439_v2  ;;  %9364 = vmatpush3.msra.mxu0 %v6412_v34 }
 0x860   : > { %9365 = vmatprep.subr.mxu0 %v6411_v54  ;;  %9446 = vmatpush3.msra.mxu1 %v6413_v46 }
 0x861   : > { %7318 = vmatmul.mubr.f32.gmra.mxu0 %v14425_v50  ;;  %9431 = vmatprep.subr.mxu1 %v6412_v34  ;;  %v15443_v50 = vld [vmem:[#allocation14_spill] sm:$0xff] }
 0x862   : > { %7322 = vmatprep.mubr.f32.mxu0 %v14496_v48  ;;  %7538 = vmatmul.mubr.f32.gmra.mxu1 %v14400_v55 }
 0x863   : > { %7542 = vmatprep.mubr.f32.mxu1 %v14468_v12  ;;  %9366 = vmatpush3.msra.mxu0 %v6411_v54 }
 0x864   : > { %9367 = vmatprep.subr.mxu0 %v6410_v15  ;;  %9447 = vmatpush3.msra.mxu1 %v6412_v34 }
 0x865   : > { %7323 = vmatmul.mubr.f32.gmra.mxu0 %v14439_v2  ;;  %9432 = vmatprep.subr.mxu1 %v6411_v54 }
 0x866   : > { %7327 = vmatprep.mubr.f32.mxu0 %v15432_v59  ;;  %7543 = vmatmul.mubr.f32.gmra.mxu1 %v15433_v62 }
 0x867   : > { %7547 = vmatprep.mubr.f32.mxu1 %v15434_v29  ;;  %9368 = vmatpush3.msra.mxu0 %v6410_v15 }
 0x868   : > { %9369 = vmatprep.subr.mxu0 %v6409_v45  ;;  %9448 = vmatpush3.msra.mxu1 %v6411_v54  ;;  %v15450_v54 = vld [vmem:[#allocation29_spill] sm:$0xff] }
 0x869   : > { %7328 = vmatmul.mubr.f32.gmra.mxu0 %v14468_v12  ;;  %9433 = vmatprep.subr.mxu1 %v6410_v15  ;;  %v15444_v12 = vld [vmem:[#allocation17_spill] sm:$0xff] }
 0x86a   : > { %7332 = vmatprep.mubr.f32.mxu0 %v15435_v17  ;;  %7548 = vmatmul.mubr.f32.gmra.mxu1 %v15436_v11  ;;  %v6810_v61 = vadd.f32 %v14836_v53, %v15444_v12  ;;  %v15451_v11 = vld [vmem:[#allocation34_spill] sm:$0xff]  ;;  %v15455_v12 = vld [vmem:[#allocation25_spill] sm:$0xff] }
 0x86b   : > { %7552 = vmatprep.mubr.f32.mxu1 %v15437_v56  ;;  %9370 = vmatpush3.msra.mxu0 %v6409_v45 }
 0x86c   : > { %9449 = vmatpush3.msra.mxu1 %v6410_v15 }
 0x86d   : > { %7333 = vmatmul.mubr.f32.gmra.mxu0 %v15434_v29  ;;  %9434 = vmatprep.subr.mxu1 %v6409_v45 }
 0x86e   : > { %7337 = vmatprep.mubr.f32.mxu0 %v14553_v3  ;;  %7553 = vmatmul.mubr.f32.gmra.mxu1 %v15438_v19 }
 0x86f   : > { %7557 = vmatprep.mubr.f32.mxu1 %v15439_v41  ;;  %9450 = vmatpush3.msra.mxu1 %v6409_v45 }
 0x871   : > { %7338 = vmatmul.mubr.f32.gmra.mxu0 %v15437_v56  ;;  %v15452_v56 = vld [vmem:[#allocation22_spill] sm:$0xff] }
 0x872   : > { %v7029_v32 = vpop.f32.mrf.mxu1  ;;  %7342 = vmatprep.mubr.f32.mxu0 %v15441_v43  ;;  %7558 = vmatmul.mubr.f32.gmra.mxu1 %v15442_v40 }
 0x873   : > { %v14846_v55 = vadd.f32 %v7029_v32, %v6805_v21  ;;  %7562 = vmatprep.mubr.f32.mxu1 %v15443_v50 }
 0x874   : > { %v7031_v2 = vpop.f32.mrf.mxu1 }
 0x875   : > { %v6814_v20 = vpop.f32.mrf.mxu0  ;;  %7343 = vmatmul.mubr.f32.gmra.mxu0 %v15439_v41  ;;  %v15454_v2 = vld [vmem:[#allocation37_spill] sm:$0xff] }
 0x876   : > { %v7034_v49 = vpop.f32.mrf.mxu1  ;;  %7347 = vmatprep.mubr.f32.mxu0 %v15445_v35  ;;  %7563 = vmatmul.mubr.f32.gmra.mxu1 %v15446_v13  ;;  %v6815_v25 = vadd.f32 %v14836_v53, %v6814_v20 }
 0x877   : > { %v14854_v8 = vadd.f32 %v7034_v49, %v6810_v61  ;;  %v6816_v9 = vpop.f32.mrf.mxu0  ;;  %7567 = vmatprep.mubr.f32.mxu1 %v15447_v1  ;;  %v15456_v49 = vld [vmem:[#allocation26_spill] sm:$0xff] }
 0x878   : > { %v7036_v42 = vpop.f32.mrf.mxu1 }
 0x879   : > { %v6819_v7 = vpop.f32.mrf.mxu0  ;;  %7348 = vmatmul.mubr.f32.gmra.mxu0 %v15443_v50 }
 0x87a   : > { %v7039_v39 = vpop.f32.mrf.mxu1  ;;  %7352 = vmatprep.mubr.f32.mxu0 %v15448_v16  ;;  %7568 = vmatmul.mubr.f32.gmra.mxu1 %v15449_v22  ;;  %v6820_v45 = vadd.f32 %v14836_v53, %v6819_v7  ;;  %v15458_v22 = vld [vmem:[#allocation35_spill] sm:$0xff] }
 0x87b   : > { %v14861_v46 = vadd.f32 %v7039_v39, %v6815_v25  ;;  %v6821_v34 = vpop.f32.mrf.mxu0  ;;  %7572 = vmatprep.mubr.f32.mxu1 %v15450_v54  ;;  %v15457_v25 = vld [vmem:[#allocation21_spill] sm:$0xff] }
 0x87c   : > { %v7041_v15 = vpop.f32.mrf.mxu1 }
 0x87d   : > { %v6824_v62 = vpop.f32.mrf.mxu0  ;;  %7353 = vmatmul.mubr.f32.gmra.mxu0 %v15447_v1 }
 0x87e   : > { %v7044_v29 = vpop.f32.mrf.mxu1  ;;  %7357 = vmatprep.mubr.f32.mxu0 %v15451_v11  ;;  %7573 = vmatmul.mubr.f32.gmra.mxu1 %v15452_v56  ;;  %v6825_v32 = vadd.f32 %v14836_v53, %v6824_v62  ;;  %v15459_v62 = vld [vmem:[#allocation7_spill] sm:$0xff] }
 0x87f   : > { %v14868_v19 = vadd.f32 %v7044_v29, %v6820_v45  ;;  %v6826_v41 = vpop.f32.mrf.mxu0  ;;  %7577 = vmatprep.mubr.f32.mxu1 %v15453_v31  ;;  %v15460_v29 = vld [vmem:[#allocation27_spill] sm:$0xff] }
 0x880   : > { %v7046_v21 = vpop.f32.mrf.mxu1 }
 0x881   : > { %v6829_v40 = vpop.f32.mrf.mxu0  ;;  %7358 = vmatmul.mubr.f32.gmra.mxu0 %v15450_v54 }
 0x882   : > { %v7049_v50 = vpop.f32.mrf.mxu1  ;;  %7362 = vmatprep.mubr.f32.mxu0 %v15454_v2  ;;  %7578 = vmatmul.mubr.f32.gmra.mxu1 %v15455_v12  ;;  %v6830_v9 = vadd.f32 %v14836_v53, %v6829_v40  ;;  %v15462_v12 = vld [vmem:[#allocation32_spill] sm:$0xff] }
 0x883   : > { %v14875_v61 = vadd.f32 %v7049_v50, %v6825_v32  ;;  %v6831_v20 = vpop.f32.mrf.mxu0  ;;  %7582 = vmatprep.mubr.f32.mxu1 %v15456_v49 }
 0x884   : > { %v7051_v13 = vpop.f32.mrf.mxu1 }
 0x885   : > { %v6834_v1 = vpop.f32.mrf.mxu0  ;;  %7363 = vmatmul.mubr.f32.gmra.mxu0 %v15453_v31  ;;  %v15461_v31 = vld [vmem:[#allocation31_spill] sm:$0xff]  ;;  %v15463_v13 = vld [vmem:[#allocation38_spill] sm:$0xff] }
 0x886   : > { %v7054_v42 = vpop.f32.mrf.mxu1  ;;  %7367 = vmatprep.mubr.f32.mxu0 %v14650_v51  ;;  %7583 = vmatmul.mubr.f32.gmra.mxu1 %v15457_v25  ;;  %v6835_v54 = vadd.f32 %v14836_v53, %v6834_v1 }
 0x887   : > { %v14882_v7 = vadd.f32 %v7054_v42, %v6830_v9  ;;  %v6836_v39 = vpop.f32.mrf.mxu0  ;;  %7587 = vmatprep.mubr.f32.mxu1 %v15458_v22 }
 0x888   : > { %v7056_v34 = vpop.f32.mrf.mxu1 }
 0x889   : > { %v6839_v15 = vpop.f32.mrf.mxu0  ;;  %7368 = vmatmul.mubr.f32.gmra.mxu0 %v15456_v49 }
 0x88a   : > { %v7059_v45 = vpop.f32.mrf.mxu1  ;;  %7372 = vmatprep.mubr.f32.mxu0 %v15459_v62  ;;  %7588 = vmatmul.mubr.f32.gmra.mxu1 %v15460_v29  ;;  %v6840_v32 = vadd.f32 %v14836_v53, %v6839_v15  ;;  %v15464_v29 = vld [vmem:[#allocation36_spill] sm:$0xff] }
 0x88b   : > { %v14889_v56 = vadd.f32 %v7059_v45, %v6835_v54  ;;  %v6841_v41 = vpop.f32.mrf.mxu0  ;;  %7592 = vmatprep.mubr.f32.mxu1 %v15461_v31 }
 0x88c   : > { %v7061_v21 = vpop.f32.mrf.mxu1 }
 0x88d   : > { %v6844_v40 = vpop.f32.mrf.mxu0  ;;  %7373 = vmatmul.mubr.f32.gmra.mxu0 %v15458_v22 }
 0x88e   : > { %v7064_v50 = vpop.f32.mrf.mxu1  ;;  %7377 = vmatprep.mubr.f32.mxu0 %v14678_v38  ;;  %7593 = vmatmul.mubr.f32.gmra.mxu1 %v15462_v12  ;;  %v6845_v1 = vadd.f32 %v14836_v53, %v6844_v40  ;;  %v6701_v12 = vrot.slane %v14695_v63, 1 }
 0x88f   : > { %v14896_v20 = vadd.f32 %v7064_v50, %v6840_v32  ;;  %v6846_v49 = vpop.f32.mrf.mxu0  ;;  %7597 = vmatprep.mubr.f32.mxu1 %v15463_v13 }
 0x890   : > { %v7066_v9 = vpop.f32.mrf.mxu1  ;;  %v6702_v49 = vrot.slane %v14709_v57, 1 }
 0x891   : > { %v6849_v42 = vpop.f32.mrf.mxu0  ;;  %7378 = vmatmul.mubr.f32.gmra.mxu0 %v15461_v31 }
 0x892   : > { %v7069_v25 = vpop.f32.mrf.mxu1  ;;  %7382 = vmatprep.mubr.f32.mxu0 %v14690_v18  ;;  %7598 = vmatmul.mubr.f32.gmra.mxu1 %v14632_v6  ;;  %v6850_v54 = vadd.f32 %v14836_v53, %v6849_v42  ;;  %v15465_v6 = vld [vmem:[#allocation8_spill] sm:$0xff] }
 0x893   : > { %v14903_v39 = vadd.f32 %v7069_v25, %v6845_v1  ;;  %v6851_v22 = vpop.f32.mrf.mxu0  ;;  %7602 = vmatprep.mubr.f32.mxu1 %v14675_v36  ;;  %v6277_v1 = vld [vmem:[#allocation2 + $0x190] sm:$0x3] }
 0x894   : > { %v7071_v34 = vpop.f32.mrf.mxu1 }
 0x895   : > { %v6854_v15 = vpop.f32.mrf.mxu0  ;;  %7383 = vmatmul.mubr.f32.gmra.mxu0 %v15463_v13 }
 0x896   : > { %v7074_v45 = vpop.f32.mrf.mxu1  ;;  %7387 = vmatprep.mubr.f32.mxu0 %v14702_v27  ;;  %7603 = vmatmul.mubr.f32.gmra.mxu1 %v15464_v29  ;;  %v6855_v32 = vadd.f32 %v14836_v53, %v6854_v15  ;;  %v6704_v15 = vrot.slane %v6277_v1, 1 }
 0x897   : > { %v14910_v41 = vadd.f32 %v7074_v45, %v6850_v54  ;;  %v6856_v31 = vpop.f32.mrf.mxu0  ;;  %7607 = vmatprep.mubr.f32.mxu1 %v15465_v6  ;;  %v6703_v54 = vsel %vm833_vm0, %v6701_v12, %v6702_v49 }
 0x898   : > { %v7076_v21 = vpop.f32.mrf.mxu1  ;;  %v6705_v12 = vsel %vm833_vm0, %v6702_v49, %v6704_v15 }
 0x899   : > { %v6859_v40 = vpop.f32.mrf.mxu0  ;;  %7388 = vmatmul.mubr.f32.gmra.mxu0 %v14675_v36  ;;  %v6708_v36 = vrot.slane %v14695_v63, 2  ;;  %v9608_v21 = vld [vmem:[#allocation2] sm:$0xff] }
 0x89a   : > { %v7079_v50 = vpop.f32.mrf.mxu1  ;;  %7392 = vmatprep.mubr.f32.mxu0 %v14713_v47  ;;  %7608 = vmatmul.mubr.f32.gmra.mxu1 %v14660_v58  ;;  %v6860_v25 = vadd.f32 %v14836_v53, %v6859_v40  ;;  %v6709_v58 = vrot.slane %v14709_v57, 2 }
 0x89b   : > { %v14919_v13 = vadd.f32 %v7079_v50, %v6855_v32  ;;  %v6861_v9 = vpop.f32.mrf.mxu0  ;;  %7612 = vmatprep.mubr.f32.mxu1 %v14699_v14  ;;  %v6718_v32 = vrot.slane %v9608_v21, 1 }
 0x89c   : > { %v7081_v42 = vpop.f32.mrf.mxu1  ;;  %v14934_v50 = vsel %vm946_vm1, %v6708_v36, %v6709_v58  ;;  %v6711_v9 = vrot.slane %v6277_v1, 2 }
 0x89d   : > { %v6864_v22 = vpop.f32.mrf.mxu0  ;;  %7393 = vmatmul.mubr.f32.gmra.mxu0 %v15465_v6 }
 0x89e   : > { %v7084_v34 = vpop.f32.mrf.mxu1  ;;  %7397 = vmatprep.mubr.f32.mxu0 %v14720_v30  ;;  %7613 = vmatmul.mubr.f32.gmra.mxu1 %v14662_v4  ;;  %v6865_v6 = vadd.f32 %v14836_v53, %v6864_v22  ;;  %v6280_v4 = vld [vmem:[#allocation2 + $0x1a8] sm:$0x3]  ;;  %v14943_v1 = vsel %vm946_vm1, %v6709_v58, %v6711_v9 }
 0x89f   : > { %v14929_v45 = vadd.f32 %v7084_v34, %v6860_v25  ;;  %v6866_v29 = vpop.f32.mrf.mxu0  ;;  %7617 = vmatprep.mubr.f32.mxu1 %v6703_v54 }
 0x8a0   : > { %v7086_v31 = vpop.f32.mrf.mxu1  ;;  %v6721_v29 = vrot.slane %v6280_v4, 1 }
 0x8a1   : > { %v6869_v40 = vpop.f32.mrf.mxu0  ;;  %7398 = vmatmul.mubr.f32.gmra.mxu0 %v14699_v14 }
 0x8a2   : > { %v7089_v42 = vpop.f32.mrf.mxu1  ;;  %7402 = vmatprep.mubr.f32.mxu0 %v14934_v50  ;;  %7618 = vmatmul.mubr.f32.gmra.mxu1 %v14695_v63  ;;  %v6870_v14 = vadd.f32 %v14836_v53, %v6869_v40 }
 0x8a3   : > { %v14939_v25 = vadd.f32 %v7089_v42, %v6865_v6  ;;  %v6871_v34 = vpop.f32.mrf.mxu0  ;;  %7622 = vmatprep.mubr.f32.mxu1 %v6705_v12  ;;  %v6722_v6 = vsel %vm833_vm0, %v6718_v32, %v6721_v29  ;;  %v6725_v42 = vrot.slane %v9608_v21, 2 }
 0x8a4   : > { %v7091_v22 = vpop.f32.mrf.mxu1 }
 0x8a5   : > { %v6874_v31 = vpop.f32.mrf.mxu0  ;;  %7403 = vmatmul.mubr.f32.gmra.mxu0 %v6703_v54 }
 0x8a6   : > { %v7094_v36 = vpop.f32.mrf.mxu1  ;;  %7407 = vmatprep.mubr.f32.mxu0 %v14943_v1  ;;  %7623 = vmatmul.mubr.f32.gmra.mxu1 %v14709_v57  ;;  %v6875_v40 = vadd.f32 %v14836_v53, %v6874_v31  ;;  %v6728_v57 = vrot.slane %v6280_v4, 2 }
 0x8a7   : > { %v14947_v63 = vadd.f32 %v7094_v36, %v6870_v14  ;;  %v6876_v49 = vpop.f32.mrf.mxu0  ;;  %7627 = vmatprep.mubr.f32.mxu1 %v6718_v32 }
 0x8a8   : > { %v7096_v15 = vpop.f32.mrf.mxu1 }
 0x8a9   : > { %v6879_v34 = vpop.f32.mrf.mxu0  ;;  %7408 = vmatmul.mubr.f32.gmra.mxu0 %v6705_v12 }
 0x8aa   : > { %v7099_v54 = vpop.f32.mrf.mxu1  ;;  %7628 = vmatmul.mubr.f32.gmra.mxu1 %v9608_v21  ;;  %9371 = vmatprep.mubr.f32.mxu0 %v14231_v10  ;;  %v6880_v14 = vadd.f32 %v14836_v53, %v6879_v34  ;;  %v6729_v10 = vsel %vm946_vm1, %v6725_v42, %v6728_v57 }
 0x8ab   : > { %v14952_v58 = vadd.f32 %v7099_v54, %v6875_v40  ;;  %v6881_v9 = vpop.f32.mrf.mxu0  ;;  %7632 = vmatprep.mubr.f32.mxu1 %v6722_v6 }
 0x8ac   : > { %v7101_v22 = vpop.f32.mrf.mxu1 }
 0x8ad   : > { %v6884_v36 = vpop.f32.mrf.mxu0  ;;  %9372 = vmatmul.mubr.f32.vlgmr.msra.gmra.mxu0 %v14250_v44 }
 0x8ae   : > { %v7104_v32 = vpop.f32.mrf.mxu1  ;;  %7633 = vmatmul.mubr.f32.gmra.mxu1 %v9608_v21  ;;  %9374 = vmatprep.mubr.f32.mxu0 %v14275_v0  ;;  %v6885_v4 = vadd.f32 %v14836_v53, %v6884_v36 }
 0x8af   : > { %v14957_v12 = vadd.f32 %v7104_v32, %v6880_v14  ;;  %v6886_v29 = vpop.f32.mrf.mxu0  ;;  %9416 = vmatprep.mubr.f32.mxu1 %v6725_v42 }
 0x8b0   : > { %v7106_v31 = vpop.f32.mrf.mxu1 }
 0x8b1   : > { %v6889_v49 = vpop.f32.mrf.mxu0  ;;  %9375 = vmatmul.mubr.f32.gmra.mxu0 %v14296_v26 }
 0x8b2   : > { %v7109_v15 = vpop.f32.mrf.mxu1  ;;  %9377 = vmatprep.mubr.f32.mxu0 %v14321_v37  ;;  %9417 = vmatmul.mubr.f32.vlgmr.msra.gmra.mxu1 %v6729_v10  ;;  %v6890_v6 = vadd.f32 %v14836_v53, %v6889_v49 }
 0x8b3   : > { %v14963_v44 = vadd.f32 %v7109_v15, %v6885_v4  ;;  %v6891_v21 = vpop.f32.mrf.mxu0 }
 0x8b4   : > { %v7111_v0 = vpop.f32.mrf.mxu1 }
 0x8b5   : > { %v6894_v40 = vpop.f32.mrf.mxu0  ;;  %9378 = vmatmul.mubr.f32.gmra.mxu0 %v14340_v5 }
 0x8b6   : > { %v7114_v42 = vpop.f32.mrf.mxu1  ;;  %9380 = vmatprep.mubr.f32.mxu0 %v14365_v60  ;;  %v6895_v9 = vadd.f32 %v14836_v53, %v6894_v40 }
 0x8b7   : > { %v14968_v34 = vadd.f32 %v7114_v42, %v6890_v6  ;;  %v6896_v54 = vpop.f32.mrf.mxu0 }
 0x8b8   : > { %v7116_v26 = vpop.f32.mrf.mxu1 }
 0x8b9   : > { %v6899_v37 = vpop.f32.mrf.mxu0  ;;  %9381 = vmatmul.mubr.f32.gmra.mxu0 %v14384_v52 }
 0x8ba   : > { %v7119_v57 = vpop.f32.mrf.mxu1  ;;  %9383 = vmatprep.mubr.f32.mxu0 %v14409_v33  ;;  %v6900_v5 = vadd.f32 %v14836_v53, %v6899_v37 }
 0x8bb   : > { %v14973_v22 = vadd.f32 %v7119_v57, %v6895_v9  ;;  %v6901_v14 = vpop.f32.mrf.mxu0 }
 0x8bc   : > { %v7121_v36 = vpop.f32.mrf.mxu1 }
 0x8bd   : > { %v6904_v32 = vpop.f32.mrf.mxu0  ;;  %9384 = vmatmul.mubr.f32.gmra.mxu0 %v14428_v24 }
 0x8be   : > { %v7124_v60 = vpop.f32.mrf.mxu1  ;;  %9386 = vmatprep.mubr.f32.mxu0 %v14451_v28  ;;  %v6905_v52 = vadd.f32 %v14836_v53, %v6904_v32 }
 0x8bf   : > { %v14978_v29 = vadd.f32 %v7124_v60, %v6900_v5  ;;  %v6906_v10 = vpop.f32.mrf.mxu0 }
 0x8c0   : > { %v7126_v31 = vpop.f32.mrf.mxu1 }
 0x8c1   : > { %v6909_v4 = vpop.f32.mrf.mxu0  ;;  %9387 = vmatmul.mubr.f32.gmra.mxu0 %v14471_v23 }
 0x8c2   : > { %v7129_v33 = vpop.f32.mrf.mxu1  ;;  %9389 = vmatprep.mubr.f32.mxu0 %v14496_v48  ;;  %v6910_v24 = vadd.f32 %v14836_v53, %v6909_v4 }
 0x8c3   : > { %v14983_v49 = vadd.f32 %v7129_v33, %v6905_v52  ;;  %v6911_v15 = vpop.f32.mrf.mxu0 }
 0x8c4   : > { %v7131_v21 = vpop.f32.mrf.mxu1 }
 0x8c5   : > { %v6914_v0 = vpop.f32.mrf.mxu0  ;;  %9390 = vmatmul.mubr.f32.gmra.mxu0 %v15432_v59 }
 0x8c6   : > { %v7134_v28 = vpop.f32.mrf.mxu1  ;;  %9392 = vmatprep.mubr.f32.mxu0 %v15435_v17  ;;  %v6915_v23 = vadd.f32 %v14836_v53, %v6914_v0 }
 0x8c7   : > { %v14988_v6 = vadd.f32 %v7134_v28, %v6910_v24  ;;  %v6916_v40 = vpop.f32.mrf.mxu0 }
 0x8c8   : > { %v7136_v42 = vpop.f32.mrf.mxu1 }
 0x8c9   : > { %v6919_v54 = vpop.f32.mrf.mxu0  ;;  %9393 = vmatmul.mubr.f32.gmra.mxu0 %v14553_v3 }
 0x8ca   : > { %v7139_v48 = vpop.f32.mrf.mxu1  ;;  %9395 = vmatprep.mubr.f32.mxu0 %v15441_v43  ;;  %v6920_v59 = vadd.f32 %v14836_v53, %v6919_v54 }
 0x8cb   : > { %v14993_v26 = vadd.f32 %v7139_v48, %v6915_v23  ;;  %v6921_v9 = vpop.f32.mrf.mxu0 }
 0x8cc   : > { %v7141_v37 = vpop.f32.mrf.mxu1 }
 0x8cd   : > { %v6924_v57 = vpop.f32.mrf.mxu0  ;;  %9396 = vmatmul.mubr.f32.gmra.mxu0 %v15445_v35 }
 0x8ce   : > { %v7144_v17 = vpop.f32.mrf.mxu1  ;;  %9398 = vmatprep.mubr.f32.mxu0 %v15448_v16  ;;  %v6925_v3 = vadd.f32 %v14836_v53, %v6924_v57 }
 0x8cf   : > { %v14998_v14 = vadd.f32 %v7144_v17, %v6920_v59  ;;  %v6926_v36 = vpop.f32.mrf.mxu0 }
 0x8d0   : > { %v7146_v5 = vpop.f32.mrf.mxu1 }
 0x8d1   : > { %v6929_v32 = vpop.f32.mrf.mxu0  ;;  %9399 = vmatmul.mubr.f32.gmra.mxu0 %v15451_v11 }
 0x8d2   : > { %v7149_v43 = vpop.f32.mrf.mxu1  ;;  %9401 = vmatprep.mubr.f32.mxu0 %v15454_v2  ;;  %v6930_v35 = vadd.f32 %v14836_v53, %v6929_v32 }
 0x8d3   : > { %v15003_v60 = vadd.f32 %v7149_v43, %v6925_v3  ;;  %v6931_v10 = vpop.f32.mrf.mxu0 }
 0x8d4   : > { %v7151_v31 = vpop.f32.mrf.mxu1 }
 0x8d5   : > { %v6934_v52 = vpop.f32.mrf.mxu0  ;;  %9402 = vmatmul.mubr.f32.gmra.mxu0 %v14650_v51 }
 0x8d6   : > { %v7154_v16 = vpop.f32.mrf.mxu1  ;;  %9404 = vmatprep.mubr.f32.mxu0 %v15459_v62  ;;  %v6935_v11 = vadd.f32 %v14836_v53, %v6934_v52 }
 0x8d7   : > { %v15008_v4 = vadd.f32 %v7154_v16, %v6930_v35  ;;  %v6936_v33 = vpop.f32.mrf.mxu0 }
 0x8d8   : > { %v7156_v15 = vpop.f32.mrf.mxu1 }
 0x8d9   : > { %v6939_v21 = vpop.f32.mrf.mxu0  ;;  %9405 = vmatmul.mubr.f32.gmra.mxu0 %v14678_v38 }
 0x8da   : > { %v7159_v2 = vpop.f32.mrf.mxu1  ;;  %9407 = vmatprep.mubr.f32.mxu0 %v14690_v18  ;;  %v6940_v51 = vadd.f32 %v14836_v53, %v6939_v21 }
 0x8db   : > { %v15013_v24 = vadd.f32 %v7159_v2, %v6935_v11  ;;  %v6941_v0 = vpop.f32.mrf.mxu0 }
 0x8dc   : > { %v7161_v28 = vpop.f32.mrf.mxu1 }
 0x8dd   : > { %v6944_v40 = vpop.f32.mrf.mxu0  ;;  %9408 = vmatmul.mubr.f32.gmra.mxu0 %v14702_v27 }
 0x8de   : > { %v7164_v62 = vpop.f32.mrf.mxu1  ;;  %9410 = vmatprep.mubr.f32.mxu0 %v14713_v47  ;;  %v6945_v38 = vadd.f32 %v14836_v53, %v6944_v40 }
 0x8df   : > { %v15018_v42 = vadd.f32 %v7164_v62, %v6940_v51  ;;  %v6946_v23 = vpop.f32.mrf.mxu0 }
 0x8e0   : > { %v7166_v54 = vpop.f32.mrf.mxu1 }
 0x8e1   : > { %v6949_v48 = vpop.f32.mrf.mxu0  ;;  %9411 = vmatmul.mubr.f32.gmra.mxu0 %v14720_v30 }
 0x8e2   : > { %v7169_v18 = vpop.f32.mrf.mxu1  ;;  %9413 = vmatprep.mubr.f32.mxu0 %v14934_v50  ;;  %v6950_v27 = vadd.f32 %v14836_v53, %v6949_v48 }
 0x8e3   : > { %v15023_v9 = vadd.f32 %v7169_v18, %v6945_v38  ;;  %v6951_v37 = vpop.f32.mrf.mxu0 }
 0x8e4   : > { %v7171_v59 = vpop.f32.mrf.mxu1 }
 0x8e5   : > { %v6954_v57 = vpop.f32.mrf.mxu0  ;;  %9414 = vmatmul.mubr.f32.gmra.mxu0 %v14943_v1 }
 0x8e6   : > { %v7174_v47 = vpop.f32.mrf.mxu1  ;;  %v6955_v3 = vadd.f32 %v14836_v53, %v6954_v57 }
 0x8e7   : > { %v15027_v17 = vadd.f32 %v7174_v47, %v6950_v27  ;;  %v6956_v36 = vpop.f32.mrf.mxu0 }
 0x8e8   : > { %v7176_v5 = vpop.f32.mrf.mxu1 }
 0x8e9   : > { %v6959_v30 = vpop.f32.mrf.mxu0 }
 0x8ea   : > { %v7179_v32 = vpop.f32.mrf.mxu1  ;;  %v6960_v31 = vadd.f32 %v14836_v53, %v6959_v30 }
 0x8eb   : > { %v15030_v43 = vadd.f32 %v7179_v32, %v6955_v3  ;;  %v6961_v50 = vpop.f32.mrf.mxu0 }
 0x8ec   : > { %v7181_v10 = vpop.f32.mrf.mxu1 }
 0x8ed   : > { %v7254_v35 = vpop.f32.mrf.mxu0 }
 0x8ee   : > { %v7255_v52 = vadd.f32 %v7254_v35, %v14846_v55  ;;  %v7184_v16 = vpop.f32.mrf.mxu1 }
 0x8ef   : > { %v15034_v1 = vadd.f32 %v7184_v16, %v6960_v31  ;;  %v7256_v33 = vpop.f32.mrf.mxu0 }
 0x8f0   : > { %v7186_v15 = vpop.f32.mrf.mxu1 }
 0x8f1   : > { %v7259_v11 = vpop.f32.mrf.mxu0 }
 0x8f2   : > { %v7260_v21 = vadd.f32 %v7259_v11, %v14854_v8  ;;  %v7479_v2 = vpop.f32.mrf.mxu1 }
 0x8f3   : > { %v15037_v0 = vadd.f32 %v7479_v2, %v7255_v52  ;;  %v7261_v28 = vpop.f32.mrf.mxu0 }
 0x8f4   : > { %v7481_v51 = vpop.f32.mrf.mxu1 }
 0x8f5   : > { %v7264_v40 = vpop.f32.mrf.mxu0 }
 0x8f6   : > { %v7265_v62 = vadd.f32 %v7264_v40, %v14861_v46  ;;  %v7484_v53 = vpop.f32.mrf.mxu1 }
 0x8f7   : > { %v15040_v23 = vadd.f32 %v7484_v53, %v7260_v21  ;;  %v7266_v55 = vpop.f32.mrf.mxu0 }
 0x8f8   : > { %v7486_v54 = vpop.f32.mrf.mxu1 }
 0x8f9   : > { %v7269_v38 = vpop.f32.mrf.mxu0 }
 0x8fa   : > { %v7270_v48 = vadd.f32 %v7269_v38, %v14868_v19  ;;  %v7489_v18 = vpop.f32.mrf.mxu1 }
 0x8fb   : > { %v15043_v37 = vadd.f32 %v7489_v18, %v7265_v62  ;;  %v7271_v8 = vpop.f32.mrf.mxu0 }
 0x8fc   : > { %v7491_v59 = vpop.f32.mrf.mxu1 }
 0x8fd   : > { %v7274_v27 = vpop.f32.mrf.mxu0 }
 0x8fe   : > { %v7275_v57 = vadd.f32 %v7274_v27, %v14875_v61  ;;  %v7494_v47 = vpop.f32.mrf.mxu1 }
 0x8ff   : > { %v15046_v36 = vadd.f32 %v7494_v47, %v7270_v48  ;;  %v7276_v46 = vpop.f32.mrf.mxu0 }
 0x900   : > { %v7496_v5 = vpop.f32.mrf.mxu1 }
 0x901   : > { %v7279_v3 = vpop.f32.mrf.mxu0 }
 0x902   : > { %v7280_v30 = vadd.f32 %v7279_v3, %v14882_v7  ;;  %v7499_v32 = vpop.f32.mrf.mxu1 }
 0x903   : > { %v15049_v50 = vadd.f32 %v7499_v32, %v7275_v57  ;;  %v7281_v19 = vpop.f32.mrf.mxu0 }
 0x904   : > { %v7501_v10 = vpop.f32.mrf.mxu1 }
 0x905   : > { %v7284_v31 = vpop.f32.mrf.mxu0 }
 0x906   : > { %v7285_v35 = vadd.f32 %v7284_v31, %v14889_v56  ;;  %v7504_v52 = vpop.f32.mrf.mxu1 }
 0x907   : > { %v15052_v16 = vadd.f32 %v7504_v52, %v7280_v30  ;;  %v7286_v61 = vpop.f32.mrf.mxu0 }
 0x908   : > { %v7506_v33 = vpop.f32.mrf.mxu1 }
 0x909   : > { %v7289_v15 = vpop.f32.mrf.mxu0 }
 0x90a   : > { %v7290_v11 = vadd.f32 %v7289_v15, %v14896_v20  ;;  %v7509_v21 = vpop.f32.mrf.mxu1 }
 0x90b   : > { %v15055_v2 = vadd.f32 %v7509_v21, %v7285_v35  ;;  %v7291_v7 = vpop.f32.mrf.mxu0 }
 0x90c   : > { %v7511_v28 = vpop.f32.mrf.mxu1 }
 0x90d   : > { %v7294_v51 = vpop.f32.mrf.mxu0 }
 0x90e   : > { %v7295_v40 = vadd.f32 %v7294_v51, %v14903_v39  ;;  %v7514_v62 = vpop.f32.mrf.mxu1 }
 0x90f   : > { %v15058_v53 = vadd.f32 %v7514_v62, %v7290_v11  ;;  %v7296_v56 = vpop.f32.mrf.mxu0 }
 0x910   : > { %v7516_v55 = vpop.f32.mrf.mxu1 }
 0x911   : > { %v7299_v54 = vpop.f32.mrf.mxu0 }
 0x912   : > { %v7300_v38 = vadd.f32 %v7299_v54, %v14910_v41  ;;  %v7519_v48 = vpop.f32.mrf.mxu1 }
 0x913   : > { %v15061_v18 = vadd.f32 %v7519_v48, %v7295_v40  ;;  %v7301_v20 = vpop.f32.mrf.mxu0 }
 0x914   : > { %v7521_v8 = vpop.f32.mrf.mxu1 }
 0x915   : > { %v7304_v59 = vpop.f32.mrf.mxu0 }
 0x916   : > { %v7305_v27 = vadd.f32 %v7304_v59, %v14919_v13  ;;  %v7524_v57 = vpop.f32.mrf.mxu1 }
 0x917   : > { %v15064_v47 = vadd.f32 %v7524_v57, %v7300_v38  ;;  %v7306_v39 = vpop.f32.mrf.mxu0 }
 0x918   : > { %v7526_v46 = vpop.f32.mrf.mxu1 }
 0x919   : > { %v7309_v5 = vpop.f32.mrf.mxu0 }
 0x91a   : > { %v7310_v3 = vadd.f32 %v7309_v5, %v14929_v45  ;;  %v7529_v30 = vpop.f32.mrf.mxu1 }
 0x91b   : > { %v15067_v32 = vadd.f32 %v7529_v30, %v7305_v27  ;;  %v7311_v41 = vpop.f32.mrf.mxu0 }
 0x91c   : > { %v7531_v19 = vpop.f32.mrf.mxu1 }
 0x91d   : > { %v7314_v10 = vpop.f32.mrf.mxu0 }
 0x91e   : > { %v7315_v31 = vadd.f32 %v7314_v10, %v14939_v25  ;;  %v7534_v35 = vpop.f32.mrf.mxu1 }
 0x91f   : > { %v15070_v52 = vadd.f32 %v7534_v35, %v7310_v3  ;;  %v7316_v13 = vpop.f32.mrf.mxu0 }
 0x920   : > { %v7536_v61 = vpop.f32.mrf.mxu1 }
 0x921   : > { %v7319_v33 = vpop.f32.mrf.mxu0 }
 0x922   : > { %v7320_v15 = vadd.f32 %v7319_v33, %v14947_v63  ;;  %v7539_v11 = vpop.f32.mrf.mxu1 }
 0x923   : > { %v15073_v21 = vadd.f32 %v7539_v11, %v7315_v31  ;;  %v7321_v45 = vpop.f32.mrf.mxu0 }
 0x924   : > { %v7541_v7 = vpop.f32.mrf.mxu1 }
 0x925   : > { %v7324_v28 = vpop.f32.mrf.mxu0 }
 0x926   : > { %v7325_v51 = vadd.f32 %v7324_v28, %v14952_v58  ;;  %v7544_v40 = vpop.f32.mrf.mxu1 }
 0x927   : > { %v15076_v62 = vadd.f32 %v7544_v40, %v7320_v15  ;;  %v7326_v25 = vpop.f32.mrf.mxu0 }
 0x928   : > { %v7546_v56 = vpop.f32.mrf.mxu1 }
 0x929   : > { %v7329_v55 = vpop.f32.mrf.mxu0 }
 0x92a   : > { %v7330_v54 = vadd.f32 %v7329_v55, %v14957_v12  ;;  %v7549_v38 = vpop.f32.mrf.mxu1 }
 0x92b   : > { %v15079_v48 = vadd.f32 %v7549_v38, %v7325_v51  ;;  %v7331_v63 = vpop.f32.mrf.mxu0 }
 0x92c   : > { %v7551_v20 = vpop.f32.mrf.mxu1 }
 0x92d   : > { %v7334_v8 = vpop.f32.mrf.mxu0 }
 0x92e   : > { %v7335_v59 = vadd.f32 %v7334_v8, %v14963_v44  ;;  %v7554_v27 = vpop.f32.mrf.mxu1 }
 0x92f   : > { %v15082_v57 = vadd.f32 %v7554_v27, %v7330_v54  ;;  %v7336_v58 = vpop.f32.mrf.mxu0 }
 0x930   : > { %v7556_v39 = vpop.f32.mrf.mxu1 }
 0x931   : > { %v7339_v46 = vpop.f32.mrf.mxu0 }
 0x932   : > { %v7340_v5 = vadd.f32 %v7339_v46, %v14968_v34  ;;  %v7559_v3 = vpop.f32.mrf.mxu1 }
 0x933   : > { %v15085_v30 = vadd.f32 %v7559_v3, %v7335_v59  ;;  %v7341_v12 = vpop.f32.mrf.mxu0 }
 0x934   : > { %v7561_v41 = vpop.f32.mrf.mxu1 }
 0x935   : > { %v7344_v19 = vpop.f32.mrf.mxu0 }
 0x936   : > { %v7345_v10 = vadd.f32 %v7344_v19, %v14973_v22  ;;  %v7564_v31 = vpop.f32.mrf.mxu1 }
 0x937   : > { %v15088_v35 = vadd.f32 %v7564_v31, %v7340_v5  ;;  %v7346_v44 = vpop.f32.mrf.mxu0 }
 0x938   : > { %v7566_v13 = vpop.f32.mrf.mxu1 }
 0x939   : > { %v7349_v61 = vpop.f32.mrf.mxu0 }
 0x93a   : > { %v7350_v33 = vadd.f32 %v7349_v61, %v14978_v29  ;;  %v7569_v15 = vpop.f32.mrf.mxu1 }
 0x93b   : > { %v15091_v11 = vadd.f32 %v7569_v15, %v7345_v10  ;;  %v7351_v34 = vpop.f32.mrf.mxu0 }
 0x93c   : > { %v7571_v45 = vpop.f32.mrf.mxu1 }
 0x93d   : > { %v7354_v7 = vpop.f32.mrf.mxu0 }
 0x93e   : > { %v7355_v28 = vadd.f32 %v7354_v7, %v14983_v49  ;;  %v7574_v51 = vpop.f32.mrf.mxu1 }
 0x93f   : > { %v15094_v40 = vadd.f32 %v7574_v51, %v7350_v33  ;;  %v7356_v22 = vpop.f32.mrf.mxu0 }
 0x940   : > { %v7576_v25 = vpop.f32.mrf.mxu1 }
 0x941   : > { %v7359_v56 = vpop.f32.mrf.mxu0 }
 0x942   : > { %v7360_v55 = vadd.f32 %v7359_v56, %v14988_v6  ;;  %v7579_v54 = vpop.f32.mrf.mxu1 }
 0x943   : > { %v15097_v38 = vadd.f32 %v7579_v54, %v7355_v28  ;;  %v7361_v29 = vpop.f32.mrf.mxu0 }
 0x944   : > { %v7581_v63 = vpop.f32.mrf.mxu1 }
 0x945   : > { %v7364_v20 = vpop.f32.mrf.mxu0 }
 0x946   : > { %v7365_v8 = vadd.f32 %v7364_v20, %v14993_v26  ;;  %v7584_v59 = vpop.f32.mrf.mxu1 }
 0x947   : > { %v15100_v27 = vadd.f32 %v7584_v59, %v7360_v55  ;;  %v7366_v49 = vpop.f32.mrf.mxu0 }
 0x948   : > { %v7586_v58 = vpop.f32.mrf.mxu1 }
 0x949   : > { %v7369_v39 = vpop.f32.mrf.mxu0 }
 0x94a   : > { %v7370_v46 = vadd.f32 %v7369_v39, %v14998_v14  ;;  %v7589_v5 = vpop.f32.mrf.mxu1 }
 0x94b   : > { %v15103_v3 = vadd.f32 %v7589_v5, %v7365_v8  ;;  %v7371_v6 = vpop.f32.mrf.mxu0 }
 0x94c   : > { %v7591_v12 = vpop.f32.mrf.mxu1 }
 0x94d   : > { %v7374_v41 = vpop.f32.mrf.mxu0 }
 0x94e   : > { %v7375_v19 = vadd.f32 %v7374_v41, %v15003_v60  ;;  %v7594_v10 = vpop.f32.mrf.mxu1 }
 0x94f   : > { %v15106_v31 = vadd.f32 %v7594_v10, %v7370_v46  ;;  %v7376_v26 = vpop.f32.mrf.mxu0 }
 0x950   : > { %v7596_v44 = vpop.f32.mrf.mxu1 }
 0x951   : > { %v7379_v13 = vpop.f32.mrf.mxu0 }
 0x952   : > { %v7380_v61 = vadd.f32 %v7379_v13, %v15008_v4  ;;  %v7599_v33 = vpop.f32.mrf.mxu1 }
 0x953   : > { %v15109_v15 = vadd.f32 %v7599_v33, %v7375_v19  ;;  %v7381_v14 = vpop.f32.mrf.mxu0 }
 0x954   : > { %v7601_v34 = vpop.f32.mrf.mxu1 }
 0x955   : > { %v7384_v45 = vpop.f32.mrf.mxu0 }
 0x956   : > { %v7385_v7 = vadd.f32 %v7384_v45, %v15013_v24  ;;  %v7604_v28 = vpop.f32.mrf.mxu1 }
 0x957   : > { %v15112_v51 = vadd.f32 %v7604_v28, %v7380_v61  ;;  %v7386_v60 = vpop.f32.mrf.mxu0 }
 0x958   : > { %v7606_v22 = vpop.f32.mrf.mxu1 }
 0x959   : > { %v7389_v25 = vpop.f32.mrf.mxu0 }
 0x95a   : > { %v7390_v56 = vadd.f32 %v7389_v25, %v15018_v42  ;;  %v7609_v55 = vpop.f32.mrf.mxu1 }
 0x95b   : > { %v15115_v54 = vadd.f32 %v7609_v55, %v7385_v7  ;;  %v7391_v4 = vpop.f32.mrf.mxu0 }
 0x95c   : > { %v7611_v29 = vpop.f32.mrf.mxu1 }
 0x95d   : > { %v7394_v63 = vpop.f32.mrf.mxu0 }
 0x95e   : > { %v7395_v20 = vadd.f32 %v7394_v63, %v15023_v9  ;;  %v7614_v8 = vpop.f32.mrf.mxu1 }
 0x95f   : > { %v15118_v59 = vadd.f32 %v7614_v8, %v7390_v56  ;;  %v7396_v24 = vpop.f32.mrf.mxu0 }
 0x960   : > { %v7616_v49 = vpop.f32.mrf.mxu1 }
 0x961   : > { %v7399_v58 = vpop.f32.mrf.mxu0 }
 0x962   : > { %v7400_v39 = vadd.f32 %v7399_v58, %v15027_v17  ;;  %v7619_v46 = vpop.f32.mrf.mxu1 }
 0x963   : > { %v15121_v5 = vadd.f32 %v7619_v46, %v7395_v20  ;;  %v7401_v42 = vpop.f32.mrf.mxu0 }
 0x964   : > { %v7621_v6 = vpop.f32.mrf.mxu1 }
 0x965   : > { %v7404_v12 = vpop.f32.mrf.mxu0 }
 0x966   : > { %v7624_v41 = vpop.f32.mrf.mxu1  ;;  %v7405_v22 = vadd.f32 %v7404_v12, %v15030_v43 }
 0x967   : > { %v15123_v19 = vadd.f32 %v7624_v41, %v7400_v39  ;;  %v7406_v10 = vpop.f32.mrf.mxu0 }
 0x968   : > { %v7626_v26 = vpop.f32.mrf.mxu1 }
 0x969   : > { %v7409_v9 = vpop.f32.mrf.mxu0 }
 0x96a   : > { %v7629_v44 = vpop.f32.mrf.mxu1  ;;  %v7410_v17 = vadd.f32 %v7409_v9, %v15034_v1 }
 0x96b   : > { %v7411_v13 = vpop.f32.mrf.mxu0  ;;  %v7630_v63 = vadd.f32 %v7629_v44, %v7405_v22 }
 0x96c   : > { %v7631_v61 = vpop.f32.mrf.mxu1 }
 0x96d   : > { %v9373_v33 = vpop.f32.mrf.mxu0 }
 0x96e   : > { %v7710_v14 = vadd.f32 %v9373_v33, %v15040_v23  ;;  %v7634_v34 = vpop.f32.mrf.mxu1 }
 0x96f   : > { %v7704_v45 = vpop.f32.mrf.mxu0  ;;  %v7635_v25 = vadd.f32 %v7634_v34, %v7410_v17 }
 0x970   : > { %v8209_v7 = vmul.f32 -1.442695, %v7710_v14  ;;  %v7705_v28 = vadd.f32 %v7704_v45, %v15037_v0  ;;  %v7636_v60 = vpop.f32.mrf.mxu1 }
 0x971   : > { %v9376_v56 = vpop.f32.mrf.mxu0 }
 0x972   : > { %9472 = vpow2.f32 %v8209_v7  ;;  %v8208_v55 = vmul.f32 -1.442695, %v7705_v28  ;;  %v7720_v4 = vadd.f32 %v9376_v56, %v15046_v36  ;;  %v9418_v29 = vpop.f32.mrf.mxu1 }
 0x973   : > { %v7860_v20 = vadd.f32 %v9418_v29, %v7635_v25  ;;  %v7714_v23 = vpop.f32.mrf.mxu0 }
 0x974   : > { %9474 = vpow2.f32 %v8208_v55  ;;  %v8211_v8 = vmul.f32 -1.442695, %v7720_v4  ;;  %v7715_v1 = vadd.f32 %v7714_v23, %v15043_v37  ;;  %v7854_v24 = vpop.f32.mrf.mxu1 }
 0x975   : > { %v8239_v49 = vmul.f32 -1.442695, %v7860_v20  ;;  %v7855_v0 = vadd.f32 %v7854_v24, %v7630_v63  ;;  %v9379_v58 = vpop.f32.mrf.mxu0 }
 0x976   : > { %9476 = vpow2.f32 %v8211_v8  ;;  %v8210_v43 = vmul.f32 -1.442695, %v7715_v1  ;;  %v7730_v39 = vadd.f32 %v9379_v58, %v15052_v16 }
 0x977   : > { %9478 = vpow2.f32 %v8239_v49  ;;  %v8238_v46 = vmul.f32 -1.442695, %v7855_v0  ;;  %v7724_v42 = vpop.f32.mrf.mxu0 }
 0x978   : > { %9480 = vpow2.f32 %v8210_v43  ;;  %v8213_v36 = vmul.f32 -1.442695, %v7730_v39  ;;  %v7725_v6 = vadd.f32 %v7724_v42, %v15049_v50 }
 0x979   : > { %9482 = vpow2.f32 %v8238_v46  ;;  %v9382_v12 = vpop.f32.mrf.mxu0 }
 0x97a   : > { %9484 = vpow2.f32 %v8213_v36  ;;  %v8212_v41 = vmul.f32 -1.442695, %v7725_v6  ;;  %v7740_v37 = vadd.f32 %v9382_v12, %v15058_v53 }
 0x97b   : > { %v7734_v10 = vpop.f32.mrf.mxu0 }
 0x97c   : > { %9486 = vpow2.f32 %v8212_v41  ;;  %v8215_v26 = vmul.f32 -1.442695, %v7740_v37  ;;  %v7735_v9 = vadd.f32 %v7734_v10, %v15055_v2 }
 0x97d   : > { %v9385_v44 = vpop.f32.mrf.mxu0 }
 0x97e   : > { %9488 = vpow2.f32 %v8215_v26  ;;  %v8214_v16 = vmul.f32 -1.442695, %v7735_v9  ;;  %v7750_v13 = vadd.f32 %v9385_v44, %v15064_v47 }
 0x97f   : > { %v9473_v61 = vpop.eup %9472  ;;  %v7744_v33 = vpop.f32.mrf.mxu0 }
 0x980   : > { %v7960_v14 = vadd.f32 1.0, %v9473_v61  ;;  %9490 = vpow2.f32 %v8214_v16  ;;  %v8217_v50 = vmul.f32 -1.442695, %v7750_v13  ;;  %v7745_v34 = vadd.f32 %v7744_v33, %v15061_v18 }
 0x981   : > { %v9475_v17 = vpop.eup %9474  ;;  %v9388_v45 = vpop.f32.mrf.mxu0 }
 0x982   : > { %9492 = vrcp.f32 %v7960_v14  ;;  %v7959_v53 = vadd.f32 1.0, %v9475_v17  ;;  %v8216_v7 = vmul.f32 -1.442695, %v7745_v34  ;;  %v7760_v2 = vadd.f32 %v9388_v45, %v15070_v52 }
 0x983   : > { %v9477_v28 = vpop.eup %9476  ;;  %9494 = vpow2.f32 %v8217_v50  ;;  %v7754_v60 = vpop.f32.mrf.mxu0 }
 0x984   : > { %v9479_v22 = vpop.eup %9478  ;;  %9496 = vrcp.f32 %v7959_v53  ;;  %v7962_v47 = vadd.f32 1.0, %v9477_v28  ;;  %v7755_v55 = vadd.f32 %v7754_v60, %v15067_v32  ;;  %v8219_v23 = vmul.f32 -1.442695, %v7760_v2 }
 0x985   : > { %v9481_v25 = vpop.eup %9480  ;;  %v7990_v56 = vadd.f32 1.0, %v9479_v22  ;;  %9498 = vpow2.f32 %v8216_v7  ;;  %v9391_v4 = vpop.f32.mrf.mxu0 }
 0x986   : > { %v9483_v18 = vpop.eup %9482  ;;  %9500 = vrcp.f32 %v7962_v47  ;;  %v7961_v29 = vadd.f32 1.0, %v9481_v25  ;;  %v7770_v8 = vadd.f32 %v9391_v4, %v15076_v62  ;;  %v8218_v49 = vmul.f32 -1.442695, %v7755_v55 }
 0x987   : > { %v9485_v63 = vpop.eup %9484  ;;  %9502 = vrcp.f32 %v7990_v56  ;;  %v7989_v20 = vadd.f32 1.0, %v9483_v18  ;;  %v7764_v52 = vpop.f32.mrf.mxu0 }
 0x988   : > { %9504 = vrcp.f32 %v7961_v29  ;;  %v7964_v1 = vadd.f32 1.0, %v9485_v63  ;;  %v7765_v0 = vadd.f32 %v7764_v52, %v15073_v21  ;;  %v8221_v46 = vmul.f32 -1.442695, %v7770_v8 }
 0x989   : > { %v9487_v24 = vpop.eup %9486  ;;  %9506 = vrcp.f32 %v7989_v20  ;;  %v9394_v32 = vpop.f32.mrf.mxu0 }
 0x98a   : > { %9508 = vrcp.f32 %v7964_v1  ;;  %v7963_v58 = vadd.f32 1.0, %v9487_v24  ;;  %v7780_v43 = vadd.f32 %v9394_v32, %v15082_v57  ;;  %v8220_v21 = vmul.f32 -1.442695, %v7765_v0 }
 0x98b   : > { %v9489_v39 = vpop.eup %9488  ;;  %9510 = vpow2.f32 %v8219_v23  ;;  %v7774_v42 = vpop.f32.mrf.mxu0 }
 0x98c   : > { %9512 = vrcp.f32 %v7963_v58  ;;  %v7966_v62 = vadd.f32 1.0, %v9489_v39  ;;  %v7775_v36 = vadd.f32 %v7774_v42, %v15079_v48  ;;  %v8223_v41 = vmul.f32 -1.442695, %v7780_v43 }
 0x98d   : > { %v9491_v6 = vpop.eup %9490  ;;  %9514 = vpow2.f32 %v8218_v49  ;;  %v9397_v12 = vpop.f32.mrf.mxu0 }
 0x98e   : > { %9516 = vrcp.f32 %v7966_v62  ;;  %v7965_v57 = vadd.f32 1.0, %v9491_v6  ;;  %v7790_v37 = vadd.f32 %v9397_v12, %v15088_v35  ;;  %v8222_v9 = vmul.f32 -1.442695, %v7775_v36 }
 0x98f   : > { %v9493_v10 = vpop.eup %9492  ;;  %9518 = vpow2.f32 %v8221_v46  ;;  %v7784_v48 = vpop.f32.mrf.mxu0 }
 0x990   : > { %v9495_v26 = vpop.eup %9494  ;;  %8056 = vst [vmem:[%s15148_s27 + $0x8] sm:$0xff] %v9493_v10  ;;  %9520 = vrcp.f32 %v7965_v57  ;;  %v7785_v44 = vadd.f32 %v7784_v48, %v15085_v30  ;;  %v8225_v14 = vmul.f32 -1.442695, %v7790_v37 }
 0x991   : > { %v9497_v16 = vpop.eup %9496  ;;  %v7968_v13 = vadd.f32 1.0, %v9495_v26  ;;  %9522 = vpow2.f32 %v8220_v21  ;;  %v9400_v61 = vpop.f32.mrf.mxu0 }
 0x992   : > { %v9499_v33 = vpop.eup %9498  ;;  %8055 = vst [vmem:[%s15148_s27] sm:$0xff] %v9497_v16  ;;  %9524 = vpow2.f32 %v8223_v41  ;;  %v7800_v35 = vadd.f32 %v9400_v61, %v15094_v40  ;;  %v8224_v17 = vmul.f32 -1.442695, %v7785_v44 }
 0x993   : > { %v9501_v50 = vpop.eup %9500  ;;  %9526 = vrcp.f32 %v7968_v13  ;;  %v7967_v34 = vadd.f32 1.0, %v9499_v33  ;;  %v7794_v45 = vpop.f32.mrf.mxu0 }
 0x994   : > { %v9503_v30 = vpop.eup %9502  ;;  %8058 = vst [vmem:[%s15148_s27 + $0x18] sm:$0xff] %v9501_v50  ;;  %9528 = vpow2.f32 %v8222_v9  ;;  %v8227_v53 = vmul.f32 -1.442695, %v7800_v35  ;;  %v7795_v7 = vadd.f32 %v7794_v45, %v15091_v11 }
 0x995   : > { %v9505_v28 = vpop.eup %9504  ;;  %8086 = vst [vmem:[%s15148_s27 + $0xf8] sm:$0xff] %v9503_v30  ;;  %9530 = vrcp.f32 %v7967_v34  ;;  %v9403_v2 = vpop.f32.mrf.mxu0 }
 0x996   : > { %v9507_v60 = vpop.eup %9506  ;;  %8057 = vst [vmem:[%s15148_s27 + $0x10] sm:$0xff] %v9505_v28  ;;  %9532 = vpow2.f32 %v8225_v14  ;;  %v8226_v40 = vmul.f32 -1.442695, %v7795_v7  ;;  %v7810_v22 = vadd.f32 %v9403_v2, %v15100_v27 }
 0x997   : > { %v9509_v47 = vpop.eup %9508  ;;  %8085 = vst [vmem:[%s15148_s27 + $0xf0] sm:$0xff] %v9507_v60  ;;  %9534 = vpow2.f32 %v8224_v17  ;;  %v7804_v25 = vpop.f32.mrf.mxu0 }
 0x998   : > { %v9511_v56 = vpop.eup %9510  ;;  %8060 = vst [vmem:[%s15148_s27 + $0x28] sm:$0xff] %v9509_v47  ;;  %9536 = vpow2.f32 %v8227_v53  ;;  %v8229_v55 = vmul.f32 -1.442695, %v7810_v22  ;;  %v7805_v11 = vadd.f32 %v7804_v25, %v15097_v38 }
 0x999   : > { %v9513_v4 = vpop.eup %9512  ;;  %v7970_v18 = vadd.f32 1.0, %v9511_v56  ;;  %9538 = vpow2.f32 %v8226_v40  ;;  %v9406_v29 = vpop.f32.mrf.mxu0 }
 0x99a   : > { %v9515_v63 = vpop.eup %9514  ;;  %8059 = vst [vmem:[%s15148_s27 + $0x20] sm:$0xff] %v9513_v4  ;;  %9540 = vpow2.f32 %v8229_v55  ;;  %v8228_v20 = vmul.f32 -1.442695, %v7805_v11  ;;  %v7820_v27 = vadd.f32 %v9406_v29, %v15106_v31 }
 0x99b   : > { %v9517_v23 = vpop.eup %9516  ;;  %9542 = vrcp.f32 %v7970_v18  ;;  %v7969_v8 = vadd.f32 1.0, %v9515_v63  ;;  %v7814_v52 = vpop.f32.mrf.mxu0 }
 0x99c   : > { %v9519_v1 = vpop.eup %9518  ;;  %8062 = vst [vmem:[%s15148_s27 + $0x38] sm:$0xff] %v9517_v23  ;;  %9544 = vpow2.f32 %v8228_v20  ;;  %v8231_v24 = vmul.f32 -1.442695, %v7820_v27  ;;  %v7815_v38 = vadd.f32 %v7814_v52, %v15103_v3 }
 0x99d   : > { %v9521_v49 = vpop.eup %9520  ;;  %9546 = vrcp.f32 %v7969_v8  ;;  %v7972_v0 = vadd.f32 1.0, %v9519_v1  ;;  %v9409_v32 = vpop.f32.mrf.mxu0 }
 0x99e   : > { %v9523_v58 = vpop.eup %9522  ;;  %8061 = vst [vmem:[%s15148_s27 + $0x30] sm:$0xff] %v9521_v49  ;;  %9548 = vpow2.f32 %v8231_v24  ;;  %v8230_v43 = vmul.f32 -1.442695, %v7815_v38  ;;  %v7830_v31 = vadd.f32 %v9409_v32, %v15112_v51 }
 0x99f   : > { %v9525_v39 = vpop.eup %9524  ;;  %9550 = vrcp.f32 %v7972_v0  ;;  %v7971_v46 = vadd.f32 1.0, %v9523_v58  ;;  %v7824_v42 = vpop.f32.mrf.mxu0 }
 0x9a0   : > { %v9527_v62 = vpop.eup %9526  ;;  %v7974_v36 = vadd.f32 1.0, %v9525_v39  ;;  %9552 = vpow2.f32 %v8230_v43  ;;  %v8233_v3 = vmul.f32 -1.442695, %v7830_v31  ;;  %v7825_v6 = vadd.f32 %v7824_v42, %v15109_v15 }
 0x9a1   : > { %v9529_v21 = vpop.eup %9528  ;;  %8064 = vst [vmem:[%s15148_s27 + $0x48] sm:$0xff] %v9527_v62  ;;  %9554 = vrcp.f32 %v7971_v46  ;;  %v9412_v12 = vpop.f32.mrf.mxu0 }
 0x9a2   : > { %v9531_v57 = vpop.eup %9530  ;;  %9556 = vrcp.f32 %v7974_v36  ;;  %v7973_v41 = vadd.f32 1.0, %v9529_v21  ;;  %v8232_v37 = vmul.f32 -1.442695, %v7825_v6  ;;  %v7840_v10 = vadd.f32 %v9412_v12, %v15118_v59 }
 0x9a3   : > { %v9533_v51 = vpop.eup %9532  ;;  %8063 = vst [vmem:[%s15148_s27 + $0x40] sm:$0xff] %v9531_v57  ;;  %9558 = vpow2.f32 %v8233_v3  ;;  %v7834_v48 = vpop.f32.mrf.mxu0 }
 0x9a4   : > { %v9535_v26 = vpop.eup %9534  ;;  %9560 = vrcp.f32 %v7973_v41  ;;  %v7976_v9 = vadd.f32 1.0, %v9533_v51  ;;  %v7835_v15 = vadd.f32 %v7834_v48, %v15115_v54  ;;  %v8235_v50 = vmul.f32 -1.442695, %v7840_v10 }
 0x9a5   : > { %v9537_v44 = vpop.eup %9536  ;;  %v7975_v16 = vadd.f32 1.0, %v9535_v26  ;;  %9562 = vpow2.f32 %v8232_v37  ;;  %v9415_v13 = vpop.f32.mrf.mxu0 }
 0x9a6   : > { %v9539_v61 = vpop.eup %9538  ;;  %9564 = vrcp.f32 %v7976_v9  ;;  %v7978_v33 = vadd.f32 1.0, %v9537_v44  ;;  %v7850_v59 = vadd.f32 %v9415_v13, %v15123_v19  ;;  %v8234_v54 = vmul.f32 -1.442695, %v7835_v15 }
 0x9a7   : > { %v9541_v14 = vpop.eup %9540  ;;  %9566 = vrcp.f32 %v7975_v16  ;;  %v7977_v35 = vadd.f32 1.0, %v9539_v61  ;;  %v7844_v34 = vpop.f32.mrf.mxu0 }
 0x9a8   : > { %v9543_v17 = vpop.eup %9542  ;;  %9568 = vrcp.f32 %v7978_v33  ;;  %v7980_v45 = vadd.f32 1.0, %v9541_v14  ;;  %v7845_v53 = vadd.f32 %v7844_v34, %v15121_v5  ;;  %v8237_v19 = vmul.f32 -1.442695, %v7850_v59 }
 0x9a9   : > { %v9545_v30 = vpop.eup %9544  ;;  %8066 = vst [vmem:[%s15148_s27 + $0x58] sm:$0xff] %v9543_v17  ;;  %9570 = vrcp.f32 %v7977_v35 }
 0x9aa   : > { %v9547_v7 = vpop.eup %9546  ;;  %9572 = vrcp.f32 %v7980_v45  ;;  %v7979_v28 = vadd.f32 1.0, %v9545_v30  ;;  %v8236_v47 = vmul.f32 -1.442695, %v7845_v53 }
 0x9ab   : > { %v9549_v2 = vpop.eup %9548  ;;  %8065 = vst [vmem:[%s15148_s27 + $0x50] sm:$0xff] %v9547_v7  ;;  %9574 = vpow2.f32 %v8235_v50 }
 0x9ac   : > { %v9551_v60 = vpop.eup %9550  ;;  %9576 = vrcp.f32 %v7979_v28  ;;  %v7982_v40 = vadd.f32 1.0, %v9549_v2 }
 0x9ad   : > { %v9553_v22 = vpop.eup %9552  ;;  %8068 = vst [vmem:[%s15148_s27 + $0x68] sm:$0xff] %v9551_v60  ;;  %9578 = vpow2.f32 %v8234_v54 }
 0x9ae   : > { %v9555_v25 = vpop.eup %9554  ;;  %9580 = vrcp.f32 %v7982_v40  ;;  %v7981_v5 = vadd.f32 1.0, %v9553_v22 }
 0x9af   : > { %v9557_v56 = vpop.eup %9556  ;;  %8067 = vst [vmem:[%s15148_s27 + $0x60] sm:$0xff] %v9555_v25  ;;  %9582 = vpow2.f32 %v8237_v19 }
 0x9b0   : > { %v9559_v55 = vpop.eup %9558  ;;  %8070 = vst [vmem:[%s15148_s27 + $0x78] sm:$0xff] %v9557_v56  ;;  %9584 = vrcp.f32 %v7981_v5 }
 0x9b1   : > { %v9561_v11 = vpop.eup %9560  ;;  %v7984_v4 = vadd.f32 1.0, %v9559_v55  ;;  %9586 = vpow2.f32 %v8236_v47 }
 0x9b2   : > { %v9563_v18 = vpop.eup %9562  ;;  %8069 = vst [vmem:[%s15148_s27 + $0x70] sm:$0xff] %v9561_v11 }
 0x9b3   : > { %v9565_v29 = vpop.eup %9564  ;;  %9588 = vrcp.f32 %v7984_v4  ;;  %v7983_v63 = vadd.f32 1.0, %v9563_v18 }
 0x9b4   : > { %v9567_v20 = vpop.eup %9566  ;;  %8072 = vst [vmem:[%s15148_s27 + $0x88] sm:$0xff] %v9565_v29 }
 0x9b5   : > { %v9569_v27 = vpop.eup %9568  ;;  %8071 = vst [vmem:[%s15148_s27 + $0x80] sm:$0xff] %v9567_v20  ;;  %9590 = vrcp.f32 %v7983_v63 }
 0x9b6   : > { %v9571_v23 = vpop.eup %9570  ;;  %8074 = vst [vmem:[%s15148_s27 + $0x98] sm:$0xff] %v9569_v27 }
 0x9b7   : > { %v9573_v8 = vpop.eup %9572  ;;  %8073 = vst [vmem:[%s15148_s27 + $0x90] sm:$0xff] %v9571_v23 }
 0x9b8   : > { %v9575_v52 = vpop.eup %9574  ;;  %8076 = vst [vmem:[%s15148_s27 + $0xa8] sm:$0xff] %v9573_v8 }
 0x9b9   : > { %v9577_v1 = vpop.eup %9576  ;;  %v7986_v24 = vadd.f32 1.0, %v9575_v52 }
 0x9ba   : > { %v9579_v38 = vpop.eup %9578  ;;  %8075 = vst [vmem:[%s15148_s27 + $0xa0] sm:$0xff] %v9577_v1 }
 0x9bb   : > { %v9581_v49 = vpop.eup %9580  ;;  %9592 = vrcp.f32 %v7986_v24  ;;  %v7985_v0 = vadd.f32 1.0, %v9579_v38 }
 0x9bc   : > { %v9583_v32 = vpop.eup %9582  ;;  %8078 = vst [vmem:[%s15148_s27 + $0xb8] sm:$0xff] %v9581_v49 }
 0x9bd   : > { %v9585_v58 = vpop.eup %9584  ;;  %9594 = vrcp.f32 %v7985_v0  ;;  %v7988_v43 = vadd.f32 1.0, %v9583_v32 }
 0x9be   : > { %v9587_v31 = vpop.eup %9586  ;;  %8077 = vst [vmem:[%s15148_s27 + $0xb0] sm:$0xff] %v9585_v58 }
 0x9bf   : > { %9596 = vrcp.f32 %v7988_v43  ;;  %v7987_v39 = vadd.f32 1.0, %v9587_v31 }
 0x9c0   : > { %v9589_v46 = vpop.eup %9588 }
 0x9c1   : > { %8080 = vst [vmem:[%s15148_s27 + $0xc8] sm:$0xff] %v9589_v46  ;;  %9598 = vrcp.f32 %v7987_v39 }
 0x9c2   : > { %v9591_v42 = vpop.eup %9590 }
 0x9c3   : > { %8079 = vst [vmem:[%s15148_s27 + $0xc0] sm:$0xff] %v9591_v42 }
 0x9c8   : > { %v9593_v62 = vpop.eup %9592 }
 0x9c9   : > { %8082 = vst [vmem:[%s15148_s27 + $0xd8] sm:$0xff] %v9593_v62 }
 0x9ca   : > { %v9595_v36 = vpop.eup %9594 }
 0x9cb   : > { %8081 = vst [vmem:[%s15148_s27 + $0xd0] sm:$0xff] %v9595_v36 }
 0x9cc   : > { %v9597_v3 = vpop.eup %9596 }
 0x9cd   : > { %8084 = vst [vmem:[%s15148_s27 + $0xe8] sm:$0xff] %v9597_v3 }
 0x9ce   : > { %v9599_v6 = vpop.eup %9598 }
 0x9cf   : > { %8083 = vst [vmem:[%s15148_s27 + $0xe0] sm:$0xff] %v9599_v6 }
 0x9d0 PF: > { %s23_s25 = sadd.s32 1, %s9615_s25  }
 0x9d1   : > { %p20_p4 = scmp.ge.s32.totalorder %s23_s25, 4  }
 0x9d3   :  { %22 = sbr.rel (!%p20_p4) target bundleno = 1 (0x1), region = 105 }

</bundles_post_ra>
